<compile_context>
chip_gen: v6e
topology: v6e:2x2x1
jax: 0.10.0
libtpu: 0.0.40
codegen_flags: <defaults>
</compile_context>

<pallas_src>
import jax
import jax.numpy as jnp
from jax import lax
from jax.experimental import pallas as pl
from jax.experimental.pallas import tpu as pltpu

C, H, W = 3, 32, 32
NLAYERS = 16
ALPHA = 0.01          # nn.LeakyReLU default negative_slope
HIDDEN = 1000
HIDDEN_PAD = 1024     # lane-aligned hidden size (zero padded)
NCLASS = 10
B_TILE = 4            # 4 images * 32 cols = 128 lanes (exact vreg fill)
LANES = B_TILE * W
TN = 256              # hidden-block width streamed through the FC head


def _lrelu(v):
    return jnp.where(v >= 0, v, ALPHA * v)


# ---------------------------------------------------------------------------
# Kernel 1: 16-block residual conv chain (lane-packed images, roll+mask conv)
# ---------------------------------------------------------------------------
def conv_chain_kernel(wc_ref, shift_ref, mask_ref, x_ref, o_ref,
                      act_ref, cum_ref):
    # wc_ref:    SMEM f32 (16*3*3*9,)  conv weights, BN scale folded,
    #                                   flattened as [l][co][ci][ky*3+kx]
    # shift_ref: SMEM f32 (16*3,)      folded BN shift  [l][c]
    # mask_ref:  VMEM f32 (9, H, LANES) combined 0/1 boundary mask per tap
    # x_ref:     VMEM f32 (G_TILE, C, H, LANES)  packed images
    # o_ref:     VMEM f32 (G_TILE, C, H, LANES)
    # act_ref:   VMEM f32 (C, H, LANES) scratch: lrelu(cur)
    # cum_ref:   VMEM f32 (C, H, LANES) scratch: cum_feat
    g_tile = x_ref.shape[0]

    @pl.loop(0, g_tile)
    def _group(gi):
        # Per-group state lives in VMEM scratch (ld/st slots have slack; the
        # kernel is VALU-bound), not in vregs across the whole layer loop.
        for c in range(C):
            xc = x_ref[gi, c]
            cum_ref[c] = xc
            act_ref[c] = _lrelu(xc)

        @pl.loop(0, NLAYERS)
        def _layer(l):
            # Accumulators seeded with residual + folded BN shift
            # (no zeros-init, no separate BN / residual epilogue).
            accs = [cum_ref[co] + shift_ref[l * C + co] for co in range(C)]

            for ky in range(3):
                sy = 1 - ky                              # row shift for tap
                v = []
                for ci in range(C):
                    p = act_ref[ci]
                    if sy != 0:
                        p = pltpu.roll(p, sy % H, axis=0)
                    v.append(p)
                for kx in range(3):
                    sx = 1 - kx                          # lane (col) shift
                    if sx != 0:
                        u = [pltpu.roll(p, sx % LANES, axis=1) for p in v]
                    else:
                        u = v
                    is_center = (ky == 1 and kx == 1)
                    if not is_center:
                        m = mask_ref[ky * 3 + kx]        # combined row*col mask
                    for co in range(C):
                        w_base = (l * C + co) * C * 9 + ky * 3 + kx
                        s = (wc_ref[w_base] * u[0]
                             + wc_ref[w_base + 9] * u[1]
                             + wc_ref[w_base + 18] * u[2])
                        if is_center:
                            accs[co] = accs[co] + s
                        else:
                            accs[co] = accs[co] + s * m  # one mask mul per (tap, co)

            # End-of-block updates: cum <- (cum + out)/2, act <- lrelu(out).
            for c in range(C):
                out_c = accs[c]
                cum_ref[c] = (cum_ref[c] + out_c) * 0.5
                act_ref[c] = _lrelu(out_c)

            # Raw block-16 output is what feeds the FC head.
            @pl.when(l == NLAYERS - 1)
            def _():
                for c in range(C):
                    o_ref[gi, c] = accs[c]


# ---------------------------------------------------------------------------
# Kernel 2: FC head streamed over HIDDEN blocks + log_softmax over dim=0
# ---------------------------------------------------------------------------
def head_kernel(x_ref, w1_ref, b1_ref, w2_ref, b2_ref, o_ref, acc_ref):
    j = pl.program_id(0)

    @pl.when(j == 0)
    def _():
        acc_ref[...] = jnp.zeros_like(acc_ref)

    h = _lrelu(x_ref[...]).astype(jnp.bfloat16)               # (N, 3072)
    h1 = jnp.dot(h, w1_ref[...],
                 preferred_element_type=jnp.float32) + b1_ref[...]
    h1 = _lrelu(h1)                                           # (N, TN)
    acc_ref[...] += jnp.dot(h1, w2_ref[...],
                            preferred_element_type=jnp.float32)

    @pl.when(j == pl.num_programs(0) - 1)
    def _():
        logits = acc_ref[...] + b2_ref[...]
        # F.log_softmax(out, dim=0): normalize over the BATCH axis.
        m = jnp.max(logits, axis=0, keepdims=True)
        lse = m + jnp.log(jnp.sum(jnp.exp(logits - m), axis=0, keepdims=True))
        o_ref[...] = logits - lse


# ---------------------------------------------------------------------------
# One-time parameter preparation (kept OUT of the per-forward jit path)
# ---------------------------------------------------------------------------
def _build_tap_masks():
    row = jnp.arange(H, dtype=jnp.int32)[:, None]
    col = (jnp.arange(LANES, dtype=jnp.int32) % W)[None, :]
    masks = []
    for ky in range(3):
        for kx in range(3):
            m = jnp.ones((H, LANES), jnp.float32)
            if ky == 0:
                m = m * (row != 0)           # tap needs y-1
            elif ky == 2:
                m = m * (row != H - 1)       # tap needs y+1
            if kx == 0:
                m = m * (col != 0)           # tap needs x-1
            elif kx == 2:
                m = m * (col != W - 1)       # tap needs x+1
            masks.append(m)
    return jnp.stack(masks).astype(jnp.float32)      # (9, H, LANES)


def prepare_params(conv_w, bn_scale, bn_shift, w1, b1, w2, b2):
    """Persistent model-state prep: fold BN, pad+cast head weights, masks."""
    wc = conv_w * bn_scale[:, :, None, None, None]            # (16,3,3,3,3)
    wc_flat = wc.reshape(-1).astype(jnp.float32)
    shift_flat = bn_shift.reshape(-1).astype(jnp.float32)
    masks = _build_tap_masks()
    w1p = (jnp.zeros((C * H * W, HIDDEN_PAD), jnp.float32)
              .at[:, :HIDDEN].set(w1).astype(jnp.bfloat16))
    b1p = jnp.zeros((1, HIDDEN_PAD), jnp.float32).at[0, :HIDDEN].set(b1)
    w2p = jnp.zeros((HIDDEN_PAD, NCLASS), jnp.float32).at[:HIDDEN, :].set(w2)
    b2p = b2.reshape(1, NCLASS).astype(jnp.float32)
    return wc_flat, shift_flat, masks, w1p, b1p, w2p, b2p


def _choose_g_tile(g):
    # Bigger blocks amortize the ~0.35us per-grid-step overhead, but keep
    # >= 2 grid steps when possible so both v7x TensorCores get work.
    for t in (8, 4, 2):
        if g % t == 0 and g // t >= 2:
            return t
    return 1


# ---------------------------------------------------------------------------
# Forward wrapper
# ---------------------------------------------------------------------------
@jax.jit
def reinforce_net_forward(x, wc_flat, shift_flat, masks, w1p, b1p, w2p, b2p):
    n = x.shape[0]

    # Pad batch to a multiple of B_TILE and lane-pack images: (g, C, H, B*W).
    n_pad = ((n + B_TILE - 1) // B_TILE) * B_TILE
    xp = jnp.zeros((n_pad, C, H, W), jnp.float32).at[:n].set(x)
    g = n_pad // B_TILE
    packed = (xp.reshape(g, B_TILE, C, H, W)
                .transpose(0, 2, 3, 1, 4)
                .reshape(g, C, H, LANES))

    g_tile = _choose_g_tile(g)

    conv_out = pl.pallas_call(
        conv_chain_kernel,
        out_shape=jax.ShapeDtypeStruct((g, C, H, LANES), jnp.float32),
        grid=(g // g_tile,),
        in_specs=[
            pl.BlockSpec(memory_space=pltpu.MemorySpace.SMEM),   # conv weights
            pl.BlockSpec(memory_space=pltpu.MemorySpace.SMEM),   # bn shifts
            pl.BlockSpec((9, H, LANES), lambda i: (0, 0, 0)),    # tap masks
            pl.BlockSpec((g_tile, C, H, LANES), lambda i: (i, 0, 0, 0)),
        ],
        out_specs=pl.BlockSpec((g_tile, C, H, LANES), lambda i: (i, 0, 0, 0)),
        scratch_shapes=[pltpu.VMEM((C, H, LANES), jnp.float32),   # lrelu(cur)
                        pltpu.VMEM((C, H, LANES), jnp.float32)],  # cum_feat
        compiler_params=pltpu.CompilerParams(
            dimension_semantics=("parallel",)),
    )(wc_flat, shift_flat, masks, packed)

    # Unpack back to NCHW, drop batch padding, flatten (== view(-1, 3*32*32)).
    feat_maps = (conv_out.reshape(g, C, H, B_TILE, W)
                         .transpose(0, 3, 1, 2, 4)
                         .reshape(n_pad, C, H, W))[:n]
    feat = feat_maps.reshape(n, C * H * W)

    head = pl.pallas_call(
        head_kernel,
        out_shape=jax.ShapeDtypeStruct((n, NCLASS), jnp.float32),
        grid=(HIDDEN_PAD // TN,),
        in_specs=[
            pl.BlockSpec((n, C * H * W), lambda j: (0, 0)),      # resident
            pl.BlockSpec((C * H * W, TN), lambda j: (0, j)),     # w1 col block
            pl.BlockSpec((1, TN), lambda j: (0, j)),             # b1 block
            pl.BlockSpec((TN, NCLASS), lambda j: (j, 0)),        # w2 row block
            pl.BlockSpec((1, NCLASS), lambda j: (0, 0)),         # b2
        ],
        out_specs=pl.BlockSpec((n, NCLASS), lambda j: (0, 0)),
        scratch_shapes=[pltpu.VMEM((n, NCLASS), jnp.float32)],   # logits acc
        compiler_params=pltpu.CompilerParams(
            dimension_semantics=("arbitrary",)),
    )
    return head(feat, w1p, b1p, w2p, b2p)


# ---------------------------------------------------------------------------
# Pure-JAX reference (for a sanity check)
# ---------------------------------------------------------------------------
def reference_forward(x, conv_w, bn_scale, bn_shift, w1, b1, w2, b2):
    cur = x
    cum = x
    for l in range(NLAYERS):
        h = _lrelu(cur)
        y = lax.conv_general_dilated(
            h, conv_w[l], window_strides=(1, 1), padding=((1, 1), (1, 1)),
            dimension_numbers=("NCHW", "OIHW", "NCHW"))
        y = y * bn_scale[l][None, :, None, None] + bn_shift[l][None, :, None, None]
        out = y + cum
        cum = (cum + out) / 2
        cur = out
    feat = cur.reshape(-1, C * H * W)
    h = _lrelu(feat)
    h1 = _lrelu(h @ w1 + b1)
    logits = h1 @ w2 + b2
    return jax.nn.log_softmax(logits, axis=0)


if __name__ == "__main__":
    key = jax.random.PRNGKey(0)
    ks = jax.random.split(key, 10)

    N = 6  # exercises the pad-to-multiple-of-4 path
    x = jax.random.normal(ks[0], (N, C, H, W), jnp.float32)

    # Deterministic synthetic parameters (shapes from the module __init__).
    conv_w = 0.05 * jax.random.normal(ks[1], (NLAYERS, C, C, 3, 3), jnp.float32)
    gamma = 1.0 + 0.1 * jax.random.normal(ks[2], (NLAYERS, C), jnp.float32)
    beta = 0.1 * jax.random.normal(ks[3], (NLAYERS, C), jnp.float32)
    run_mean = 0.1 * jax.random.normal(ks[4], (NLAYERS, C), jnp.float32)
    run_var = 1.0 + 0.1 * jnp.abs(jax.random.normal(ks[5], (NLAYERS, C), jnp.float32))
    eps = 1e-5
    bn_scale = gamma / jnp.sqrt(run_var + eps)          # (16, 3)
    bn_shift = beta - run_mean * bn_scale               # (16, 3)

    w1 = 0.02 * jax.random.normal(ks[6], (C * H * W, HIDDEN), jnp.float32)
    b1 = 0.02 * jax.random.normal(ks[7], (HIDDEN,), jnp.float32)
    w2 = 0.02 * jax.random.normal(ks[8], (HIDDEN, NCLASS), jnp.float32)
    b2 = 0.02 * jax.random.normal(ks[9], (NCLASS,), jnp.float32)

    # One-time model-state prep (outside the per-forward jit path).
    prepared = prepare_params(conv_w, bn_scale, bn_shift, w1, b1, w2, b2)
    prepared = jax.block_until_ready(prepared)

    out = reinforce_net_forward(x, *prepared)
    out = jax.block_until_ready(out)

    ref = reference_forward(x, conv_w, bn_scale, bn_shift, w1, b1, w2, b2)
    assert out.shape == (N, NCLASS)
    # Slightly loosened tolerance: fc1 runs in bf16 (f32 accumulation).
    assert jnp.allclose(out, ref, atol=2e-2, rtol=2e-2), (
        f"max abs diff {jnp.max(jnp.abs(out - ref))}")

    print("KERNEL_OK")
</pallas_src>

<mosaic_0001>
module attributes {stable_mosaic.version = 11 : i64} {
  func.func @conv_chain_kernel(%arg0: i32, %arg1: memref<1296xf32, #tpu.memory_space<smem>>, %arg2: memref<48xf32, #tpu.memory_space<smem>>, %arg3: memref<9x32x128xf32, #tpu.memory_space<vmem>>, %arg4: memref<1x3x32x128xf32, #tpu.memory_space<vmem>>, %arg5: memref<1x3x32x128xf32, #tpu.memory_space<vmem>>, %arg6: memref<3x32x128xf32, #tpu.memory_space<vmem>>, %arg7: memref<3x32x128xf32, #tpu.memory_space<vmem>>) attributes {dimension_semantics = [#tpu.dimension_semantics<parallel>], iteration_bounds = array<i64: 2>, scalar_prefetch = 0 : i64, scratch_operands = 2 : i64, tpu.core_type = #tpu.core_type<tc>, window_params = [{transform_indices = @transform_0, window_bounds = array<i64: 1296>}, {transform_indices = @transform_1, window_bounds = array<i64: 48>}, {pipeline_mode = #tpu.pipeline_mode<synchronous>, transform_indices = @transform_2, window_bounds = array<i64: 9, 32, 128>}, {transform_indices = @transform_3, window_bounds = array<i64: 1, 3, 32, 128>}, {transform_indices = @transform_4, window_bounds = array<i64: 1, 3, 32, 128>}]} {
    %c0_i32 = arith.constant 0 : i32
    %c1_i32 = arith.constant 1 : i32
    %0 = arith.muli %c0_i32, %c1_i32 : i32
    %c0_i32_0 = arith.constant 0 : i32
    %1 = arith.addi %c0_i32_0, %0 : i32
    %2 = arith.index_cast %1 : i32 to index
    %c0 = arith.constant 0 : index
    %c0_1 = arith.constant 0 : index
    %c0_2 = arith.constant 0 : index
    %3 = vector.load %arg4[%2, %c0, %c0_1, %c0_2] : memref<1x3x32x128xf32, #tpu.memory_space<vmem>>, vector<1x1x32x128xf32>
    %4 = vector.shape_cast %3 : vector<1x1x32x128xf32> to vector<32x128xf32>
    %c0_3 = arith.constant 0 : index
    %c0_4 = arith.constant 0 : index
    %c0_5 = arith.constant 0 : index
    %5 = vector.load %arg7[%c0_3, %c0_4, %c0_5] : memref<3x32x128xf32, #tpu.memory_space<vmem>>, vector<1x32x128xf32>
    %6 = vector.shape_cast %5 : vector<1x32x128xf32> to vector<32x128xf32>
    %7 = vector.shape_cast %4 : vector<32x128xf32> to vector<1x32x128xf32>
    tpu.vector_store %arg7[%c0_3, %c0_4, %c0_5], %7 {strides = array<i32>} : memref<3x32x128xf32, #tpu.memory_space<vmem>>, vector<1x32x128xf32>,
    %cst = arith.constant 0.000000e+00 : f32
    %8 = vector.broadcast %cst : f32 to vector<32x128xf32>
    %9 = arith.cmpf oge, %4, %8 : vector<32x128xf32>
    %cst_6 = arith.constant 0.00999999977 : f32
    %10 = vector.broadcast %cst_6 : f32 to vector<32x128xf32>
    %11 = arith.mulf %10, %4 : vector<32x128xf32>
    %12 = arith.select %9, %4, %11 : vector<32x128xi1>, vector<32x128xf32>
    %c0_7 = arith.constant 0 : index
    %c0_8 = arith.constant 0 : index
    %c0_9 = arith.constant 0 : index
    %13 = vector.load %arg6[%c0_7, %c0_8, %c0_9] : memref<3x32x128xf32, #tpu.memory_space<vmem>>, vector<1x32x128xf32>
    %14 = vector.shape_cast %13 : vector<1x32x128xf32> to vector<32x128xf32>
    %15 = vector.shape_cast %12 : vector<32x128xf32> to vector<1x32x128xf32>
    tpu.vector_store %arg6[%c0_7, %c0_8, %c0_9], %15 {strides = array<i32>} : memref<3x32x128xf32, #tpu.memory_space<vmem>>, vector<1x32x128xf32>,
    %16 = arith.index_cast %1 : i32 to index
    %c1 = arith.constant 1 : index
    %c0_10 = arith.constant 0 : index
    %c0_11 = arith.constant 0 : index
    %17 = vector.load %arg4[%16, %c1, %c0_10, %c0_11] : memref<1x3x32x128xf32, #tpu.memory_space<vmem>>, vector<1x1x32x128xf32>
    %18 = vector.shape_cast %17 : vector<1x1x32x128xf32> to vector<32x128xf32>
    %c1_12 = arith.constant 1 : index
    %c0_13 = arith.constant 0 : index
    %c0_14 = arith.constant 0 : index
    %19 = vector.load %arg7[%c1_12, %c0_13, %c0_14] : memref<3x32x128xf32, #tpu.memory_space<vmem>>, vector<1x32x128xf32>
    %20 = vector.shape_cast %19 : vector<1x32x128xf32> to vector<32x128xf32>
    %21 = vector.shape_cast %18 : vector<32x128xf32> to vector<1x32x128xf32>
    tpu.vector_store %arg7[%c1_12, %c0_13, %c0_14], %21 {strides = array<i32>} : memref<3x32x128xf32, #tpu.memory_space<vmem>>, vector<1x32x128xf32>,
    %cst_15 = arith.constant 0.000000e+00 : f32
    %22 = vector.broadcast %cst_15 : f32 to vector<32x128xf32>
    %23 = arith.cmpf oge, %18, %22 : vector<32x128xf32>
    %cst_16 = arith.constant 0.00999999977 : f32
    %24 = vector.broadcast %cst_16 : f32 to vector<32x128xf32>
    %25 = arith.mulf %24, %18 : vector<32x128xf32>
    %26 = arith.select %23, %18, %25 : vector<32x128xi1>, vector<32x128xf32>
    %c1_17 = arith.constant 1 : index
    %c0_18 = arith.constant 0 : index
    %c0_19 = arith.constant 0 : index
    %27 = vector.load %arg6[%c1_17, %c0_18, %c0_19] : memref<3x32x128xf32, #tpu.memory_space<vmem>>, vector<1x32x128xf32>
    %28 = vector.shape_cast %27 : vector<1x32x128xf32> to vector<32x128xf32>
    %29 = vector.shape_cast %26 : vector<32x128xf32> to vector<1x32x128xf32>
    tpu.vector_store %arg6[%c1_17, %c0_18, %c0_19], %29 {strides = array<i32>} : memref<3x32x128xf32, #tpu.memory_space<vmem>>, vector<1x32x128xf32>,
    %30 = arith.index_cast %1 : i32 to index
    %c2 = arith.constant 2 : index
    %c0_20 = arith.constant 0 : index
    %c0_21 = arith.constant 0 : index
    %31 = vector.load %arg4[%30, %c2, %c0_20, %c0_21] : memref<1x3x32x128xf32, #tpu.memory_space<vmem>>, vector<1x1x32x128xf32>
    %32 = vector.shape_cast %31 : vector<1x1x32x128xf32> to vector<32x128xf32>
    %c2_22 = arith.constant 2 : index
    %c0_23 = arith.constant 0 : index
    %c0_24 = arith.constant 0 : index
    %33 = vector.load %arg7[%c2_22, %c0_23, %c0_24] : memref<3x32x128xf32, #tpu.memory_space<vmem>>, vector<1x32x128xf32>
    %34 = vector.shape_cast %33 : vector<1x32x128xf32> to vector<32x128xf32>
    %35 = vector.shape_cast %32 : vector<32x128xf32> to vector<1x32x128xf32>
    tpu.vector_store %arg7[%c2_22, %c0_23, %c0_24], %35 {strides = array<i32>} : memref<3x32x128xf32, #tpu.memory_space<vmem>>, vector<1x32x128xf32>,
    %cst_25 = arith.constant 0.000000e+00 : f32
    %36 = vector.broadcast %cst_25 : f32 to vector<32x128xf32>
    %37 = arith.cmpf oge, %32, %36 : vector<32x128xf32>
    %cst_26 = arith.constant 0.00999999977 : f32
    %38 = vector.broadcast %cst_26 : f32 to vector<32x128xf32>
    %39 = arith.mulf %38, %32 : vector<32x128xf32>
    %40 = arith.select %37, %32, %39 : vector<32x128xi1>, vector<32x128xf32>
    %c2_27 = arith.constant 2 : index
    %c0_28 = arith.constant 0 : index
    %c0_29 = arith.constant 0 : index
    %41 = vector.load %arg6[%c2_27, %c0_28, %c0_29] : memref<3x32x128xf32, #tpu.memory_space<vmem>>, vector<1x32x128xf32>
    %42 = vector.shape_cast %41 : vector<1x32x128xf32> to vector<32x128xf32>
    %43 = vector.shape_cast %40 : vector<32x128xf32> to vector<1x32x128xf32>
    tpu.vector_store %arg6[%c2_27, %c0_28, %c0_29], %43 {strides = array<i32>} : memref<3x32x128xf32, #tpu.memory_space<vmem>>, vector<1x32x128xf32>,
    %c0_i32_30 = arith.constant 0 : i32
    %c16_i32 = arith.constant 16 : i32
    %44 = arith.addi %c0_i32_30, %c16_i32 : i32
    %c1_i32_31 = arith.constant 1 : i32
    scf.for %arg8 = %c0_i32_30 to %44 step %c1_i32_31  : i32 {
      %c1_i32_34 = arith.constant 1 : i32
      %45 = arith.muli %arg8, %c1_i32_34 : i32
      %c0_i32_35 = arith.constant 0 : i32
      %46 = arith.addi %c0_i32_35, %45 : i32
      %c0_36 = arith.constant 0 : index
      %c0_37 = arith.constant 0 : index
      %c0_38 = arith.constant 0 : index
      %47 = vector.load %arg7[%c0_36, %c0_37, %c0_38] : memref<3x32x128xf32, #tpu.memory_space<vmem>>, vector<1x32x128xf32>
      %48 = vector.shape_cast %47 : vector<1x32x128xf32> to vector<32x128xf32>
      %c3_i32 = arith.constant 3 : i32
      %49 = arith.muli %46, %c3_i32 : i32
      %c0_i32_39 = arith.constant 0 : i32
      %50 = arith.addi %49, %c0_i32_39 : i32
      %51 = arith.index_cast %50 : i32 to index
      %52 = memref.load %arg2[%51] : memref<48xf32, #tpu.memory_space<smem>>
      %53 = vector.broadcast %52 : f32 to vector<32x128xf32>
      %54 = arith.addf %48, %53 : vector<32x128xf32>
      %c1_40 = arith.constant 1 : index
      %c0_41 = arith.constant 0 : index
      %c0_42 = arith.constant 0 : index
      %55 = vector.load %arg7[%c1_40, %c0_41, %c0_42] : memref<3x32x128xf32, #tpu.memory_space<vmem>>, vector<1x32x128xf32>
      %56 = vector.shape_cast %55 : vector<1x32x128xf32> to vector<32x128xf32>
      %c3_i32_43 = arith.constant 3 : i32
      %57 = arith.muli %46, %c3_i32_43 : i32
      %c1_i32_44 = arith.constant 1 : i32
      %58 = arith.addi %57, %c1_i32_44 : i32
      %59 = arith.index_cast %58 : i32 to index
      %60 = memref.load %arg2[%59] : memref<48xf32, #tpu.memory_space<smem>>
      %61 = vector.broadcast %60 : f32 to vector<32x128xf32>
      %62 = arith.addf %56, %61 : vector<32x128xf32>
      %c2_45 = arith.constant 2 : index
      %c0_46 = arith.constant 0 : index
      %c0_47 = arith.constant 0 : index
      %63 = vector.load %arg7[%c2_45, %c0_46, %c0_47] : memref<3x32x128xf32, #tpu.memory_space<vmem>>, vector<1x32x128xf32>
      %64 = vector.shape_cast %63 : vector<1x32x128xf32> to vector<32x128xf32>
      %c3_i32_48 = arith.constant 3 : i32
      %65 = arith.muli %46, %c3_i32_48 : i32
      %c2_i32 = arith.constant 2 : i32
      %66 = arith.addi %65, %c2_i32 : i32
      %67 = arith.index_cast %66 : i32 to index
      %68 = memref.load %arg2[%67] : memref<48xf32, #tpu.memory_space<smem>>
      %69 = vector.broadcast %68 : f32 to vector<32x128xf32>
      %70 = arith.addf %64, %69 : vector<32x128xf32>
      %c0_49 = arith.constant 0 : index
      %c0_50 = arith.constant 0 : index
      %c0_51 = arith.constant 0 : index
      %71 = vector.load %arg6[%c0_49, %c0_50, %c0_51] : memref<3x32x128xf32, #tpu.memory_space<vmem>>, vector<1x32x128xf32>
      %72 = vector.shape_cast %71 : vector<1x32x128xf32> to vector<32x128xf32>
      %c1_i32_52 = arith.constant 1 : i32
      %73 = tpu.dynamic_rotate %72 by %c1_i32_52 dim 0 : vector<32x128xf32>, i32 -> vector<32x128xf32>
      %c1_53 = arith.constant 1 : index
      %c0_54 = arith.constant 0 : index
      %c0_55 = arith.constant 0 : index
      %74 = vector.load %arg6[%c1_53, %c0_54, %c0_55] : memref<3x32x128xf32, #tpu.memory_space<vmem>>, vector<1x32x128xf32>
      %75 = vector.shape_cast %74 : vector<1x32x128xf32> to vector<32x128xf32>
      %c1_i32_56 = arith.constant 1 : i32
      %76 = tpu.dynamic_rotate %75 by %c1_i32_56 dim 0 : vector<32x128xf32>, i32 -> vector<32x128xf32>
      %c2_57 = arith.constant 2 : index
      %c0_58 = arith.constant 0 : index
      %c0_59 = arith.constant 0 : index
      %77 = vector.load %arg6[%c2_57, %c0_58, %c0_59] : memref<3x32x128xf32, #tpu.memory_space<vmem>>, vector<1x32x128xf32>
      %78 = vector.shape_cast %77 : vector<1x32x128xf32> to vector<32x128xf32>
      %c1_i32_60 = arith.constant 1 : i32
      %79 = tpu.dynamic_rotate %78 by %c1_i32_60 dim 0 : vector<32x128xf32>, i32 -> vector<32x128xf32>
      %c1_i32_61 = arith.constant 1 : i32
      %80 = tpu.dynamic_rotate %73 by %c1_i32_61 dim 1 : vector<32x128xf32>, i32 -> vector<32x128xf32>
      %c1_i32_62 = arith.constant 1 : i32
      %81 = tpu.dynamic_rotate %76 by %c1_i32_62 dim 1 : vector<32x128xf32>, i32 -> vector<32x128xf32>
      %c1_i32_63 = arith.constant 1 : i32
      %82 = tpu.dynamic_rotate %79 by %c1_i32_63 dim 1 : vector<32x128xf32>, i32 -> vector<32x128xf32>
      %c0_64 = arith.constant 0 : index
      %c0_65 = arith.constant 0 : index
      %c0_66 = arith.constant 0 : index
      %83 = vector.load %arg3[%c0_64, %c0_65, %c0_66] : memref<9x32x128xf32, #tpu.memory_space<vmem>>, vector<1x32x128xf32>
      %84 = vector.shape_cast %83 : vector<1x32x128xf32> to vector<32x128xf32>
      %c3_i32_67 = arith.constant 3 : i32
      %85 = arith.muli %46, %c3_i32_67 : i32
      %c0_i32_68 = arith.constant 0 : i32
      %86 = arith.addi %85, %c0_i32_68 : i32
      %c3_i32_69 = arith.constant 3 : i32
      %87 = arith.muli %86, %c3_i32_69 : i32
      %c9_i32 = arith.constant 9 : i32
      %88 = arith.muli %87, %c9_i32 : i32
      %c0_i32_70 = arith.constant 0 : i32
      %89 = arith.addi %88, %c0_i32_70 : i32
      %c0_i32_71 = arith.constant 0 : i32
      %90 = arith.addi %89, %c0_i32_71 : i32
      %91 = arith.index_cast %90 : i32 to index
      %92 = memref.load %arg1[%91] : memref<1296xf32, #tpu.memory_space<smem>>
      %93 = vector.broadcast %92 : f32 to vector<32x128xf32>
      %94 = arith.mulf %93, %80 : vector<32x128xf32>
      %c9_i32_72 = arith.constant 9 : i32
      %95 = arith.addi %90, %c9_i32_72 : i32
      %96 = arith.index_cast %95 : i32 to index
      %97 = memref.load %arg1[%96] : memref<1296xf32, #tpu.memory_space<smem>>
      %98 = vector.broadcast %97 : f32 to vector<32x128xf32>
      %99 = arith.mulf %98, %81 : vector<32x128xf32>
      %100 = arith.addf %94, %99 : vector<32x128xf32>
      %c18_i32 = arith.constant 18 : i32
      %101 = arith.addi %90, %c18_i32 : i32
      %102 = arith.index_cast %101 : i32 to index
      %103 = memref.load %arg1[%102] : memref<1296xf32, #tpu.memory_space<smem>>
      %104 = vector.broadcast %103 : f32 to vector<32x128xf32>
      %105 = arith.mulf %104, %82 : vector<32x128xf32>
      %106 = arith.addf %100, %105 : vector<32x128xf32>
      %107 = arith.mulf %106, %84 : vector<32x128xf32>
      %108 = arith.addf %54, %107 : vector<32x128xf32>
      %c3_i32_73 = arith.constant 3 : i32
      %109 = arith.muli %46, %c3_i32_73 : i32
      %c1_i32_74 = arith.constant 1 : i32
      %110 = arith.addi %109, %c1_i32_74 : i32
      %c3_i32_75 = arith.constant 3 : i32
      %111 = arith.muli %110, %c3_i32_75 : i32
      %c9_i32_76 = arith.constant 9 : i32
      %112 = arith.muli %111, %c9_i32_76 : i32
      %c0_i32_77 = arith.constant 0 : i32
      %113 = arith.addi %112, %c0_i32_77 : i32
      %c0_i32_78 = arith.constant 0 : i32
      %114 = arith.addi %113, %c0_i32_78 : i32
      %115 = arith.index_cast %114 : i32 to index
      %116 = memref.load %arg1[%115] : memref<1296xf32, #tpu.memory_space<smem>>
      %117 = vector.broadcast %116 : f32 to vector<32x128xf32>
      %118 = arith.mulf %117, %80 : vector<32x128xf32>
      %c9_i32_79 = arith.constant 9 : i32
      %119 = arith.addi %114, %c9_i32_79 : i32
      %120 = arith.index_cast %119 : i32 to index
      %121 = memref.load %arg1[%120] : memref<1296xf32, #tpu.memory_space<smem>>
      %122 = vector.broadcast %121 : f32 to vector<32x128xf32>
      %123 = arith.mulf %122, %81 : vector<32x128xf32>
      %124 = arith.addf %118, %123 : vector<32x128xf32>
      %c18_i32_80 = arith.constant 18 : i32
      %125 = arith.addi %114, %c18_i32_80 : i32
      %126 = arith.index_cast %125 : i32 to index
      %127 = memref.load %arg1[%126] : memref<1296xf32, #tpu.memory_space<smem>>
      %128 = vector.broadcast %127 : f32 to vector<32x128xf32>
      %129 = arith.mulf %128, %82 : vector<32x128xf32>
      %130 = arith.addf %124, %129 : vector<32x128xf32>
      %131 = arith.mulf %130, %84 : vector<32x128xf32>
      %132 = arith.addf %62, %131 : vector<32x128xf32>
      %c3_i32_81 = arith.constant 3 : i32
      %133 = arith.muli %46, %c3_i32_81 : i32
      %c2_i32_82 = arith.constant 2 : i32
      %134 = arith.addi %133, %c2_i32_82 : i32
      %c3_i32_83 = arith.constant 3 : i32
      %135 = arith.muli %134, %c3_i32_83 : i32
      %c9_i32_84 = arith.constant 9 : i32
      %136 = arith.muli %135, %c9_i32_84 : i32
      %c0_i32_85 = arith.constant 0 : i32
      %137 = arith.addi %136, %c0_i32_85 : i32
      %c0_i32_86 = arith.constant 0 : i32
      %138 = arith.addi %137, %c0_i32_86 : i32
      %139 = arith.index_cast %138 : i32 to index
      %140 = memref.load %arg1[%139] : memref<1296xf32, #tpu.memory_space<smem>>
      %141 = vector.broadcast %140 : f32 to vector<32x128xf32>
      %142 = arith.mulf %141, %80 : vector<32x128xf32>
      %c9_i32_87 = arith.constant 9 : i32
      %143 = arith.addi %138, %c9_i32_87 : i32
      %144 = arith.index_cast %143 : i32 to index
      %145 = memref.load %arg1[%144] : memref<1296xf32, #tpu.memory_space<smem>>
      %146 = vector.broadcast %145 : f32 to vector<32x128xf32>
      %147 = arith.mulf %146, %81 : vector<32x128xf32>
      %148 = arith.addf %142, %147 : vector<32x128xf32>
      %c18_i32_88 = arith.constant 18 : i32
      %149 = arith.addi %138, %c18_i32_88 : i32
      %150 = arith.index_cast %149 : i32 to index
      %151 = memref.load %arg1[%150] : memref<1296xf32, #tpu.memory_space<smem>>
      %152 = vector.broadcast %151 : f32 to vector<32x128xf32>
      %153 = arith.mulf %152, %82 : vector<32x128xf32>
      %154 = arith.addf %148, %153 : vector<32x128xf32>
      %155 = arith.mulf %154, %84 : vector<32x128xf32>
      %156 = arith.addf %70, %155 : vector<32x128xf32>
      %c1_89 = arith.constant 1 : index
      %c0_90 = arith.constant 0 : index
      %c0_91 = arith.constant 0 : index
      %157 = vector.load %arg3[%c1_89, %c0_90, %c0_91] : memref<9x32x128xf32, #tpu.memory_space<vmem>>, vector<1x32x128xf32>
      %158 = vector.shape_cast %157 : vector<1x32x128xf32> to vector<32x128xf32>
      %c3_i32_92 = arith.constant 3 : i32
      %159 = arith.muli %46, %c3_i32_92 : i32
      %c0_i32_93 = arith.constant 0 : i32
      %160 = arith.addi %159, %c0_i32_93 : i32
      %c3_i32_94 = arith.constant 3 : i32
      %161 = arith.muli %160, %c3_i32_94 : i32
      %c9_i32_95 = arith.constant 9 : i32
      %162 = arith.muli %161, %c9_i32_95 : i32
      %c0_i32_96 = arith.constant 0 : i32
      %163 = arith.addi %162, %c0_i32_96 : i32
      %c1_i32_97 = arith.constant 1 : i32
      %164 = arith.addi %163, %c1_i32_97 : i32
      %165 = arith.index_cast %164 : i32 to index
      %166 = memref.load %arg1[%165] : memref<1296xf32, #tpu.memory_space<smem>>
      %167 = vector.broadcast %166 : f32 to vector<32x128xf32>
      %168 = arith.mulf %167, %73 : vector<32x128xf32>
      %c9_i32_98 = arith.constant 9 : i32
      %169 = arith.addi %164, %c9_i32_98 : i32
      %170 = arith.index_cast %169 : i32 to index
      %171 = memref.load %arg1[%170] : memref<1296xf32, #tpu.memory_space<smem>>
      %172 = vector.broadcast %171 : f32 to vector<32x128xf32>
      %173 = arith.mulf %172, %76 : vector<32x128xf32>
      %174 = arith.addf %168, %173 : vector<32x128xf32>
      %c18_i32_99 = arith.constant 18 : i32
      %175 = arith.addi %164, %c18_i32_99 : i32
      %176 = arith.index_cast %175 : i32 to index
      %177 = memref.load %arg1[%176] : memref<1296xf32, #tpu.memory_space<smem>>
      %178 = vector.broadcast %177 : f32 to vector<32x128xf32>
      %179 = arith.mulf %178, %79 : vector<32x128xf32>
      %180 = arith.addf %174, %179 : vector<32x128xf32>
      %181 = arith.mulf %180, %158 : vector<32x128xf32>
      %182 = arith.addf %108, %181 : vector<32x128xf32>
      %c3_i32_100 = arith.constant 3 : i32
      %183 = arith.muli %46, %c3_i32_100 : i32
      %c1_i32_101 = arith.constant 1 : i32
      %184 = arith.addi %183, %c1_i32_101 : i32
      %c3_i32_102 = arith.constant 3 : i32
      %185 = arith.muli %184, %c3_i32_102 : i32
      %c9_i32_103 = arith.constant 9 : i32
      %186 = arith.muli %185, %c9_i32_103 : i32
      %c0_i32_104 = arith.constant 0 : i32
      %187 = arith.addi %186, %c0_i32_104 : i32
      %c1_i32_105 = arith.constant 1 : i32
      %188 = arith.addi %187, %c1_i32_105 : i32
      %189 = arith.index_cast %188 : i32 to index
      %190 = memref.load %arg1[%189] : memref<1296xf32, #tpu.memory_space<smem>>
      %191 = vector.broadcast %190 : f32 to vector<32x128xf32>
      %192 = arith.mulf %191, %73 : vector<32x128xf32>
      %c9_i32_106 = arith.constant 9 : i32
      %193 = arith.addi %188, %c9_i32_106 : i32
      %194 = arith.index_cast %193 : i32 to index
      %195 = memref.load %arg1[%194] : memref<1296xf32, #tpu.memory_space<smem>>
      %196 = vector.broadcast %195 : f32 to vector<32x128xf32>
      %197 = arith.mulf %196, %76 : vector<32x128xf32>
      %198 = arith.addf %192, %197 : vector<32x128xf32>
      %c18_i32_107 = arith.constant 18 : i32
      %199 = arith.addi %188, %c18_i32_107 : i32
      %200 = arith.index_cast %199 : i32 to index
      %201 = memref.load %arg1[%200] : memref<1296xf32, #tpu.memory_space<smem>>
      %202 = vector.broadcast %201 : f32 to vector<32x128xf32>
      %203 = arith.mulf %202, %79 : vector<32x128xf32>
      %204 = arith.addf %198, %203 : vector<32x128xf32>
      %205 = arith.mulf %204, %158 : vector<32x128xf32>
      %206 = arith.addf %132, %205 : vector<32x128xf32>
      %c3_i32_108 = arith.constant 3 : i32
      %207 = arith.muli %46, %c3_i32_108 : i32
      %c2_i32_109 = arith.constant 2 : i32
      %208 = arith.addi %207, %c2_i32_109 : i32
      %c3_i32_110 = arith.constant 3 : i32
      %209 = arith.muli %208, %c3_i32_110 : i32
      %c9_i32_111 = arith.constant 9 : i32
      %210 = arith.muli %209, %c9_i32_111 : i32
      %c0_i32_112 = arith.constant 0 : i32
      %211 = arith.addi %210, %c0_i32_112 : i32
      %c1_i32_113 = arith.constant 1 : i32
      %212 = arith.addi %211, %c1_i32_113 : i32
      %213 = arith.index_cast %212 : i32 to index
      %214 = memref.load %arg1[%213] : memref<1296xf32, #tpu.memory_space<smem>>
      %215 = vector.broadcast %214 : f32 to vector<32x128xf32>
      %216 = arith.mulf %215, %73 : vector<32x128xf32>
      %c9_i32_114 = arith.constant 9 : i32
      %217 = arith.addi %212, %c9_i32_114 : i32
      %218 = arith.index_cast %217 : i32 to index
      %219 = memref.load %arg1[%218] : memref<1296xf32, #tpu.memory_space<smem>>
      %220 = vector.broadcast %219 : f32 to vector<32x128xf32>
      %221 = arith.mulf %220, %76 : vector<32x128xf32>
      %222 = arith.addf %216, %221 : vector<32x128xf32>
      %c18_i32_115 = arith.constant 18 : i32
      %223 = arith.addi %212, %c18_i32_115 : i32
      %224 = arith.index_cast %223 : i32 to index
      %225 = memref.load %arg1[%224] : memref<1296xf32, #tpu.memory_space<smem>>
      %226 = vector.broadcast %225 : f32 to vector<32x128xf32>
      %227 = arith.mulf %226, %79 : vector<32x128xf32>
      %228 = arith.addf %222, %227 : vector<32x128xf32>
      %229 = arith.mulf %228, %158 : vector<32x128xf32>
      %230 = arith.addf %156, %229 : vector<32x128xf32>
      %c127_i32 = arith.constant 127 : i32
      %231 = tpu.dynamic_rotate %73 by %c127_i32 dim 1 : vector<32x128xf32>, i32 -> vector<32x128xf32>
      %c127_i32_116 = arith.constant 127 : i32
      %232 = tpu.dynamic_rotate %76 by %c127_i32_116 dim 1 : vector<32x128xf32>, i32 -> vector<32x128xf32>
      %c127_i32_117 = arith.constant 127 : i32
      %233 = tpu.dynamic_rotate %79 by %c127_i32_117 dim 1 : vector<32x128xf32>, i32 -> vector<32x128xf32>
      %c2_118 = arith.constant 2 : index
      %c0_119 = arith.constant 0 : index
      %c0_120 = arith.constant 0 : index
      %234 = vector.load %arg3[%c2_118, %c0_119, %c0_120] : memref<9x32x128xf32, #tpu.memory_space<vmem>>, vector<1x32x128xf32>
      %235 = vector.shape_cast %234 : vector<1x32x128xf32> to vector<32x128xf32>
      %c3_i32_121 = arith.constant 3 : i32
      %236 = arith.muli %46, %c3_i32_121 : i32
      %c0_i32_122 = arith.constant 0 : i32
      %237 = arith.addi %236, %c0_i32_122 : i32
      %c3_i32_123 = arith.constant 3 : i32
      %238 = arith.muli %237, %c3_i32_123 : i32
      %c9_i32_124 = arith.constant 9 : i32
      %239 = arith.muli %238, %c9_i32_124 : i32
      %c0_i32_125 = arith.constant 0 : i32
      %240 = arith.addi %239, %c0_i32_125 : i32
      %c2_i32_126 = arith.constant 2 : i32
      %241 = arith.addi %240, %c2_i32_126 : i32
      %242 = arith.index_cast %241 : i32 to index
      %243 = memref.load %arg1[%242] : memref<1296xf32, #tpu.memory_space<smem>>
      %244 = vector.broadcast %243 : f32 to vector<32x128xf32>
      %245 = arith.mulf %244, %231 : vector<32x128xf32>
      %c9_i32_127 = arith.constant 9 : i32
      %246 = arith.addi %241, %c9_i32_127 : i32
      %247 = arith.index_cast %246 : i32 to index
      %248 = memref.load %arg1[%247] : memref<1296xf32, #tpu.memory_space<smem>>
      %249 = vector.broadcast %248 : f32 to vector<32x128xf32>
      %250 = arith.mulf %249, %232 : vector<32x128xf32>
      %251 = arith.addf %245, %250 : vector<32x128xf32>
      %c18_i32_128 = arith.constant 18 : i32
      %252 = arith.addi %241, %c18_i32_128 : i32
      %253 = arith.index_cast %252 : i32 to index
      %254 = memref.load %arg1[%253] : memref<1296xf32, #tpu.memory_space<smem>>
      %255 = vector.broadcast %254 : f32 to vector<32x128xf32>
      %256 = arith.mulf %255, %233 : vector<32x128xf32>
      %257 = arith.addf %251, %256 : vector<32x128xf32>
      %258 = arith.mulf %257, %235 : vector<32x128xf32>
      %259 = arith.addf %182, %258 : vector<32x128xf32>
      %c3_i32_129 = arith.constant 3 : i32
      %260 = arith.muli %46, %c3_i32_129 : i32
      %c1_i32_130 = arith.constant 1 : i32
      %261 = arith.addi %260, %c1_i32_130 : i32
      %c3_i32_131 = arith.constant 3 : i32
      %262 = arith.muli %261, %c3_i32_131 : i32
      %c9_i32_132 = arith.constant 9 : i32
      %263 = arith.muli %262, %c9_i32_132 : i32
      %c0_i32_133 = arith.constant 0 : i32
      %264 = arith.addi %263, %c0_i32_133 : i32
      %c2_i32_134 = arith.constant 2 : i32
      %265 = arith.addi %264, %c2_i32_134 : i32
      %266 = arith.index_cast %265 : i32 to index
      %267 = memref.load %arg1[%266] : memref<1296xf32, #tpu.memory_space<smem>>
      %268 = vector.broadcast %267 : f32 to vector<32x128xf32>
      %269 = arith.mulf %268, %231 : vector<32x128xf32>
      %c9_i32_135 = arith.constant 9 : i32
      %270 = arith.addi %265, %c9_i32_135 : i32
      %271 = arith.index_cast %270 : i32 to index
      %272 = memref.load %arg1[%271] : memref<1296xf32, #tpu.memory_space<smem>>
      %273 = vector.broadcast %272 : f32 to vector<32x128xf32>
      %274 = arith.mulf %273, %232 : vector<32x128xf32>
      %275 = arith.addf %269, %274 : vector<32x128xf32>
      %c18_i32_136 = arith.constant 18 : i32
      %276 = arith.addi %265, %c18_i32_136 : i32
      %277 = arith.index_cast %276 : i32 to index
      %278 = memref.load %arg1[%277] : memref<1296xf32, #tpu.memory_space<smem>>
      %279 = vector.broadcast %278 : f32 to vector<32x128xf32>
      %280 = arith.mulf %279, %233 : vector<32x128xf32>
      %281 = arith.addf %275, %280 : vector<32x128xf32>
      %282 = arith.mulf %281, %235 : vector<32x128xf32>
      %283 = arith.addf %206, %282 : vector<32x128xf32>
      %c3_i32_137 = arith.constant 3 : i32
      %284 = arith.muli %46, %c3_i32_137 : i32
      %c2_i32_138 = arith.constant 2 : i32
      %285 = arith.addi %284, %c2_i32_138 : i32
      %c3_i32_139 = arith.constant 3 : i32
      %286 = arith.muli %285, %c3_i32_139 : i32
      %c9_i32_140 = arith.constant 9 : i32
      %287 = arith.muli %286, %c9_i32_140 : i32
      %c0_i32_141 = arith.constant 0 : i32
      %288 = arith.addi %287, %c0_i32_141 : i32
      %c2_i32_142 = arith.constant 2 : i32
      %289 = arith.addi %288, %c2_i32_142 : i32
      %290 = arith.index_cast %289 : i32 to index
      %291 = memref.load %arg1[%290] : memref<1296xf32, #tpu.memory_space<smem>>
      %292 = vector.broadcast %291 : f32 to vector<32x128xf32>
      %293 = arith.mulf %292, %231 : vector<32x128xf32>
      %c9_i32_143 = arith.constant 9 : i32
      %294 = arith.addi %289, %c9_i32_143 : i32
      %295 = arith.index_cast %294 : i32 to index
      %296 = memref.load %arg1[%295] : memref<1296xf32, #tpu.memory_space<smem>>
      %297 = vector.broadcast %296 : f32 to vector<32x128xf32>
      %298 = arith.mulf %297, %232 : vector<32x128xf32>
      %299 = arith.addf %293, %298 : vector<32x128xf32>
      %c18_i32_144 = arith.constant 18 : i32
      %300 = arith.addi %289, %c18_i32_144 : i32
      %301 = arith.index_cast %300 : i32 to index
      %302 = memref.load %arg1[%301] : memref<1296xf32, #tpu.memory_space<smem>>
      %303 = vector.broadcast %302 : f32 to vector<32x128xf32>
      %304 = arith.mulf %303, %233 : vector<32x128xf32>
      %305 = arith.addf %299, %304 : vector<32x128xf32>
      %306 = arith.mulf %305, %235 : vector<32x128xf32>
      %307 = arith.addf %230, %306 : vector<32x128xf32>
      %c0_145 = arith.constant 0 : index
      %c0_146 = arith.constant 0 : index
      %c0_147 = arith.constant 0 : index
      %308 = vector.load %arg6[%c0_145, %c0_146, %c0_147] : memref<3x32x128xf32, #tpu.memory_space<vmem>>, vector<1x32x128xf32>
      %309 = vector.shape_cast %308 : vector<1x32x128xf32> to vector<32x128xf32>
      %c1_148 = arith.constant 1 : index
      %c0_149 = arith.constant 0 : index
      %c0_150 = arith.constant 0 : index
      %310 = vector.load %arg6[%c1_148, %c0_149, %c0_150] : memref<3x32x128xf32, #tpu.memory_space<vmem>>, vector<1x32x128xf32>
      %311 = vector.shape_cast %310 : vector<1x32x128xf32> to vector<32x128xf32>
      %c2_151 = arith.constant 2 : index
      %c0_152 = arith.constant 0 : index
      %c0_153 = arith.constant 0 : index
      %312 = vector.load %arg6[%c2_151, %c0_152, %c0_153] : memref<3x32x128xf32, #tpu.memory_space<vmem>>, vector<1x32x128xf32>
      %313 = vector.shape_cast %312 : vector<1x32x128xf32> to vector<32x128xf32>
      %c1_i32_154 = arith.constant 1 : i32
      %314 = tpu.dynamic_rotate %309 by %c1_i32_154 dim 1 : vector<32x128xf32>, i32 -> vector<32x128xf32>
      %c1_i32_155 = arith.constant 1 : i32
      %315 = tpu.dynamic_rotate %311 by %c1_i32_155 dim 1 : vector<32x128xf32>, i32 -> vector<32x128xf32>
      %c1_i32_156 = arith.constant 1 : i32
      %316 = tpu.dynamic_rotate %313 by %c1_i32_156 dim 1 : vector<32x128xf32>, i32 -> vector<32x128xf32>
      %c3 = arith.constant 3 : index
      %c0_157 = arith.constant 0 : index
      %c0_158 = arith.constant 0 : index
      %317 = vector.load %arg3[%c3, %c0_157, %c0_158] : memref<9x32x128xf32, #tpu.memory_space<vmem>>, vector<1x32x128xf32>
      %318 = vector.shape_cast %317 : vector<1x32x128xf32> to vector<32x128xf32>
      %c3_i32_159 = arith.constant 3 : i32
      %319 = arith.muli %46, %c3_i32_159 : i32
      %c0_i32_160 = arith.constant 0 : i32
      %320 = arith.addi %319, %c0_i32_160 : i32
      %c3_i32_161 = arith.constant 3 : i32
      %321 = arith.muli %320, %c3_i32_161 : i32
      %c9_i32_162 = arith.constant 9 : i32
      %322 = arith.muli %321, %c9_i32_162 : i32
      %c3_i32_163 = arith.constant 3 : i32
      %323 = arith.addi %322, %c3_i32_163 : i32
      %c0_i32_164 = arith.constant 0 : i32
      %324 = arith.addi %323, %c0_i32_164 : i32
      %325 = arith.index_cast %324 : i32 to index
      %326 = memref.load %arg1[%325] : memref<1296xf32, #tpu.memory_space<smem>>
      %327 = vector.broadcast %326 : f32 to vector<32x128xf32>
      %328 = arith.mulf %327, %314 : vector<32x128xf32>
      %c9_i32_165 = arith.constant 9 : i32
      %329 = arith.addi %324, %c9_i32_165 : i32
      %330 = arith.index_cast %329 : i32 to index
      %331 = memref.load %arg1[%330] : memref<1296xf32, #tpu.memory_space<smem>>
      %332 = vector.broadcast %331 : f32 to vector<32x128xf32>
      %333 = arith.mulf %332, %315 : vector<32x128xf32>
      %334 = arith.addf %328, %333 : vector<32x128xf32>
      %c18_i32_166 = arith.constant 18 : i32
      %335 = arith.addi %324, %c18_i32_166 : i32
      %336 = arith.index_cast %335 : i32 to index
      %337 = memref.load %arg1[%336] : memref<1296xf32, #tpu.memory_space<smem>>
      %338 = vector.broadcast %337 : f32 to vector<32x128xf32>
      %339 = arith.mulf %338, %316 : vector<32x128xf32>
      %340 = arith.addf %334, %339 : vector<32x128xf32>
      %341 = arith.mulf %340, %318 : vector<32x128xf32>
      %342 = arith.addf %259, %341 : vector<32x128xf32>
      %c3_i32_167 = arith.constant 3 : i32
      %343 = arith.muli %46, %c3_i32_167 : i32
      %c1_i32_168 = arith.constant 1 : i32
      %344 = arith.addi %343, %c1_i32_168 : i32
      %c3_i32_169 = arith.constant 3 : i32
      %345 = arith.muli %344, %c3_i32_169 : i32
      %c9_i32_170 = arith.constant 9 : i32
      %346 = arith.muli %345, %c9_i32_170 : i32
      %c3_i32_171 = arith.constant 3 : i32
      %347 = arith.addi %346, %c3_i32_171 : i32
      %c0_i32_172 = arith.constant 0 : i32
      %348 = arith.addi %347, %c0_i32_172 : i32
      %349 = arith.index_cast %348 : i32 to index
      %350 = memref.load %arg1[%349] : memref<1296xf32, #tpu.memory_space<smem>>
      %351 = vector.broadcast %350 : f32 to vector<32x128xf32>
      %352 = arith.mulf %351, %314 : vector<32x128xf32>
      %c9_i32_173 = arith.constant 9 : i32
      %353 = arith.addi %348, %c9_i32_173 : i32
      %354 = arith.index_cast %353 : i32 to index
      %355 = memref.load %arg1[%354] : memref<1296xf32, #tpu.memory_space<smem>>
      %356 = vector.broadcast %355 : f32 to vector<32x128xf32>
      %357 = arith.mulf %356, %315 : vector<32x128xf32>
      %358 = arith.addf %352, %357 : vector<32x128xf32>
      %c18_i32_174 = arith.constant 18 : i32
      %359 = arith.addi %348, %c18_i32_174 : i32
      %360 = arith.index_cast %359 : i32 to index
      %361 = memref.load %arg1[%360] : memref<1296xf32, #tpu.memory_space<smem>>
      %362 = vector.broadcast %361 : f32 to vector<32x128xf32>
      %363 = arith.mulf %362, %316 : vector<32x128xf32>
      %364 = arith.addf %358, %363 : vector<32x128xf32>
      %365 = arith.mulf %364, %318 : vector<32x128xf32>
      %366 = arith.addf %283, %365 : vector<32x128xf32>
      %c3_i32_175 = arith.constant 3 : i32
      %367 = arith.muli %46, %c3_i32_175 : i32
      %c2_i32_176 = arith.constant 2 : i32
      %368 = arith.addi %367, %c2_i32_176 : i32
      %c3_i32_177 = arith.constant 3 : i32
      %369 = arith.muli %368, %c3_i32_177 : i32
      %c9_i32_178 = arith.constant 9 : i32
      %370 = arith.muli %369, %c9_i32_178 : i32
      %c3_i32_179 = arith.constant 3 : i32
      %371 = arith.addi %370, %c3_i32_179 : i32
      %c0_i32_180 = arith.constant 0 : i32
      %372 = arith.addi %371, %c0_i32_180 : i32
      %373 = arith.index_cast %372 : i32 to index
      %374 = memref.load %arg1[%373] : memref<1296xf32, #tpu.memory_space<smem>>
      %375 = vector.broadcast %374 : f32 to vector<32x128xf32>
      %376 = arith.mulf %375, %314 : vector<32x128xf32>
      %c9_i32_181 = arith.constant 9 : i32
      %377 = arith.addi %372, %c9_i32_181 : i32
      %378 = arith.index_cast %377 : i32 to index
      %379 = memref.load %arg1[%378] : memref<1296xf32, #tpu.memory_space<smem>>
      %380 = vector.broadcast %379 : f32 to vector<32x128xf32>
      %381 = arith.mulf %380, %315 : vector<32x128xf32>
      %382 = arith.addf %376, %381 : vector<32x128xf32>
      %c18_i32_182 = arith.constant 18 : i32
      %383 = arith.addi %372, %c18_i32_182 : i32
      %384 = arith.index_cast %383 : i32 to index
      %385 = memref.load %arg1[%384] : memref<1296xf32, #tpu.memory_space<smem>>
      %386 = vector.broadcast %385 : f32 to vector<32x128xf32>
      %387 = arith.mulf %386, %316 : vector<32x128xf32>
      %388 = arith.addf %382, %387 : vector<32x128xf32>
      %389 = arith.mulf %388, %318 : vector<32x128xf32>
      %390 = arith.addf %307, %389 : vector<32x128xf32>
      %c3_i32_183 = arith.constant 3 : i32
      %391 = arith.muli %46, %c3_i32_183 : i32
      %c0_i32_184 = arith.constant 0 : i32
      %392 = arith.addi %391, %c0_i32_184 : i32
      %c3_i32_185 = arith.constant 3 : i32
      %393 = arith.muli %392, %c3_i32_185 : i32
      %c9_i32_186 = arith.constant 9 : i32
      %394 = arith.muli %393, %c9_i32_186 : i32
      %c3_i32_187 = arith.constant 3 : i32
      %395 = arith.addi %394, %c3_i32_187 : i32
      %c1_i32_188 = arith.constant 1 : i32
      %396 = arith.addi %395, %c1_i32_188 : i32
      %397 = arith.index_cast %396 : i32 to index
      %398 = memref.load %arg1[%397] : memref<1296xf32, #tpu.memory_space<smem>>
      %399 = vector.broadcast %398 : f32 to vector<32x128xf32>
      %400 = arith.mulf %399, %309 : vector<32x128xf32>
      %c9_i32_189 = arith.constant 9 : i32
      %401 = arith.addi %396, %c9_i32_189 : i32
      %402 = arith.index_cast %401 : i32 to index
      %403 = memref.load %arg1[%402] : memref<1296xf32, #tpu.memory_space<smem>>
      %404 = vector.broadcast %403 : f32 to vector<32x128xf32>
      %405 = arith.mulf %404, %311 : vector<32x128xf32>
      %406 = arith.addf %400, %405 : vector<32x128xf32>
      %c18_i32_190 = arith.constant 18 : i32
      %407 = arith.addi %396, %c18_i32_190 : i32
      %408 = arith.index_cast %407 : i32 to index
      %409 = memref.load %arg1[%408] : memref<1296xf32, #tpu.memory_space<smem>>
      %410 = vector.broadcast %409 : f32 to vector<32x128xf32>
      %411 = arith.mulf %410, %313 : vector<32x128xf32>
      %412 = arith.addf %406, %411 : vector<32x128xf32>
      %413 = arith.addf %342, %412 : vector<32x128xf32>
      %c3_i32_191 = arith.constant 3 : i32
      %414 = arith.muli %46, %c3_i32_191 : i32
      %c1_i32_192 = arith.constant 1 : i32
      %415 = arith.addi %414, %c1_i32_192 : i32
      %c3_i32_193 = arith.constant 3 : i32
      %416 = arith.muli %415, %c3_i32_193 : i32
      %c9_i32_194 = arith.constant 9 : i32
      %417 = arith.muli %416, %c9_i32_194 : i32
      %c3_i32_195 = arith.constant 3 : i32
      %418 = arith.addi %417, %c3_i32_195 : i32
      %c1_i32_196 = arith.constant 1 : i32
      %419 = arith.addi %418, %c1_i32_196 : i32
      %420 = arith.index_cast %419 : i32 to index
      %421 = memref.load %arg1[%420] : memref<1296xf32, #tpu.memory_space<smem>>
      %422 = vector.broadcast %421 : f32 to vector<32x128xf32>
      %423 = arith.mulf %422, %309 : vector<32x128xf32>
      %c9_i32_197 = arith.constant 9 : i32
      %424 = arith.addi %419, %c9_i32_197 : i32
      %425 = arith.index_cast %424 : i32 to index
      %426 = memref.load %arg1[%425] : memref<1296xf32, #tpu.memory_space<smem>>
      %427 = vector.broadcast %426 : f32 to vector<32x128xf32>
      %428 = arith.mulf %427, %311 : vector<32x128xf32>
      %429 = arith.addf %423, %428 : vector<32x128xf32>
      %c18_i32_198 = arith.constant 18 : i32
      %430 = arith.addi %419, %c18_i32_198 : i32
      %431 = arith.index_cast %430 : i32 to index
      %432 = memref.load %arg1[%431] : memref<1296xf32, #tpu.memory_space<smem>>
      %433 = vector.broadcast %432 : f32 to vector<32x128xf32>
      %434 = arith.mulf %433, %313 : vector<32x128xf32>
      %435 = arith.addf %429, %434 : vector<32x128xf32>
      %436 = arith.addf %366, %435 : vector<32x128xf32>
      %c3_i32_199 = arith.constant 3 : i32
      %437 = arith.muli %46, %c3_i32_199 : i32
      %c2_i32_200 = arith.constant 2 : i32
      %438 = arith.addi %437, %c2_i32_200 : i32
      %c3_i32_201 = arith.constant 3 : i32
      %439 = arith.muli %438, %c3_i32_201 : i32
      %c9_i32_202 = arith.constant 9 : i32
      %440 = arith.muli %439, %c9_i32_202 : i32
      %c3_i32_203 = arith.constant 3 : i32
      %441 = arith.addi %440, %c3_i32_203 : i32
      %c1_i32_204 = arith.constant 1 : i32
      %442 = arith.addi %441, %c1_i32_204 : i32
      %443 = arith.index_cast %442 : i32 to index
      %444 = memref.load %arg1[%443] : memref<1296xf32, #tpu.memory_space<smem>>
      %445 = vector.broadcast %444 : f32 to vector<32x128xf32>
      %446 = arith.mulf %445, %309 : vector<32x128xf32>
      %c9_i32_205 = arith.constant 9 : i32
      %447 = arith.addi %442, %c9_i32_205 : i32
      %448 = arith.index_cast %447 : i32 to index
      %449 = memref.load %arg1[%448] : memref<1296xf32, #tpu.memory_space<smem>>
      %450 = vector.broadcast %449 : f32 to vector<32x128xf32>
      %451 = arith.mulf %450, %311 : vector<32x128xf32>
      %452 = arith.addf %446, %451 : vector<32x128xf32>
      %c18_i32_206 = arith.constant 18 : i32
      %453 = arith.addi %442, %c18_i32_206 : i32
      %454 = arith.index_cast %453 : i32 to index
      %455 = memref.load %arg1[%454] : memref<1296xf32, #tpu.memory_space<smem>>
      %456 = vector.broadcast %455 : f32 to vector<32x128xf32>
      %457 = arith.mulf %456, %313 : vector<32x128xf32>
      %458 = arith.addf %452, %457 : vector<32x128xf32>
      %459 = arith.addf %390, %458 : vector<32x128xf32>
      %c127_i32_207 = arith.constant 127 : i32
      %460 = tpu.dynamic_rotate %309 by %c127_i32_207 dim 1 : vector<32x128xf32>, i32 -> vector<32x128xf32>
      %c127_i32_208 = arith.constant 127 : i32
      %461 = tpu.dynamic_rotate %311 by %c127_i32_208 dim 1 : vector<32x128xf32>, i32 -> vector<32x128xf32>
      %c127_i32_209 = arith.constant 127 : i32
      %462 = tpu.dynamic_rotate %313 by %c127_i32_209 dim 1 : vector<32x128xf32>, i32 -> vector<32x128xf32>
      %c5 = arith.constant 5 : index
      %c0_210 = arith.constant 0 : index
      %c0_211 = arith.constant 0 : index
      %463 = vector.load %arg3[%c5, %c0_210, %c0_211] : memref<9x32x128xf32, #tpu.memory_space<vmem>>, vector<1x32x128xf32>
      %464 = vector.shape_cast %463 : vector<1x32x128xf32> to vector<32x128xf32>
      %c3_i32_212 = arith.constant 3 : i32
      %465 = arith.muli %46, %c3_i32_212 : i32
      %c0_i32_213 = arith.constant 0 : i32
      %466 = arith.addi %465, %c0_i32_213 : i32
      %c3_i32_214 = arith.constant 3 : i32
      %467 = arith.muli %466, %c3_i32_214 : i32
      %c9_i32_215 = arith.constant 9 : i32
      %468 = arith.muli %467, %c9_i32_215 : i32
      %c3_i32_216 = arith.constant 3 : i32
      %469 = arith.addi %468, %c3_i32_216 : i32
      %c2_i32_217 = arith.constant 2 : i32
      %470 = arith.addi %469, %c2_i32_217 : i32
      %471 = arith.index_cast %470 : i32 to index
      %472 = memref.load %arg1[%471] : memref<1296xf32, #tpu.memory_space<smem>>
      %473 = vector.broadcast %472 : f32 to vector<32x128xf32>
      %474 = arith.mulf %473, %460 : vector<32x128xf32>
      %c9_i32_218 = arith.constant 9 : i32
      %475 = arith.addi %470, %c9_i32_218 : i32
      %476 = arith.index_cast %475 : i32 to index
      %477 = memref.load %arg1[%476] : memref<1296xf32, #tpu.memory_space<smem>>
      %478 = vector.broadcast %477 : f32 to vector<32x128xf32>
      %479 = arith.mulf %478, %461 : vector<32x128xf32>
      %480 = arith.addf %474, %479 : vector<32x128xf32>
      %c18_i32_219 = arith.constant 18 : i32
      %481 = arith.addi %470, %c18_i32_219 : i32
      %482 = arith.index_cast %481 : i32 to index
      %483 = memref.load %arg1[%482] : memref<1296xf32, #tpu.memory_space<smem>>
      %484 = vector.broadcast %483 : f32 to vector<32x128xf32>
      %485 = arith.mulf %484, %462 : vector<32x128xf32>
      %486 = arith.addf %480, %485 : vector<32x128xf32>
      %487 = arith.mulf %486, %464 : vector<32x128xf32>
      %488 = arith.addf %413, %487 : vector<32x128xf32>
      %c3_i32_220 = arith.constant 3 : i32
      %489 = arith.muli %46, %c3_i32_220 : i32
      %c1_i32_221 = arith.constant 1 : i32
      %490 = arith.addi %489, %c1_i32_221 : i32
      %c3_i32_222 = arith.constant 3 : i32
      %491 = arith.muli %490, %c3_i32_222 : i32
      %c9_i32_223 = arith.constant 9 : i32
      %492 = arith.muli %491, %c9_i32_223 : i32
      %c3_i32_224 = arith.constant 3 : i32
      %493 = arith.addi %492, %c3_i32_224 : i32
      %c2_i32_225 = arith.constant 2 : i32
      %494 = arith.addi %493, %c2_i32_225 : i32
      %495 = arith.index_cast %494 : i32 to index
      %496 = memref.load %arg1[%495] : memref<1296xf32, #tpu.memory_space<smem>>
      %497 = vector.broadcast %496 : f32 to vector<32x128xf32>
      %498 = arith.mulf %497, %460 : vector<32x128xf32>
      %c9_i32_226 = arith.constant 9 : i32
      %499 = arith.addi %494, %c9_i32_226 : i32
      %500 = arith.index_cast %499 : i32 to index
      %501 = memref.load %arg1[%500] : memref<1296xf32, #tpu.memory_space<smem>>
      %502 = vector.broadcast %501 : f32 to vector<32x128xf32>
      %503 = arith.mulf %502, %461 : vector<32x128xf32>
      %504 = arith.addf %498, %503 : vector<32x128xf32>
      %c18_i32_227 = arith.constant 18 : i32
      %505 = arith.addi %494, %c18_i32_227 : i32
      %506 = arith.index_cast %505 : i32 to index
      %507 = memref.load %arg1[%506] : memref<1296xf32, #tpu.memory_space<smem>>
      %508 = vector.broadcast %507 : f32 to vector<32x128xf32>
      %509 = arith.mulf %508, %462 : vector<32x128xf32>
      %510 = arith.addf %504, %509 : vector<32x128xf32>
      %511 = arith.mulf %510, %464 : vector<32x128xf32>
      %512 = arith.addf %436, %511 : vector<32x128xf32>
      %c3_i32_228 = arith.constant 3 : i32
      %513 = arith.muli %46, %c3_i32_228 : i32
      %c2_i32_229 = arith.constant 2 : i32
      %514 = arith.addi %513, %c2_i32_229 : i32
      %c3_i32_230 = arith.constant 3 : i32
      %515 = arith.muli %514, %c3_i32_230 : i32
      %c9_i32_231 = arith.constant 9 : i32
      %516 = arith.muli %515, %c9_i32_231 : i32
      %c3_i32_232 = arith.constant 3 : i32
      %517 = arith.addi %516, %c3_i32_232 : i32
      %c2_i32_233 = arith.constant 2 : i32
      %518 = arith.addi %517, %c2_i32_233 : i32
      %519 = arith.index_cast %518 : i32 to index
      %520 = memref.load %arg1[%519] : memref<1296xf32, #tpu.memory_space<smem>>
      %521 = vector.broadcast %520 : f32 to vector<32x128xf32>
      %522 = arith.mulf %521, %460 : vector<32x128xf32>
      %c9_i32_234 = arith.constant 9 : i32
      %523 = arith.addi %518, %c9_i32_234 : i32
      %524 = arith.index_cast %523 : i32 to index
      %525 = memref.load %arg1[%524] : memref<1296xf32, #tpu.memory_space<smem>>
      %526 = vector.broadcast %525 : f32 to vector<32x128xf32>
      %527 = arith.mulf %526, %461 : vector<32x128xf32>
      %528 = arith.addf %522, %527 : vector<32x128xf32>
      %c18_i32_235 = arith.constant 18 : i32
      %529 = arith.addi %518, %c18_i32_235 : i32
      %530 = arith.index_cast %529 : i32 to index
      %531 = memref.load %arg1[%530] : memref<1296xf32, #tpu.memory_space<smem>>
      %532 = vector.broadcast %531 : f32 to vector<32x128xf32>
      %533 = arith.mulf %532, %462 : vector<32x128xf32>
      %534 = arith.addf %528, %533 : vector<32x128xf32>
      %535 = arith.mulf %534, %464 : vector<32x128xf32>
      %536 = arith.addf %459, %535 : vector<32x128xf32>
      %c0_236 = arith.constant 0 : index
      %c0_237 = arith.constant 0 : index
      %c0_238 = arith.constant 0 : index
      %537 = vector.load %arg6[%c0_236, %c0_237, %c0_238] : memref<3x32x128xf32, #tpu.memory_space<vmem>>, vector<1x32x128xf32>
      %538 = vector.shape_cast %537 : vector<1x32x128xf32> to vector<32x128xf32>
      %c31_i32 = arith.constant 31 : i32
      %539 = tpu.dynamic_rotate %538 by %c31_i32 dim 0 : vector<32x128xf32>, i32 -> vector<32x128xf32>
      %c1_239 = arith.constant 1 : index
      %c0_240 = arith.constant 0 : index
      %c0_241 = arith.constant 0 : index
      %540 = vector.load %arg6[%c1_239, %c0_240, %c0_241] : memref<3x32x128xf32, #tpu.memory_space<vmem>>, vector<1x32x128xf32>
      %541 = vector.shape_cast %540 : vector<1x32x128xf32> to vector<32x128xf32>
      %c31_i32_242 = arith.constant 31 : i32
      %542 = tpu.dynamic_rotate %541 by %c31_i32_242 dim 0 : vector<32x128xf32>, i32 -> vector<32x128xf32>
      %c2_243 = arith.constant 2 : index
      %c0_244 = arith.constant 0 : index
      %c0_245 = arith.constant 0 : index
      %543 = vector.load %arg6[%c2_243, %c0_244, %c0_245] : memref<3x32x128xf32, #tpu.memory_space<vmem>>, vector<1x32x128xf32>
      %544 = vector.shape_cast %543 : vector<1x32x128xf32> to vector<32x128xf32>
      %c31_i32_246 = arith.constant 31 : i32
      %545 = tpu.dynamic_rotate %544 by %c31_i32_246 dim 0 : vector<32x128xf32>, i32 -> vector<32x128xf32>
      %c1_i32_247 = arith.constant 1 : i32
      %546 = tpu.dynamic_rotate %539 by %c1_i32_247 dim 1 : vector<32x128xf32>, i32 -> vector<32x128xf32>
      %c1_i32_248 = arith.constant 1 : i32
      %547 = tpu.dynamic_rotate %542 by %c1_i32_248 dim 1 : vector<32x128xf32>, i32 -> vector<32x128xf32>
      %c1_i32_249 = arith.constant 1 : i32
      %548 = tpu.dynamic_rotate %545 by %c1_i32_249 dim 1 : vector<32x128xf32>, i32 -> vector<32x128xf32>
      %c6 = arith.constant 6 : index
      %c0_250 = arith.constant 0 : index
      %c0_251 = arith.constant 0 : index
      %549 = vector.load %arg3[%c6, %c0_250, %c0_251] : memref<9x32x128xf32, #tpu.memory_space<vmem>>, vector<1x32x128xf32>
      %550 = vector.shape_cast %549 : vector<1x32x128xf32> to vector<32x128xf32>
      %c3_i32_252 = arith.constant 3 : i32
      %551 = arith.muli %46, %c3_i32_252 : i32
      %c0_i32_253 = arith.constant 0 : i32
      %552 = arith.addi %551, %c0_i32_253 : i32
      %c3_i32_254 = arith.constant 3 : i32
      %553 = arith.muli %552, %c3_i32_254 : i32
      %c9_i32_255 = arith.constant 9 : i32
      %554 = arith.muli %553, %c9_i32_255 : i32
      %c6_i32 = arith.constant 6 : i32
      %555 = arith.addi %554, %c6_i32 : i32
      %c0_i32_256 = arith.constant 0 : i32
      %556 = arith.addi %555, %c0_i32_256 : i32
      %557 = arith.index_cast %556 : i32 to index
      %558 = memref.load %arg1[%557] : memref<1296xf32, #tpu.memory_space<smem>>
      %559 = vector.broadcast %558 : f32 to vector<32x128xf32>
      %560 = arith.mulf %559, %546 : vector<32x128xf32>
      %c9_i32_257 = arith.constant 9 : i32
      %561 = arith.addi %556, %c9_i32_257 : i32
      %562 = arith.index_cast %561 : i32 to index
      %563 = memref.load %arg1[%562] : memref<1296xf32, #tpu.memory_space<smem>>
      %564 = vector.broadcast %563 : f32 to vector<32x128xf32>
      %565 = arith.mulf %564, %547 : vector<32x128xf32>
      %566 = arith.addf %560, %565 : vector<32x128xf32>
      %c18_i32_258 = arith.constant 18 : i32
      %567 = arith.addi %556, %c18_i32_258 : i32
      %568 = arith.index_cast %567 : i32 to index
      %569 = memref.load %arg1[%568] : memref<1296xf32, #tpu.memory_space<smem>>
      %570 = vector.broadcast %569 : f32 to vector<32x128xf32>
      %571 = arith.mulf %570, %548 : vector<32x128xf32>
      %572 = arith.addf %566, %571 : vector<32x128xf32>
      %573 = arith.mulf %572, %550 : vector<32x128xf32>
      %574 = arith.addf %488, %573 : vector<32x128xf32>
      %c3_i32_259 = arith.constant 3 : i32
      %575 = arith.muli %46, %c3_i32_259 : i32
      %c1_i32_260 = arith.constant 1 : i32
      %576 = arith.addi %575, %c1_i32_260 : i32
      %c3_i32_261 = arith.constant 3 : i32
      %577 = arith.muli %576, %c3_i32_261 : i32
      %c9_i32_262 = arith.constant 9 : i32
      %578 = arith.muli %577, %c9_i32_262 : i32
      %c6_i32_263 = arith.constant 6 : i32
      %579 = arith.addi %578, %c6_i32_263 : i32
      %c0_i32_264 = arith.constant 0 : i32
      %580 = arith.addi %579, %c0_i32_264 : i32
      %581 = arith.index_cast %580 : i32 to index
      %582 = memref.load %arg1[%581] : memref<1296xf32, #tpu.memory_space<smem>>
      %583 = vector.broadcast %582 : f32 to vector<32x128xf32>
      %584 = arith.mulf %583, %546 : vector<32x128xf32>
      %c9_i32_265 = arith.constant 9 : i32
      %585 = arith.addi %580, %c9_i32_265 : i32
      %586 = arith.index_cast %585 : i32 to index
      %587 = memref.load %arg1[%586] : memref<1296xf32, #tpu.memory_space<smem>>
      %588 = vector.broadcast %587 : f32 to vector<32x128xf32>
      %589 = arith.mulf %588, %547 : vector<32x128xf32>
      %590 = arith.addf %584, %589 : vector<32x128xf32>
      %c18_i32_266 = arith.constant 18 : i32
      %591 = arith.addi %580, %c18_i32_266 : i32
      %592 = arith.index_cast %591 : i32 to index
      %593 = memref.load %arg1[%592] : memref<1296xf32, #tpu.memory_space<smem>>
      %594 = vector.broadcast %593 : f32 to vector<32x128xf32>
      %595 = arith.mulf %594, %548 : vector<32x128xf32>
      %596 = arith.addf %590, %595 : vector<32x128xf32>
      %597 = arith.mulf %596, %550 : vector<32x128xf32>
      %598 = arith.addf %512, %597 : vector<32x128xf32>
      %c3_i32_267 = arith.constant 3 : i32
      %599 = arith.muli %46, %c3_i32_267 : i32
      %c2_i32_268 = arith.constant 2 : i32
      %600 = arith.addi %599, %c2_i32_268 : i32
      %c3_i32_269 = arith.constant 3 : i32
      %601 = arith.muli %600, %c3_i32_269 : i32
      %c9_i32_270 = arith.constant 9 : i32
      %602 = arith.muli %601, %c9_i32_270 : i32
      %c6_i32_271 = arith.constant 6 : i32
      %603 = arith.addi %602, %c6_i32_271 : i32
      %c0_i32_272 = arith.constant 0 : i32
      %604 = arith.addi %603, %c0_i32_272 : i32
      %605 = arith.index_cast %604 : i32 to index
      %606 = memref.load %arg1[%605] : memref<1296xf32, #tpu.memory_space<smem>>
      %607 = vector.broadcast %606 : f32 to vector<32x128xf32>
      %608 = arith.mulf %607, %546 : vector<32x128xf32>
      %c9_i32_273 = arith.constant 9 : i32
      %609 = arith.addi %604, %c9_i32_273 : i32
      %610 = arith.index_cast %609 : i32 to index
      %611 = memref.load %arg1[%610] : memref<1296xf32, #tpu.memory_space<smem>>
      %612 = vector.broadcast %611 : f32 to vector<32x128xf32>
      %613 = arith.mulf %612, %547 : vector<32x128xf32>
      %614 = arith.addf %608, %613 : vector<32x128xf32>
      %c18_i32_274 = arith.constant 18 : i32
      %615 = arith.addi %604, %c18_i32_274 : i32
      %616 = arith.index_cast %615 : i32 to index
      %617 = memref.load %arg1[%616] : memref<1296xf32, #tpu.memory_space<smem>>
      %618 = vector.broadcast %617 : f32 to vector<32x128xf32>
      %619 = arith.mulf %618, %548 : vector<32x128xf32>
      %620 = arith.addf %614, %619 : vector<32x128xf32>
      %621 = arith.mulf %620, %550 : vector<32x128xf32>
      %622 = arith.addf %536, %621 : vector<32x128xf32>
      %c7 = arith.constant 7 : index
      %c0_275 = arith.constant 0 : index
      %c0_276 = arith.constant 0 : index
      %623 = vector.load %arg3[%c7, %c0_275, %c0_276] : memref<9x32x128xf32, #tpu.memory_space<vmem>>, vector<1x32x128xf32>
      %624 = vector.shape_cast %623 : vector<1x32x128xf32> to vector<32x128xf32>
      %c3_i32_277 = arith.constant 3 : i32
      %625 = arith.muli %46, %c3_i32_277 : i32
      %c0_i32_278 = arith.constant 0 : i32
      %626 = arith.addi %625, %c0_i32_278 : i32
      %c3_i32_279 = arith.constant 3 : i32
      %627 = arith.muli %626, %c3_i32_279 : i32
      %c9_i32_280 = arith.constant 9 : i32
      %628 = arith.muli %627, %c9_i32_280 : i32
      %c6_i32_281 = arith.constant 6 : i32
      %629 = arith.addi %628, %c6_i32_281 : i32
      %c1_i32_282 = arith.constant 1 : i32
      %630 = arith.addi %629, %c1_i32_282 : i32
      %631 = arith.index_cast %630 : i32 to index
      %632 = memref.load %arg1[%631] : memref<1296xf32, #tpu.memory_space<smem>>
      %633 = vector.broadcast %632 : f32 to vector<32x128xf32>
      %634 = arith.mulf %633, %539 : vector<32x128xf32>
      %c9_i32_283 = arith.constant 9 : i32
      %635 = arith.addi %630, %c9_i32_283 : i32
      %636 = arith.index_cast %635 : i32 to index
      %637 = memref.load %arg1[%636] : memref<1296xf32, #tpu.memory_space<smem>>
      %638 = vector.broadcast %637 : f32 to vector<32x128xf32>
      %639 = arith.mulf %638, %542 : vector<32x128xf32>
      %640 = arith.addf %634, %639 : vector<32x128xf32>
      %c18_i32_284 = arith.constant 18 : i32
      %641 = arith.addi %630, %c18_i32_284 : i32
      %642 = arith.index_cast %641 : i32 to index
      %643 = memref.load %arg1[%642] : memref<1296xf32, #tpu.memory_space<smem>>
      %644 = vector.broadcast %643 : f32 to vector<32x128xf32>
      %645 = arith.mulf %644, %545 : vector<32x128xf32>
      %646 = arith.addf %640, %645 : vector<32x128xf32>
      %647 = arith.mulf %646, %624 : vector<32x128xf32>
      %648 = arith.addf %574, %647 : vector<32x128xf32>
      %c3_i32_285 = arith.constant 3 : i32
      %649 = arith.muli %46, %c3_i32_285 : i32
      %c1_i32_286 = arith.constant 1 : i32
      %650 = arith.addi %649, %c1_i32_286 : i32
      %c3_i32_287 = arith.constant 3 : i32
      %651 = arith.muli %650, %c3_i32_287 : i32
      %c9_i32_288 = arith.constant 9 : i32
      %652 = arith.muli %651, %c9_i32_288 : i32
      %c6_i32_289 = arith.constant 6 : i32
      %653 = arith.addi %652, %c6_i32_289 : i32
      %c1_i32_290 = arith.constant 1 : i32
      %654 = arith.addi %653, %c1_i32_290 : i32
      %655 = arith.index_cast %654 : i32 to index
      %656 = memref.load %arg1[%655] : memref<1296xf32, #tpu.memory_space<smem>>
      %657 = vector.broadcast %656 : f32 to vector<32x128xf32>
      %658 = arith.mulf %657, %539 : vector<32x128xf32>
      %c9_i32_291 = arith.constant 9 : i32
      %659 = arith.addi %654, %c9_i32_291 : i32
      %660 = arith.index_cast %659 : i32 to index
      %661 = memref.load %arg1[%660] : memref<1296xf32, #tpu.memory_space<smem>>
      %662 = vector.broadcast %661 : f32 to vector<32x128xf32>
      %663 = arith.mulf %662, %542 : vector<32x128xf32>
      %664 = arith.addf %658, %663 : vector<32x128xf32>
      %c18_i32_292 = arith.constant 18 : i32
      %665 = arith.addi %654, %c18_i32_292 : i32
      %666 = arith.index_cast %665 : i32 to index
      %667 = memref.load %arg1[%666] : memref<1296xf32, #tpu.memory_space<smem>>
      %668 = vector.broadcast %667 : f32 to vector<32x128xf32>
      %669 = arith.mulf %668, %545 : vector<32x128xf32>
      %670 = arith.addf %664, %669 : vector<32x128xf32>
      %671 = arith.mulf %670, %624 : vector<32x128xf32>
      %672 = arith.addf %598, %671 : vector<32x128xf32>
      %c3_i32_293 = arith.constant 3 : i32
      %673 = arith.muli %46, %c3_i32_293 : i32
      %c2_i32_294 = arith.constant 2 : i32
      %674 = arith.addi %673, %c2_i32_294 : i32
      %c3_i32_295 = arith.constant 3 : i32
      %675 = arith.muli %674, %c3_i32_295 : i32
      %c9_i32_296 = arith.constant 9 : i32
      %676 = arith.muli %675, %c9_i32_296 : i32
      %c6_i32_297 = arith.constant 6 : i32
      %677 = arith.addi %676, %c6_i32_297 : i32
      %c1_i32_298 = arith.constant 1 : i32
      %678 = arith.addi %677, %c1_i32_298 : i32
      %679 = arith.index_cast %678 : i32 to index
      %680 = memref.load %arg1[%679] : memref<1296xf32, #tpu.memory_space<smem>>
      %681 = vector.broadcast %680 : f32 to vector<32x128xf32>
      %682 = arith.mulf %681, %539 : vector<32x128xf32>
      %c9_i32_299 = arith.constant 9 : i32
      %683 = arith.addi %678, %c9_i32_299 : i32
      %684 = arith.index_cast %683 : i32 to index
      %685 = memref.load %arg1[%684] : memref<1296xf32, #tpu.memory_space<smem>>
      %686 = vector.broadcast %685 : f32 to vector<32x128xf32>
      %687 = arith.mulf %686, %542 : vector<32x128xf32>
      %688 = arith.addf %682, %687 : vector<32x128xf32>
      %c18_i32_300 = arith.constant 18 : i32
      %689 = arith.addi %678, %c18_i32_300 : i32
      %690 = arith.index_cast %689 : i32 to index
      %691 = memref.load %arg1[%690] : memref<1296xf32, #tpu.memory_space<smem>>
      %692 = vector.broadcast %691 : f32 to vector<32x128xf32>
      %693 = arith.mulf %692, %545 : vector<32x128xf32>
      %694 = arith.addf %688, %693 : vector<32x128xf32>
      %695 = arith.mulf %694, %624 : vector<32x128xf32>
      %696 = arith.addf %622, %695 : vector<32x128xf32>
      %c127_i32_301 = arith.constant 127 : i32
      %697 = tpu.dynamic_rotate %539 by %c127_i32_301 dim 1 : vector<32x128xf32>, i32 -> vector<32x128xf32>
      %c127_i32_302 = arith.constant 127 : i32
      %698 = tpu.dynamic_rotate %542 by %c127_i32_302 dim 1 : vector<32x128xf32>, i32 -> vector<32x128xf32>
      %c127_i32_303 = arith.constant 127 : i32
      %699 = tpu.dynamic_rotate %545 by %c127_i32_303 dim 1 : vector<32x128xf32>, i32 -> vector<32x128xf32>
      %c8 = arith.constant 8 : index
      %c0_304 = arith.constant 0 : index
      %c0_305 = arith.constant 0 : index
      %700 = vector.load %arg3[%c8, %c0_304, %c0_305] : memref<9x32x128xf32, #tpu.memory_space<vmem>>, vector<1x32x128xf32>
      %701 = vector.shape_cast %700 : vector<1x32x128xf32> to vector<32x128xf32>
      %c3_i32_306 = arith.constant 3 : i32
      %702 = arith.muli %46, %c3_i32_306 : i32
      %c0_i32_307 = arith.constant 0 : i32
      %703 = arith.addi %702, %c0_i32_307 : i32
      %c3_i32_308 = arith.constant 3 : i32
      %704 = arith.muli %703, %c3_i32_308 : i32
      %c9_i32_309 = arith.constant 9 : i32
      %705 = arith.muli %704, %c9_i32_309 : i32
      %c6_i32_310 = arith.constant 6 : i32
      %706 = arith.addi %705, %c6_i32_310 : i32
      %c2_i32_311 = arith.constant 2 : i32
      %707 = arith.addi %706, %c2_i32_311 : i32
      %708 = arith.index_cast %707 : i32 to index
      %709 = memref.load %arg1[%708] : memref<1296xf32, #tpu.memory_space<smem>>
      %710 = vector.broadcast %709 : f32 to vector<32x128xf32>
      %711 = arith.mulf %710, %697 : vector<32x128xf32>
      %c9_i32_312 = arith.constant 9 : i32
      %712 = arith.addi %707, %c9_i32_312 : i32
      %713 = arith.index_cast %712 : i32 to index
      %714 = memref.load %arg1[%713] : memref<1296xf32, #tpu.memory_space<smem>>
      %715 = vector.broadcast %714 : f32 to vector<32x128xf32>
      %716 = arith.mulf %715, %698 : vector<32x128xf32>
      %717 = arith.addf %711, %716 : vector<32x128xf32>
      %c18_i32_313 = arith.constant 18 : i32
      %718 = arith.addi %707, %c18_i32_313 : i32
      %719 = arith.index_cast %718 : i32 to index
      %720 = memref.load %arg1[%719] : memref<1296xf32, #tpu.memory_space<smem>>
      %721 = vector.broadcast %720 : f32 to vector<32x128xf32>
      %722 = arith.mulf %721, %699 : vector<32x128xf32>
      %723 = arith.addf %717, %722 : vector<32x128xf32>
      %724 = arith.mulf %723, %701 : vector<32x128xf32>
      %725 = arith.addf %648, %724 : vector<32x128xf32>
      %c3_i32_314 = arith.constant 3 : i32
      %726 = arith.muli %46, %c3_i32_314 : i32
      %c1_i32_315 = arith.constant 1 : i32
      %727 = arith.addi %726, %c1_i32_315 : i32
      %c3_i32_316 = arith.constant 3 : i32
      %728 = arith.muli %727, %c3_i32_316 : i32
      %c9_i32_317 = arith.constant 9 : i32
      %729 = arith.muli %728, %c9_i32_317 : i32
      %c6_i32_318 = arith.constant 6 : i32
      %730 = arith.addi %729, %c6_i32_318 : i32
      %c2_i32_319 = arith.constant 2 : i32
      %731 = arith.addi %730, %c2_i32_319 : i32
      %732 = arith.index_cast %731 : i32 to index
      %733 = memref.load %arg1[%732] : memref<1296xf32, #tpu.memory_space<smem>>
      %734 = vector.broadcast %733 : f32 to vector<32x128xf32>
      %735 = arith.mulf %734, %697 : vector<32x128xf32>
      %c9_i32_320 = arith.constant 9 : i32
      %736 = arith.addi %731, %c9_i32_320 : i32
      %737 = arith.index_cast %736 : i32 to index
      %738 = memref.load %arg1[%737] : memref<1296xf32, #tpu.memory_space<smem>>
      %739 = vector.broadcast %738 : f32 to vector<32x128xf32>
      %740 = arith.mulf %739, %698 : vector<32x128xf32>
      %741 = arith.addf %735, %740 : vector<32x128xf32>
      %c18_i32_321 = arith.constant 18 : i32
      %742 = arith.addi %731, %c18_i32_321 : i32
      %743 = arith.index_cast %742 : i32 to index
      %744 = memref.load %arg1[%743] : memref<1296xf32, #tpu.memory_space<smem>>
      %745 = vector.broadcast %744 : f32 to vector<32x128xf32>
      %746 = arith.mulf %745, %699 : vector<32x128xf32>
      %747 = arith.addf %741, %746 : vector<32x128xf32>
      %748 = arith.mulf %747, %701 : vector<32x128xf32>
      %749 = arith.addf %672, %748 : vector<32x128xf32>
      %c3_i32_322 = arith.constant 3 : i32
      %750 = arith.muli %46, %c3_i32_322 : i32
      %c2_i32_323 = arith.constant 2 : i32
      %751 = arith.addi %750, %c2_i32_323 : i32
      %c3_i32_324 = arith.constant 3 : i32
      %752 = arith.muli %751, %c3_i32_324 : i32
      %c9_i32_325 = arith.constant 9 : i32
      %753 = arith.muli %752, %c9_i32_325 : i32
      %c6_i32_326 = arith.constant 6 : i32
      %754 = arith.addi %753, %c6_i32_326 : i32
      %c2_i32_327 = arith.constant 2 : i32
      %755 = arith.addi %754, %c2_i32_327 : i32
      %756 = arith.index_cast %755 : i32 to index
      %757 = memref.load %arg1[%756] : memref<1296xf32, #tpu.memory_space<smem>>
      %758 = vector.broadcast %757 : f32 to vector<32x128xf32>
      %759 = arith.mulf %758, %697 : vector<32x128xf32>
      %c9_i32_328 = arith.constant 9 : i32
      %760 = arith.addi %755, %c9_i32_328 : i32
      %761 = arith.index_cast %760 : i32 to index
      %762 = memref.load %arg1[%761] : memref<1296xf32, #tpu.memory_space<smem>>
      %763 = vector.broadcast %762 : f32 to vector<32x128xf32>
      %764 = arith.mulf %763, %698 : vector<32x128xf32>
      %765 = arith.addf %759, %764 : vector<32x128xf32>
      %c18_i32_329 = arith.constant 18 : i32
      %766 = arith.addi %755, %c18_i32_329 : i32
      %767 = arith.index_cast %766 : i32 to index
      %768 = memref.load %arg1[%767] : memref<1296xf32, #tpu.memory_space<smem>>
      %769 = vector.broadcast %768 : f32 to vector<32x128xf32>
      %770 = arith.mulf %769, %699 : vector<32x128xf32>
      %771 = arith.addf %765, %770 : vector<32x128xf32>
      %772 = arith.mulf %771, %701 : vector<32x128xf32>
      %773 = arith.addf %696, %772 : vector<32x128xf32>
      %c0_330 = arith.constant 0 : index
      %c0_331 = arith.constant 0 : index
      %c0_332 = arith.constant 0 : index
      %774 = vector.load %arg7[%c0_330, %c0_331, %c0_332] : memref<3x32x128xf32, #tpu.memory_space<vmem>>, vector<1x32x128xf32>
      %775 = vector.shape_cast %774 : vector<1x32x128xf32> to vector<32x128xf32>
      %776 = arith.addf %775, %725 : vector<32x128xf32>
      %cst_333 = arith.constant 5.000000e-01 : f32
      %777 = vector.broadcast %cst_333 : f32 to vector<32x128xf32>
      %778 = arith.mulf %776, %777 : vector<32x128xf32>
      %c0_334 = arith.constant 0 : index
      %c0_335 = arith.constant 0 : index
      %c0_336 = arith.constant 0 : index
      %779 = vector.load %arg7[%c0_334, %c0_335, %c0_336] : memref<3x32x128xf32, #tpu.memory_space<vmem>>, vector<1x32x128xf32>
      %780 = vector.shape_cast %779 : vector<1x32x128xf32> to vector<32x128xf32>
      %781 = vector.shape_cast %778 : vector<32x128xf32> to vector<1x32x128xf32>
      tpu.vector_store %arg7[%c0_334, %c0_335, %c0_336], %781 {strides = array<i32>} : memref<3x32x128xf32, #tpu.memory_space<vmem>>, vector<1x32x128xf32>,
      %cst_337 = arith.constant 0.000000e+00 : f32
      %782 = vector.broadcast %cst_337 : f32 to vector<32x128xf32>
      %783 = arith.cmpf oge, %725, %782 : vector<32x128xf32>
      %cst_338 = arith.constant 0.00999999977 : f32
      %784 = vector.broadcast %cst_338 : f32 to vector<32x128xf32>
      %785 = arith.mulf %784, %725 : vector<32x128xf32>
      %786 = arith.select %783, %725, %785 : vector<32x128xi1>, vector<32x128xf32>
      %c0_339 = arith.constant 0 : index
      %c0_340 = arith.constant 0 : index
      %c0_341 = arith.constant 0 : index
      %787 = vector.load %arg6[%c0_339, %c0_340, %c0_341] : memref<3x32x128xf32, #tpu.memory_space<vmem>>, vector<1x32x128xf32>
      %788 = vector.shape_cast %787 : vector<1x32x128xf32> to vector<32x128xf32>
      %789 = vector.shape_cast %786 : vector<32x128xf32> to vector<1x32x128xf32>
      tpu.vector_store %arg6[%c0_339, %c0_340, %c0_341], %789 {strides = array<i32>} : memref<3x32x128xf32, #tpu.memory_space<vmem>>, vector<1x32x128xf32>,
      %c1_342 = arith.constant 1 : index
      %c0_343 = arith.constant 0 : index
      %c0_344 = arith.constant 0 : index
      %790 = vector.load %arg7[%c1_342, %c0_343, %c0_344] : memref<3x32x128xf32, #tpu.memory_space<vmem>>, vector<1x32x128xf32>
      %791 = vector.shape_cast %790 : vector<1x32x128xf32> to vector<32x128xf32>
      %792 = arith.addf %791, %749 : vector<32x128xf32>
      %cst_345 = arith.constant 5.000000e-01 : f32
      %793 = vector.broadcast %cst_345 : f32 to vector<32x128xf32>
      %794 = arith.mulf %792, %793 : vector<32x128xf32>
      %c1_346 = arith.constant 1 : index
      %c0_347 = arith.constant 0 : index
      %c0_348 = arith.constant 0 : index
      %795 = vector.load %arg7[%c1_346, %c0_347, %c0_348] : memref<3x32x128xf32, #tpu.memory_space<vmem>>, vector<1x32x128xf32>
      %796 = vector.shape_cast %795 : vector<1x32x128xf32> to vector<32x128xf32>
      %797 = vector.shape_cast %794 : vector<32x128xf32> to vector<1x32x128xf32>
      tpu.vector_store %arg7[%c1_346, %c0_347, %c0_348], %797 {strides = array<i32>} : memref<3x32x128xf32, #tpu.memory_space<vmem>>, vector<1x32x128xf32>,
      %cst_349 = arith.constant 0.000000e+00 : f32
      %798 = vector.broadcast %cst_349 : f32 to vector<32x128xf32>
      %799 = arith.cmpf oge, %749, %798 : vector<32x128xf32>
      %cst_350 = arith.constant 0.00999999977 : f32
      %800 = vector.broadcast %cst_350 : f32 to vector<32x128xf32>
      %801 = arith.mulf %800, %749 : vector<32x128xf32>
      %802 = arith.select %799, %749, %801 : vector<32x128xi1>, vector<32x128xf32>
      %c1_351 = arith.constant 1 : index
      %c0_352 = arith.constant 0 : index
      %c0_353 = arith.constant 0 : index
      %803 = vector.load %arg6[%c1_351, %c0_352, %c0_353] : memref<3x32x128xf32, #tpu.memory_space<vmem>>, vector<1x32x128xf32>
      %804 = vector.shape_cast %803 : vector<1x32x128xf32> to vector<32x128xf32>
      %805 = vector.shape_cast %802 : vector<32x128xf32> to vector<1x32x128xf32>
      tpu.vector_store %arg6[%c1_351, %c0_352, %c0_353], %805 {strides = array<i32>} : memref<3x32x128xf32, #tpu.memory_space<vmem>>, vector<1x32x128xf32>,
      %c2_354 = arith.constant 2 : index
      %c0_355 = arith.constant 0 : index
      %c0_356 = arith.constant 0 : index
      %806 = vector.load %arg7[%c2_354, %c0_355, %c0_356] : memref<3x32x128xf32, #tpu.memory_space<vmem>>, vector<1x32x128xf32>
      %807 = vector.shape_cast %806 : vector<1x32x128xf32> to vector<32x128xf32>
      %808 = arith.addf %807, %773 : vector<32x128xf32>
      %cst_357 = arith.constant 5.000000e-01 : f32
      %809 = vector.broadcast %cst_357 : f32 to vector<32x128xf32>
      %810 = arith.mulf %808, %809 : vector<32x128xf32>
      %c2_358 = arith.constant 2 : index
      %c0_359 = arith.constant 0 : index
      %c0_360 = arith.constant 0 : index
      %811 = vector.load %arg7[%c2_358, %c0_359, %c0_360] : memref<3x32x128xf32, #tpu.memory_space<vmem>>, vector<1x32x128xf32>
      %812 = vector.shape_cast %811 : vector<1x32x128xf32> to vector<32x128xf32>
      %813 = vector.shape_cast %810 : vector<32x128xf32> to vector<1x32x128xf32>
      tpu.vector_store %arg7[%c2_358, %c0_359, %c0_360], %813 {strides = array<i32>} : memref<3x32x128xf32, #tpu.memory_space<vmem>>, vector<1x32x128xf32>,
      %cst_361 = arith.constant 0.000000e+00 : f32
      %814 = vector.broadcast %cst_361 : f32 to vector<32x128xf32>
      %815 = arith.cmpf oge, %773, %814 : vector<32x128xf32>
      %cst_362 = arith.constant 0.00999999977 : f32
      %816 = vector.broadcast %cst_362 : f32 to vector<32x128xf32>
      %817 = arith.mulf %816, %773 : vector<32x128xf32>
      %818 = arith.select %815, %773, %817 : vector<32x128xi1>, vector<32x128xf32>
      %c2_363 = arith.constant 2 : index
      %c0_364 = arith.constant 0 : index
      %c0_365 = arith.constant 0 : index
      %819 = vector.load %arg6[%c2_363, %c0_364, %c0_365] : memref<3x32x128xf32, #tpu.memory_space<vmem>>, vector<1x32x128xf32>
      %820 = vector.shape_cast %819 : vector<1x32x128xf32> to vector<32x128xf32>
      %821 = vector.shape_cast %818 : vector<32x128xf32> to vector<1x32x128xf32>
      tpu.vector_store %arg6[%c2_363, %c0_364, %c0_365], %821 {strides = array<i32>} : memref<3x32x128xf32, #tpu.memory_space<vmem>>, vector<1x32x128xf32>,
      %c15_i32 = arith.constant 15 : i32
      %822 = arith.cmpi eq, %46, %c15_i32 : i32
      %823 = arith.extui %822 : i1 to i32
      %c0_i32_366 = arith.constant 0 : i32
      %824 = arith.cmpi ne, %823, %c0_i32_366 : i32
      scf.if %824 {
        %825 = arith.index_cast %1 : i32 to index
        %c0_367 = arith.constant 0 : index
        %c0_368 = arith.constant 0 : index
        %c0_369 = arith.constant 0 : index
        %826 = vector.load %arg5[%825, %c0_367, %c0_368, %c0_369] : memref<1x3x32x128xf32, #tpu.memory_space<vmem>>, vector<1x1x32x128xf32>
        %827 = vector.shape_cast %826 : vector<1x1x32x128xf32> to vector<32x128xf32>
        %828 = vector.shape_cast %725 : vector<32x128xf32> to vector<1x1x32x128xf32>
        tpu.vector_store %arg5[%825, %c0_367, %c0_368, %c0_369], %828 {strides = array<i32>} : memref<1x3x32x128xf32, #tpu.memory_space<vmem>>, vector<1x1x32x128xf32>,
        %829 = arith.index_cast %1 : i32 to index
        %c1_370 = arith.constant 1 : index
        %c0_371 = arith.constant 0 : index
        %c0_372 = arith.constant 0 : index
        %830 = vector.load %arg5[%829, %c1_370, %c0_371, %c0_372] : memref<1x3x32x128xf32, #tpu.memory_space<vmem>>, vector<1x1x32x128xf32>
        %831 = vector.shape_cast %830 : vector<1x1x32x128xf32> to vector<32x128xf32>
        %832 = vector.shape_cast %749 : vector<32x128xf32> to vector<1x1x32x128xf32>
        tpu.vector_store %arg5[%829, %c1_370, %c0_371, %c0_372], %832 {strides = array<i32>} : memref<1x3x32x128xf32, #tpu.memory_space<vmem>>, vector<1x1x32x128xf32>,
        %833 = arith.index_cast %1 : i32 to index
        %c2_373 = arith.constant 2 : index
        %c0_374 = arith.constant 0 : index
        %c0_375 = arith.constant 0 : index
        %834 = vector.load %arg5[%833, %c2_373, %c0_374, %c0_375] : memref<1x3x32x128xf32, #tpu.memory_space<vmem>>, vector<1x1x32x128xf32>
        %835 = vector.shape_cast %834 : vector<1x1x32x128xf32> to vector<32x128xf32>
        %836 = vector.shape_cast %773 : vector<32x128xf32> to vector<1x1x32x128xf32>
        tpu.vector_store %arg5[%833, %c2_373, %c0_374, %c0_375], %836 {strides = array<i32>} : memref<1x3x32x128xf32, #tpu.memory_space<vmem>>, vector<1x1x32x128xf32>,
      } else {
      }
    }
    %c16_i32_32 = arith.constant 16 : i32
    %c1_i32_33 = arith.constant 1 : i32
    return
  }
  func.func @transform_0(%arg0: i32) -> i32 {
    %c0_i32 = arith.constant 0 : i32
    %c0_i32_0 = arith.constant 0 : i32
    return %c0_i32 : i32
  }
  func.func @transform_1(%arg0: i32) -> i32 {
    %c0_i32 = arith.constant 0 : i32
    %c0_i32_0 = arith.constant 0 : i32
    return %c0_i32 : i32
  }
  func.func @transform_2(%arg0: i32) -> (i32, i32, i32) {
    %c0_i32 = arith.constant 0 : i32
    %c0_i32_0 = arith.constant 0 : i32
    %c0_i32_1 = arith.constant 0 : i32
    %c0_i32_2 = arith.constant 0 : i32
    return %c0_i32, %c0_i32_0, %c0_i32_1 : i32, i32, i32
  }
  func.func @transform_3(%arg0: i32) -> (i32, i32, i32, i32) {
    %c0_i32 = arith.constant 0 : i32
    %c0_i32_0 = arith.constant 0 : i32
    %c0_i32_1 = arith.constant 0 : i32
    %c0_i32_2 = arith.constant 0 : i32
    return %arg0, %c0_i32, %c0_i32_0, %c0_i32_1 : i32, i32, i32, i32
  }
  func.func @transform_4(%arg0: i32) -> (i32, i32, i32, i32) {
    %c0_i32 = arith.constant 0 : i32
    %c0_i32_0 = arith.constant 0 : i32
    %c0_i32_1 = arith.constant 0 : i32
    %c0_i32_2 = arith.constant 0 : i32
    return %arg0, %c0_i32, %c0_i32_0, %c0_i32_1 : i32, i32, i32, i32
  }
}

module attributes {stable_mosaic.version = 11 : i64} {
  func.func @head_kernel(%arg0: i32, %arg1: memref<6x3072xf32, #tpu.memory_space<vmem>>, %arg2: memref<3072x256xbf16, #tpu.memory_space<vmem>>, %arg3: memref<1x256xf32, #tpu.memory_space<vmem>>, %arg4: memref<256x10xf32, #tpu.memory_space<vmem>>, %arg5: memref<1x10xf32, #tpu.memory_space<vmem>>, %arg6: memref<6x10xf32, #tpu.memory_space<vmem>>, %arg7: memref<6x10xf32, #tpu.memory_space<vmem>>) attributes {dimension_semantics = [#tpu.dimension_semantics<arbitrary>], iteration_bounds = array<i64: 4>, scalar_prefetch = 0 : i64, scratch_operands = 1 : i64, tpu.core_type = #tpu.core_type<tc>, window_params = [{pipeline_mode = #tpu.pipeline_mode<synchronous>, transform_indices = @transform_0, window_bounds = array<i64: 6, 3072>}, {transform_indices = @transform_1, window_bounds = array<i64: 3072, 256>}, {transform_indices = @transform_2, window_bounds = array<i64: 1, 256>}, {transform_indices = @transform_3, window_bounds = array<i64: 256, 10>}, {pipeline_mode = #tpu.pipeline_mode<synchronous>, transform_indices = @transform_4, window_bounds = array<i64: 1, 10>}, {pipeline_mode = #tpu.pipeline_mode<synchronous>, transform_indices = @transform_5, window_bounds = array<i64: 6, 10>}]} {
    %c0_i32 = arith.constant 0 : i32
    %0 = arith.cmpi eq, %arg0, %c0_i32 : i32
    %1 = arith.extui %0 : i1 to i32
    %c0_i32_0 = arith.constant 0 : i32
    %2 = arith.cmpi ne, %1, %c0_i32_0 : i32
    scf.if %2 {
      %cst_18 = arith.constant 0.000000e+00 : f32
      %28 = vector.broadcast %cst_18 : f32 to vector<6x10xf32>
      %c0_19 = arith.constant 0 : index
      %c0_20 = arith.constant 0 : index
      %29 = vector.load %arg7[%c0_19, %c0_20] : memref<6x10xf32, #tpu.memory_space<vmem>>, vector<6x10xf32>
      tpu.vector_store %arg7[%c0_19, %c0_20], %28 {strides = array<i32>} : memref<6x10xf32, #tpu.memory_space<vmem>>, vector<6x10xf32>,
    } else {
    }
    %c0 = arith.constant 0 : index
    %c0_1 = arith.constant 0 : index
    %3 = vector.load %arg1[%c0, %c0_1] : memref<6x3072xf32, #tpu.memory_space<vmem>>, vector<6x3072xf32>
    %cst = arith.constant 0.000000e+00 : f32
    %4 = vector.broadcast %cst : f32 to vector<6x3072xf32>
    %5 = arith.cmpf oge, %3, %4 : vector<6x3072xf32>
    %cst_2 = arith.constant 0.00999999977 : f32
    %6 = vector.broadcast %cst_2 : f32 to vector<6x3072xf32>
    %7 = arith.mulf %6, %3 : vector<6x3072xf32>
    %8 = arith.select %5, %3, %7 : vector<6x3072xi1>, vector<6x3072xf32>
    %9 = arith.truncf %8 : vector<6x3072xf32> to vector<6x3072xbf16>
    %c0_3 = arith.constant 0 : index
    %c0_4 = arith.constant 0 : index
    %10 = vector.load %arg2[%c0_3, %c0_4] : memref<3072x256xbf16, #tpu.memory_space<vmem>>, vector<3072x256xbf16>
    %cst_5 = arith.constant dense<0.000000e+00> : vector<6x256xf32>
    %11 = tpu.matmul %9, %10, %cst_5 {dimension_numbers = #tpu.dot_dimension_numbers<[1], [0], [0], [1], [0, 0, 1, 1], [], []>} : vector<6x3072xbf16>, vector<3072x256xbf16>, vector<6x256xf32> -> vector<6x256xf32>
    %c0_6 = arith.constant 0 : index
    %c0_7 = arith.constant 0 : index
    %12 = vector.load %arg3[%c0_6, %c0_7] : memref<1x256xf32, #tpu.memory_space<vmem>>, vector<1x256xf32>
    %13 = vector.broadcast %12 : vector<1x256xf32> to vector<6x256xf32>
    %14 = arith.addf %11, %13 : vector<6x256xf32>
    %cst_8 = arith.constant 0.000000e+00 : f32
    %15 = vector.broadcast %cst_8 : f32 to vector<6x256xf32>
    %16 = arith.cmpf oge, %14, %15 : vector<6x256xf32>
    %cst_9 = arith.constant 0.00999999977 : f32
    %17 = vector.broadcast %cst_9 : f32 to vector<6x256xf32>
    %18 = arith.mulf %17, %14 : vector<6x256xf32>
    %19 = arith.select %16, %14, %18 : vector<6x256xi1>, vector<6x256xf32>
    %c0_10 = arith.constant 0 : index
    %c0_11 = arith.constant 0 : index
    %20 = vector.load %arg7[%c0_10, %c0_11] : memref<6x10xf32, #tpu.memory_space<vmem>>, vector<6x10xf32>
    %c0_12 = arith.constant 0 : index
    %c0_13 = arith.constant 0 : index
    %21 = vector.load %arg4[%c0_12, %c0_13] : memref<256x10xf32, #tpu.memory_space<vmem>>, vector<256x10xf32>
    %cst_14 = arith.constant dense<0.000000e+00> : vector<6x10xf32>
    %22 = tpu.matmul %19, %21, %cst_14 {dimension_numbers = #tpu.dot_dimension_numbers<[1], [0], [0], [1], [0, 0, 1, 1], [], []>} : vector<6x256xf32>, vector<256x10xf32>, vector<6x10xf32> -> vector<6x10xf32>
    %23 = arith.addf %20, %22 : vector<6x10xf32>
    %c0_15 = arith.constant 0 : index
    %c0_16 = arith.constant 0 : index
    %24 = vector.load %arg7[%c0_15, %c0_16] : memref<6x10xf32, #tpu.memory_space<vmem>>, vector<6x10xf32>
    tpu.vector_store %arg7[%c0_15, %c0_16], %23 {strides = array<i32>} : memref<6x10xf32, #tpu.memory_space<vmem>>, vector<6x10xf32>,
    %c3_i32 = arith.constant 3 : i32
    %25 = arith.cmpi eq, %arg0, %c3_i32 : i32
    %26 = arith.extui %25 : i1 to i32
    %c0_i32_17 = arith.constant 0 : i32
    %27 = arith.cmpi ne, %26, %c0_i32_17 : i32
    scf.if %27 {
      %c0_18 = arith.constant 0 : index
      %c0_19 = arith.constant 0 : index
      %28 = vector.load %arg7[%c0_18, %c0_19] : memref<6x10xf32, #tpu.memory_space<vmem>>, vector<6x10xf32>
      %c0_20 = arith.constant 0 : index
      %c0_21 = arith.constant 0 : index
      %29 = vector.load %arg5[%c0_20, %c0_21] : memref<1x10xf32, #tpu.memory_space<vmem>>, vector<1x10xf32>
      %30 = vector.broadcast %29 : vector<1x10xf32> to vector<6x10xf32>
      %31 = arith.addf %28, %30 : vector<6x10xf32>
      %cst_22 = arith.constant dense<0xFF800000> : vector<10xf32>
      %32 = vector.multi_reduction <maximumf>, %31, %cst_22 [0] : vector<6x10xf32> to vector<10xf32>
      %33 = vector.shape_cast %32 : vector<10xf32> to vector<1x10xf32>
      %34 = vector.broadcast %33 : vector<1x10xf32> to vector<6x10xf32>
      %35 = arith.subf %31, %34 : vector<6x10xf32>
      %36 = math.exp %35 : vector<6x10xf32>
      %cst_23 = arith.constant dense<0.000000e+00> : vector<10xf32>
      %37 = vector.multi_reduction <add>, %36, %cst_23 [0] : vector<6x10xf32> to vector<10xf32>
      %38 = vector.shape_cast %37 : vector<10xf32> to vector<1x10xf32>
      %39 = math.log %38 : vector<1x10xf32>
      %40 = arith.addf %33, %39 : vector<1x10xf32>
      %41 = vector.broadcast %40 : vector<1x10xf32> to vector<6x10xf32>
      %42 = arith.subf %31, %41 : vector<6x10xf32>
      %c0_24 = arith.constant 0 : index
      %c0_25 = arith.constant 0 : index
      %43 = vector.load %arg6[%c0_24, %c0_25] : memref<6x10xf32, #tpu.memory_space<vmem>>, vector<6x10xf32>
      tpu.vector_store %arg6[%c0_24, %c0_25], %42 {strides = array<i32>} : memref<6x10xf32, #tpu.memory_space<vmem>>, vector<6x10xf32>,
    } else {
    }
    return
  }
  func.func @transform_0(%arg0: i32) -> (i32, i32) {
    %c0_i32 = arith.constant 0 : i32
    %c0_i32_0 = arith.constant 0 : i32
    %c0_i32_1 = arith.constant 0 : i32
    return %c0_i32, %c0_i32_0 : i32, i32
  }
  func.func @transform_1(%arg0: i32) -> (i32, i32) {
    %c0_i32 = arith.constant 0 : i32
    %c0_i32_0 = arith.constant 0 : i32
    return %c0_i32, %arg0 : i32, i32
  }
  func.func @transform_2(%arg0: i32) -> (i32, i32) {
    %c0_i32 = arith.constant 0 : i32
    %c0_i32_0 = arith.constant 0 : i32
    return %c0_i32, %arg0 : i32, i32
  }
  func.func @transform_3(%arg0: i32) -> (i32, i32) {
    %c0_i32 = arith.constant 0 : i32
    %c0_i32_0 = arith.constant 0 : i32
    return %arg0, %c0_i32 : i32, i32
  }
  func.func @transform_4(%arg0: i32) -> (i32, i32) {
    %c0_i32 = arith.constant 0 : i32
    %c0_i32_0 = arith.constant 0 : i32
    %c0_i32_1 = arith.constant 0 : i32
    return %c0_i32, %c0_i32_0 : i32, i32
  }
  func.func @transform_5(%arg0: i32) -> (i32, i32) {
    %c0_i32 = arith.constant 0 : i32
    %c0_i32_0 = arith.constant 0 : i32
    %c0_i32_1 = arith.constant 0 : i32
    return %c0_i32, %c0_i32_0 : i32, i32
  }
}

</mosaic_0001>

<bundles_post_ra>
// kernel: reinforce_net_forward.2
= control target key start
LH: loop header
LB: loop body
LE: loop exit
PB: predicated region body
PF: predicated region fallthrough
CT: control target
= control target key end

     0   :  { %s3725_s0 = inlined_call_operand.hbm [shape: f32[1296], index: 0, kind: input, shape index: {}]   ;;  %s3726_s1 = inlined_call_operand.hbm [shape: f32[48], index: 1, kind: input, shape index: {}]   ;;  %s3727_s2 = inlined_call_operand.hbm [shape: f32[9,32,128], index: 2, kind: input, shape index: {}]   ;;  %s3728_s3 = inlined_call_operand.vmem [shape: f32[2,3,32,128], index: 3, kind: input, shape index: {}]   ;;  %s3729_s4 = inlined_call_operand.vmem [shape: f32[2,3,32,128], index: 4, kind: output, shape index: {}]  }
   0x1   :  { %3781 = sst [smem:[#allocation90_spill]] %s3725_s0 }
   0x2   :  { %3782 = sst [smem:[#allocation91_spill]] %s3726_s1 }
   0x3   :  { %3783 = sst [smem:[#allocation92_spill]] %s3727_s2 }
   0x4   :  { %3784 = sst [smem:[#allocation93_spill]] %s3728_s3 }
   0x5   :  { %3785 = sst [smem:[#allocation94_spill]] %s3729_s4 }
   0x6   :  { %9 = vsyncpa [#allocation6], 0 }
   0x7   :  { %10 = vsyncpa [#allocation8], 0 }
   0x8   :  { %11 = vsyncpa [#allocation5], 0  ;;  %s1987_s15 = smov 0  }
   0x9 LB: > { %3786 = sst [smem:[#allocation13_spill]] %s1949_s15  ;;  %s1993_s16 = sadd.s32 4294967295, %s1949_s15   ;;  %s1949_s15 = sphi %s1987_s15, %s17_s15  }
   0xa   : > { %p1793_p0 = scmp.ge.s32.totalorder %s1949_s15, 1  ;;  %p137_p1 = scmp.lt.s32.totalorder %s1949_s15, 3 }
   0xb   : > { %p1846_p3 = scmp.eq.s32.totalorder %s1993_s16, 0  ;;  %s1955_s18 = smov [#allocation9]  }
   0xc   : > { %p1997_p2 = pnand %p1793_p0, %p137_p1  ;;  %s167_s19 = sshll.u32 %s1955_s18, 4  ;;  %s168_s19 = int_to_ptr.vmem [resolvable:$true] %s167_s19 }
   0xd   : > { %s1956_s21 = smov [#allocation4]   ;;  %s3789_s0 = sld [smem:[#allocation90_spill]] }
   0xe   : > { %p1836_p4 = pneg %p1997_p2  ;;  %s1957_s24 = smov [#allocation7]  }
   0xf   : > { %s3790_s1 = sld [smem:[#allocation91_spill]]  ;;  %s1912_s27 = scalar_lea.vmem %s168_s19, 4608 }
  0x10   : > { %p2006_p5 = pnand %p1846_p3, %p1836_p4  ;;  %p1913_p7 = scmp.ne.s32.totalorder %s168_s19, %s1912_s27 }
  0x11   : > { %p1920_p10 = scmp.lt.s32.totalorder %s168_s19, %s168_s19  ;;  %p1921_p11 = scmp.lt.s32.totalorder %s1912_s27, %s1912_s27 }
  0x12   : > { %p1903_p6 = pneg %p2006_p5 }
  0x13   : > { %1839 = dma.hbm_to_smem (!%p2006_p5), %s3789_s0, 176, %s1956_s21, [#allocation6]  }
  0x14   : > { %p1915_p8 = pnand %p1913_p7, %p1903_p6  ;;  %p1922_p12 = por %p1921_p11, %p1920_p10 }
  0x15   : > { %1842 = dma.hbm_to_smem (!%p2006_p5), %s3790_s1, 16, %s1957_s24, [#allocation8]  }
  0x16   : > { %p1916_p9 = pneg %p1915_p8 }
  0x18   : > { %p1923_p13 = pnand %p1922_p12, %p1916_p9 }
  0x1a   : > { %1926 = shalt.err (!%p1923_p13)
}
  0x1b   : > { %s1958_s28 = smov 128   ;;  %s1959_s29 = smov 8  }
  0x1c   : > { %s3791_s2 = sld [smem:[#allocation92_spill]] }
  0x1e   : > { %191 = sbr.rel (%p1997_p2) target bundleno = 374 (0x176), region = 36 }
  0x22   : > { %1845 = dma.hbm_to_vmem [thread:$0]  (!%p2006_p5), %s3791_s2, 4608, %s168_s19, [#allocation5], %s1958_s28, %s1958_s28, %s1959_s29  }
  0x23   : > { %1936 = dma.done.wait (%p1846_p3), [#allocation6], 176  }
  0x24   : > { %1938 = vsyncadd (%p1846_p3), [#allocation6], 4294967120 }
  0x25   : > { %1940 = dma.done.wait (%p1846_p3), [#allocation8], 16  }
  0x26   : > { %1942 = vsyncadd (%p1846_p3), [#allocation8], 4294967280 }
  0x27   : > { %1944 = dma.done.wait (%p1846_p3), [#allocation5], 4608  }
  0x28   : > { %1946 = vsyncadd (%p1846_p3), [#allocation5], 4294962688 }
  0x29   : > { %205 = sfence }
  0x2a   : > { %p226_p0 = scmp.lt.s32.totalorder %s1993_s16, 1  ;;  %s3792_s3 = sld [smem:[#allocation93_spill]] }
  0x2b   : > { %s3793_s4 = sld [smem:[#allocation94_spill]]  ;;  %s2068_s13 = smov 0  }
  0x2c   : > { %s3994_s16 = smov (!%p226_p0, %s1993_s16), 1 }
  0x2d   : > { %s1823_s6 = smul.u32 96, %s3994_s16 }
  0x30   : > { %s2046_s9 = scalar_lea.vmem %s3792_s3, %s1823_s6 }
  0x31   : > { %s2051_s12 = scalar_lea.vmem %s3793_s4, %s1823_s6  ;;  %v236_v0 = vld [vmem:[%s2046_s9] sm:$0xff]  ;;  %v237_v1 = vld [vmem:[%s2046_s9 + $0x8] sm:$0xff]  ;;  %v238_v2 = vld [vmem:[%s2046_s9 + $0x10] sm:$0xff] }
  0x32   : > { %3794 = sst [smem:[#allocation14_spill]] %s2051_s12  ;;  %240 = vst [vmem:[#allocation3 + $0x48] sm:$0xff] %v236_v0  ;;  %241 = vst [vmem:[#allocation3] sm:$0xff] %v237_v1  ;;  %v239_v3 = vld [vmem:[%s2046_s9 + $0x18] sm:$0xff]  ;;  %vm244_vm0 = vcmp.ge.f32.partialorder %v236_v0, 0.0  ;;  %vm245_vm1 = vcmp.ge.f32.partialorder %v237_v1, 0.0 }
  0x33   : > { %242 = vst [vmem:[#allocation3 + $0x50] sm:$0xff] %v238_v2  ;;  %v248_v4 = vmul.f32 0.01, %v236_v0  ;;  %vm246_vm2 = vcmp.ge.f32.partialorder %v238_v2, 0.0  ;;  %243 = vst [vmem:[#allocation3 + $0x30] sm:$0xff] %v239_v3  ;;  %vm247_vm3 = vcmp.ge.f32.partialorder %v239_v3, 0.0 }
  0x34   : > { %v249_v5 = vmul.f32 0.01, %v237_v1  ;;  %v250_v6 = vmul.f32 0.01, %v238_v2  ;;  %v1804_v7 = vld [vmem:[%s2046_s9 + $0x20] sm:$0xff]  ;;  %v1805_v10 = vld [vmem:[%s2046_s9 + $0x28] sm:$0xff] }
  0x35   : > { %v252_v8 = vsel %vm244_vm0, %v236_v0, %v248_v4  ;;  %v251_v9 = vmul.f32 0.01, %v239_v3  ;;  %266 = vst [vmem:[#allocation3 + $0x8] sm:$0xff] %v1804_v7  ;;  %v1806_v11 = vld [vmem:[%s2046_s9 + $0x30] sm:$0xff]  ;;  %v1807_v12 = vld [vmem:[%s2046_s9 + $0x38] sm:$0xff]  ;;  %vm270_vm4 = vcmp.ge.f32.partialorder %v1804_v7, 0.0 }
  0x36   : > { %256 = vst [vmem:[#allocation2 + $0x30] sm:$0xff] %v252_v8  ;;  %v253_v13 = vsel %vm245_vm1, %v237_v1, %v249_v5  ;;  %v254_v14 = vsel %vm246_vm2, %v238_v2, %v250_v6  ;;  %267 = vst [vmem:[#allocation3 + $0x20] sm:$0xff] %v1805_v10  ;;  %v274_v15 = vmul.f32 0.01, %v1804_v7  ;;  %vm271_vm5 = vcmp.ge.f32.partialorder %v1805_v10, 0.0  ;;  %v1808_v16 = vld [vmem:[%s2046_s9 + $0x40] sm:$0xff] }
  0x37   : > { %268 = vst [vmem:[#allocation3 + $0x18] sm:$0xff] %v1806_v11  ;;  %269 = vst [vmem:[#allocation3 + $0x40] sm:$0xff] %v1807_v12  ;;  %v1809_v17 = vld [vmem:[%s2046_s9 + $0x48] sm:$0xff]  ;;  %v1810_v18 = vld [vmem:[%s2046_s9 + $0x50] sm:$0xff]  ;;  %v255_v19 = vsel %vm247_vm3, %v239_v3, %v251_v9  ;;  %v275_v20 = vmul.f32 0.01, %v1805_v10 }
  0x38   : > { %257 = vst [vmem:[#allocation2] sm:$0xff] %v253_v13  ;;  %258 = vst [vmem:[#allocation2 + $0x58] sm:$0xff] %v254_v14  ;;  %vm272_vm6 = vcmp.ge.f32.partialorder %v1806_v11, 0.0  ;;  %v276_v21 = vmul.f32 0.01, %v1806_v11  ;;  %v1811_v22 = vld [vmem:[%s2046_s9 + $0x58] sm:$0xff]  ;;  %v278_v23 = vsel %vm270_vm4, %v1804_v7, %v274_v15 }
  0x39   : > { %293 = vst [vmem:[#allocation3 + $0x38] sm:$0xff] %v1808_v16  ;;  %294 = vst [vmem:[#allocation3 + $0x28] sm:$0xff] %v1809_v17  ;;  %vm273_vm7 = vcmp.ge.f32.partialorder %v1807_v12, 0.0  ;;  %v277_v24 = vmul.f32 0.01, %v1807_v12  ;;  %vm297_vm8 = vcmp.ge.f32.partialorder %v1808_v16, 0.0  ;;  %v279_v25 = vsel %vm271_vm5, %v1805_v10, %v275_v20 }
  0x3a   : > { %295 = vst [vmem:[#allocation3 + $0x58] sm:$0xff] %v1810_v18  ;;  %259 = vst [vmem:[#allocation2 + $0x18] sm:$0xff] %v255_v19  ;;  %v280_v26 = vsel %vm272_vm6, %v1806_v11, %v276_v21  ;;  %v301_v27 = vmul.f32 0.01, %v1808_v16  ;;  %vm298_vm9 = vcmp.ge.f32.partialorder %v1809_v17, 0.0  ;;  %vm299_vm10 = vcmp.ge.f32.partialorder %v1810_v18, 0.0 }
  0x3b   : > { %296 = vst [vmem:[#allocation3 + $0x10] sm:$0xff] %v1811_v22  ;;  %283 = vst [vmem:[#allocation2 + $0x50] sm:$0xff] %v278_v23  ;;  %v281_v28 = vsel %vm273_vm7, %v1807_v12, %v277_v24  ;;  %v302_v29 = vmul.f32 0.01, %v1809_v17  ;;  %v303_v30 = vmul.f32 0.01, %v1810_v18 }
  0x3c   : > { %284 = vst [vmem:[#allocation2 + $0x20] sm:$0xff] %v279_v25  ;;  %285 = vst [vmem:[#allocation2 + $0x8] sm:$0xff] %v280_v26  ;;  %v305_v31 = vsel %vm297_vm8, %v1808_v16, %v301_v27  ;;  %vm300_vm11 = vcmp.ge.f32.partialorder %v1811_v22, 0.0  ;;  %v304_v32 = vmul.f32 0.01, %v1811_v22 }
  0x3d   : > { %286 = vst [vmem:[#allocation2 + $0x38] sm:$0xff] %v281_v28  ;;  %310 = vst [vmem:[#allocation2 + $0x28] sm:$0xff] %v305_v31  ;;  %v306_v33 = vsel %vm298_vm9, %v1809_v17, %v302_v29  ;;  %v307_v34 = vsel %vm299_vm10, %v1810_v18, %v303_v30 }
  0x3e   : > { %311 = vst [vmem:[#allocation2 + $0x48] sm:$0xff] %v306_v33  ;;  %312 = vst [vmem:[#allocation2 + $0x10] sm:$0xff] %v307_v34  ;;  %v308_v35 = vsel %vm300_vm11, %v1811_v22, %v304_v32 }
  0x3f   : > { %313 = vst [vmem:[#allocation2 + $0x40] sm:$0xff] %v308_v35 }
  0x40 LB: >> { %3795 = sst [smem:[#allocation15_spill]] %s1953_s13  ;;  %v2073_v36 = vld [vmem:[#allocation2] sm:$0xff]  ;;  %v2075_v37 = vld [vmem:[#allocation2 + $0x58] sm:$0xff]  ;;  %v361_v38 = vlaneseq  ;;  %v2077_v39 = vld [vmem:[#allocation2 + $0x30] sm:$0xff]  ;;  %s2087_s14 = smul.u32 3, %s1953_s13  ;;  %s1953_s13 = sphi %s2068_s13, %s319_s13  }
  0x41   : >> { %3796 = vst [vmem:[#allocation16_spill] sm:$0xff] %v2075_v37  ;;  %v358_v40 = vrot.slane %v2073_v36, 7  ;;  %v359_v41 = vrot.slane %v2075_v37, 7  ;;  %v2081_v42 = vld [vmem:[#allocation2 + $0x18] sm:$0xff]  ;;  %v357_v43 = vrot.slane %v2077_v39, 7  ;;  %s2091_s16 = smul.u32 81, %s1953_s13 }
  0x42   : >> { %v2084_v44 = vshrl.u32 %v361_v38, 7  ;;  %v360_v45 = vrot.slane %v2081_v42, 7  ;;  %v2093_v46 = vld [vmem:[#allocation2 + $0x50] sm:$0xff]  ;;  %s3733_s17 = sadd.s32 1, %s2087_s14  ;;  %s3732_s18 = sadd.s32 2, %s2087_s14 }
  0x43   : >> { %v2098_v47 = vld [vmem:[#allocation2 + $0x20] sm:$0xff]  ;;  %s2108_s19 = smul.u32 27, %s3733_s17  ;;  %s536_s20 = sadd.s32 1, %s2091_s16  ;;  %v2115_v51 = vld [vmem:[#allocation2 + $0x8] sm:$0xff]  ;;  %v372_v53 = vrot.slane %v2093_v46, 7 }
  0x44   : >> { %vm363_vm12 = vcmp.lt.s32.totalorder %v2084_v44, 1  ;;  %v2100_v48 = vld [vmem:[#allocation2 + $0x38] sm:$0xff]  ;;  %v2117_v52 = vld [vmem:[#allocation2 + $0x28] sm:$0xff]  ;;  %s3734_s21 = smov 1   ;;  %s2123_s22 = smul.u32 27, %s3732_s18  ;;  %v373_v59 = vrot.slane %v2098_v47, 7 }
  0x45   : >> { %v2104_v49 = vsel %vm363_vm12, %v358_v40, %v359_v41  ;;  %v2113_v50 = vsel %vm363_vm12, %v360_v45, %v357_v43  ;;  %s537_s23 = sld [smem:[#allocation4 + %s536_s20]]  ;;  %v2128_v54 = vld [vmem:[#allocation2 + $0x48] sm:$0xff]  ;;  %v2132_v56 = vld [vmem:[#allocation2 + $0x10] sm:$0xff]  ;;  %s573_s24 = sadd.s32 1, %s2108_s19  ;;  %v2137_v57 = vsel %vm363_vm12, %v359_v41, %v360_v45  ;;  %v2141_v58 = vsel %vm363_vm12, %v357_v43, %v358_v40 }
  0x46   : >> { %396 = vrot.lane.b32.xlu1 %v2104_v49, %s3734_s21  ;;  %392 = vrot.lane.b32.xlu0 %v2113_v50, %s3734_s21  ;;  %v2130_v55 = vld [vmem:[#allocation2 + $0x40] sm:$0xff]  ;;  %s543_s25 = sadd.s32 10, %s2091_s16  ;;  %v375_v60 = vrot.slane %v2100_v48, 7  ;;  %s574_s26 = sld [smem:[#allocation4 + %s573_s24]]  ;;  %v374_v61 = vrot.slane %v2115_v51, 7  ;;  %v384_v62 = vrot.slane %v2117_v52, 7  ;;  %v2164_v2 = vsel %vm363_vm12, %v372_v53, %v373_v59 }
  0x47   : >> { %s610_s27 = sadd.s32 1, %s2123_s22  ;;  %s580_s29 = sadd.s32 10, %s2108_s19  ;;  %v385_v63 = vrot.slane %v2128_v54, 7  ;;  %v387_v0 = vrot.slane %v2130_v55, 7  ;;  %v386_v1 = vrot.slane %v2132_v56, 7  ;;  %vm1170_vm13 = vcmp.lt.s32.totalorder %v2084_v44, 7 }
  0x48   : >> { %s2148_s28 = sld [smem:[#allocation4 + %s610_s27]]  ;;  %s617_s5 = sadd.s32 10, %s2123_s22  ;;  %v2170_v3 = vsel %vm363_vm12, %v375_v60, %v372_v53  ;;  %v2177_v5 = vsel %vm363_vm12, %v374_v61, %v375_v60  ;;  %v2181_v6 = vsel %vm363_vm12, %v373_v59, %v374_v61 }
  0x49   : >> { %s2159_s30 = sld [smem:[#allocation4 + %s543_s25]]  ;;  %s554_s7 = sadd.s32 19, %s2091_s16  ;;  %v2186_v7 = vsel %vm363_vm12, %v384_v62, %v385_v63  ;;  %v2193_v8 = vsel %vm363_vm12, %v387_v0, %v384_v62  ;;  %v2197_v9 = vsel %vm363_vm12, %v386_v1, %v387_v0  ;;  %v2201_v10 = vsel %vm363_vm12, %v385_v63, %v386_v1 }
  0x4a   : >> { %398 = vrot.lane.b32.xlu1 %v2137_v57, %s3734_s21  ;;  %394 = vrot.lane.b32.xlu0 %v2141_v58, %s3734_s21  ;;  %s2166_s6 = sld [smem:[#allocation4 + %s580_s29]]  ;;  %s591_s9 = sadd.s32 19, %s2108_s19 }
  0x4b   : >> { %v538_v4 = vstv %s537_s23  ;;  %s2173_s8 = sld [smem:[#allocation4 + %s617_s5]]  ;;  %s628_s11 = sadd.s32 19, %s2123_s22 }
  0x4c   : >> { %s2188_s10 = sld [smem:[#allocation4 + %s554_s7]]  ;;  %v541_v11 = vmul.f32 %v538_v4, %v2104_v49  ;;  %v575_v12 = vstv %s574_s26  ;;  %v539_v13 = vmul.f32 %v538_v4, %v2113_v50  ;;  %v542_v14 = vmul.f32 %v538_v4, %v2137_v57  ;;  %s3730_s24 = smov 127  }
  0x4d   : >> { %s2210_s20 = sld [smem:[#allocation4 + %s591_s9]]  ;;  %v578_v15 = vmul.f32 %v575_v12, %v2104_v49  ;;  %v576_v17 = vmul.f32 %v575_v12, %v2113_v50  ;;  %v540_v18 = vmul.f32 %v538_v4, %v2141_v58  ;;  %v579_v21 = vmul.f32 %v575_v12, %v2137_v57  ;;  %s1336_s25 = sadd.s32 7, %s2091_s16 }
  0x4e   : >> { %402 = vrot.lane.b32.xlu1 %v2164_v2, %s3734_s21  ;;  %400 = vrot.lane.b32.xlu0 %v2170_v3, %s3734_s21  ;;  %v612_v16 = vstv %s2148_s28  ;;  %s2216_s23 = sld [smem:[#allocation4 + %s628_s11]]  ;;  %v577_v22 = vmul.f32 %v575_v12, %v2141_v58  ;;  %s1373_s26 = sadd.s32 7, %s2108_s19 }
  0x4f   : >> { %v615_v19 = vmul.f32 %v612_v16, %v2104_v49  ;;  %v613_v20 = vmul.f32 %v612_v16, %v2113_v50  ;;  %v616_v23 = vmul.f32 %v612_v16, %v2137_v57  ;;  %v614_v24 = vmul.f32 %v612_v16, %v2141_v58  ;;  %s1410_s27 = sadd.s32 7, %s2123_s22  ;;  %s2323_s28 = sld [smem:[#allocation4 + %s1336_s25]] }
  0x50   : >> { %v545_v25 = vstv %s2159_s30  ;;  %v582_v26 = vstv %s2166_s6  ;;  %s1343_s29 = sadd.s32 16, %s2091_s16  ;;  %s2328_s30 = sld [smem:[#allocation4 + %s1373_s26]] }
  0x51   : >> { %v547_v27 = vmul.f32 %v545_v25, %v2164_v2  ;;  %v584_v28 = vmul.f32 %v582_v26, %v2164_v2  ;;  %v619_v29 = vstv %s2173_s8  ;;  %v546_v30 = vmul.f32 %v545_v25, %v2170_v3  ;;  %s1380_s5 = sadd.s32 16, %s2108_s19  ;;  %s2331_s6 = sld [smem:[#allocation4 + %s1410_s27]] }
  0x52   : >> { %406 = vrot.lane.b32.xlu1 %v2177_v5, %s3734_s21  ;;  %404 = vrot.lane.b32.xlu0 %v2181_v6, %s3734_s21  ;;  %v621_v31 = vmul.f32 %v619_v29, %v2164_v2  ;;  %v583_v32 = vmul.f32 %v582_v26, %v2170_v3  ;;  %v620_v33 = vmul.f32 %v619_v29, %v2170_v3  ;;  %v556_v1 = vstv %s2188_s10  ;;  %s1417_s7 = sadd.s32 16, %s2123_s22  ;;  %s2334_s8 = sld [smem:[#allocation4 + %s1343_s29]] }
  0x53   : >> { %v549_v34 = vmul.f32 %v545_v25, %v2177_v5  ;;  %v551_v35 = vadd.f32 %v547_v27, %v540_v18  ;;  %v588_v38 = vadd.f32 %v584_v28, %v577_v22  ;;  %v550_v40 = vadd.f32 %v546_v30, %v539_v13  ;;  %s1354_s9 = sadd.s32 25, %s2091_s16  ;;  %s2339_s10 = sld [smem:[#allocation4 + %s1380_s5]] }
  0x54   : >> { %v586_v41 = vmul.f32 %v582_v26, %v2177_v5  ;;  %v625_v43 = vadd.f32 %v621_v31, %v614_v24  ;;  %v587_v45 = vadd.f32 %v583_v32, %v576_v17  ;;  %v624_v53 = vadd.f32 %v620_v33, %v613_v20  ;;  %s1391_s11 = sadd.s32 25, %s2108_s19  ;;  %s2347_s25 = sld [smem:[#allocation4 + %s1354_s9]] }
  0x55   : >> { %v553_v59 = vadd.f32 %v549_v34, %v542_v14  ;;  %v623_v61 = vmul.f32 %v619_v29, %v2177_v5  ;;  %v548_v62 = vmul.f32 %v545_v25, %v2181_v6  ;;  %v585_v63 = vmul.f32 %v582_v26, %v2181_v6  ;;  %s2349_s26 = sld [smem:[#allocation4 + %s1391_s11]]  ;;  %s427_s5 = sadd.s32 9, %s2091_s16 }
  0x56   : >> { %v590_v60 = vadd.f32 %v586_v41, %v579_v21  ;;  %410 = vrot.lane.b32.xlu1 %v2186_v7, %s3734_s21  ;;  %v622_v0 = vmul.f32 %v619_v29, %v2181_v6  ;;  %v593_v4 = vstv %s2210_s20  ;;  %v630_v12 = vstv %s2216_s23  ;;  %408 = vrot.lane.b32.xlu0 %v2193_v8, %s3734_s21  ;;  %s2344_s20 = sld [smem:[#allocation4 + %s1417_s7]]  ;;  %s1428_s23 = sadd.s32 25, %s2123_s22 }
  0x57   : >> { %v627_v13 = vadd.f32 %v623_v61, %v616_v23  ;;  %v552_v14 = vadd.f32 %v548_v62, %v541_v11  ;;  %v589_v16 = vadd.f32 %v585_v63, %v578_v15  ;;  %v558_v17 = vmul.f32 %v556_v1, %v2186_v7  ;;  %s2353_s27 = sld [smem:[#allocation4 + %s1428_s23]]  ;;  %s464_s7 = sadd.s32 9, %s2108_s19 }
  0x58   : >> { %v626_v18 = vadd.f32 %v622_v0, %v615_v19  ;;  %v595_v20 = vmul.f32 %v593_v4, %v2186_v7  ;;  %v632_v21 = vmul.f32 %v630_v12, %v2186_v7  ;;  %v557_v22 = vmul.f32 %v556_v1, %v2193_v8  ;;  %s2358_s29 = sld [smem:[#allocation4 + %s2091_s16]]  ;;  %s501_s9 = sadd.s32 9, %s2123_s22 }
  0x59   : >> { %v2254_v24 = vadd.f32 %v558_v17, %v551_v35  ;;  %v594_v25 = vmul.f32 %v593_v4, %v2193_v8  ;;  %v631_v26 = vmul.f32 %v630_v12, %v2193_v8  ;;  %v560_v11 = vmul.f32 %v556_v1, %v2197_v9  ;;  %s2366_s18 = sld [smem:[#allocation4 + %s2123_s22]]  ;;  %s438_s17 = sadd.s32 18, %s2091_s16 }
  0x5a   : >> { %414 = vrot.lane.b32.xlu1 %v2197_v9, %s3734_s21  ;;  %v2261_v15 = vadd.f32 %v595_v20, %v588_v38  ;;  %v2263_v19 = vadd.f32 %v632_v21, %v625_v43  ;;  %v2265_v23 = vadd.f32 %v557_v22, %v550_v40  ;;  %v597_v27 = vmul.f32 %v593_v4, %v2197_v9  ;;  %s2374_s11 = sld [smem:[#allocation4 + %s427_s5]]  ;;  %s475_s1 = sadd.s32 18, %s2108_s19 }
  0x5b   : >> { %412 = vrot.lane.b32.xlu0 %v2201_v10, %s3734_s21  ;;  %v2270_v28 = vadd.f32 %v594_v25, %v587_v45  ;;  %v2272_v29 = vadd.f32 %v631_v26, %v624_v53  ;;  %v2274_v30 = vadd.f32 %v560_v11, %v553_v59  ;;  %v634_v31 = vmul.f32 %v630_v12, %v2197_v9  ;;  %s2380_s23 = sld [smem:[#allocation4 + %s464_s7]]  ;;  %s3798_s2 = sadd.s32 2, %s2087_s14 }
  0x5c   : >> { %v2277_v32 = vadd.f32 %v597_v27, %v590_v60  ;;  %v559_v33 = vmul.f32 %v556_v1, %v2201_v10  ;;  %v596_v34 = vmul.f32 %v593_v4, %v2201_v10  ;;  %v633_v35 = vmul.f32 %v630_v12, %v2201_v10  ;;  %s2385_s5 = sld [smem:[#allocation4 + %s501_s9]]  ;;  %s3797_s9 = sadd.s32 1, %s2087_s14 }
  0x5d   : >> { %v2282_v38 = vadd.f32 %v634_v31, %v627_v13  ;;  %s2391_s7 = sld [smem:[#allocation7 + %s2087_s14]]  ;;  %v1338_v45 = vstv %s2323_s28  ;;  %v1375_v53 = vstv %s2328_s30  ;;  %v1412_v61 = vstv %s2331_s6  ;;  %s676_s30 = sadd.s32 2, %s2091_s16 }
  0x5e   : >> { %649 = vrot.lane.b32.xlu1 %v2141_v58, %s3730_s24  ;;  %v2286_v40 = vadd.f32 %v559_v33, %v552_v14  ;;  %v2288_v41 = vadd.f32 %v596_v34, %v589_v16  ;;  %v2290_v43 = vadd.f32 %v633_v35, %v626_v18  ;;  %v1169_v58 = vrot.slane %v2081_v42, 1  ;;  %s2406_s0 = sld [smem:[#allocation7 + %s3797_s9]]  ;;  %s512_s9 = sadd.s32 18, %s2123_s22 }
  0x5f   : >> { %647 = vrot.lane.b32.xlu0 %v2113_v50, %s3730_s24  ;;  %v1168_v50 = vrot.slane %v2075_v37, 1  ;;  %s2423_s3 = sld [smem:[#allocation7 + %s3798_s2]]  ;;  %v1345_v63 = vstv %s2334_s8  ;;  %v1382_v1 = vstv %s2339_s10  ;;  %s713_s14 = sadd.s32 2, %s2108_s19  ;;  %v1419_v17 = vstv %s2344_s20 }
  0x60   : >> { %s2436_s28 = sld [smem:[#allocation4 + %s438_s17]]  ;;  %s3801_s17 = smov 127   ;;  %v2514_v18 = vstv %s2353_s27 }
  0x61   : >> { %v2419_v60 = vsel %vm1170_vm13, %v1168_v50, %v1169_v58  ;;  %s2456_s2 = sld [smem:[#allocation4 + %s475_s1]]  ;;  %s750_s8 = sadd.s32 2, %s2123_s22 }
  0x62   : >> { %653 = vrot.lane.b32.xlu1 %v2137_v57, %s3730_s24  ;;  %v1166_v57 = vrot.slane %v2077_v39, 1  ;;  %s2465_s6 = sld [smem:[#allocation4 + %s512_s9]]  ;;  %s683_s10 = sadd.s32 11, %s2091_s16  ;;  %v1341_v35 = vmul.f32 %v1338_v45, %v2419_v60 }
  0x63   : >> { %651 = vrot.lane.b32.xlu0 %v2104_v49, %s3730_s24  ;;  %v1167_v49 = vrot.slane %v2073_v36, 1  ;;  %s2474_s1 = sld [smem:[#allocation4 + %s676_s30]]  ;;  %s720_s9 = sadd.s32 11, %s2108_s19 }
  0x64   : >> { %v2415_v59 = vsel %vm1170_vm13, %v1169_v58, %v1166_v57  ;;  %s2481_s20 = sld [smem:[#allocation4 + %s713_s14]]  ;;  %s694_s4 = sadd.s32 20, %s2091_s16 }
  0x65   : >> { %v1342_v27 = vmul.f32 %v1338_v45, %v2415_v59  ;;  %v1379_v33 = vmul.f32 %v1375_v53, %v2415_v59  ;;  %v1416_v34 = vmul.f32 %v1412_v61, %v2415_v59  ;;  %s2488_s30 = sld [smem:[#allocation4 + %s750_s8]]  ;;  %s731_s15 = sadd.s32 20, %s2108_s19 }
  0x66   : >> { %657 = vrot.lane.b32.xlu1 %v2164_v2, %s3730_s24  ;;  %v1176_v2 = vrot.slane %v2098_v47, 1  ;;  %s2497_s14 = sld [smem:[#allocation4 + %s683_s10]]  ;;  %s768_s12 = sadd.s32 20, %s2123_s22 }
  0x67   : >> { %655 = vrot.lane.b32.xlu0 %v2170_v3, %s3730_s24  ;;  %v1177_v3 = vrot.slane %v2115_v51, 1  ;;  %s2508_s8 = sld [smem:[#allocation4 + %s720_s9]]  ;;  %s890_s9 = sadd.s32 3, %s2123_s22 }
  0x68   : >> { %s2549_s27 = sld [smem:[#allocation4 + %s768_s12]]  ;;  %s823_s13 = sadd.s32 12, %s2091_s16 }
  0x69   : >> { %v2429_v62 = vsel %vm1170_vm13, %v1176_v2, %v1177_v3 }
  0x6a   : >> { %661 = vrot.lane.b32.xlu1 %v2177_v5, %s3730_s24  ;;  %v1175_v5 = vrot.slane %v2093_v46, 1  ;;  %v1347_v22 = vmul.f32 %v1345_v63, %v2429_v62  ;;  %v1384_v31 = vmul.f32 %v1382_v1, %v2429_v62 }
  0x6b   : >> { %659 = vrot.lane.b32.xlu0 %v2181_v6, %s3730_s24  ;;  %v1178_v6 = vrot.slane %v2100_v48, 1 }
  0x6c   : >> { %v2434_v0 = vsel %vm1170_vm13, %v1175_v5, %v1176_v2 }
  0x6d   : >> { %v2442_v4 = vsel %vm1170_vm13, %v1178_v6, %v1175_v5  ;;  %v2446_v12 = vsel %vm1170_vm13, %v1177_v3, %v1178_v6  ;;  %v1346_v25 = vmul.f32 %v1345_v63, %v2434_v0  ;;  %v1383_v58 = vmul.f32 %v1382_v1, %v2434_v0 }
  0x6e   : >> { %665 = vrot.lane.b32.xlu1 %v2186_v7, %s3730_s24  ;;  %v1184_v7 = vrot.slane %v2128_v54, 1  ;;  %3799 = vst [vmem:[#allocation17_spill] sm:$0xff] %v2442_v4  ;;  %3800 = vst [vmem:[#allocation18_spill] sm:$0xff] %v2446_v12  ;;  %v1420_v2 = vmul.f32 %v1419_v17, %v2434_v0  ;;  %v2503_v6 = vstv %s2347_s25  ;;  %s2522_s25 = sld [smem:[#allocation4 + %s694_s4]] }
  0x6f   : >> { %663 = vrot.lane.b32.xlu0 %v2193_v8, %s3730_s24  ;;  %v3737_v8 = vrot.slane %v2132_v56, 1  ;;  %s2540_s4 = sld [smem:[#allocation4 + %s731_s15]] }
  0x70   : >> { %3803 = sst [smem:[#allocation19_spill]] %s2549_s27  ;;  %s927_s27 = sadd.s32 4, %s2091_s16 }
  0x71   : >> { %v2454_v13 = vsel %vm1170_vm13, %v1184_v7, %v3737_v8  ;;  %v1386_v8 = vmul.f32 %v1382_v1, %v2442_v4 }
  0x72   : >> { %669 = vrot.lane.b32.xlu1 %v2197_v9, %s3730_s24  ;;  %v2398_v9 = vsel %vm1170_vm13, %v1167_v49, %v1168_v50  ;;  %v1378_v50 = vmul.f32 %v1375_v53, %v2419_v60 }
  0x73   : >> { %667 = vrot.lane.b32.xlu0 %v2201_v10, %s3730_s24  ;;  %s2362_s24 = sld [smem:[#allocation4 + %s2108_s19]]  ;;  %v2402_v10 = vsel %vm1170_vm13, %v1166_v57, %v1167_v49  ;;  %v1340_v14 = vmul.f32 %v1338_v45, %v2398_v9  ;;  %v1377_v16 = vmul.f32 %v1375_v53, %v2398_v9  ;;  %v1414_v20 = vmul.f32 %v1412_v61, %v2398_v9 }
  0x74   : >> { %v1339_v21 = vmul.f32 %v1338_v45, %v2402_v10  ;;  %v1376_v26 = vmul.f32 %v1375_v53, %v2402_v10  ;;  %v1413_v11 = vmul.f32 %v1412_v61, %v2402_v10  ;;  %v1421_v49 = vmul.f32 %v1419_v17, %v2429_v62 }
  0x75   : >> { %v1415_v57 = vmul.f32 %v1412_v61, %v2419_v60  ;;  %v1351_v3 = vadd.f32 %v1347_v22, %v1340_v14  ;;  %v2506_v45 = vstv %s2349_s26  ;;  %v1388_v53 = vadd.f32 %v1384_v31, %v1377_v16  ;;  %s816_s26 = sadd.s32 3, %s2091_s16 }
  0x76   : >> { %789 = vrot.lane.b32.xlu1 %v2073_v36, %s3734_s21  ;;  %v1350_v5 = vadd.f32 %v1346_v25, %v1339_v21  ;;  %v1349_v61 = vmul.f32 %v1345_v63, %v2442_v4  ;;  %v1425_v14 = vadd.f32 %v1421_v49, %v1414_v20  ;;  %v1423_v21 = vmul.f32 %v1419_v17, %v2442_v4  ;;  %s2560_s15 = sld [smem:[#allocation4 + %s816_s26]] }
  0x77   : >> { %787 = vrot.lane.b32.xlu0 %v2077_v39, %s3734_s21  ;;  %v1348_v22 = vmul.f32 %v1345_v63, %v2446_v12  ;;  %v1385_v25 = vmul.f32 %v1382_v1, %v2446_v12  ;;  %v1422_v16 = vmul.f32 %v1419_v17, %v2446_v12  ;;  %v1358_v31 = vmul.f32 %v2503_v6, %v2454_v13  ;;  %s2584_s26 = sld [smem:[#allocation4 + %s890_s9]]  ;;  %s897_s9 = sadd.s32 12, %s2123_s22 }
  0x78   : >> { %v1395_v20 = vmul.f32 %v2506_v45, %v2454_v13  ;;  %v3802_v63 = vrot.slane %v2117_v52, 1  ;;  %v1387_v17 = vadd.f32 %v1383_v58, %v1376_v26  ;;  %v1424_v49 = vadd.f32 %v1420_v2, %v1413_v11 }
  0x79   : >> { %v2563_v11 = vadd.f32 %v1423_v21, %v1416_v34  ;;  %v2565_v58 = vadd.f32 %v1348_v22, %v1341_v35  ;;  %v2577_v34 = vadd.f32 %v1358_v31, %v1351_v3  ;;  %v2597_v3 = vstv %s2366_s18  ;;  %v332_v31 = vld [vmem:[#allocation3 + $0x20] sm:$0xff]  ;;  %s945_s18 = sadd.s32 22, %s2091_s16 }
  0x7a   : >> { %793 = vrot.lane.b32.xlu1 %v2081_v42, %s3734_s21  ;;  %v2538_v1 = vsel %vm1170_vm13, %v3802_v63, %v1184_v7  ;;  %v2552_v7 = vadd.f32 %v1349_v61, %v1342_v27  ;;  %v2554_v63 = vadd.f32 %v1386_v8, %v1379_v33  ;;  %v2567_v27 = vadd.f32 %v1385_v25, %v1378_v50  ;;  %v321_v25 = vld [vmem:[#allocation3] sm:$0xff] }
  0x7b   : >> { %791 = vrot.lane.b32.xlu0 %v2075_v37, %s3734_s21  ;;  %v1357_v12 = vmul.f32 %v2503_v6, %v2538_v1  ;;  %v1394_v4 = vmul.f32 %v2506_v45, %v2538_v1  ;;  %v1431_v26 = vmul.f32 %v2514_v18, %v2538_v1  ;;  %3807 = vst [vmem:[#allocation23_spill] sm:$0xff] %v2563_v11  ;;  %3808 = vst [vmem:[#allocation24_spill] sm:$0xff] %v2565_v58 }
  0x7c   : >> { %3804 = vst [vmem:[#allocation20_spill] sm:$0xff] %v2552_v7  ;;  %3805 = vst [vmem:[#allocation21_spill] sm:$0xff] %v2554_v63  ;;  %3806 = sst [smem:[#allocation22_spill]] %s2560_s15  ;;  %v1186_v8 = vrot.slane %v2130_v55, 1  ;;  %v2575_v33 = vadd.f32 %v1422_v16, %v1415_v57  ;;  %v2579_v35 = vadd.f32 %v1395_v20, %v1388_v53  ;;  %v2582_v50 = vstv %s2358_s29  ;;  %s934_s15 = sadd.s32 13, %s2091_s16  ;;  %v323_v63 = vld [vmem:[#allocation3 + $0x30] sm:$0xff] }
  0x7d   : >> { %3809 = vst [vmem:[#allocation25_spill] sm:$0xff] %v2567_v27  ;;  %3811 = vst [vmem:[#allocation27_spill] sm:$0xff] %v2577_v34  ;;  %3813 = sst [smem:[#allocation29_spill]] %s2584_s26  ;;  %v2591_v61 = vadd.f32 %v1357_v12, %v1350_v5  ;;  %v2594_v57 = vstv %s2362_s24  ;;  %s860_s29 = sadd.s32 12, %s2108_s19  ;;  %v2602_v53 = vadd.f32 %v1394_v4, %v1387_v17  ;;  %v2604_v21 = vadd.f32 %v1431_v26, %v1424_v49  ;;  %v343_v17 = vld [vmem:[#allocation3 + $0x28] sm:$0xff]  ;;  %v345_v7 = vld [vmem:[#allocation3 + $0x10] sm:$0xff] }
  0x7e   : >> { %797 = vrot.lane.b32.xlu1 %v2098_v47, %s3734_s21  ;;  %3810 = vst [vmem:[#allocation26_spill] sm:$0xff] %v2575_v33  ;;  %3812 = vst [vmem:[#allocation28_spill] sm:$0xff] %v2579_v35  ;;  %v2607_v22 = vstv %s2374_s11  ;;  %s2613_s26 = sld [smem:[#allocation4 + %s927_s27]]  ;;  %v3818_v12 = vrot.slane %v2117_v52, 1  ;;  %v3819_v4 = vrot.slane %v2132_v56, 1  ;;  %v326_v16 = vstv %s2391_s7  ;;  %v342_v33 = vld [vmem:[#allocation3 + $0x38] sm:$0xff] }
  0x7f   : >> { %795 = vrot.lane.b32.xlu0 %v2093_v46, %s3734_s21  ;;  %3815 = vst [vmem:[#allocation31_spill] sm:$0xff] %v2591_v61  ;;  %3816 = vst [vmem:[#allocation32_spill] sm:$0xff] %v2602_v53  ;;  %v337_v20 = vstv %s2406_s0  ;;  %v2643_v26 = vstv %s2385_s5  ;;  %s2646_s0 = sld [smem:[#allocation4 + %s860_s29]]  ;;  %s960_s24 = sadd.s32 4, %s2108_s19  ;;  %v2686_v53 = vstv %s2465_s6 }
  0x80   : >> { %3817 = vst [vmem:[#allocation33_spill] sm:$0xff] %v2604_v21  ;;  %v2619_v5 = vsel %vm1170_vm13, %v1186_v8, %v3818_v12  ;;  %v320_v12 = vld [vmem:[#allocation3 + $0x48] sm:$0xff]  ;;  %s967_s11 = sadd.s32 13, %s2108_s19  ;;  %v333_v21 = vld [vmem:[#allocation3 + $0x18] sm:$0xff]  ;;  %s2681_s5 = sld [smem:[#allocation4 + %s945_s18]]  ;;  %v2726_v34 = vstv %s2488_s30 }
  0x81   : >> { %v2636_v49 = vmul.f32 %v2503_v6, %v2619_v5  ;;  %v2640_v44 = vmul.f32 %v2506_v45, %v2619_v5  ;;  %v2653_v27 = vmul.f32 %v2514_v18, %v2619_v5  ;;  %v2688_v61 = vadd.f32 %v326_v16, %v320_v12  ;;  %s871_s7 = sadd.s32 21, %s2108_s19  ;;  %s2706_s6 = sld [smem:[#allocation4 + %s967_s11]]  ;;  %3834 = vst [vmem:[#allocation48_spill] sm:$0xff] %v2726_v34 }
  0x82   : >> { %801 = vrot.lane.b32.xlu1 %v2100_v48, %s3734_s21  ;;  %s2734_s29 = sld [smem:[#allocation4 + %s871_s7]]  ;;  %s1129_s30 = sadd.s32 5, %s2123_s22 }
  0x83   : >> { %799 = vrot.lane.b32.xlu0 %v2115_v51, %s3734_s21  ;;  %3820 = vst [vmem:[#allocation34_spill] sm:$0xff] %v2636_v49  ;;  %3821 = vst [vmem:[#allocation35_spill] sm:$0xff] %v2640_v44  ;;  %v334_v49 = vld [vmem:[#allocation3 + $0x40] sm:$0xff]  ;;  %s1062_s18 = sadd.s32 14, %s2091_s16  ;;  %s978_s11 = sadd.s32 22, %s2108_s19 }
  0x84   : >> { %3822 = vst [vmem:[#allocation36_spill] sm:$0xff] %v2653_v27  ;;  %v2670_v27 = vadd.f32 %v326_v16, %v321_v25  ;;  %v2701_v12 = vadd.f32 %v337_v20, %v334_v49  ;;  %v2723_v49 = vstv %s2481_s20 }
  0x85   : >> { %3833 = vst [vmem:[#allocation47_spill] sm:$0xff] %v2723_v49 }
  0x86   : >> { %805 = vrot.lane.b32.xlu1 %v2128_v54, %s3734_s21  ;;  %3827 = vst [vmem:[#allocation41_spill] sm:$0xff] %v2701_v12 }
  0x87   : >> { %803 = vrot.lane.b32.xlu0 %v2117_v52, %s3734_s21 }
  0x8a   : >> { %809 = vrot.lane.b32.xlu1 %v2130_v55, %s3734_s21 }
  0x8b   : >> { %807 = vrot.lane.b32.xlu0 %v2132_v56, %s3734_s21  ;;  %s757_s21 = sadd.s32 11, %s2123_s22 }
  0x8c   : >> { %s2516_s10 = sld [smem:[#allocation4 + %s757_s21]]  ;;  %s853_s21 = sadd.s32 3, %s2108_s19 }
  0x8d   : >> { %s2570_s12 = sld [smem:[#allocation4 + %s853_s21]] }
  0x8e   : >> { %1028 = vrot.lane.b32.xlu1 %v2073_v36, %s3801_s17  ;;  %s2599_s21 = sld [smem:[#allocation4 + %s823_s13]] }
  0x8f   : >> { %1026 = vrot.lane.b32.xlu0 %v2077_v39, %s3801_s17  ;;  %s2629_s13 = sld [smem:[#allocation4 + %s934_s15]]  ;;  %s1055_s15 = sadd.s32 5, %s2091_s16 }
  0x92   : >> { %1032 = vrot.lane.b32.xlu1 %v2081_v42, %s3801_s17 }
  0x93   : >> { %1030 = vrot.lane.b32.xlu0 %v2075_v37, %s3801_s17  ;;  %v1432_v37 = vmul.f32 %v2514_v18, %v2454_v13 }
  0x95   : >> { %v2589_v2 = vadd.f32 %v1432_v37, %v1425_v14  ;;  %v2610_v37 = vstv %s2380_s23  ;;  %v2625_v14 = vsel %vm1170_vm13, %v3819_v4, %v1186_v8  ;;  %v348_v8 = vstv %s2423_s3  ;;  %v331_v4 = vld [vmem:[#allocation3 + $0x8] sm:$0xff]  ;;  %s2667_s3 = sld [smem:[#allocation4 + %s897_s9]]  ;;  %s834_s23 = sadd.s32 21, %s2091_s16 }
  0x96   : >> { %1036 = vrot.lane.b32.xlu1 %v2098_v47, %s3801_s17  ;;  %v2657_v58 = vmul.f32 %v2503_v6, %v2625_v14  ;;  %v2661_v11 = vmul.f32 %v2506_v45, %v2625_v14  ;;  %v2665_v44 = vmul.f32 %v2514_v18, %v2625_v14  ;;  %v2672_v6 = vadd.f32 %v337_v20, %v332_v31  ;;  %v344_v18 = vld [vmem:[#allocation3 + $0x58] sm:$0xff]  ;;  %v533_v31 = vld [vmem:[#allocation9 + $0x28] sm:$0xff]  ;;  %s2719_s27 = sld [smem:[#allocation4 + %s834_s23]] }
  0x97   : >> { %1034 = vrot.lane.b32.xlu0 %v2093_v46, %s3801_s17  ;;  %3814 = vst [vmem:[#allocation30_spill] sm:$0xff] %v2589_v2  ;;  %v2678_v45 = vstv %s2456_s2  ;;  %v2690_v25 = vadd.f32 %v337_v20, %v331_v4  ;;  %v2699_v2 = vadd.f32 %v326_v16, %v323_v63  ;;  %v2703_v35 = vadd.f32 %v348_v8, %v345_v7  ;;  %s908_s2 = sadd.s32 21, %s2123_s22  ;;  %s3837_s9 = sld [smem:[#allocation19_spill]] }
  0x98   : >> { %3823 = vst [vmem:[#allocation37_spill] sm:$0xff] %v2657_v58  ;;  %3824 = vst [vmem:[#allocation38_spill] sm:$0xff] %v2661_v11  ;;  %v2675_v58 = vstv %s2436_s28  ;;  %v322_v11 = vld [vmem:[#allocation3 + $0x50] sm:$0xff]  ;;  %s2693_s28 = sld [smem:[#allocation4 + %s960_s24]]  ;;  %v2714_v63 = vadd.f32 %v348_v8, %v344_v18  ;;  %v2717_v7 = vstv %s2474_s1  ;;  %s1092_s1 = sadd.s32 5, %s2108_s19  ;;  %v2747_v18 = vstv %s2613_s26 }
  0x99   : >> { %3825 = vst [vmem:[#allocation39_spill] sm:$0xff] %v2665_v44  ;;  %v2683_v44 = vadd.f32 %v348_v8, %v343_v17  ;;  %v2697_v17 = vadd.f32 %v348_v8, %v342_v33  ;;  %3826 = vst [vmem:[#allocation40_spill] sm:$0xff] %v2699_v2  ;;  %v2710_v4 = vadd.f32 %v326_v16, %v322_v11  ;;  %v2729_v11 = vstv %s2497_s14  ;;  %v532_v16 = vld [vmem:[#allocation9 + $0x20] sm:$0xff]  ;;  %s2743_s20 = sld [smem:[#allocation4 + %s908_s2]]  ;;  %s3840_s14 = smov 1  }
  0x9a   : >> { %1040 = vrot.lane.b32.xlu1 %v2100_v48, %s3801_s17  ;;  %3828 = vst [vmem:[#allocation42_spill] sm:$0xff] %v2703_v35  ;;  %v2712_v33 = vadd.f32 %v337_v20, %v333_v21  ;;  %3831 = vst [vmem:[#allocation45_spill] sm:$0xff] %v2714_v63  ;;  %v2732_v21 = vmul.f32 %v2254_v24, %v533_v31  ;;  %v2738_v20 = vstv %s2508_s8  ;;  %v2741_v8 = vstv %s2516_s10  ;;  %s2766_s8 = sld [smem:[#allocation4 + %s1055_s15]]  ;;  %s993_s10 = sadd.s32 4, %s2123_s22 }
  0x9b   : >> { %1038 = vrot.lane.b32.xlu0 %v2115_v51, %s3801_s17  ;;  %3829 = vst [vmem:[#allocation43_spill] sm:$0xff] %v2710_v4  ;;  %3832 = vst [vmem:[#allocation46_spill] sm:$0xff] %v2717_v7  ;;  %v2750_v63 = vstv %s2629_s13  ;;  %v2755_v24 = vmul.f32 %v2261_v15, %v533_v31  ;;  %v2775_v15 = vmul.f32 %v2265_v23, %v532_v16  ;;  %s1000_s26 = sadd.s32 13, %s2123_s22  ;;  %s2786_s13 = sld [smem:[#allocation4 + %s1129_s30]] }
  0x9c   : >> { %3830 = vst [vmem:[#allocation44_spill] sm:$0xff] %v2712_v33  ;;  %3835 = vst [vmem:[#allocation49_spill] sm:$0xff] %v2729_v11  ;;  %v535_v11 = vld [vmem:[#allocation9 + $0x38] sm:$0xff]  ;;  %v931_v23 = vmul.f32 %v2747_v18, %v2073_v36  ;;  %s3851_s24 = sld [smem:[#allocation29_spill]]  ;;  %s1011_s2 = sadd.s32 22, %s2123_s22 }
  0x9d   : >> { %3836 = vst [vmem:[#allocation50_spill] sm:$0xff] %v2732_v21  ;;  %3838 = vst [vmem:[#allocation51_spill] sm:$0xff] %v2738_v20  ;;  %v2758_v21 = vmul.f32 %v2263_v19, %v533_v31  ;;  %v2761_v20 = vstv %s2522_s25  ;;  %v2772_v33 = vstv %s3837_s9  ;;  %v2778_v19 = vmul.f32 %v2270_v28, %v532_v16  ;;  %s2783_s25 = sld [smem:[#allocation4 + %s1092_s1]]  ;;  %s1110_s15 = sadd.s32 23, %s2108_s19 }
  0x9e   : >> { %1044 = vrot.lane.b32.xlu1 %v2128_v54, %s3801_s17  ;;  %3839 = vst [vmem:[#allocation52_spill] sm:$0xff] %v2741_v8  ;;  %3841 = vst [vmem:[#allocation53_spill] sm:$0xff] %v2755_v24  ;;  %v2764_v8 = vstv %s2540_s4  ;;  %v2781_v31 = vmul.f32 %v2272_v29, %v532_v16  ;;  %s3849_s4 = sld [smem:[#allocation22_spill]]  ;;  %v938_v28 = vmul.f32 %v2750_v63, %v2098_v47  ;;  %v2873_v24 = vstv %s2719_s27  ;;  %s1220_s9 = sadd.s32 6, %s2091_s16 }
  0x9f   : >> { %1042 = vrot.lane.b32.xlu0 %v2117_v52, %s3801_s17  ;;  %3842 = vst [vmem:[#allocation54_spill] sm:$0xff] %v2758_v21  ;;  %3843 = vst [vmem:[#allocation55_spill] sm:$0xff] %v2761_v20  ;;  %v930_v29 = vmul.f32 %v2747_v18, %v2077_v39  ;;  %v937_v16 = vmul.f32 %v2750_v63, %v2093_v46  ;;  %v2801_v20 = vmul.f32 %v2277_v32, %v535_v11  ;;  %s2810_s23 = sld [smem:[#allocation4 + %s993_s10]]  ;;  %s1257_s30 = sadd.s32 6, %s2108_s19 }
  0xa0   : >> { %3844 = vst [vmem:[#allocation56_spill] sm:$0xff] %v2764_v8  ;;  %3845 = vst [vmem:[#allocation57_spill] sm:$0xff] %v2772_v33  ;;  %v534_v8 = vld [vmem:[#allocation9 + $0x30] sm:$0xff]  ;;  %v2798_v33 = vmul.f32 %v2274_v30, %v535_v11  ;;  %v962_v32 = vstv %s2693_s28  ;;  %s2822_s7 = sld [smem:[#allocation4 + %s1000_s26]]  ;;  %v2883_v4 = vstv %s2766_s8  ;;  %s1294_s10 = sadd.s32 6, %s2123_s22 }
  0xa1   : >> { %3846 = vst [vmem:[#allocation58_spill] sm:$0xff] %v2775_v15  ;;  %3847 = vst [vmem:[#allocation59_spill] sm:$0xff] %v2778_v19  ;;  %v2807_v19 = vstv %s2681_s5  ;;  %v2815_v15 = vmul.f32 %v2286_v40, %v534_v8  ;;  %v2837_v40 = vstv %s2599_s21  ;;  %s2839_s5 = sld [smem:[#allocation4 + %s1062_s18]]  ;;  %v2870_v21 = vmul.f32 %v2290_v43, %v534_v8  ;;  %s1301_s18 = sadd.s32 15, %s2123_s22 }
  0xa2   : >> { %1048 = vrot.lane.b32.xlu1 %v2130_v55, %s3801_s17  ;;  %3848 = vst [vmem:[#allocation60_spill] sm:$0xff] %v2781_v31  ;;  %3850 = vst [vmem:[#allocation61_spill] sm:$0xff] %v2798_v33  ;;  %v2804_v31 = vmul.f32 %v2282_v38, %v535_v11  ;;  %v2828_v38 = vmul.f32 %v2288_v41, %v534_v8  ;;  %v2831_v11 = vstv %s2570_s12  ;;  %s2843_s28 = sld [smem:[#allocation4 + %s978_s11]]  ;;  %s1099_s12 = sadd.s32 14, %s2108_s19 }
  0xa3   : >> { %1046 = vrot.lane.b32.xlu0 %v2132_v56, %s3801_s17  ;;  %3852 = vst [vmem:[#allocation62_spill] sm:$0xff] %v2801_v20  ;;  %3854 = vst [vmem:[#allocation64_spill] sm:$0xff] %v2815_v15  ;;  %v969_v20 = vstv %s2706_s6  ;;  %v949_v15 = vmul.f32 %v2807_v19, %v2128_v54  ;;  %v941_v33 = vadd.f32 %v937_v16, %v930_v29  ;;  %s2850_s21 = sld [smem:[#allocation4 + %s1011_s2]]  ;;  %v2857_v29 = vstv %s2646_s0  ;;  %s1136_s6 = sadd.s32 14, %s2123_s22 }
  0xa4   : >> { %3853 = vst [vmem:[#allocation63_spill] sm:$0xff] %v2804_v31  ;;  %v2818_v30 = vstv %s3849_s4  ;;  %3856 = vst [vmem:[#allocation66_spill] sm:$0xff] %v2828_v38  ;;  %v2834_v31 = vstv %s3851_s24  ;;  %v948_v41 = vmul.f32 %v2807_v19, %v2117_v52  ;;  %v2860_v16 = vstv %s2667_s3  ;;  %s1073_s0 = sadd.s32 23, %s2091_s16  ;;  %s2888_s3 = sld [smem:[#allocation4 + %s1099_s12]] }
  0xa5   : >> { %3855 = vst [vmem:[#allocation65_spill] sm:$0xff] %v2818_v30  ;;  %3857 = vst [vmem:[#allocation67_spill] sm:$0xff] %v2831_v11  ;;  %v942_v30 = vadd.f32 %v938_v28, %v931_v23  ;;  %v963_v23 = vmul.f32 %v962_v32, %v2077_v39  ;;  %v970_v28 = vmul.f32 %v969_v20, %v2093_v46  ;;  %v2886_v35 = vstv %s2783_s25  ;;  %s2895_s27 = sld [smem:[#allocation4 + %s1136_s6]]  ;;  %s1238_s11 = sadd.s32 24, %s2091_s16 }
  0xa6   : >> { %1193 = vrot.lane.b32.xlu1 %v2398_v9, %s3840_s14  ;;  %3858 = vst [vmem:[#allocation68_spill] sm:$0xff] %v2834_v31  ;;  %3859 = vst [vmem:[#allocation69_spill] sm:$0xff] %v2837_v40  ;;  %v964_v31 = vmul.f32 %v962_v32, %v2073_v36  ;;  %v971_v40 = vmul.f32 %v969_v20, %v2098_v47  ;;  %v933_v11 = vmul.f32 %v2747_v18, %v2081_v42  ;;  %s2907_s1 = sld [smem:[#allocation4 + %s1073_s0]]  ;;  %s1513_s0 = sadd.s32 8, %s2108_s19 }
  0xa7   : >> { %1191 = vrot.lane.b32.xlu0 %v2402_v10, %s3840_s14  ;;  %3860 = vst [vmem:[#allocation70_spill] sm:$0xff] %v2857_v29  ;;  %3861 = vst [vmem:[#allocation71_spill] sm:$0xff] %v2860_v16  ;;  %v940_v38 = vmul.f32 %v2750_v63, %v2100_v48  ;;  %v2876_v29 = vstv %s2734_s29  ;;  %v2879_v16 = vstv %s2743_s20  ;;  %v2890_v34 = vadd.f32 %v949_v15, %v942_v30  ;;  %s1147_s29 = sadd.s32 23, %s2123_s22  ;;  %s2916_s20 = sld [smem:[#allocation4 + %s1110_s15]] }
  0xa8   : >> { %3862 = vst [vmem:[#allocation72_spill] sm:$0xff] %v2870_v21  ;;  %3863 = vst [vmem:[#allocation73_spill] sm:$0xff] %v2873_v24  ;;  %v2893_v43 = vadd.f32 %v948_v41, %v941_v33  ;;  %v975_v8 = vadd.f32 %v971_v40, %v964_v31  ;;  %v2904_v15 = vstv %s2786_s13  ;;  %v1002_v30 = vstv %s2822_s7  ;;  %v3872_v40 = vld [vmem:[#allocation18_spill] sm:$0xff]  ;;  %s2926_s8 = sld [smem:[#allocation4 + %s1147_s29]]  ;;  %s1264_s13 = sadd.s32 15, %s2108_s19 }
  0xa9   : >> { %3864 = vst [vmem:[#allocation74_spill] sm:$0xff] %v2876_v29  ;;  %3865 = vst [vmem:[#allocation75_spill] sm:$0xff] %v2879_v16  ;;  %v995_v29 = vstv %s2810_s23  ;;  %v974_v16 = vadd.f32 %v970_v28, %v963_v23  ;;  %v944_v33 = vadd.f32 %v940_v38, %v933_v11  ;;  %v966_v31 = vmul.f32 %v962_v32, %v2081_v42  ;;  %v3874_v28 = vld [vmem:[#allocation16_spill] sm:$0xff]  ;;  %s2935_s25 = sld [smem:[#allocation4 + %s1220_s9]]  ;;  %s1275_s7 = sadd.s32 24, %s2108_s19 }
  0xaa   : >> { %1197 = vrot.lane.b32.xlu1 %v2415_v59, %s3840_s14  ;;  %3866 = vst [vmem:[#allocation76_spill] sm:$0xff] %v2883_v4  ;;  %3867 = vst [vmem:[#allocation77_spill] sm:$0xff] %v2886_v35  ;;  %v951_v35 = vmul.f32 %v2807_v19, %v2130_v55  ;;  %v3870_v4 = vld [vmem:[#allocation17_spill] sm:$0xff]  ;;  %v2914_v41 = vstv %s2839_s5  ;;  %v973_v23 = vmul.f32 %v969_v20, %v2100_v48  ;;  %v980_v38 = vstv %s2843_s28  ;;  %s2943_s4 = sld [smem:[#allocation4 + %s1257_s30]]  ;;  %s1312_s5 = sadd.s32 24, %s2123_s22 }
  0xab   : >> { %1195 = vrot.lane.b32.xlu0 %v2419_v60, %s3840_s14  ;;  %3868 = vst [vmem:[#allocation78_spill] sm:$0xff] %v2890_v34  ;;  %3869 = vst [vmem:[#allocation79_spill] sm:$0xff] %v2893_v43  ;;  %v932_v43 = vmul.f32 %v2747_v18, %v3874_v28  ;;  %v939_v34 = vmul.f32 %v2750_v63, %v2115_v51  ;;  %v997_v11 = vmul.f32 %v995_v29, %v2073_v36  ;;  %s2950_s26 = sld [smem:[#allocation4 + %s1294_s10]]  ;;  %s1550_s15 = sadd.s32 8, %s2123_s22 }
  0xac   : >> { %3871 = vst [vmem:[#allocation17_spill] sm:$0xff] %v2904_v15  ;;  %3873 = vst [vmem:[#allocation18_spill] sm:$0xff] %v2914_v41  ;;  %v965_v15 = vmul.f32 %v962_v32, %v3874_v28  ;;  %v972_v41 = vmul.f32 %v969_v20, %v2115_v51  ;;  %v1004_v24 = vmul.f32 %v1002_v30, %v2098_v47  ;;  %v1013_v21 = vstv %s2850_s21  ;;  %s3026_s23 = sld [smem:[#allocation4 + %s1264_s13]]  ;;  %s1520_s9 = sadd.s32 17, %s2108_s19 }
  0xad   : >> { %v996_v12 = vmul.f32 %v995_v29, %v2077_v39  ;;  %v1003_v18 = vmul.f32 %v1002_v30, %v2093_v46  ;;  %v999_v36 = vmul.f32 %v995_v29, %v2081_v42  ;;  %v1006_v63 = vmul.f32 %v1002_v30, %v2100_v48  ;;  %s3033_s2 = sld [smem:[#allocation4 + %s1301_s18]]  ;;  %s1557_s30 = sadd.s32 17, %s2123_s22 }
  0xae   : >> { %1201 = vrot.lane.b32.xlu1 %v2429_v62, %s3840_s14  ;;  %v998_v32 = vmul.f32 %v995_v29, %v3874_v28  ;;  %v1005_v20 = vmul.f32 %v1002_v30, %v2115_v51  ;;  %v982_v39 = vmul.f32 %v980_v38, %v2128_v54  ;;  %v977_v46 = vadd.f32 %v973_v23, %v966_v31  ;;  %s3042_s28 = sld [smem:[#allocation4 + %s1238_s11]]  ;;  %s1531_s10 = sadd.s32 26, %s2108_s19 }
  0xaf   : >> { %1199 = vrot.lane.b32.xlu0 %v2434_v0, %s3840_s14  ;;  %v943_v47 = vadd.f32 %v939_v34, %v932_v43  ;;  %v950_v2 = vmul.f32 %v2807_v19, %v2132_v56  ;;  %v1015_v51 = vmul.f32 %v1013_v21, %v2128_v54  ;;  %v981_v29 = vmul.f32 %v980_v38, %v2117_v52  ;;  %s3046_s12 = sld [smem:[#allocation4 + %s1275_s7]] }
  0xb0   : >> { %v1014_v30 = vmul.f32 %v1013_v21, %v2117_v52  ;;  %v984_v28 = vmul.f32 %v980_v38, %v2130_v55  ;;  %v1008_v31 = vadd.f32 %v1004_v24, %v997_v11  ;;  %v1007_v34 = vadd.f32 %v1003_v18, %v996_v12  ;;  %s3050_s21 = sld [smem:[#allocation4 + %s1312_s5]] }
  0xb1   : >> { %v976_v43 = vadd.f32 %v972_v41, %v965_v15  ;;  %v983_v19 = vmul.f32 %v980_v38, %v2132_v56  ;;  %v1010_v23 = vadd.f32 %v1006_v63, %v999_v36  ;;  %v1017_v49 = vmul.f32 %v1013_v21, %v2130_v55  ;;  %s3261_s29 = sld [smem:[#allocation4 + %s1550_s15]] }
  0xb2   : >> { %1205 = vrot.lane.b32.xlu1 %v3870_v4, %s3840_s14  ;;  %v1009_v54 = vadd.f32 %v1005_v20, %v998_v32  ;;  %v1016_v7 = vmul.f32 %v1013_v21, %v2132_v56  ;;  %v2966_v52 = vstv %s2888_s3  ;;  %v2969_v12 = vstv %s2895_s27  ;;  %s3243_s3 = sld [smem:[#allocation4 + %s1513_s0]]  ;;  %s1483_s27 = sadd.s32 17, %s2091_s16 }
  0xb3   : >> { %1203 = vrot.lane.b32.xlu0 %v3872_v40, %s3840_s14  ;;  %v2971_v24 = vadd.f32 %v982_v39, %v975_v8  ;;  %v2973_v15 = vadd.f32 %v951_v35, %v944_v33  ;;  %v2976_v38 = vstv %s2907_s1  ;;  %v2978_v56 = vadd.f32 %v981_v29, %v974_v16  ;;  %s3264_s1 = sld [smem:[#allocation4 + %s1483_s27]] }
  0xb4   : >> { %v2980_v21 = vadd.f32 %v984_v28, %v977_v46  ;;  %v2982_v11 = vadd.f32 %v950_v2, %v943_v47  ;;  %v2985_v18 = vadd.f32 %v1015_v51, %v1008_v31  ;;  %v2988_v8 = vstv %s2916_s20  ;;  %s3300_s20 = sld [smem:[#allocation4 + %s1520_s9]] }
  0xb5   : >> { %v2990_v35 = vadd.f32 %v1014_v30, %v1007_v34  ;;  %v2992_v33 = vadd.f32 %v983_v19, %v976_v43  ;;  %v2998_v16 = vstv %s2926_s8  ;;  %v3000_v2 = vadd.f32 %v1017_v49, %v1010_v23  ;;  %s1494_s8 = sadd.s32 26, %s2091_s16  ;;  %s3340_s19 = sld [smem:[#allocation4 + %s1531_s10]] }
  0xb6   : >> { %1209 = vrot.lane.b32.xlu1 %v2454_v13, %s3840_s14  ;;  %v3002_v36 = vadd.f32 %v1016_v7, %v1009_v54  ;;  %v3005_v63 = vstv %s2935_s25  ;;  %v3014_v39 = vstv %s2943_s4  ;;  %s3317_s25 = sld [smem:[#allocation4 + %s1557_s30]]  ;;  %s1568_s4 = sadd.s32 26, %s2123_s22 }
  0xb7   : >> { %1207 = vrot.lane.b32.xlu0 %v2538_v1, %s3840_s14  ;;  %3875 = vst [vmem:[#allocation16_spill] sm:$0xff] %v2992_v33  ;;  %3877 = vst [vmem:[#allocation81_spill] sm:$0xff] %v3005_v63  ;;  %v3909_v33 = vld [vmem:[#allocation63_spill] sm:$0xff]  ;;  %s3345_s22 = sld [smem:[#allocation4 + %s1568_s4]] }
  0xb8   : >> { %v2952_v42 = vpop.permute.xlu1 %396  ;;  %v393_v48 = vpop.permute.xlu0 %392  ;;  %3876 = vst [vmem:[#allocation80_spill] sm:$0xff] %v3002_v36  ;;  %3878 = vst [vmem:[#allocation82_spill] sm:$0xff] %v3014_v39 }
  0xb9   : >> { %v425_v32 = vmul.f32 %v2582_v50, %v2952_v42  ;;  %v423_v20 = vmul.f32 %v2582_v50, %v393_v48  ;;  %v460_v7 = vmul.f32 %v2594_v57, %v393_v48  ;;  %v497_v34 = vmul.f32 %v2597_v3, %v393_v48 }
  0xba   : >> { %1213 = vrot.lane.b32.xlu1 %v2619_v5, %s3840_s14 }
  0xbb   : >> { %1211 = vrot.lane.b32.xlu0 %v2625_v14, %s3840_s14  ;;  %s1227_s14 = sadd.s32 15, %s2091_s16 }
  0xbc   : >> { %v399_v41 = vpop.permute.xlu1 %398  ;;  %v395_v55 = vpop.permute.xlu0 %394  ;;  %s3019_s24 = sld [smem:[#allocation4 + %s1227_s14]] }
  0xbd   : >> { %v424_v49 = vmul.f32 %v2582_v50, %v395_v55  ;;  %v461_v46 = vmul.f32 %v2594_v57, %v395_v55  ;;  %v498_v47 = vmul.f32 %v2597_v3, %v395_v55  ;;  %v426_v43 = vmul.f32 %v2582_v50, %v399_v41 }
  0xbe   : >> { %1449 = vrot.lane.b32.xlu1 %v2398_v9, %s3801_s17  ;;  %v3017_v9 = vstv %s2950_s26  ;;  %v463_v50 = vmul.f32 %v2594_v57, %v399_v41  ;;  %v500_v48 = vmul.f32 %v2597_v3, %v399_v41  ;;  %v499_v41 = vmul.f32 %v2597_v3, %v2952_v42  ;;  %s3989_s26 = sld [smem:[#allocation15_spill]] }
  0xbf   : >> { %1447 = vrot.lane.b32.xlu0 %v2402_v10, %s3801_s17  ;;  %3879 = vst [vmem:[#allocation83_spill] sm:$0xff] %v3017_v9 }
  0xc0   : >> { %v403_v51 = vpop.permute.xlu1 %402  ;;  %v401_v29 = vpop.permute.xlu0 %400 }
  0xc1   : >> { %v431_v10 = vmul.f32 %v2607_v22, %v403_v51  ;;  %v468_v30 = vmul.f32 %v2610_v37, %v403_v51  ;;  %v505_v28 = vmul.f32 %v2643_v26, %v403_v51  ;;  %v430_v31 = vmul.f32 %v2607_v22, %v401_v29 }
  0xc2   : >> { %v467_v19 = vmul.f32 %v2610_v37, %v401_v29  ;;  %v504_v23 = vmul.f32 %v2643_v26, %v401_v29  ;;  %1453 = vrot.lane.b32.xlu1 %v2415_v59, %s3801_s17 }
  0xc3   : >> { %v435_v54 = vadd.f32 %v431_v10, %v424_v49  ;;  %v472_v55 = vadd.f32 %v468_v30, %v461_v46  ;;  %v509_v51 = vadd.f32 %v505_v28, %v498_v47  ;;  %v434_v9 = vadd.f32 %v430_v31, %v423_v20  ;;  %1451 = vrot.lane.b32.xlu0 %v2419_v60, %s3801_s17 }
  0xc4   : >> { %v471_v39 = vadd.f32 %v467_v19, %v460_v7  ;;  %v508_v29 = vadd.f32 %v504_v23, %v497_v34  ;;  %v407_v63 = vpop.permute.xlu1 %406  ;;  %v405_v36 = vpop.permute.xlu0 %404  ;;  %v462_v46 = vmul.f32 %v2594_v57, %v2952_v42  ;;  %v3082_v31 = vstv %s3033_s2  ;;  %p1812_p1 = scmp.ne.s32.totalorder %s3989_s26, 15 }
  0xc5   : >> { %v433_v59 = vmul.f32 %v2607_v22, %v407_v63  ;;  %v470_v49 = vmul.f32 %v2610_v37, %v407_v63  ;;  %v507_v20 = vmul.f32 %v2643_v26, %v407_v63  ;;  %v432_v60 = vmul.f32 %v2607_v22, %v405_v36  ;;  %3882 = vst [vmem:[#allocation86_spill] sm:$0xff] %v3082_v31  ;;  %v3901_v31 = vld [vmem:[#allocation58_spill] sm:$0xff]  ;;  %s3990_s14 = sld [smem:[#allocation14_spill]] (!%p1812_p1) }
  0xc6   : >> { %v469_v7 = vmul.f32 %v2610_v37, %v405_v36  ;;  %v506_v47 = vmul.f32 %v2643_v26, %v405_v36  ;;  %1457 = vrot.lane.b32.xlu1 %v2429_v62, %s3801_s17  ;;  %v3073_v37 = vstv %s3019_s24  ;;  %v3076_v26 = vstv %s3026_s23 }
  0xc7   : >> { %v437_v10 = vadd.f32 %v433_v59, %v426_v43  ;;  %v474_v30 = vadd.f32 %v470_v49, %v463_v50  ;;  %v3064_v63 = vadd.f32 %v507_v20, %v500_v48  ;;  %v3066_v28 = vadd.f32 %v432_v60, %v425_v32  ;;  %1455 = vrot.lane.b32.xlu0 %v2434_v0, %s3801_s17  ;;  %v417_v0 = vld [vmem:[#allocation9 + $0x8] sm:$0xff]  ;;  %v416_v49 = vld [vmem:[#allocation9] sm:$0xff] }
  0xc8   : >> { %v473_v57 = vadd.f32 %v469_v7, %v462_v46  ;;  %v3070_v3 = vadd.f32 %v506_v47, %v499_v41  ;;  %v411_v22 = vpop.permute.xlu1 %410  ;;  %3880 = vst [vmem:[#allocation84_spill] sm:$0xff] %v3073_v37  ;;  %3881 = vst [vmem:[#allocation85_spill] sm:$0xff] %v3076_v26  ;;  %v409_v32 = vpop.permute.xlu0 %408  ;;  %v3090_v23 = vstv %s3042_s28  ;;  %v3095_v20 = vstv %s3046_s12 }
  0xc9   : >> { %v442_v62 = vmul.f32 %v2675_v58, %v411_v22  ;;  %v479_v42 = vmul.f32 %v2678_v45, %v411_v22  ;;  %v516_v36 = vmul.f32 %v2686_v53, %v411_v22  ;;  %v441_v34 = vmul.f32 %v2675_v58, %v409_v32  ;;  %3883 = vst [vmem:[#allocation87_spill] sm:$0xff] %v3090_v23 }
  0xca   : >> { %v478_v43 = vmul.f32 %v2678_v45, %v409_v32  ;;  %v515_v19 = vmul.f32 %v2686_v53, %v409_v32  ;;  %1461 = vrot.lane.b32.xlu1 %v3870_v4, %s3801_s17  ;;  %3884 = vst [vmem:[#allocation88_spill] sm:$0xff] %v3095_v20  ;;  %v3098_v47 = vstv %s3050_s21 }
  0xcb   : >> { %v446_v50 = vadd.f32 %v442_v62, %v435_v54  ;;  %v483_v48 = vadd.f32 %v479_v42, %v472_v55  ;;  %v520_v59 = vadd.f32 %v516_v36, %v509_v51  ;;  %1459 = vrot.lane.b32.xlu0 %v3872_v40, %s3801_s17  ;;  %v445_v60 = vadd.f32 %v441_v34, %v434_v9  ;;  %v419_v42 = vld [vmem:[#allocation9 + $0x18] sm:$0xff] }
  0xcc   : >> { %v482_v46 = vadd.f32 %v478_v43, %v471_v39  ;;  %v519_v41 = vadd.f32 %v515_v19, %v508_v29  ;;  %v415_v7 = vpop.permute.xlu1 %414  ;;  %3885 = vst [vmem:[#allocation89_spill] sm:$0xff] %v3098_v47 }
  0xcd   : >> { %v450_v22 = vmul.f32 %v446_v50, %v417_v0  ;;  %v487_v32 = vmul.f32 %v483_v48, %v417_v0  ;;  %v524_v4 = vmul.f32 %v520_v59, %v417_v0  ;;  %v444_v23 = vmul.f32 %v2675_v58, %v415_v7  ;;  %v413_v54 = vpop.permute.xlu0 %412  ;;  %v3886_v48 = vld [vmem:[#allocation46_spill] sm:$0xff]  ;;  %v3887_v59 = vld [vmem:[#allocation47_spill] sm:$0xff] }
  0xce   : >> { %v449_v55 = vmul.f32 %v445_v60, %v416_v49  ;;  %v486_v51 = vmul.f32 %v482_v46, %v416_v49  ;;  %v523_v62 = vmul.f32 %v519_v41, %v416_v49  ;;  %v481_v40 = vmul.f32 %v2678_v45, %v415_v7  ;;  %1465 = vrot.lane.b32.xlu1 %v2454_v13, %s3801_s17 }
  0xcf   : >> { %v454_v39 = vadd.f32 %v450_v22, %v2670_v27  ;;  %v491_v9 = vadd.f32 %v487_v32, %v2672_v6  ;;  %v528_v29 = vadd.f32 %v524_v4, %v2683_v44  ;;  %v448_v36 = vadd.f32 %v444_v23, %v437_v10  ;;  %1463 = vrot.lane.b32.xlu0 %v2538_v1, %s3801_s17  ;;  %v418_v1 = vld [vmem:[#allocation9 + $0x10] sm:$0xff] }
  0xd0   : >> { %v453_v0 = vadd.f32 %v449_v55, %v2688_v61  ;;  %v3111_v34 = vadd.f32 %v486_v51, %v2690_v25  ;;  %v3114_v43 = vadd.f32 %v523_v62, %v2697_v17  ;;  %v485_v19 = vadd.f32 %v481_v40, %v474_v30  ;;  %v650_v13 = vpop.permute.xlu1 %649  ;;  %v3888_v17 = vld [vmem:[#allocation40_spill] sm:$0xff]  ;;  %v3891_v40 = vld [vmem:[#allocation42_spill] sm:$0xff] }
  0xd1   : >> { %v452_v50 = vmul.f32 %v448_v36, %v419_v42  ;;  %v518_v27 = vmul.f32 %v2686_v53, %v415_v7  ;;  %v443_v6 = vmul.f32 %v2675_v58, %v413_v54  ;;  %v480_v44 = vmul.f32 %v2678_v45, %v413_v54  ;;  %v648_v10 = vpop.permute.xlu0 %647  ;;  %v3889_v45 = vld [vmem:[#allocation41_spill] sm:$0xff]  ;;  %v3890_v7 = vld [vmem:[#allocation48_spill] sm:$0xff]  ;;  %v3892_v36 = vld [vmem:[#allocation43_spill] sm:$0xff] }
  0xd2   : >> { %v489_v23 = vmul.f32 %v485_v19, %v419_v42  ;;  %v517_v61 = vmul.f32 %v2686_v53, %v413_v54  ;;  %v680_v25 = vmul.f32 %v3886_v48, %v650_v13  ;;  %v717_v49 = vmul.f32 %v3887_v59, %v650_v13  ;;  %1469 = vrot.lane.b32.xlu1 %v2619_v5, %s3801_s17 }
  0xd3   : >> { %v456_v30 = vadd.f32 %v452_v50, %v3888_v17  ;;  %v522_v60 = vadd.f32 %v518_v27, %v3064_v63  ;;  %v447_v58 = vadd.f32 %v443_v6, %v3066_v28  ;;  %v484_v46 = vadd.f32 %v480_v44, %v473_v57  ;;  %1467 = vrot.lane.b32.xlu0 %v2625_v14, %s3801_s17  ;;  %v3894_v27 = vld [vmem:[#allocation45_spill] sm:$0xff]  ;;  %s1476_s17 = sadd.s32 8, %s2091_s16  ;;  %s3329_s16 = sld [smem:[#allocation4 + %s1494_s8]] }
  0xd4   : >> { %v493_v41 = vadd.f32 %v489_v23, %v3889_v45  ;;  %v521_v53 = vadd.f32 %v517_v61, %v3070_v3  ;;  %v754_v22 = vmul.f32 %v3890_v7, %v650_v13  ;;  %v679_v32 = vmul.f32 %v3886_v48, %v648_v10  ;;  %v654_v4 = vpop.permute.xlu1 %653  ;;  %v3893_v13 = vld [vmem:[#allocation44_spill] sm:$0xff]  ;;  %v3895_v61 = vld [vmem:[#allocation49_spill] sm:$0xff]  ;;  %s3184_s6 = sld [smem:[#allocation4 + %s1476_s17]] }
  0xd5   : >> { %v526_v5 = vmul.f32 %v522_v60, %v419_v42  ;;  %v451_v54 = vmul.f32 %v447_v58, %v418_v1  ;;  %v488_v55 = vmul.f32 %v484_v46, %v418_v1  ;;  %v716_v63 = vmul.f32 %v3887_v59, %v648_v10  ;;  %v652_v51 = vpop.permute.xlu0 %651  ;;  %v3896_v60 = vld [vmem:[#allocation51_spill] sm:$0xff]  ;;  %v3897_v46 = vld [vmem:[#allocation52_spill] sm:$0xff] }
  0xd6   : >> { %v525_v28 = vmul.f32 %v521_v53, %v418_v1  ;;  %v753_v57 = vmul.f32 %v3890_v7, %v648_v10  ;;  %v682_v14 = vmul.f32 %v3886_v48, %v654_v4  ;;  %v719_v62 = vmul.f32 %v3887_v59, %v654_v4 }
  0xd7   : >> { %v530_v3 = vadd.f32 %v526_v5, %v3891_v40  ;;  %v455_v19 = vadd.f32 %v451_v54, %v3892_v36  ;;  %v492_v50 = vadd.f32 %v488_v55, %v3893_v13  ;;  %v756_v42 = vmul.f32 %v3890_v7, %v654_v4  ;;  %v3898_v5 = vld [vmem:[#allocation50_spill] sm:$0xff] }
  0xd8   : >> { %v529_v6 = vadd.f32 %v525_v28, %v3894_v27  ;;  %v681_v44 = vmul.f32 %v3886_v48, %v652_v51  ;;  %v718_v23 = vmul.f32 %v3887_v59, %v652_v51  ;;  %v755_v10 = vmul.f32 %v3890_v7, %v652_v51  ;;  %v658_v1 = vpop.permute.xlu1 %657  ;;  %v3899_v59 = vld [vmem:[#allocation53_spill] sm:$0xff]  ;;  %v3900_v36 = vld [vmem:[#allocation54_spill] sm:$0xff] }
  0xd9   : >> { %v687_v17 = vmul.f32 %v3895_v61, %v658_v1  ;;  %v724_v58 = vmul.f32 %v3896_v60, %v658_v1  ;;  %v761_v45 = vmul.f32 %v3897_v46, %v658_v1  ;;  %v656_v53 = vpop.permute.xlu0 %655  ;;  %v3149_v54 = vadd.f32 %v3898_v5, %v454_v39 }
  0xda   : >> { %v686_v4 = vmul.f32 %v3895_v61, %v656_v53  ;;  %v723_v55 = vmul.f32 %v3896_v60, %v656_v53  ;;  %v760_v48 = vmul.f32 %v3897_v46, %v656_v53  ;;  %v607_v28 = vadd.f32 %v3899_v59, %v491_v9  ;;  %v3902_v9 = vld [vmem:[#allocation59_spill] sm:$0xff] }
  0xdb   : >> { %v691_v7 = vadd.f32 %v687_v17, %v680_v25  ;;  %v728_v51 = vadd.f32 %v724_v58, %v717_v49  ;;  %v765_v40 = vadd.f32 %v761_v45, %v754_v22  ;;  %v644_v13 = vadd.f32 %v3900_v36, %v528_v29  ;;  %v3904_v17 = vld [vmem:[#allocation61_spill] sm:$0xff] }
  0xdc   : >> { %v690_v27 = vadd.f32 %v686_v4, %v679_v32  ;;  %v727_v47 = vadd.f32 %v723_v55, %v716_v63  ;;  %v764_v1 = vadd.f32 %v760_v48, %v753_v57  ;;  %v662_v20 = vpop.permute.xlu1 %661  ;;  %v569_v39 = vadd.f32 %v3901_v31, %v453_v0  ;;  %v3903_v32 = vld [vmem:[#allocation60_spill] sm:$0xff] }
  0xdd   : >> { %v689_v5 = vmul.f32 %v3895_v61, %v662_v20  ;;  %v726_v26 = vmul.f32 %v3896_v60, %v662_v20  ;;  %v763_v37 = vmul.f32 %v3897_v46, %v662_v20  ;;  %v660_v53 = vpop.permute.xlu0 %659  ;;  %v606_v25 = vadd.f32 %v3902_v9, %v3111_v34  ;;  %v3905_v34 = vld [vmem:[#allocation62_spill] sm:$0xff] }
  0xde   : >> { %v688_v49 = vmul.f32 %v3895_v61, %v660_v53  ;;  %v725_v29 = vmul.f32 %v3896_v60, %v660_v53  ;;  %v762_v22 = vmul.f32 %v3897_v46, %v660_v53  ;;  %v643_v31 = vadd.f32 %v3903_v32, %v3114_v43  ;;  %v3906_v61 = vld [vmem:[#allocation55_spill] sm:$0xff]  ;;  %v3907_v60 = vld [vmem:[#allocation56_spill] sm:$0xff]  ;;  %v3908_v46 = vld [vmem:[#allocation57_spill] sm:$0xff] }
  0xdf   : >> { %v693_v0 = vadd.f32 %v689_v5, %v682_v14  ;;  %v730_v63 = vadd.f32 %v726_v26, %v719_v62  ;;  %v767_v57 = vadd.f32 %v763_v37, %v756_v42  ;;  %v572_v58 = vadd.f32 %v3904_v17, %v456_v30  ;;  %v673_v37 = vld [vmem:[#allocation9 + $0x48] sm:$0xff]  ;;  %v3911_v5 = vld [vmem:[#allocation66_spill] sm:$0xff] }
  0xe0   : >> { %v692_v20 = vadd.f32 %v688_v49, %v681_v44  ;;  %v729_v45 = vadd.f32 %v725_v29, %v718_v23  ;;  %v766_v4 = vadd.f32 %v762_v22, %v755_v10  ;;  %v666_v55 = vpop.permute.xlu1 %665  ;;  %v609_v48 = vadd.f32 %v3905_v34, %v493_v41  ;;  %v3910_v62 = vld [vmem:[#allocation64_spill] sm:$0xff]  ;;  %v672_v10 = vld [vmem:[#allocation9 + $0x40] sm:$0xff] }
  0xe1   : >> { %v698_v59 = vmul.f32 %v3906_v61, %v666_v55  ;;  %v735_v36 = vmul.f32 %v3907_v60, %v666_v55  ;;  %v772_v53 = vmul.f32 %v3908_v46, %v666_v55  ;;  %v664_v9 = vpop.permute.xlu0 %663  ;;  %v3173_v43 = vadd.f32 %v3909_v33, %v530_v3  ;;  %v3912_v32 = vld [vmem:[#allocation72_spill] sm:$0xff] }
  0xe2   : >> { %v697_v26 = vmul.f32 %v3906_v61, %v664_v9  ;;  %v734_v30 = vmul.f32 %v3907_v60, %v664_v9  ;;  %v771_v14 = vmul.f32 %v3908_v46, %v664_v9  ;;  %v3180_v41 = vadd.f32 %v3910_v62, %v455_v19 }
  0xe3   : >> { %v702_v42 = vadd.f32 %v698_v59, %v691_v7  ;;  %v739_v44 = vadd.f32 %v735_v36, %v728_v51  ;;  %v776_v23 = vadd.f32 %v772_v53, %v765_v40  ;;  %v608_v49 = vadd.f32 %v3911_v5, %v492_v50  ;;  %v675_v59 = vld [vmem:[#allocation9 + $0x58] sm:$0xff]  ;;  %v1333_v36 = vld [vmem:[#allocation9 + $0xe8] sm:$0xff]  ;;  %v3211_v5 = vld [vmem:[#allocation9 + $0xe0] sm:$0xff] }
  0xe4   : >> { %v701_v29 = vadd.f32 %v697_v26, %v690_v27  ;;  %v738_v33 = vadd.f32 %v734_v30, %v727_v47  ;;  %v775_v3 = vadd.f32 %v771_v14, %v764_v1  ;;  %v670_v22 = vpop.permute.xlu1 %669  ;;  %v645_v17 = vadd.f32 %v3912_v32, %v529_v6 }
  0xe5   : >> { %v706_v55 = vmul.f32 %v702_v42, %v673_v37  ;;  %v743_v34 = vmul.f32 %v739_v44, %v673_v37  ;;  %v780_v9 = vmul.f32 %v776_v23, %v673_v37  ;;  %v700_v19 = vmul.f32 %v3906_v61, %v670_v22  ;;  %v668_v62 = vpop.permute.xlu0 %667  ;;  %v674_v23 = vld [vmem:[#allocation9 + $0x50] sm:$0xff] }
  0xe6   : >> { %v705_v7 = vmul.f32 %v701_v29, %v672_v10  ;;  %v742_v51 = vmul.f32 %v738_v33, %v672_v10  ;;  %v779_v40 = vmul.f32 %v775_v3, %v672_v10  ;;  %v737_v50 = vmul.f32 %v3907_v60, %v670_v22 }
  0xe7   : >> { %v3189_v47 = vadd.f32 %v706_v55, %v3149_v54  ;;  %v3191_v27 = vadd.f32 %v743_v34, %v607_v28  ;;  %v3193_v6 = vadd.f32 %v780_v9, %v644_v13  ;;  %v704_v1 = vadd.f32 %v700_v19, %v693_v0 }
  0xe8   : >> { %v3195_v53 = vadd.f32 %v705_v7, %v569_v39  ;;  %v3197_v37 = vadd.f32 %v742_v51, %v606_v25  ;;  %v3199_v26 = vadd.f32 %v779_v40, %v643_v31  ;;  %v741_v30 = vadd.f32 %v737_v50, %v730_v63  ;;  %v790_v14 = vpop.permute.xlu1 %789  ;;  %v3913_v25 = vld [vmem:[#allocation27_spill] sm:$0xff]  ;;  %v3915_v31 = vld [vmem:[#allocation28_spill] sm:$0xff] }
  0xe9   : >> { %v708_v42 = vmul.f32 %v704_v1, %v675_v59  ;;  %v774_v44 = vmul.f32 %v3908_v46, %v670_v22  ;;  %v699_v54 = vmul.f32 %v3906_v61, %v668_v62  ;;  %v736_v28 = vmul.f32 %v3907_v60, %v668_v62  ;;  %v788_v13 = vpop.permute.xlu0 %787  ;;  %v3923_v40 = vld [vmem:[#allocation32_spill] sm:$0xff] }
  0xea   : >> { %v745_v0 = vmul.f32 %v741_v30, %v675_v59  ;;  %v773_v39 = vmul.f32 %v3908_v46, %v668_v62  ;;  %v3206_v10 = vmul.f32 %v3913_v25, %v1333_v36  ;;  %v3209_v63 = vmul.f32 %v3915_v31, %v1333_v36  ;;  %v3917_v46 = vld [vmem:[#allocation30_spill] sm:$0xff]  ;;  %v3925_v30 = vld [vmem:[#allocation68_spill] sm:$0xff]  ;;  %v3928_v31 = vld [vmem:[#allocation71_spill] sm:$0xff] }
  0xeb   : >> { %v3213_v29 = vadd.f32 %v708_v42, %v572_v58  ;;  %v778_v61 = vadd.f32 %v774_v44, %v767_v57  ;;  %v703_v33 = vadd.f32 %v699_v54, %v692_v20  ;;  %v740_v3 = vadd.f32 %v736_v28, %v729_v45  ;;  %v3919_v58 = vld [vmem:[#allocation31_spill] sm:$0xff]  ;;  %v3921_v45 = vld [vmem:[#allocation65_spill] sm:$0xff] }
  0xec   : >> { %3914 = vst [vmem:[#allocation46_spill] sm:$0xff] %v3206_v10  ;;  %3916 = vst [vmem:[#allocation47_spill] sm:$0xff] %v3209_v63  ;;  %v3215_v60 = vadd.f32 %v745_v0, %v609_v48  ;;  %v777_v22 = vadd.f32 %v773_v39, %v766_v4  ;;  %v794_v32 = vpop.permute.xlu1 %793  ;;  %v3218_v55 = vstv %s3184_s6  ;;  %v3222_v34 = vmul.f32 %v3917_v46, %v1333_v36  ;;  %v3922_v4 = vld [vmem:[#allocation67_spill] sm:$0xff] }
  0xed   : >> { %v782_v9 = vmul.f32 %v778_v61, %v675_v59  ;;  %v707_v19 = vmul.f32 %v703_v33, %v674_v23  ;;  %v744_v62 = vmul.f32 %v740_v3, %v674_v23  ;;  %v792_v7 = vpop.permute.xlu0 %791  ;;  %v3226_v57 = vmul.f32 %v3919_v58, %v3211_v5 }
  0xee   : >> { %3918 = vst [vmem:[#allocation40_spill] sm:$0xff] %v3222_v34  ;;  %v781_v20 = vmul.f32 %v777_v22, %v674_v23  ;;  %v820_v48 = vmul.f32 %v3921_v45, %v790_v14  ;;  %v857_v51 = vmul.f32 %v3922_v4, %v790_v14  ;;  %v3232_v50 = vmul.f32 %v3923_v40, %v3211_v5 }
  0xef   : >> { %3920 = vst [vmem:[#allocation41_spill] sm:$0xff] %v3226_v57  ;;  %v3235_v1 = vadd.f32 %v782_v9, %v3173_v43  ;;  %v3238_v59 = vadd.f32 %v707_v19, %v3180_v41  ;;  %v3240_v36 = vadd.f32 %v744_v62, %v608_v49  ;;  %v894_v42 = vmul.f32 %v3925_v30, %v790_v14  ;;  %v3926_v41 = vld [vmem:[#allocation69_spill] sm:$0xff]  ;;  %v3927_v49 = vld [vmem:[#allocation70_spill] sm:$0xff] }
  0xf0   : >> { %3924 = vst [vmem:[#allocation48_spill] sm:$0xff] %v3232_v50  ;;  %v3245_v44 = vadd.f32 %v781_v20, %v645_v17  ;;  %v819_v54 = vmul.f32 %v3921_v45, %v788_v13  ;;  %v856_v28 = vmul.f32 %v3922_v4, %v788_v13  ;;  %v893_v0 = vmul.f32 %v3925_v30, %v788_v13  ;;  %v798_v43 = vpop.permute.xlu1 %797 }
  0xf1   : >> { %v822_v23 = vmul.f32 %v3921_v45, %v794_v32  ;;  %v827_v39 = vmul.f32 %v3926_v41, %v798_v43  ;;  %v864_v25 = vmul.f32 %v3927_v49, %v798_v43  ;;  %v901_v14 = vmul.f32 %v3928_v31, %v798_v43  ;;  %v796_v61 = vpop.permute.xlu0 %795 }
  0xf2   : >> { %v859_v17 = vmul.f32 %v3922_v4, %v794_v32  ;;  %v826_v33 = vmul.f32 %v3926_v41, %v796_v61  ;;  %v863_v3 = vmul.f32 %v3927_v49, %v796_v61  ;;  %v900_v13 = vmul.f32 %v3928_v31, %v796_v61 }
  0xf3   : >> { %v896_v22 = vmul.f32 %v3925_v30, %v794_v32  ;;  %v831_v46 = vadd.f32 %v827_v39, %v820_v48  ;;  %v868_v9 = vadd.f32 %v864_v25, %v857_v51  ;;  %v905_v19 = vadd.f32 %v901_v14, %v894_v42 }
  0xf4   : >> { %v821_v62 = vmul.f32 %v3921_v45, %v792_v7  ;;  %v830_v58 = vadd.f32 %v826_v33, %v819_v54  ;;  %v867_v20 = vadd.f32 %v863_v3, %v856_v28  ;;  %v904_v40 = vadd.f32 %v900_v13, %v893_v0  ;;  %v802_v43 = vpop.permute.xlu1 %801  ;;  %v3934_v13 = vld [vmem:[#allocation75_spill] sm:$0xff] }
  0xf5   : >> { %v858_v50 = vmul.f32 %v3922_v4, %v792_v7  ;;  %v829_v61 = vmul.f32 %v3926_v41, %v802_v43  ;;  %v866_v32 = vmul.f32 %v3927_v49, %v802_v43  ;;  %v903_v48 = vmul.f32 %v3928_v31, %v802_v43  ;;  %v800_v51 = vpop.permute.xlu0 %799 }
  0xf6   : >> { %v895_v42 = vmul.f32 %v3925_v30, %v792_v7  ;;  %v828_v45 = vmul.f32 %v3926_v41, %v800_v51  ;;  %v865_v54 = vmul.f32 %v3927_v49, %v800_v51  ;;  %v902_v28 = vmul.f32 %v3928_v31, %v800_v51  ;;  %v3930_v30 = vld [vmem:[#allocation33_spill] sm:$0xff]  ;;  %v3933_v31 = vld [vmem:[#allocation74_spill] sm:$0xff] }
  0xf7   : >> { %v833_v0 = vadd.f32 %v829_v61, %v822_v23  ;;  %v870_v39 = vadd.f32 %v866_v32, %v859_v17  ;;  %v3274_v25 = vadd.f32 %v903_v48, %v896_v22  ;;  %v3277_v4 = vstv %s3243_s3  ;;  %v3932_v49 = vld [vmem:[#allocation73_spill] sm:$0xff]  ;;  %v3936_v61 = vld [vmem:[#allocation34_spill] sm:$0xff]  ;;  %v813_v32 = vld [vmem:[#allocation9 + $0x68] sm:$0xff] }
  0xf8   : >> { %3929 = vst [vmem:[#allocation42_spill] sm:$0xff] %v3277_v4  ;;  %v3280_v14 = vadd.f32 %v828_v45, %v821_v62  ;;  %v3282_v33 = vadd.f32 %v865_v54, %v858_v50  ;;  %v3284_v3 = vadd.f32 %v902_v28, %v895_v42  ;;  %v806_v7 = vpop.permute.xlu1 %805  ;;  %v3288_v41 = vmul.f32 %v3930_v30, %v3211_v5  ;;  %v3935_v62 = vld [vmem:[#allocation20_spill] sm:$0xff]  ;;  %v3937_v42 = vld [vmem:[#allocation21_spill] sm:$0xff] }
  0xf9   : >> { %v838_v23 = vmul.f32 %v3932_v49, %v806_v7  ;;  %v875_v17 = vmul.f32 %v3933_v31, %v806_v7  ;;  %v912_v22 = vmul.f32 %v3934_v13, %v806_v7  ;;  %v804_v43 = vpop.permute.xlu0 %803  ;;  %v3295_v50 = vadd.f32 %v3936_v61, %v3935_v62  ;;  %v3938_v45 = vld [vmem:[#allocation35_spill] sm:$0xff] }
  0xfa   : >> { %3931 = vst [vmem:[#allocation43_spill] sm:$0xff] %v3288_v41  ;;  %v837_v48 = vmul.f32 %v3932_v49, %v804_v43  ;;  %v874_v5 = vmul.f32 %v3933_v31, %v804_v43  ;;  %v911_v51 = vmul.f32 %v3934_v13, %v804_v43  ;;  %v3304_v54 = vadd.f32 %v3938_v45, %v3937_v42  ;;  %v812_v62 = vld [vmem:[#allocation9 + $0x60] sm:$0xff]  ;;  %v3940_v45 = vld [vmem:[#allocation36_spill] sm:$0xff] }
  0xfb   : >> { %v842_v28 = vadd.f32 %v838_v23, %v831_v46  ;;  %v879_v7 = vadd.f32 %v875_v17, %v868_v9  ;;  %v916_v30 = vadd.f32 %v912_v22, %v905_v19  ;;  %v3307_v61 = vstv %s3261_s29  ;;  %v815_v22 = vld [vmem:[#allocation9 + $0x78] sm:$0xff] }
  0xfc   : >> { %v841_v41 = vadd.f32 %v837_v48, %v830_v58  ;;  %v878_v57 = vadd.f32 %v874_v5, %v867_v20  ;;  %v915_v34 = vadd.f32 %v911_v51, %v904_v40  ;;  %v810_v63 = vpop.permute.xlu1 %809  ;;  %v3311_v43 = vstv %s3264_s1 }
  0xfd   : >> { %v846_v10 = vmul.f32 %v842_v28, %v813_v32  ;;  %v883_v4 = vmul.f32 %v879_v7, %v813_v32  ;;  %v920_v42 = vmul.f32 %v916_v30, %v813_v32  ;;  %v840_v46 = vmul.f32 %v3932_v49, %v810_v63  ;;  %v808_v9 = vpop.permute.xlu0 %807  ;;  %v1335_v30 = vld [vmem:[#allocation9 + $0xf8] sm:$0xff] }
  0xfe   : >> { %v845_v19 = vmul.f32 %v841_v41, %v812_v62  ;;  %v882_v23 = vmul.f32 %v878_v57, %v812_v62  ;;  %v919_v17 = vmul.f32 %v915_v34, %v812_v62  ;;  %v877_v58 = vmul.f32 %v3933_v31, %v810_v63 }
  0xff   : >> { %v3321_v20 = vadd.f32 %v846_v10, %v3189_v47  ;;  %v3324_v40 = vadd.f32 %v883_v4, %v3191_v27  ;;  %v3327_v32 = vadd.f32 %v920_v42, %v3193_v6  ;;  %v844_v48 = vadd.f32 %v840_v46, %v833_v0  ;;  %v3941_v46 = vld [vmem:[#allocation24_spill] sm:$0xff] }
 0x100   : >> { %v3332_v34 = vadd.f32 %v845_v19, %v3195_v53  ;;  %v3335_v57 = vadd.f32 %v882_v23, %v3197_v37  ;;  %v3338_v41 = vadd.f32 %v919_v17, %v3199_v26  ;;  %v881_v47 = vadd.f32 %v877_v58, %v870_v39  ;;  %v1029_v10 = vpop.permute.xlu1 %1028  ;;  %v814_v37 = vld [vmem:[#allocation9 + $0x70] sm:$0xff]  ;;  %v3939_v39 = vld [vmem:[#allocation23_spill] sm:$0xff]  ;;  %v3944_v23 = vld [vmem:[#allocation38_spill] sm:$0xff] }
 0x101   : >> { %v848_v27 = vmul.f32 %v844_v48, %v815_v22  ;;  %v914_v6 = vmul.f32 %v3934_v13, %v810_v63  ;;  %v839_v0 = vmul.f32 %v3932_v49, %v808_v9  ;;  %v876_v4 = vmul.f32 %v3933_v31, %v808_v9  ;;  %v1027_v5 = vpop.permute.xlu0 %1026 }
 0x102   : >> { %v885_v53 = vmul.f32 %v881_v47, %v815_v22  ;;  %v913_v51 = vmul.f32 %v3934_v13, %v808_v9  ;;  %v3349_v26 = vstv %s3300_s20  ;;  %v1438_v28 = vadd.f32 %v3940_v45, %v3939_v39  ;;  %v3942_v9 = vld [vmem:[#allocation37_spill] sm:$0xff]  ;;  %v3945_v47 = vld [vmem:[#allocation26_spill] sm:$0xff] }
 0x103   : >> { %v3354_v7 = vadd.f32 %v848_v27, %v3213_v29  ;;  %v918_v63 = vadd.f32 %v914_v6, %v3274_v25  ;;  %v843_v49 = vadd.f32 %v839_v0, %v3280_v14  ;;  %v880_v31 = vadd.f32 %v876_v4, %v3282_v33  ;;  %v3943_v29 = vld [vmem:[#allocation25_spill] sm:$0xff]  ;;  %v1334_v33 = vld [vmem:[#allocation9 + $0xf0] sm:$0xff]  ;;  %v3946_v27 = vld [vmem:[#allocation39_spill] sm:$0xff] }
 0x104   : >> { %v3360_v62 = vadd.f32 %v885_v53, %v3215_v60  ;;  %v917_v13 = vadd.f32 %v913_v51, %v3284_v3  ;;  %v1033_v42 = vpop.permute.xlu1 %1032  ;;  %v1363_v19 = vadd.f32 %v3942_v9, %v3941_v46  ;;  %v1400_v17 = vadd.f32 %v3944_v23, %v3943_v29  ;;  %v3957_v46 = vld [vmem:[#allocation77_spill] sm:$0xff] }
 0x105   : >> { %v922_v25 = vmul.f32 %v918_v63, %v815_v22  ;;  %v847_v58 = vmul.f32 %v843_v49, %v814_v37  ;;  %v884_v14 = vmul.f32 %v880_v31, %v814_v37  ;;  %v1031_v48 = vpop.permute.xlu0 %1030  ;;  %v1437_v60 = vadd.f32 %v3946_v27, %v3945_v47 }
 0x106   : >> { %v921_v6 = vmul.f32 %v917_v13, %v814_v37  ;;  %v3370_v3 = vstv %s3317_s25  ;;  %v3373_v0 = vmul.f32 %v3295_v50, %v1335_v30  ;;  %v3376_v4 = vmul.f32 %v3304_v54, %v1335_v30 }
 0x107   : >> { %v3379_v22 = vadd.f32 %v922_v25, %v3235_v1  ;;  %v3382_v53 = vadd.f32 %v847_v58, %v3238_v59  ;;  %v3385_v51 = vadd.f32 %v884_v14, %v3240_v36  ;;  %v3388_v39 = vstv %s3329_s16  ;;  %v3953_v1 = vld [vmem:[#allocation76_spill] sm:$0xff]  ;;  %v3959_v25 = vld [vmem:[#allocation18_spill] sm:$0xff] }
 0x108   : >> { %3947 = vst [vmem:[#allocation44_spill] sm:$0xff] %v3373_v0  ;;  %3948 = vst [vmem:[#allocation45_spill] sm:$0xff] %v3376_v4  ;;  %v3391_v37 = vadd.f32 %v921_v6, %v3245_v44  ;;  %v1037_v45 = vpop.permute.xlu1 %1036  ;;  %v3394_v50 = vstv %s3340_s19  ;;  %v3396_v63 = vmul.f32 %v1438_v28, %v1335_v30  ;;  %v3398_v54 = vmul.f32 %v1363_v19, %v1334_v33  ;;  %v3958_v44 = vld [vmem:[#allocation17_spill] sm:$0xff] }
 0x109   : >> { %3949 = vst [vmem:[#allocation49_spill] sm:$0xff] %v3388_v39  ;;  %3950 = vst [vmem:[#allocation51_spill] sm:$0xff] %v3394_v50  ;;  %v1059_v49 = vmul.f32 %v3953_v1, %v1029_v10  ;;  %v1035_v31 = vpop.permute.xlu0 %1034  ;;  %v3402_v59 = vstv %s3345_s22  ;;  %v3404_v13 = vmul.f32 %v1400_v17, %v1334_v33  ;;  %v3406_v36 = vmul.f32 %v1437_v60, %v1334_v33 }
 0x10a   : >> { %3951 = vst [vmem:[#allocation52_spill] sm:$0xff] %v3396_v63  ;;  %3952 = vst [vmem:[#allocation50_spill] sm:$0xff] %v3398_v54  ;;  %v1096_v9 = vmul.f32 %v3957_v46, %v1029_v10  ;;  %v1133_v29 = vmul.f32 %v3958_v44, %v1029_v10  ;;  %v1058_v23 = vmul.f32 %v3953_v1, %v1027_v5  ;;  %v3960_v63 = vld [vmem:[#allocation78_spill] sm:$0xff] }
 0x10b   : >> { %3954 = vst [vmem:[#allocation53_spill] sm:$0xff] %v3402_v59  ;;  %3955 = vst [vmem:[#allocation54_spill] sm:$0xff] %v3404_v13  ;;  %v1066_v28 = vmul.f32 %v3959_v25, %v1037_v45  ;;  %v1095_v30 = vmul.f32 %v3957_v46, %v1027_v5  ;;  %v1132_v19 = vmul.f32 %v3958_v44, %v1027_v5 }
 0x10c   : >> { %3956 = vst [vmem:[#allocation58_spill] sm:$0xff] %v3406_v36  ;;  %v1103_v58 = vmul.f32 %v2966_v52, %v1037_v45  ;;  %v1140_v14 = vmul.f32 %v2969_v12, %v1037_v45  ;;  %v1061_v17 = vmul.f32 %v3953_v1, %v1033_v42  ;;  %v1098_v33 = vmul.f32 %v3957_v46, %v1033_v42  ;;  %v1041_v27 = vpop.permute.xlu1 %1040 }
 0x10d   : >> { %v1065_v47 = vmul.f32 %v3959_v25, %v1035_v31  ;;  %v1102_v10 = vmul.f32 %v2966_v52, %v1035_v31  ;;  %v1135_v60 = vmul.f32 %v3958_v44, %v1033_v42  ;;  %v1060_v6 = vmul.f32 %v3953_v1, %v1031_v48  ;;  %v1039_v13 = vpop.permute.xlu0 %1038 }
 0x10e   : >> { %v1097_v36 = vmul.f32 %v3957_v46, %v1031_v48  ;;  %v1139_v5 = vmul.f32 %v2969_v12, %v1035_v31  ;;  %v1134_v45 = vmul.f32 %v3958_v44, %v1031_v48  ;;  %v1070_v54 = vadd.f32 %v1066_v28, %v1059_v49 }
 0x10f   : >> { %v3427_v4 = vadd.f32 %v3960_v63, %v3321_v20  ;;  %v3431_v59 = vadd.f32 %v2971_v24, %v3324_v40  ;;  %v1107_v50 = vadd.f32 %v1103_v58, %v1096_v9  ;;  %v1144_v42 = vadd.f32 %v1140_v14, %v1133_v29  ;;  %v3961_v9 = vld [vmem:[#allocation79_spill] sm:$0xff] }
 0x110   : >> { %v1068_v1 = vmul.f32 %v3959_v25, %v1041_v27  ;;  %v1105_v46 = vmul.f32 %v2966_v52, %v1041_v27  ;;  %v1069_v39 = vadd.f32 %v1065_v47, %v1058_v23  ;;  %v1106_v31 = vadd.f32 %v1102_v10, %v1095_v30  ;;  %v1045_v48 = vpop.permute.xlu1 %1044 }
 0x111   : >> { %v1142_v0 = vmul.f32 %v2969_v12, %v1041_v27  ;;  %v3438_v49 = vadd.f32 %v2985_v18, %v3327_v32  ;;  %v1143_v20 = vadd.f32 %v1139_v5, %v1132_v19  ;;  %v1067_v63 = vmul.f32 %v3959_v25, %v1039_v13  ;;  %v1043_v40 = vpop.permute.xlu0 %1042 }
 0x112   : >> { %v1104_v24 = vmul.f32 %v2966_v52, %v1039_v13  ;;  %v3444_v44 = vadd.f32 %v3961_v9, %v3332_v34  ;;  %v1141_v29 = vmul.f32 %v2969_v12, %v1039_v13  ;;  %v1077_v23 = vmul.f32 %v2976_v38, %v1045_v48 }
 0x113   : >> { %v1114_v28 = vmul.f32 %v2988_v8, %v1045_v48  ;;  %v3451_v18 = vadd.f32 %v2978_v56, %v3335_v57  ;;  %v1072_v32 = vadd.f32 %v1068_v1, %v1061_v17  ;;  %v1109_v30 = vadd.f32 %v1105_v46, %v1098_v33  ;;  %v1051_v1 = vld [vmem:[#allocation9 + $0xa0] sm:$0xff] }
 0x114   : >> { %v1151_v25 = vmul.f32 %v2998_v16, %v1045_v48  ;;  %v3456_v52 = vadd.f32 %v2990_v35, %v3338_v41  ;;  %v1146_v34 = vadd.f32 %v1142_v0, %v1135_v60  ;;  %v1076_v19 = vmul.f32 %v2976_v38, %v1043_v40  ;;  %v1049_v58 = vpop.permute.xlu1 %1048  ;;  %v1052_v0 = vld [vmem:[#allocation9 + $0xa8] sm:$0xff] }
 0x115   : >> { %v1113_v12 = vmul.f32 %v2988_v8, %v1043_v40  ;;  %v1150_v13 = vmul.f32 %v2998_v16, %v1043_v40  ;;  %v1071_v14 = vadd.f32 %v1067_v63, %v1060_v6  ;;  %v1108_v47 = vadd.f32 %v1104_v24, %v1097_v36  ;;  %v1047_v17 = vpop.permute.xlu0 %1046  ;;  %v1054_v63 = vld [vmem:[#allocation9 + $0xb8] sm:$0xff] }
 0x116   : >> { %v959_v56 = vadd.f32 %v2973_v15, %v3354_v7  ;;  %v1079_v57 = vmul.f32 %v2976_v38, %v1049_v58  ;;  %v1145_v33 = vadd.f32 %v1141_v29, %v1134_v45  ;;  %v1081_v10 = vadd.f32 %v1077_v23, %v1070_v54  ;;  %v3962_v45 = vld [vmem:[#allocation16_spill] sm:$0xff] }
 0x117   : >> { %v1118_v35 = vadd.f32 %v1114_v28, %v1107_v50  ;;  %v1116_v41 = vmul.f32 %v2988_v8, %v1049_v58  ;;  %v1155_v27 = vadd.f32 %v1151_v25, %v1144_v42  ;;  %v992_v60 = vadd.f32 %v2980_v21, %v3360_v62 }
 0x118   : >> { %v1025_v6 = vadd.f32 %v3000_v2, %v3379_v22  ;;  %v958_v36 = vadd.f32 %v2982_v11, %v3382_v53  ;;  %v1080_v15 = vadd.f32 %v1076_v19, %v1069_v39  ;;  %v1117_v7 = vadd.f32 %v1113_v12, %v1106_v31  ;;  %v1194_v50 = vpop.permute.xlu1 %1193  ;;  %v1053_v53 = vld [vmem:[#allocation9 + $0xb0] sm:$0xff] }
 0x119   : >> { %v1154_v5 = vadd.f32 %v1150_v13, %v1143_v20  ;;  %v991_v54 = vadd.f32 %v3962_v45, %v3385_v51  ;;  %v1083_v46 = vadd.f32 %v1079_v57, %v1072_v32  ;;  %v1153_v42 = vmul.f32 %v2998_v16, %v1049_v58  ;;  %v1192_v62 = vpop.permute.xlu0 %1191 }
 0x11a   : >> { %v1078_v48 = vmul.f32 %v2976_v38, %v1047_v17  ;;  %v1115_v21 = vmul.f32 %v2988_v8, %v1047_v17  ;;  %v1085_v2 = vmul.f32 %v1081_v10, %v1052_v0  ;;  %v1122_v22 = vmul.f32 %v1118_v35, %v1052_v0 }
 0x11b   : >> { %v1120_v11 = vadd.f32 %v1116_v41, %v1109_v30  ;;  %v1152_v39 = vmul.f32 %v2998_v16, %v1047_v17  ;;  %v1159_v31 = vmul.f32 %v1155_v27, %v1052_v0  ;;  %v1157_v20 = vadd.f32 %v1153_v42, %v1146_v34  ;;  %v3963_v16 = vld [vmem:[#allocation80_spill] sm:$0xff]  ;;  %v3964_v41 = vld [vmem:[#allocation81_spill] sm:$0xff]  ;;  %v3965_v27 = vld [vmem:[#allocation82_spill] sm:$0xff] }
 0x11c   : >> { %v1082_v51 = vadd.f32 %v1078_v48, %v1071_v14  ;;  %v1119_v24 = vadd.f32 %v1115_v21, %v1108_v47  ;;  %v1084_v40 = vmul.f32 %v1080_v15, %v1051_v1  ;;  %v1121_v9 = vmul.f32 %v1117_v7, %v1051_v1  ;;  %v1198_v28 = vpop.permute.xlu1 %1197  ;;  %v3967_v7 = vld [vmem:[#allocation84_spill] sm:$0xff] }
 0x11d   : >> { %v1158_v29 = vmul.f32 %v1154_v5, %v1051_v1  ;;  %v1156_v23 = vadd.f32 %v1152_v39, %v1145_v33  ;;  %v1087_v38 = vmul.f32 %v1083_v46, %v1054_v63  ;;  %v1161_v32 = vmul.f32 %v1157_v20, %v1054_v63  ;;  %v1196_v19 = vpop.permute.xlu0 %1195  ;;  %v3968_v5 = vld [vmem:[#allocation85_spill] sm:$0xff]  ;;  %v3969_v1 = vld [vmem:[#allocation86_spill] sm:$0xff] }
 0x11e   : >> { %v1086_v8 = vmul.f32 %v1082_v51, %v1053_v53  ;;  %v1123_v25 = vmul.f32 %v1119_v24, %v1053_v53  ;;  %v3478_v12 = vadd.f32 %v1085_v2, %v3427_v4  ;;  %v1124_v30 = vmul.f32 %v1120_v11, %v1054_v63 }
 0x11f   : >> { %v1024_v13 = vadd.f32 %v3963_v16, %v3391_v37  ;;  %v1160_v34 = vmul.f32 %v1156_v23, %v1053_v53  ;;  %v3483_v58 = vadd.f32 %v1122_v22, %v3431_v59  ;;  %v3485_v14 = vadd.f32 %v1161_v32, %v1025_v6 }
 0x120   : >> { %v3487_v47 = vadd.f32 %v1086_v8, %v958_v36  ;;  %v3489_v57 = vadd.f32 %v1123_v25, %v991_v54  ;;  %v3492_v17 = vadd.f32 %v1159_v31, %v3438_v49  ;;  %v3495_v4 = vadd.f32 %v1084_v40, %v3444_v44  ;;  %v1202_v10 = vpop.permute.xlu1 %1201  ;;  %v3966_v44 = vld [vmem:[#allocation83_spill] sm:$0xff] }
 0x121   : >> { %v3498_v33 = vadd.f32 %v1121_v9, %v3451_v18  ;;  %v3500_v37 = vadd.f32 %v1160_v34, %v1024_v13  ;;  %v3503_v59 = vadd.f32 %v1158_v29, %v3456_v52  ;;  %v3505_v35 = vadd.f32 %v1087_v38, %v959_v56  ;;  %v1200_v49 = vpop.permute.xlu0 %1199  ;;  %v3970_v25 = vld [vmem:[#allocation87_spill] sm:$0xff]  ;;  %v3972_v13 = vld [vmem:[#allocation89_spill] sm:$0xff] }
 0x122   : >> { %v1224_v0 = vmul.f32 %v3964_v41, %v1194_v50  ;;  %v1261_v6 = vmul.f32 %v3965_v27, %v1194_v50  ;;  %v3509_v36 = vadd.f32 %v1124_v30, %v992_v60  ;;  %v1298_v15 = vmul.f32 %v3966_v44, %v1194_v50  ;;  %v3971_v30 = vld [vmem:[#allocation88_spill] sm:$0xff] }
 0x123   : >> { %v1231_v18 = vmul.f32 %v3967_v7, %v1202_v10  ;;  %v1268_v45 = vmul.f32 %v3968_v5, %v1202_v10  ;;  %v1223_v54 = vmul.f32 %v3964_v41, %v1192_v62  ;;  %v1305_v52 = vmul.f32 %v3969_v1, %v1202_v10 }
 0x124   : >> { %v1230_v56 = vmul.f32 %v3967_v7, %v1200_v49  ;;  %v1267_v46 = vmul.f32 %v3968_v5, %v1200_v49  ;;  %v1260_v42 = vmul.f32 %v3965_v27, %v1192_v62  ;;  %v1297_v48 = vmul.f32 %v3966_v44, %v1192_v62  ;;  %v1206_v21 = vpop.permute.xlu1 %1205 }
 0x125   : >> { %v1226_v60 = vmul.f32 %v3964_v41, %v1198_v28  ;;  %v1304_v50 = vmul.f32 %v3969_v1, %v1200_v49  ;;  %v1263_v2 = vmul.f32 %v3965_v27, %v1198_v28  ;;  %v1300_v22 = vmul.f32 %v3966_v44, %v1198_v28  ;;  %v1204_v53 = vpop.permute.xlu0 %1203 }
 0x126   : >> { %v1225_v63 = vmul.f32 %v3964_v41, %v1196_v19  ;;  %v1262_v11 = vmul.f32 %v3965_v27, %v1196_v19  ;;  %v1299_v39 = vmul.f32 %v3966_v44, %v1196_v19  ;;  %v1235_v31 = vadd.f32 %v1231_v18, %v1224_v0  ;;  %v1217_v0 = vld [vmem:[#allocation9 + $0xc8] sm:$0xff] }
 0x127   : >> { %v1272_v20 = vadd.f32 %v1268_v45, %v1261_v6  ;;  %v1233_v62 = vmul.f32 %v3967_v7, %v1206_v21  ;;  %v1309_v51 = vadd.f32 %v1305_v52, %v1298_v15  ;;  %v1234_v24 = vadd.f32 %v1230_v56, %v1223_v54 }
 0x128   : >> { %v1271_v40 = vadd.f32 %v1267_v46, %v1260_v42  ;;  %v1270_v9 = vmul.f32 %v3968_v5, %v1206_v21  ;;  %v1308_v29 = vadd.f32 %v1304_v50, %v1297_v48  ;;  %v1307_v23 = vmul.f32 %v3969_v1, %v1206_v21  ;;  %v1210_v32 = vpop.permute.xlu1 %1209 }
 0x129   : >> { %v1232_v28 = vmul.f32 %v3967_v7, %v1204_v53  ;;  %v1269_v38 = vmul.f32 %v3968_v5, %v1204_v53  ;;  %v1306_v8 = vmul.f32 %v3969_v1, %v1204_v53  ;;  %v1242_v19 = vmul.f32 %v3970_v25, %v1210_v32  ;;  %v1208_v10 = vpop.permute.xlu0 %1207  ;;  %v1216_v5 = vld [vmem:[#allocation9 + $0xc0] sm:$0xff] }
 0x12a   : >> { %v1279_v16 = vmul.f32 %v3971_v30, %v1210_v32  ;;  %v1316_v34 = vmul.f32 %v3972_v13, %v1210_v32  ;;  %v1237_v41 = vadd.f32 %v1233_v62, %v1226_v60  ;;  %v1241_v27 = vmul.f32 %v3970_v25, %v1208_v10  ;;  %v1219_v32 = vld [vmem:[#allocation9 + $0xd8] sm:$0xff] }
 0x12b   : >> { %v1278_v6 = vmul.f32 %v3971_v30, %v1208_v10  ;;  %v1315_v49 = vmul.f32 %v3972_v13, %v1208_v10  ;;  %v1274_v44 = vadd.f32 %v1270_v9, %v1263_v2  ;;  %v1246_v15 = vadd.f32 %v1242_v19, %v1235_v31 }
 0x12c   : >> { %v1283_v7 = vadd.f32 %v1279_v16, %v1272_v20  ;;  %v1320_v18 = vadd.f32 %v1316_v34, %v1309_v51  ;;  %v1311_v45 = vadd.f32 %v1307_v23, %v1300_v22  ;;  %v1245_v54 = vadd.f32 %v1241_v27, %v1234_v24  ;;  %v1214_v56 = vpop.permute.xlu1 %1213 }
 0x12d   : >> { %v1282_v1 = vadd.f32 %v1278_v6, %v1271_v40  ;;  %v1319_v52 = vadd.f32 %v1315_v49, %v1308_v29  ;;  %v1250_v46 = vmul.f32 %v1246_v15, %v1217_v0  ;;  %v1244_v60 = vmul.f32 %v3970_v25, %v1214_v56  ;;  %v1212_v50 = vpop.permute.xlu0 %1211 }
 0x12e   : >> { %v1287_v42 = vmul.f32 %v1283_v7, %v1217_v0  ;;  %v1324_v48 = vmul.f32 %v1320_v18, %v1217_v0  ;;  %v1236_v21 = vadd.f32 %v1232_v28, %v1225_v63  ;;  %v1249_v53 = vmul.f32 %v1245_v54, %v1216_v5 }
 0x12f   : >> { %v1286_v62 = vmul.f32 %v1282_v1, %v1216_v5  ;;  %v1281_v2 = vmul.f32 %v3971_v30, %v1214_v56  ;;  %v1273_v31 = vadd.f32 %v1269_v38, %v1262_v11  ;;  %v1310_v20 = vadd.f32 %v1306_v8, %v1299_v39 }
 0x130   : >> { %v1323_v51 = vmul.f32 %v1319_v52, %v1216_v5  ;;  %v1248_v22 = vadd.f32 %v1244_v60, %v1237_v41  ;;  %v1254_v24 = vadd.f32 %v1250_v46, %v3478_v12  ;;  %v1291_v40 = vadd.f32 %v1287_v42, %v3483_v58  ;;  %v1450_v23 = vpop.permute.xlu1 %1449  ;;  %v1218_v12 = vld [vmem:[#allocation9 + $0xd0] sm:$0xff] }
 0x131   : >> { %v1328_v9 = vadd.f32 %v1324_v48, %v3492_v17  ;;  %v1285_v29 = vadd.f32 %v1281_v2, %v1274_v44  ;;  %v1318_v63 = vmul.f32 %v3972_v13, %v1214_v56  ;;  %v1243_v28 = vmul.f32 %v3970_v25, %v1212_v50  ;;  %v1448_v34 = vpop.permute.xlu0 %1447  ;;  %v3974_v2 = vld [vmem:[#allocation46_spill] sm:$0xff] }
 0x132   : >> { %v1252_v19 = vmul.f32 %v1248_v22, %v1219_v32  ;;  %v1280_v16 = vmul.f32 %v3971_v30, %v1212_v50  ;;  %v1253_v11 = vadd.f32 %v1249_v53, %v3495_v4  ;;  %v1290_v39 = vadd.f32 %v1286_v62, %v3498_v33  ;;  %v3973_v30 = vld [vmem:[#allocation42_spill] sm:$0xff] }
 0x133   : >> { %v1289_v38 = vmul.f32 %v1285_v29, %v1219_v32  ;;  %v1317_v58 = vmul.f32 %v3972_v13, %v1212_v50  ;;  %v1327_v17 = vadd.f32 %v1323_v51, %v3503_v59  ;;  %v1322_v8 = vadd.f32 %v1318_v63, %v1311_v45 }
 0x134   : >> { %v1247_v10 = vadd.f32 %v1243_v28, %v1236_v21  ;;  %v1284_v41 = vadd.f32 %v1280_v16, %v1273_v31  ;;  %v1256_v0 = vadd.f32 %v1252_v19, %v3505_v35  ;;  %v1480_v25 = vmul.f32 %v3218_v55, %v1450_v23  ;;  %v1454_v49 = vpop.permute.xlu1 %1453  ;;  %v3975_v31 = vld [vmem:[#allocation47_spill] sm:$0xff]  ;;  %v3976_v19 = vld [vmem:[#allocation40_spill] sm:$0xff] }
 0x135   : >> { %v1321_v27 = vadd.f32 %v1317_v58, %v1310_v20  ;;  %v1517_v6 = vmul.f32 %v3973_v30, %v1450_v23  ;;  %v3555_v4 = vadd.f32 %v1289_v38, %v3509_v36  ;;  %v1326_v33 = vmul.f32 %v1322_v8, %v1219_v32  ;;  %v1452_v13 = vpop.permute.xlu0 %1451 }
 0x136   : >> { %v1251_v44 = vmul.f32 %v1247_v10, %v1218_v12  ;;  %v1288_v15 = vmul.f32 %v1284_v41, %v1218_v12  ;;  %v1554_v59 = vmul.f32 %v3307_v61, %v1450_v23  ;;  %v1479_v18 = vmul.f32 %v3218_v55, %v1448_v34  ;;  %v3977_v10 = vld [vmem:[#allocation41_spill] sm:$0xff] }
 0x137   : >> { %v1325_v7 = vmul.f32 %v1321_v27, %v1218_v12  ;;  %v1516_v35 = vmul.f32 %v3973_v30, %v1448_v34  ;;  %v3561_v5 = vadd.f32 %v1326_v33, %v3485_v14  ;;  %v1553_v45 = vmul.f32 %v3307_v61, %v1448_v34  ;;  %v3978_v27 = vld [vmem:[#allocation48_spill] sm:$0xff] }
 0x138   : >> { %v1482_v54 = vmul.f32 %v3218_v55, %v1454_v49  ;;  %v1519_v36 = vmul.f32 %v3973_v30, %v1454_v49  ;;  %v3567_v1 = vadd.f32 %v1251_v44, %v3487_v47  ;;  %v3570_v52 = vadd.f32 %v1288_v15, %v3489_v57  ;;  %v1458_v42 = vpop.permute.xlu1 %1457  ;;  %v3980_v15 = vld [vmem:[#allocation44_spill] sm:$0xff] }
 0x139   : >> { %v3573_v56 = vadd.f32 %v1325_v7, %v3500_v37  ;;  %v1556_v46 = vmul.f32 %v3307_v61, %v1454_v49  ;;  %v1481_v14 = vmul.f32 %v3218_v55, %v1452_v13  ;;  %v1487_v48 = vmul.f32 %v3311_v43, %v1458_v42  ;;  %v1456_v21 = vpop.permute.xlu0 %1455  ;;  %v3982_v7 = vld [vmem:[#allocation51_spill] sm:$0xff] }
 0x13a   : >> { %v1524_v60 = vmul.f32 %v3349_v26, %v1458_v42  ;;  %v1561_v50 = vmul.f32 %v3370_v3, %v1458_v42  ;;  %v1518_v47 = vmul.f32 %v3973_v30, %v1452_v13  ;;  %v1486_v57 = vmul.f32 %v3311_v43, %v1456_v21 }
 0x13b   : >> { %v1523_v53 = vmul.f32 %v3349_v26, %v1456_v21  ;;  %v1560_v37 = vmul.f32 %v3370_v3, %v1456_v21  ;;  %v1555_v62 = vmul.f32 %v3307_v61, %v1452_v13  ;;  %v1491_v32 = vadd.f32 %v1487_v48, %v1480_v25  ;;  %v3979_v25 = vld [vmem:[#allocation43_spill] sm:$0xff]  ;;  %v3984_v48 = vld [vmem:[#allocation45_spill] sm:$0xff] }
 0x13c   : >> { %v1370_v55 = vadd.f32 %v3974_v2, %v1254_v24  ;;  %v1407_v20 = vadd.f32 %v3975_v31, %v1291_v40  ;;  %v1528_v51 = vadd.f32 %v1524_v60, %v1517_v6  ;;  %v1565_v22 = vadd.f32 %v1561_v50, %v1554_v59  ;;  %v1462_v23 = vpop.permute.xlu1 %1461 }
 0x13d   : >> { %v1490_v29 = vadd.f32 %v1486_v57, %v1479_v18  ;;  %v1444_v63 = vadd.f32 %v3976_v19, %v1328_v9  ;;  %v1527_v28 = vadd.f32 %v1523_v53, %v1516_v35  ;;  %v1489_v16 = vmul.f32 %v3311_v43, %v1462_v23  ;;  %v1460_v12 = vpop.permute.xlu0 %1459  ;;  %v3985_v53 = vld [vmem:[#allocation52_spill] sm:$0xff] }
 0x13e   : >> { %v1526_v34 = vmul.f32 %v3349_v26, %v1462_v23  ;;  %v1563_v38 = vmul.f32 %v3370_v3, %v1462_v23  ;;  %v1564_v61 = vadd.f32 %v1560_v37, %v1553_v45  ;;  %v1488_v58 = vmul.f32 %v3311_v43, %v1460_v12  ;;  %v1648_v19 = vld [vmem:[#allocation3 + $0x28] sm:$0xff] }
 0x13f   : >> { %v1525_v24 = vmul.f32 %v3349_v26, %v1460_v12  ;;  %v1562_v40 = vmul.f32 %v3370_v3, %v1460_v12  ;;  %v1493_v8 = vadd.f32 %v1489_v16, %v1482_v54  ;;  %v1369_v41 = vadd.f32 %v3977_v10, %v1253_v11  ;;  %v3981_v26 = vld [vmem:[#allocation49_spill] sm:$0xff]  ;;  %v1615_v10 = vld [vmem:[#allocation3 + $0x8] sm:$0xff] }
 0x140   : >> { %v1406_v9 = vadd.f32 %v3978_v27, %v1290_v39  ;;  %v1443_v30 = vadd.f32 %v3979_v25, %v1327_v17  ;;  %v1530_v6 = vadd.f32 %v1526_v34, %v1519_v36  ;;  %v3597_v49 = vadd.f32 %v1563_v38, %v1556_v46  ;;  %v1466_v44 = vpop.permute.xlu1 %1465  ;;  %v3983_v11 = vld [vmem:[#allocation53_spill] sm:$0xff]  ;;  %v1473_v17 = vld [vmem:[#allocation9 + $0x108] sm:$0xff] }
 0x141   : >> { %v3599_v33 = vadd.f32 %v1488_v58, %v1481_v14  ;;  %v3602_v13 = vadd.f32 %v3980_v15, %v1256_v0  ;;  %v3604_v43 = vadd.f32 %v1525_v24, %v1518_v47  ;;  %v1498_v3 = vmul.f32 %v3981_v26, %v1466_v44  ;;  %v1464_v39 = vpop.permute.xlu0 %1463  ;;  %v1472_v14 = vld [vmem:[#allocation9 + $0x100] sm:$0xff]  ;;  %v1876_v15 = vld [vmem:[#allocation3 + $0x48] sm:$0xff] }
 0x142   : >> { %v1535_v59 = vmul.f32 %v3982_v7, %v1466_v44  ;;  %v1572_v18 = vmul.f32 %v3983_v11, %v1466_v44  ;;  %v3609_v35 = vadd.f32 %v1562_v40, %v1555_v62  ;;  %v1497_v45 = vmul.f32 %v3981_v26, %v1464_v39  ;;  %v1875_v24 = vld [vmem:[#allocation3] sm:$0xff] }
 0x143   : >> { %v1534_v54 = vmul.f32 %v3982_v7, %v1464_v39  ;;  %v1571_v36 = vmul.f32 %v3983_v11, %v1464_v39  ;;  %v1502_v0 = vadd.f32 %v1498_v3, %v1491_v32  ;;  %v3616_v60 = vadd.f32 %v3984_v48, %v3555_v4 }
 0x144   : >> { %v1539_v46 = vadd.f32 %v1535_v59, %v1528_v51  ;;  %v1576_v42 = vadd.f32 %v1572_v18, %v1565_v22  ;;  %v1501_v50 = vadd.f32 %v1497_v45, %v1490_v29  ;;  %v3618_v57 = vpop.permute.xlu1 %1469  ;;  %v3622_v37 = vadd.f32 %v3985_v53, %v3561_v5  ;;  %v1616_v51 = vld [vmem:[#allocation3 + $0x20] sm:$0xff]  ;;  %v1475_v59 = vld [vmem:[#allocation9 + $0x118] sm:$0xff] }
 0x145   : >> { %v1538_v21 = vadd.f32 %v1534_v54, %v1527_v28  ;;  %v1575_v47 = vadd.f32 %v1571_v36, %v1564_v61  ;;  %v1506_v62 = vmul.f32 %v1502_v0, %v1473_v17  ;;  %v1500_v32 = vmul.f32 %v3981_v26, %v3618_v57  ;;  %v1468_v0 = vpop.permute.xlu0 %1467 }
 0x146   : >> { %v1543_v2 = vmul.f32 %v1539_v46, %v1473_v17  ;;  %v1580_v31 = vmul.f32 %v1576_v42, %v1473_v17  ;;  %v1505_v22 = vmul.f32 %v1501_v50, %v1472_v14  ;;  %v1537_v29 = vmul.f32 %v3982_v7, %v3618_v57 }
 0x147   : >> { %v1542_v23 = vmul.f32 %v1538_v21, %v1472_v14  ;;  %v1579_v4 = vmul.f32 %v1575_v47, %v1472_v14  ;;  %v3628_v28 = vadd.f32 %v1506_v62, %v1370_v55  ;;  %v1504_v34 = vadd.f32 %v1500_v32, %v1493_v8 }
 0x148   : >> { %v3630_v16 = vadd.f32 %v1543_v2, %v1407_v20  ;;  %v3632_v5 = vadd.f32 %v1580_v31, %v1444_v63  ;;  %v3634_v38 = vadd.f32 %v1505_v22, %v1369_v41  ;;  %v1541_v58 = vadd.f32 %v1537_v29, %v1530_v6  ;;  %v1618_v2 = vld [vmem:[#allocation3 + $0x40] sm:$0xff] }
 0x149   : >> { %v3636_v12 = vadd.f32 %v1542_v23, %v1406_v9  ;;  %v3638_v61 = vadd.f32 %v1579_v4, %v1443_v30  ;;  %v1588_v40 = vadd.f32 %v1875_v24, %v3628_v28  ;;  %vm1600_vm14 = vcmp.ge.f32.partialorder %v3628_v28, 0.0  ;;  %v1647_v30 = vld [vmem:[#allocation3 + $0x38] sm:$0xff]  ;;  %v1650_v24 = vld [vmem:[#allocation3 + $0x10] sm:$0xff] }
 0x14a   : >> { %v1604_v55 = vmul.f32 0.01, %v3628_v28  ;;  %v1620_v20 = vadd.f32 %v1616_v51, %v3630_v16  ;;  %vm1632_vm15 = vcmp.ge.f32.partialorder %v3630_v16, 0.0  ;;  %v1636_v63 = vmul.f32 0.01, %v3630_v16  ;;  %v3986_v4 = vld [vmem:[#allocation50_spill] sm:$0xff] }
 0x14b   : >> { %v1652_v8 = vadd.f32 %v1648_v19, %v3632_v5  ;;  %vm1664_vm0 = vcmp.ge.f32.partialorder %v3632_v5, 0.0  ;;  %v1592_v41 = vmul.f32 0.5, %v1588_v40  ;;  %v1668_v25 = vmul.f32 0.01, %v3632_v5 }
 0x14c   : >> { %v1608_v27 = vsel %vm1600_vm14, %v3628_v28, %v1604_v55  ;;  %v1624_v9 = vmul.f32 0.5, %v1620_v20  ;;  %v1640_v6 = vsel %vm1632_vm15, %v3630_v16, %v1636_v63  ;;  %v1587_v3 = vadd.f32 %v1876_v15, %v3634_v38  ;;  %v1649_v15 = vld [vmem:[#allocation3 + $0x58] sm:$0xff] }
 0x14d   : >> { %1612 = vst [vmem:[#allocation2] sm:$0xff] %v1608_v27  ;;  %v1656_v44 = vmul.f32 0.5, %v1652_v8  ;;  %vm1599_vm1 = vcmp.ge.f32.partialorder %v3634_v38, 0.0  ;;  %1596 = vst [vmem:[#allocation3] sm:$0xff] %v1592_v41  ;;  %v1672_v18 = vsel %vm1664_vm0, %v3632_v5, %v1668_v25  ;;  %v1603_v39 = vmul.f32 0.01, %v3634_v38 }
 0x14e   : >> { %1628 = vst [vmem:[#allocation3 + $0x20] sm:$0xff] %v1624_v9  ;;  %1644 = vst [vmem:[#allocation2 + $0x20] sm:$0xff] %v1640_v6  ;;  %v1619_v17 = vadd.f32 %v1615_v10, %v3636_v12  ;;  %vm1631_vm2 = vcmp.ge.f32.partialorder %v3636_v12, 0.0  ;;  %v1591_v45 = vmul.f32 0.5, %v1587_v3  ;;  %v1635_v54 = vmul.f32 0.01, %v3636_v12 }
 0x14f   : >> { %1660 = vst [vmem:[#allocation3 + $0x28] sm:$0xff] %v1656_v44  ;;  %1676 = vst [vmem:[#allocation2 + $0x48] sm:$0xff] %v1672_v18  ;;  %v1651_v36 = vadd.f32 %v1647_v30, %v3638_v61  ;;  %vm1663_vm3 = vcmp.ge.f32.partialorder %v3638_v61, 0.0  ;;  %v1607_v46 = vsel %vm1599_vm1, %v3634_v38, %v1603_v39  ;;  %v1667_v14 = vmul.f32 0.01, %v3638_v61  ;;  %v3987_v10 = vld [vmem:[#allocation54_spill] sm:$0xff] }
 0x150   : >> { %v1623_v42 = vmul.f32 0.5, %v1619_v17  ;;  %v1508_v48 = vmul.f32 %v1504_v34, %v1475_v59  ;;  %1595 = vst [vmem:[#allocation3 + $0x48] sm:$0xff] %v1591_v45  ;;  %1611 = vst [vmem:[#allocation2 + $0x30] sm:$0xff] %v1607_v46  ;;  %v1639_v50 = vsel %vm1631_vm2, %v3636_v12, %v1635_v54  ;;  %v1545_v47 = vmul.f32 %v1541_v58, %v1475_v59  ;;  %v1877_v34 = vld [vmem:[#allocation3 + $0x30] sm:$0xff]  ;;  %v3988_v27 = vld [vmem:[#allocation58_spill] sm:$0xff] }
 0x151   : >> { %v1655_v21 = vmul.f32 0.5, %v1651_v36  ;;  %v1574_v53 = vmul.f32 %v3983_v11, %v3618_v57  ;;  %1643 = vst [vmem:[#allocation2 + $0x50] sm:$0xff] %v1639_v50  ;;  %v1671_v62 = vsel %vm1663_vm3, %v3638_v61, %v1667_v14  ;;  %v1499_v32 = vmul.f32 %v3981_v26, %v1468_v0  ;;  %v1474_v57 = vld [vmem:[#allocation9 + $0x110] sm:$0xff]  ;;  %v1617_v6 = vld [vmem:[#allocation3 + $0x18] sm:$0xff] }
 0x152   : >> { %1627 = vst [vmem:[#allocation3 + $0x8] sm:$0xff] %v1623_v42  ;;  %v3671_v31 = vadd.f32 %v1508_v48, %v3602_v13  ;;  %v1536_v51 = vmul.f32 %v3982_v7, %v1468_v0  ;;  %1675 = vst [vmem:[#allocation2 + $0x28] sm:$0xff] %v1671_v62  ;;  %v3676_v22 = vadd.f32 %v1545_v47, %v3616_v60 }
 0x153   : >> { %1659 = vst [vmem:[#allocation3 + $0x38] sm:$0xff] %v1655_v21  ;;  %v1578_v23 = vadd.f32 %v1574_v53, %v3597_v49  ;;  %v1371_v29 = vadd.f32 %v3986_v4, %v3567_v1  ;;  %v1573_v19 = vmul.f32 %v3983_v11, %v1468_v0  ;;  %v1503_v7 = vadd.f32 %v1499_v32, %v3599_v33 }
 0x154   : >> { %v1590_v13 = vadd.f32 %v1877_v34, %v3671_v31  ;;  %vm1602_vm4 = vcmp.ge.f32.partialorder %v3671_v31, 0.0  ;;  %v1606_v26 = vmul.f32 0.01, %v3671_v31  ;;  %v1622_v60 = vadd.f32 %v1618_v2, %v3676_v22 }
 0x155   : >> { %v1582_v58 = vmul.f32 %v1578_v23, %v1475_v59  ;;  %vm1634_vm5 = vcmp.ge.f32.partialorder %v3676_v22, 0.0  ;;  %v1638_v49 = vmul.f32 0.01, %v3676_v22  ;;  %v1507_v40 = vmul.f32 %v1503_v7, %v1474_v57  ;;  %v1878_v59 = vld [vmem:[#allocation3 + $0x50] sm:$0xff] }
 0x156   : >> { %v1594_v1 = vmul.f32 0.5, %v1590_v13  ;;  %v1610_v11 = vsel %vm1602_vm4, %v3671_v31, %v1606_v26  ;;  %v1540_v55 = vadd.f32 %v1536_v51, %v3604_v43  ;;  %v1626_v63 = vmul.f32 0.5, %v1622_v60 }
 0x157   : >> { %v1586_v20 = vadd.f32 %v1582_v58, %v3622_v37  ;;  %1614 = vst [vmem:[#allocation2 + $0x18] sm:$0xff] %v1610_v11  ;;  %v1642_v33 = vsel %vm1634_vm5, %v3676_v22, %v1638_v49  ;;  %v1577_v8 = vadd.f32 %v1573_v19, %v3609_v35  ;;  %v1408_v41 = vadd.f32 %v3987_v10, %v3570_v52 }
 0x158   : >> { %1598 = vst [vmem:[#allocation3 + $0x30] sm:$0xff] %v1594_v1  ;;  %1646 = vst [vmem:[#allocation2 + $0x38] sm:$0xff] %v1642_v33  ;;  %v1445_v9 = vadd.f32 %v3988_v27, %v3573_v56  ;;  %v1511_v25 = vadd.f32 %v1507_v40, %v1371_v29  ;;  %v1544_v30 = vmul.f32 %v1540_v55, %v1474_v57 }
 0x159   : >> { %1630 = vst [vmem:[#allocation3 + $0x40] sm:$0xff] %v1626_v63  ;;  %v1654_v43 = vadd.f32 %v1650_v24, %v1586_v20  ;;  %vm1666_vm6 = vcmp.ge.f32.partialorder %v1586_v20, 0.0  ;;  %v1670_v37 = vmul.f32 0.01, %v1586_v20  ;;  %v1581_v44 = vmul.f32 %v1577_v8, %v1474_v57 }
 0x15a   : >> { %v1548_v3 = vadd.f32 %v1544_v30, %v1408_v41  ;;  %v1589_v35 = vadd.f32 %v1878_v59, %v1511_v25  ;;  %vm1601_vm7 = vcmp.ge.f32.partialorder %v1511_v25, 0.0  ;;  %v1605_v18 = vmul.f32 0.01, %v1511_v25 }
 0x15b   : >> { %v1658_v39 = vmul.f32 0.5, %v1654_v43  ;;  %v1674_v17 = vsel %vm1666_vm6, %v1586_v20, %v1670_v37  ;;  %v1585_v52 = vadd.f32 %v1581_v44, %v1445_v9 }
 0x15c   : >> { %1678 = vst [vmem:[#allocation2 + $0x40] sm:$0xff] %v1674_v17  ;;  %v1593_v45 = vmul.f32 0.5, %v1589_v35  ;;  %v1609_v56 = vsel %vm1601_vm7, %v1511_v25, %v1605_v18  ;;  %v1621_v54 = vadd.f32 %v1617_v6, %v1548_v3  ;;  %vm1633_vm8 = vcmp.ge.f32.partialorder %v1548_v3, 0.0 }
 0x15d   : >> { %1662 = vst [vmem:[#allocation3 + $0x10] sm:$0xff] %v1658_v39  ;;  %1613 = vst [vmem:[#allocation2 + $0x58] sm:$0xff] %v1609_v56  ;;  %v1637_v36 = vmul.f32 0.01, %v1548_v3  ;;  %v1653_v0 = vadd.f32 %v1649_v15, %v1585_v52  ;;  %vm1665_vm9 = vcmp.ge.f32.partialorder %v1585_v52, 0.0  ;;  %1682 = sbr.rel (%p1812_p1) target bundleno = 360 (0x168), region = 59 }
 0x15e   : >> { %v1669_v46 = vmul.f32 0.01, %v1585_v52  ;;  %1597 = vst [vmem:[#allocation3 + $0x50] sm:$0xff] %v1593_v45  ;;  %v1625_v42 = vmul.f32 0.5, %v1621_v54 }
 0x15f   : >> { %v1641_v14 = vsel %vm1633_vm8, %v1548_v3, %v1637_v36  ;;  %v1657_v48 = vmul.f32 0.5, %v1653_v0 }
 0x160   : >> { %v1673_v50 = vsel %vm1665_vm9, %v1585_v52, %v1669_v46  ;;  %1629 = vst [vmem:[#allocation3 + $0x18] sm:$0xff] %v1625_v42  ;;  %1645 = vst [vmem:[#allocation2 + $0x8] sm:$0xff] %v1641_v14 }
 0x161   : >> { %1677 = vst [vmem:[#allocation2 + $0x10] sm:$0xff] %v1673_v50  ;;  %1661 = vst [vmem:[#allocation3 + $0x58] sm:$0xff] %v1657_v48 }
 0x162   : >> { %1683 = vst [vmem:[%s3990_s14] sm:$0xff] %v3634_v38  ;;  %1684 = vst [vmem:[%s3990_s14 + $0x8] sm:$0xff] %v3628_v28 }
 0x163   : >> { %1685 = vst [vmem:[%s3990_s14 + $0x10] sm:$0xff] %v1511_v25  ;;  %1686 = vst [vmem:[%s3990_s14 + $0x18] sm:$0xff] %v3671_v31 }
 0x164   : >> { %1813 = vst [vmem:[%s3990_s14 + $0x20] sm:$0xff] %v3636_v12  ;;  %1814 = vst [vmem:[%s3990_s14 + $0x28] sm:$0xff] %v3630_v16 }
 0x165   : >> { %1815 = vst [vmem:[%s3990_s14 + $0x30] sm:$0xff] %v1548_v3  ;;  %1816 = vst [vmem:[%s3990_s14 + $0x38] sm:$0xff] %v3676_v22 }
 0x166   : >> { %1817 = vst [vmem:[%s3990_s14 + $0x40] sm:$0xff] %v3638_v61  ;;  %1818 = vst [vmem:[%s3990_s14 + $0x48] sm:$0xff] %v3632_v5 }
 0x167   : >> { %1819 = vst [vmem:[%s3990_s14 + $0x50] sm:$0xff] %v1585_v52  ;;  %1820 = vst [vmem:[%s3990_s14 + $0x58] sm:$0xff] %v1586_v20 }
 0x168 PF: >> { %s3991_s13 = sld [smem:[#allocation15_spill]] }
 0x16e   : >> { %s319_s13 = sadd.s32 1, %s3991_s13  }
 0x16f   : >> { %p316_p2 = scmp.ge.s32.totalorder %s319_s13, 16  }
 0x171   : > { %318 = sbr.rel (!%p316_p2) target bundleno = 64 (0x40), region = 106 }
 0x176 PF: > { %s3992_s18 = sld [smem:[#allocation13_spill]] }
 0x17c   : > { %s17_s15 = sadd.s32 1, %s3992_s18  }
 0x17d   : > { %p14_p3 = scmp.ge.s32.totalorder %s17_s15, 4  }
 0x17f   :  { %16 = sbr.rel (!%p14_p3) target bundleno = 9 (0x9), region = 117 }
 0x184   :  { %1718 = vsyncpa [#allocation5], 1 }
 0x185   :  { %1720 = vsyncpa [#allocation5 + $0x1], 1 }
 0x186   :  { %1721 = vsyncpa [#allocation6], 1 }
 0x187   :  { %1723 = vsyncpa [#allocation6 + $0x1], 1 }
 0x188   :  { %1724 = vsyncpa [#allocation8], 1 }

// kernel: reinforce_net_forward.3
= control target key start
LH: loop header
LB: loop body
LE: loop exit
PB: predicated region body
PF: predicated region fallthrough
CT: control target
= control target key end

     0   :  { %s5461_s0 = inlined_call_operand.vmem [shape: f32[6,3072], index: 0, kind: input, shape index: {}]   ;;  %s5462_s1 = inlined_call_operand.hbm [shape: bf16[3072,1024], index: 1, kind: input, shape index: {}]   ;;  %s5463_s2 = inlined_call_operand.hbm [shape: f32[1,1024], index: 2, kind: input, shape index: {}]   ;;  %s5464_s3 = inlined_call_operand.vmem [shape: f32[1024,10], index: 3, kind: input, shape index: {}]   ;;  %s5465_s4 = inlined_call_operand.hbm [shape: f32[1,10], index: 4, kind: input, shape index: {}]   ;;  %s5466_s5 = inlined_call_operand.hbm [shape: f32[6,10], index: 5, kind: output, shape index: {}]  }
   0x1   :  { %5470 = sst [smem:[#allocation15_spill]] %s5462_s1 }
   0x2   :  { %5471 = sst [smem:[#allocation16_spill]] %s5465_s4 }
   0x3   :  { %10 = vsyncpa [#allocation4], 0 }
   0x4   :  { %12 = vsyncpa [#allocation4 + $0x1], 0 }
   0x5   :  { %13 = vsyncpa [#allocation7], 0 }
   0x6   :  { %15 = vsyncpa [#allocation7 + $0x1], 0 }
   0x7   :  { %16 = vsyncpa [#allocation5], 0  ;;  %s4769_s18 = smov 0   ;;  %s4771_s19 = smov 0  }
   0x8   :  { %s4773_s20 = smov 0   ;;  %s4775_s21 = smov 0  }
   0x9 LB: > { %s4788_s22 = sadd.s32 4294967295, %s4729_s21   ;;  %s4791_s23 = sadd.s32 1, %s4729_s21   ;;  %s4729_s21 = sphi %s4775_s21, %s5489_s21   ;;  %s4725_s20 = sphi %s4773_s20, %s5488_s20   ;;  %s4721_s19 = sphi %s4771_s19, %s5487_s19   ;;  %s4717_s18 = sphi %s4769_s18, %s5486_s18  }
   0xa   : > { %s47_s24 = ssub.s32 %s4729_s21, %s4791_s23  ;;  %s50_s25 = sadd.s32 1, %s4725_s20 }
   0xb   : > { %p48_p0 = scmp.eq.s32.totalorder %s47_s24, 0  ;;  %p57_p1 = scmp.ne.s32.totalorder %s4725_s20, %s4721_s19 }
   0xc   : > { %p58_p2 = scmp.eq.s32.totalorder %s4729_s21, 0  ;;  %p63_p3 = scmp.ne.s32.totalorder %s4721_s19, %s4717_s18 }
   0xd   : > { %s4801_s26 = scalar_select %p48_p0, %s4725_s20, %s50_s25  }
   0xe   : > { %p4803_p4 = por %p58_p2, %p57_p1  ;;  %p5467_p5 = scmp.eq.s32.totalorder %s4788_s22, 0 }
   0xf   : > { %5472 = sst [smem:[#allocation14_spill]] %s4801_s26  ;;  %p3488_p6 = scmp.ge.s32.totalorder %s4729_s21, 1 }
  0x10   : > { %p168_p7 = scmp.lt.s32.totalorder %s4729_s21, 5  ;;  %p4812_p8 = por %p5467_p5, %p63_p3 }
  0x11   : > { %s4731_s30 = smov [#allocation8]   ;;  %p3955_p12 = scmp.lt.s32.totalorder %s4729_s21, 4 }
  0x12   : > { %s5474_s28 = scalar_select %p4812_p8, 1, 0 }
  0x13   : > { %p4817_p10 = pnand %p3488_p6, %p168_p7  ;;  %s184_s6 = sshll.u32 %s4731_s30, 4  ;;  %s185_s6 = int_to_ptr.vmem [resolvable:$true] %s184_s6 }
  0x14   : > { %s4825_s7 = sand.u32 1, %s4725_s20   ;;  %p4835_p0 = pnand %p3955_p12, %p4803_p4 }
  0x15   : > { %s5475_s29 = scalar_select %p4817_p10, 1, 0 }
  0x16   : > { %p3943_p11 = pneg %p4817_p10  ;;  %s3929_s10 = smul.u32 3072, %s4825_s7 }
  0x17   : > { %s3892_s11 = sshll.u32 %s4729_s21, 7  ;;  %s4588_s12 = scalar_lea.vmem %s185_s6, 16 }
  0x18   : > { %p4829_p13 = pnand %p3943_p11, %p5467_p5  ;;  %p4589_p2 = scmp.ne.s32.totalorder %s185_s6, %s4588_s12 }
  0x19   : > { %s4595_s13 = scalar_lea.vmem %s185_s6, 32  ;;  %p4596_p7 = scmp.lt.s32.totalorder %s185_s6, %s185_s6 }
  0x1a   : > { %p4579_p1 = pneg %p4829_p13  ;;  %p4597_p11 = scmp.lt.s32.totalorder %s4595_s13, %s4588_s12 }
  0x1c   : > { %p4591_p3 = pnand %p4589_p2, %p4579_p1  ;;  %p4598_p9 = por %p4597_p11, %p4596_p7 }
  0x1e   : > { %p4592_p6 = pneg %p4591_p3 }
  0x20   : > { %p4599_p5 = pnand %p4598_p9, %p4592_p6 }
  0x22   : > { %4602 = shalt.err (!%p4599_p5)
}
  0x23   : > { %s5478_s4 = sld [smem:[#allocation16_spill]]  ;;  %s199_s24 = scalar_lea.vmem [#allocation3], %s3929_s10 }
  0x24   : > { %s5479_s1 = sld [smem:[#allocation15_spill]]  ;;  %s206_s25 = sshll.u32 %s199_s24, 4  ;;  %s4853_s25 = int_to_ptr.vmem [resolvable:$true] %s206_s25 }
  0x25   : > { %s196_s27 = scalar_lea.sflag [#allocation4], %s4825_s7  ;;  %p4605_p5 = pneg %p4835_p0 }
  0x29   : > { %3946 = dma.hbm_to_vmem [thread:$0]  (!%p4829_p13), %s5478_s4, 16, %s185_s6, [#allocation7]  }
  0x2a   : > { %s4851_s18 = scalar_lea.hbm %s5479_s1, %s3892_s11  ;;  %s4608_s11 = scalar_lea.hbm %s5479_s1, 196608 }
  0x2b   : > { %s4603_s30 = scalar_lea.hbm %s4851_s18, 49152  ;;  %p4609_p13 = scmp.lt.s32.totalorder %s4851_s18, %s5479_s1 }
  0x2c   : > { %p4604_p4 = scmp.ne.s32.totalorder %s4851_s18, %s4603_s30  ;;  %p4610_p1 = scmp.lt.s32.totalorder %s4608_s11, %s4603_s30 }
  0x2e   : > { %p4606_p9 = pnand %p4605_p5, %p4604_p4  ;;  %p4611_p2 = por %p4610_p1, %p4609_p13 }
  0x30   : > { %p4607_p12 = pneg %p4606_p9 }
  0x32   : > { %p4612_p3 = pnand %p4611_p2, %p4607_p12 }
  0x34   : > { %4615 = shalt.err (!%p4612_p3)
}
  0x35   : > { %s4616_s10 = scalar_lea.vmem %s4853_s25, 49152  ;;  %s4732_s14 = smov [#allocation3]  }
  0x36   : > { %p4617_p6 = scmp.ne.s32.totalorder %s4853_s25, %s4616_s10  ;;  %s4621_s15 = sshll.u32 %s4732_s14, 4  ;;  %s4622_s15 = int_to_ptr.vmem [resolvable:$false] %s4621_s15 }
  0x37   : > { %s4623_s16 = scalar_lea.vmem %s4622_s15, 98304  ;;  %p4624_p4 = scmp.lt.s32.totalorder %s4853_s25, %s4622_s15 }
  0x38   : > { %p4619_p7 = pnand %p4617_p6, %p4605_p5  ;;  %p4625_p9 = scmp.lt.s32.totalorder %s4623_s16, %s4616_s10 }
  0x3a   : > { %p4620_p11 = pneg %p4619_p7  ;;  %p4626_p8 = por %p4625_p9, %p4624_p4 }
  0x3c   : > { %p4627_p13 = pnand %p4626_p8, %p4620_p11 }
  0x3e   : > { %4630 = shalt.err (!%p4627_p13)
}
  0x3f   : > { %s4733_s17 = smov 512   ;;  %s4734_s24 = smov 128  }
  0x40   : > { %s4735_s30 = smov 8   ;;  %s216_s6 = sand.u32 1, %s4729_s21  }
  0x41   : > { %3950 = dma.hbm_to_vmem [thread:$0]  (!%p4835_p0), %s4851_s18, 49152, %s4853_s25, %s196_s27, %s4733_s17, %s4734_s24, %s4735_s30  }
  0x42   : > { %s3493_s8 = sshll.u32 %s4825_s7, 1  ;;  %s3893_s11 = sshll.u32 %s4729_s21, 5 }
  0x43   : > { %s220_s12 = scalar_lea.vmem [#allocation6], %s3493_s8  ;;  %s226_s15 = scalar_lea.hbm %s5463_s2, %s3893_s11 }
  0x44   : > { %s228_s13 = sshll.u32 %s220_s12, 4  ;;  %s217_s16 = scalar_lea.sflag [#allocation7], %s216_s6  ;;  %s229_s13 = int_to_ptr.vmem [resolvable:$true] %s228_s13 }
  0x45   : > { %s4631_s1 = scalar_lea.hbm %s226_s15, 32  ;;  %s4636_s18 = scalar_lea.hbm %s5463_s2, 128 }
  0x46   : > { %p4632_p8 = scmp.ne.s32.totalorder %s226_s15, %s4631_s1  ;;  %p4637_p2 = scmp.lt.s32.totalorder %s226_s15, %s5463_s2 }
  0x47   : > { %p4638_p3 = scmp.lt.s32.totalorder %s4636_s18, %s4631_s1 }
  0x48   : > { %p4634_p12 = pnand %p4632_p8, %p4605_p5 }
  0x49   : > { %p4639_p6 = por %p4638_p3, %p4637_p2 }
  0x4a   : > { %p4635_p1 = pneg %p4634_p12 }
  0x4c   : > { %p4640_p7 = pnand %p4639_p6, %p4635_p1 }
  0x4e   : > { %4643 = shalt.err (!%p4640_p7)
}
  0x4f   : > { %s4644_s25 = scalar_lea.vmem %s229_s13, 32  ;;  %s4736_s27 = smov [#allocation6]  }
  0x50   : > { %p4645_p11 = scmp.ne.s32.totalorder %s229_s13, %s4644_s25  ;;  %s4649_s17 = sshll.u32 %s4736_s27, 4  ;;  %s4650_s17 = int_to_ptr.vmem [resolvable:$false] %s4649_s17 }
  0x51   : > { %s4651_s4 = scalar_lea.vmem %s4650_s17, 64  ;;  %p4652_p13 = scmp.lt.s32.totalorder %s229_s13, %s4650_s17 }
  0x52   : > { %p4647_p4 = pnand %p4645_p11, %p4605_p5  ;;  %p4653_p8 = scmp.lt.s32.totalorder %s4651_s4, %s4644_s25 }
  0x54   : > { %p4648_p9 = pneg %p4647_p4  ;;  %p4654_p12 = por %p4653_p8, %p4652_p13 }
  0x56   : > { %p4655_p10 = pnand %p4654_p12, %p4648_p9 }
  0x58   : > { %4658 = shalt.err (!%p4655_p10)
}
  0x59   : > { %3953 = dma.hbm_to_vmem [thread:$0]  (!%p4835_p0), %s226_s15, 32, %s229_s13, %s217_s16  }
  0x5a   : > { %p5480_p1 = scmp.ne.s32.totalorder %s5475_s29, 0 }
  0x5b   : > { %s248_s1 = sand.u32 (!%p5480_p1), 1, %s4721_s19   ;;  %p5481_p5 = scmp.ne.s32.totalorder (!%p5480_p1), %s5474_s28, 0 }
  0x5c   : > { %246 = sbr.rel (%p5480_p1) target bundleno = 990 (0x3de), region = 40  ;;  %s249_s24 = scalar_lea.sflag (!%p5480_p1), [#allocation4], %s248_s1 }
  0x5d   : > { %s3930_s26 = smul.u32 (!%p5480_p1), 3072, %s248_s1 }
  0x5f   : > { %s4905_s30 = scalar_lea.vmem (!%p5480_p1), [#allocation3], %s3930_s26 }
  0x61   : > { %4700 = dma.done.wait (%p5481_p5), %s249_s24, 49152  }
  0x62   : > { %4702 = vsyncadd (%p5481_p5), %s249_s24, 4294918144  ;;  %s257_s6 = sand.u32 1, %s4788_s22   ;;  %s3497_s9 = sshll.u32 %s248_s1, 1 }
  0x63   : > { %s258_s8 = scalar_lea.sflag [#allocation7], %s257_s6  ;;  %s4912_s11 = scalar_lea.vmem [#allocation6], %s3497_s9 }
  0x64   : > { %4704 = dma.done.wait (%p5481_p5), %s258_s8, 32  }
  0x65   : > { %4706 = vsyncadd (%p5481_p5), %s258_s8, 4294967264  ;;  %p5482_p10 = scmp.eq.s32.totalorder %s4788_s22, 0 }
  0x67   : > { %4708 = dma.done.wait (%p5482_p10), [#allocation7], 16   ;;  %p5483_p0 = pmov %p5482_p10 }
  0x68   : > { %s3499_s29 = sshll.u32 %s4788_s22, 5  ;;  %p5484_p3 = scmp.ne.s32.totalorder %s4788_s22, 0 }
  0x69   : > { %4710 = vsyncadd (%p5483_p0), [#allocation7], 4294967280  ;;  %p300_p2 = scmp.lt.s32.totalorder %s3499_s29, 127 }
  0x6a   : > { %308 = sbr.rel (%p5484_p3) target bundleno = 113 (0x71), region = 56 }
  0x6b   : > { %s5491_s29 = smov (!%p300_p2, %s3499_s29), 127 }
  0x6c   : > { %s3500_s12 = sshll.u32 %s5491_s29, 3 }
  0x6d   : > { %s4926_s14 = scalar_lea.vmem %s5464_s3, %s3500_s12 }
  0x6f   : > { %vm309_vm0 = vcmask 78848   ;;  %v4737_v0 = vmov 0.0  }
  0x70   : > { %310 = vst.msk [vmem:[#allocation2] sm:$0x3f] %vm309_vm0, %v4737_v0 }
  0x71 PF: > { %v3997_v1 = vld [vmem:[%s4905_s30 + $0x74] ss:$8 sps:$4 sm:$0xff]   ;;  %v4001_v3 = vld [vmem:[%s4905_s30 + $0x70] ss:$8 sps:$4 sm:$0xff]   ;;  %v4003_v5 = vld [vmem:[%s4905_s30 + $0x64] ss:$8 sps:$4 sm:$0xff]  }
  0x72   : > { %v3999_v2 = vld [vmem:[%s4905_s30 + $0x174] ss:$8 sps:$4 sm:$0xff]   ;;  %2747 = vmatprep.subr.bf16.mxu0 %v3997_v1  ;;  %v4002_v4 = vld [vmem:[%s4905_s30 + $0x170] ss:$8 sps:$4 sm:$0xff]   ;;  %v4005_v6 = vld [vmem:[%s4905_s30 + $0x164] ss:$8 sps:$4 sm:$0xff]  }
  0x73   : > { %2788 = vmatprep.subr.bf16.mxu1 %v3999_v2  ;;  %2748 = vmatpush1.bf16.msra.mxu0 %v4001_v3  ;;  %v4007_v7 = vld [vmem:[%s4905_s30 + $0x60] ss:$8 sps:$4 sm:$0xff]   ;;  %v4009_v9 = vld [vmem:[%s4905_s30 + $0x54] ss:$8 sps:$4 sm:$0xff]   ;;  %v4013_v11 = vld [vmem:[%s4905_s30 + $0x50] ss:$8 sps:$4 sm:$0xff]  }
  0x74   : > { %2789 = vmatpush1.bf16.msra.mxu1 %v4002_v4  ;;  %2749 = vmatprep.subr.bf16.mxu0 %v4003_v5  ;;  %v4008_v8 = vld [vmem:[%s4905_s30 + $0x160] ss:$8 sps:$4 sm:$0xff]   ;;  %v4011_v10 = vld [vmem:[%s4905_s30 + $0x154] ss:$8 sps:$4 sm:$0xff]   ;;  %v4014_v12 = vld [vmem:[%s4905_s30 + $0x150] ss:$8 sps:$4 sm:$0xff]  }
  0x75   : > { %2790 = vmatprep.subr.bf16.mxu1 %v4005_v6  ;;  %v4015_v13 = vld [vmem:[%s4905_s30 + $0x44] ss:$8 sps:$4 sm:$0xff]   ;;  %v4019_v15 = vld [vmem:[%s4905_s30 + $0x40] ss:$8 sps:$4 sm:$0xff]   ;;  %v4021_v17 = vld [vmem:[%s4905_s30 + $0x34] ss:$8 sps:$4 sm:$0xff]  }
  0x76   : > { %v4017_v14 = vld [vmem:[%s4905_s30 + $0x144] ss:$8 sps:$4 sm:$0xff]   ;;  %v4020_v16 = vld [vmem:[%s4905_s30 + $0x140] ss:$8 sps:$4 sm:$0xff]   ;;  %v4023_v18 = vld [vmem:[%s4905_s30 + $0x134] ss:$8 sps:$4 sm:$0xff]  }
  0x77   : > { %2750 = vmatpush1.bf16.msra.mxu0 %v4007_v7  ;;  %v4025_v19 = vld [vmem:[%s4905_s30 + $0x30] ss:$8 sps:$4 sm:$0xff]   ;;  %v4027_v21 = vld [vmem:[%s4905_s30 + $0x24] ss:$8 sps:$4 sm:$0xff]   ;;  %v4031_v23 = vld [vmem:[%s4905_s30 + $0x20] ss:$8 sps:$4 sm:$0xff]  }
  0x78   : > { %2791 = vmatpush1.bf16.msra.mxu1 %v4008_v8  ;;  %2751 = vmatprep.subr.bf16.mxu0 %v4009_v9  ;;  %v4026_v20 = vld [vmem:[%s4905_s30 + $0x130] ss:$8 sps:$4 sm:$0xff]   ;;  %v4029_v22 = vld [vmem:[%s4905_s30 + $0x124] ss:$8 sps:$4 sm:$0xff]   ;;  %v4032_v24 = vld [vmem:[%s4905_s30 + $0x120] ss:$8 sps:$4 sm:$0xff]  }
  0x79   : > { %2792 = vmatprep.subr.bf16.mxu1 %v4011_v10  ;;  %v4033_v25 = vld [vmem:[%s4905_s30 + $0x14] ss:$8 sps:$4 sm:$0xff]   ;;  %v4037_v27 = vld [vmem:[%s4905_s30 + $0x10] ss:$8 sps:$4 sm:$0xff]   ;;  %v4039_v29 = vld [vmem:[%s4905_s30 + $0x4] ss:$8 sps:$4 sm:$0xff]  }
  0x7a   : > { %v4035_v26 = vld [vmem:[%s4905_s30 + $0x114] ss:$8 sps:$4 sm:$0xff]   ;;  %v4038_v28 = vld [vmem:[%s4905_s30 + $0x110] ss:$8 sps:$4 sm:$0xff]   ;;  %v4041_v30 = vld [vmem:[%s4905_s30 + $0x104] ss:$8 sps:$4 sm:$0xff]  }
  0x7b   : > { %2752 = vmatpush1.bf16.msra.mxu0 %v4013_v11  ;;  %v4043_v31 = vld [vmem:[%s4905_s30] ss:$8 sps:$4 sm:$0xff]   ;;  %v4045_v33 = vld [vmem:[%s4905_s30 + $0xf4] ss:$8 sps:$4 sm:$0xff]   ;;  %v4049_v35 = vld [vmem:[%s4905_s30 + $0xf0] ss:$8 sps:$4 sm:$0xff]  }
  0x7c   : > { %2793 = vmatpush1.bf16.msra.mxu1 %v4014_v12  ;;  %2753 = vmatprep.subr.bf16.mxu0 %v4015_v13  ;;  %v4044_v32 = vld [vmem:[%s4905_s30 + $0x100] ss:$8 sps:$4 sm:$0xff]   ;;  %v4047_v34 = vld [vmem:[%s4905_s30 + $0x1f4] ss:$8 sps:$4 sm:$0xff]   ;;  %v4050_v36 = vld [vmem:[%s4905_s30 + $0x1f0] ss:$8 sps:$4 sm:$0xff]  }
  0x7d   : > { %2794 = vmatprep.subr.bf16.mxu1 %v4017_v14  ;;  %v4051_v37 = vld [vmem:[%s4905_s30 + $0xe4] ss:$8 sps:$4 sm:$0xff]   ;;  %v4055_v39 = vld [vmem:[%s4905_s30 + $0xe0] ss:$8 sps:$4 sm:$0xff]   ;;  %v4057_v41 = vld [vmem:[%s4905_s30 + $0xd4] ss:$8 sps:$4 sm:$0xff]  }
  0x7e   : > { %v4053_v38 = vld [vmem:[%s4905_s30 + $0x1e4] ss:$8 sps:$4 sm:$0xff]   ;;  %v4056_v40 = vld [vmem:[%s4905_s30 + $0x1e0] ss:$8 sps:$4 sm:$0xff]   ;;  %v4059_v42 = vld [vmem:[%s4905_s30 + $0x1d4] ss:$8 sps:$4 sm:$0xff]  }
  0x7f   : > { %2754 = vmatpush1.bf16.msra.mxu0 %v4019_v15  ;;  %v4061_v43 = vld [vmem:[%s4905_s30 + $0xd0] ss:$8 sps:$4 sm:$0xff]   ;;  %v4063_v45 = vld [vmem:[%s4905_s30 + $0xc4] ss:$8 sps:$4 sm:$0xff]   ;;  %v4067_v47 = vld [vmem:[%s4905_s30 + $0xc0] ss:$8 sps:$4 sm:$0xff]  }
  0x80   : > { %2795 = vmatpush1.bf16.msra.mxu1 %v4020_v16  ;;  %2755 = vmatprep.subr.bf16.mxu0 %v4021_v17  ;;  %v4062_v44 = vld [vmem:[%s4905_s30 + $0x1d0] ss:$8 sps:$4 sm:$0xff]   ;;  %v4065_v46 = vld [vmem:[%s4905_s30 + $0x1c4] ss:$8 sps:$4 sm:$0xff]   ;;  %v4068_v51 = vld [vmem:[%s4905_s30 + $0x1c0] ss:$8 sps:$4 sm:$0xff]  }
  0x81   : > { %2796 = vmatprep.subr.bf16.mxu1 %v4023_v18  ;;  %v312_v48 = vld [vmem:[%s5461_s0 + $0x8] sm:$0x3f]  ;;  %v314_v50 = vld [vmem:[%s5461_s0 + $0x18] sm:$0x3f]  ;;  %v311_v3 = vld [vmem:[%s5461_s0] sm:$0x3f] }
  0x82   : > { %vm336_vm1 = vcmp.ge.f32.partialorder %v312_v48, 0.0  ;;  %v360_v49 = vmul.f32 0.01, %v312_v48  ;;  %vm338_vm2 = vcmp.ge.f32.partialorder %v314_v50, 0.0  ;;  %v362_v52 = vmul.f32 0.01, %v314_v50 }
  0x83   : > { %2756 = vmatpush1.bf16.msra.mxu0 %v4025_v19  ;;  %v4069_v53 = vld [vmem:[%s4905_s30 + $0xb4] ss:$8 sps:$4 sm:$0xff]   ;;  %v4073_v58 = vld [vmem:[%s4905_s30 + $0xb0] ss:$8 sps:$4 sm:$0xff]   ;;  %v4075_v61 = vld [vmem:[%s4905_s30 + $0xa4] ss:$8 sps:$4 sm:$0xff]  }
  0x84   : > { %2797 = vmatpush1.bf16.msra.mxu1 %v4026_v20  ;;  %2757 = vmatprep.subr.bf16.mxu0 %v4027_v21  ;;  %v4071_v54 = vld [vmem:[%s4905_s30 + $0x1b4] ss:$8 sps:$4 sm:$0xff]   ;;  %v384_v55 = vsel %vm336_vm1, %v312_v48, %v360_v49  ;;  %v386_v57 = vsel %vm338_vm2, %v314_v50, %v362_v52  ;;  %v4074_v59 = vld [vmem:[%s4905_s30 + $0x1b0] ss:$8 sps:$4 sm:$0xff]   ;;  %v4077_v62 = vld [vmem:[%s4905_s30 + $0x1a4] ss:$8 sps:$4 sm:$0xff]  }
  0x85   : > { %2798 = vmatprep.subr.bf16.mxu1 %v4029_v22  ;;  %v408_v56 = vpack.c.bf16 %v384_v55, %v384_v55  ;;  %v410_v60 = vpack.c.bf16 %v386_v57, %v386_v57  ;;  %v4079_v63 = vld [vmem:[%s4905_s30 + $0xa0] ss:$8 sps:$4 sm:$0xff]   ;;  %v4081_v1 = vld [vmem:[%s4905_s30 + $0x94] ss:$8 sps:$4 sm:$0xff]   ;;  %v4085_v5 = vld [vmem:[%s4905_s30 + $0x90] ss:$8 sps:$4 sm:$0xff]  }
  0x86   : > { %v4080_v0 = vld [vmem:[%s4905_s30 + $0x1a0] ss:$8 sps:$4 sm:$0xff]   ;;  %v4083_v2 = vld [vmem:[%s4905_s30 + $0x194] ss:$8 sps:$4 sm:$0xff]   ;;  %v4086_v6 = vld [vmem:[%s4905_s30 + $0x190] ss:$8 sps:$4 sm:$0xff]  }
  0x87   : > { %2758 = vmatpush1.bf16.msra.mxu0 %v4031_v23  ;;  %2779 = vmatprep.mubr.bf16.mxu0 %v408_v56  ;;  %v313_v4 = vld [vmem:[%s5461_s0 + $0x10] sm:$0x3f]  ;;  %v359_v8 = vmul.f32 0.01, %v311_v3  ;;  %vm335_vm3 = vcmp.ge.f32.partialorder %v311_v3, 0.0  ;;  %p3886_p6 = scmp.ne.s32.totalorder %s4788_s22, 3 }
  0x88   : > { %2799 = vmatpush1.bf16.msra.mxu1 %v4032_v24  ;;  %2759 = vmatprep.subr.bf16.mxu0 %v4033_v25  ;;  %v4087_v7 = vld [vmem:[%s4905_s30 + $0x84] ss:$8 sps:$4 sm:$0xff]   ;;  %v361_v9 = vmul.f32 0.01, %v313_v4  ;;  %vm337_vm4 = vcmp.ge.f32.partialorder %v313_v4, 0.0 }
  0x89   : > { %2800 = vmatprep.subr.bf16.mxu1 %v4035_v26  ;;  %2820 = vmatprep.mubr.bf16.mxu1 %v410_v60  ;;  %v4089_v10 = vld [vmem:[%s4905_s30 + $0x184] ss:$8 sps:$4 sm:$0xff]   ;;  %v4091_v11 = vld [vmem:[%s4905_s30 + $0x80] ss:$8 sps:$4 sm:$0xff]   ;;  %v383_v13 = vsel %vm335_vm3, %v311_v3, %v359_v8  ;;  %v4095_v15 = vld [vmem:[%s4905_s30 + $0x274] ss:$8 sps:$4 sm:$0xff]  }
  0x8a   : > { %v4092_v12 = vld [vmem:[%s4905_s30 + $0x180] ss:$8 sps:$4 sm:$0xff]   ;;  %v385_v14 = vsel %vm337_vm4, %v313_v4, %v361_v9  ;;  %v4098_v16 = vld [vmem:[%s4905_s30 + $0x374] ss:$8 sps:$4 sm:$0xff]   ;;  %v407_v17 = vpack.c.bf16 %v383_v13, %v383_v13  ;;  %v4093_v19 = vld [vmem:[%s4905_s30 + $0x270] ss:$8 sps:$4 sm:$0xff]  }
  0x8b   : > { %2760 = vmatpush1.bf16.msra.mxu0 %v4037_v27  ;;  %v409_v18 = vpack.c.bf16 %v385_v14, %v385_v14  ;;  %v4096_v20 = vld [vmem:[%s4905_s30 + $0x370] ss:$8 sps:$4 sm:$0xff]   ;;  %v4101_v21 = vld [vmem:[%s4905_s30 + $0x264] ss:$8 sps:$4 sm:$0xff]   ;;  %v4099_v23 = vld [vmem:[%s4905_s30 + $0x260] ss:$8 sps:$4 sm:$0xff]  }
  0x8c   : > { %2801 = vmatpush1.bf16.msra.mxu1 %v4038_v28  ;;  %2761 = vmatprep.subr.bf16.mxu0 %v4039_v29  ;;  %v4104_v22 = vld [vmem:[%s4905_s30 + $0x364] ss:$8 sps:$4 sm:$0xff]   ;;  %v4102_v24 = vld [vmem:[%s4905_s30 + $0x360] ss:$8 sps:$4 sm:$0xff]   ;;  %v4107_v25 = vld [vmem:[%s4905_s30 + $0x254] ss:$8 sps:$4 sm:$0xff]  }
  0x8d   : > { %2802 = vmatprep.subr.bf16.mxu1 %v4041_v30  ;;  %v4110_v26 = vld [vmem:[%s4905_s30 + $0x354] ss:$8 sps:$4 sm:$0xff]   ;;  %v4105_v27 = vld [vmem:[%s4905_s30 + $0x250] ss:$8 sps:$4 sm:$0xff]   ;;  %v4113_v29 = vld [vmem:[%s4905_s30 + $0x244] ss:$8 sps:$4 sm:$0xff]  }
  0x8e   : > { %v4108_v28 = vld [vmem:[%s4905_s30 + $0x350] ss:$8 sps:$4 sm:$0xff]   ;;  %v4116_v30 = vld [vmem:[%s4905_s30 + $0x344] ss:$8 sps:$4 sm:$0xff]   ;;  %v4143_v57 = vld [vmem:[%s4905_s30 + $0x2f4] ss:$8 sps:$4 sm:$0xff]  }
  0x8f   : > { %2762 = vmatpush1.bf16.msra.mxu0 %v4043_v31  ;;  %v4111_v31 = vld [vmem:[%s4905_s30 + $0x240] ss:$8 sps:$4 sm:$0xff]   ;;  %v318_v48 = vld [vmem:[%s5461_s0 + $0x38] sm:$0x3f]  ;;  %v4173_v13 = vld [vmem:[%s4905_s30 + $0x2a4] ss:$8 sps:$4 sm:$0xff]  }
  0x90   : > { %2803 = vmatpush1.bf16.msra.mxu1 %v4044_v32  ;;  %2763 = vmatprep.subr.bf16.mxu0 %v4045_v33  ;;  %v4114_v32 = vld [vmem:[%s4905_s30 + $0x340] ss:$8 sps:$4 sm:$0xff]   ;;  %v4119_v33 = vld [vmem:[%s4905_s30 + $0x234] ss:$8 sps:$4 sm:$0xff]   ;;  %vm342_vm6 = vcmp.ge.f32.partialorder %v318_v48, 0.0 }
  0x91   : > { %2804 = vmatprep.subr.bf16.mxu1 %v4047_v34  ;;  %v4122_v34 = vld [vmem:[%s4905_s30 + $0x334] ss:$8 sps:$4 sm:$0xff]   ;;  %v366_v50 = vmul.f32 0.01, %v318_v48  ;;  %v4144_v60 = vld [vmem:[%s4905_s30 + $0x3f0] ss:$8 sps:$4 sm:$0xff]  }
  0x92   : > { %v4153_v3 = vld [vmem:[%s4905_s30 + $0x2d0] ss:$8 sps:$4 sm:$0xff]   ;;  %v4162_v8 = vld [vmem:[%s4905_s30 + $0x3c0] ss:$8 sps:$4 sm:$0xff]   ;;  %v4167_v9 = vld [vmem:[%s4905_s30 + $0x2b4] ss:$8 sps:$4 sm:$0xff]  }
  0x93   : > { %2764 = vmatpush2.bf16.msra.mxu0 %v4049_v35  ;;  %v4117_v35 = vld [vmem:[%s4905_s30 + $0x230] ss:$8 sps:$4 sm:$0xff]   ;;  %v4176_v14 = vld [vmem:[%s4905_s30 + $0x3a4] ss:$8 sps:$4 sm:$0xff]  }
  0x94   : > { %2805 = vmatpush2.bf16.msra.mxu1 %v4050_v36  ;;  %2765 = vmatprep.subr.bf16.mxu0 %v4051_v37  ;;  %v4120_v36 = vld [vmem:[%s4905_s30 + $0x330] ss:$8 sps:$4 sm:$0xff]   ;;  %v4125_v37 = vld [vmem:[%s4905_s30 + $0x224] ss:$8 sps:$4 sm:$0xff]  }
  0x95   : > { %2806 = vmatprep.subr.bf16.mxu1 %v4053_v38  ;;  %v4128_v38 = vld [vmem:[%s4905_s30 + $0x324] ss:$8 sps:$4 sm:$0xff]   ;;  %v4156_v4 = vld [vmem:[%s4905_s30 + $0x3d0] ss:$8 sps:$4 sm:$0xff]  }
  0x97   : > { %2766 = vmatpush2.bf16.msra.mxu0 %v4055_v39  ;;  %v4123_v39 = vld [vmem:[%s4905_s30 + $0x220] ss:$8 sps:$4 sm:$0xff]  }
  0x98   : > { %2807 = vmatpush2.bf16.msra.mxu1 %v4056_v40  ;;  %2767 = vmatprep.subr.bf16.mxu0 %v4057_v41  ;;  %v4126_v40 = vld [vmem:[%s4905_s30 + $0x320] ss:$8 sps:$4 sm:$0xff]   ;;  %v4131_v41 = vld [vmem:[%s4905_s30 + $0x214] ss:$8 sps:$4 sm:$0xff]  }
  0x99   : > { %2808 = vmatprep.subr.bf16.mxu1 %v4059_v42  ;;  %v4134_v42 = vld [vmem:[%s4905_s30 + $0x314] ss:$8 sps:$4 sm:$0xff]  }
  0x9b   : > { %2768 = vmatpush2.bf16.msra.mxu0 %v4061_v43  ;;  %v4129_v43 = vld [vmem:[%s4905_s30 + $0x210] ss:$8 sps:$4 sm:$0xff]  }
  0x9c   : > { %2809 = vmatpush2.bf16.msra.mxu1 %v4062_v44  ;;  %2769 = vmatprep.subr.bf16.mxu0 %v4063_v45  ;;  %v4132_v44 = vld [vmem:[%s4905_s30 + $0x310] ss:$8 sps:$4 sm:$0xff]   ;;  %v4137_v45 = vld [vmem:[%s4905_s30 + $0x204] ss:$8 sps:$4 sm:$0xff]  }
  0x9d   : > { %2810 = vmatprep.subr.bf16.mxu1 %v4065_v46  ;;  %v4140_v46 = vld [vmem:[%s4905_s30 + $0x304] ss:$8 sps:$4 sm:$0xff]  }
  0x9f   : > { %2770 = vmatpush2.bf16.msra.mxu0 %v4067_v47  ;;  %v316_v47 = vld [vmem:[%s5461_s0 + $0x28] sm:$0x3f] }
  0xa0   : > { %2811 = vmatpush2.bf16.msra.mxu1 %v4068_v51  ;;  %2771 = vmatprep.subr.bf16.mxu0 %v4069_v53  ;;  %vm340_vm5 = vcmp.ge.f32.partialorder %v316_v47, 0.0  ;;  %v364_v49 = vmul.f32 0.01, %v316_v47  ;;  %v4135_v51 = vld [vmem:[%s4905_s30 + $0x200] ss:$8 sps:$4 sm:$0xff]   ;;  %v390_v53 = vsel %vm342_vm6, %v318_v48, %v366_v50 }
  0xa1   : > { %2812 = vmatprep.subr.bf16.mxu1 %v4071_v54  ;;  %v4138_v54 = vld [vmem:[%s4905_s30 + $0x300] ss:$8 sps:$4 sm:$0xff]   ;;  %v414_v56 = vpack.c.bf16 %v390_v53, %v390_v53  ;;  %v4204_v48 = vld [vmem:[%s4905_s30 + $0x550] ss:$8 sps:$4 sm:$0xff]   ;;  %v4209_v50 = vld [vmem:[%s4905_s30 + $0x444] ss:$8 sps:$4 sm:$0xff]  }
  0xa2   : > { %v388_v52 = vsel %vm340_vm5, %v316_v47, %v364_v49  ;;  %v4201_v47 = vld [vmem:[%s4905_s30 + $0x450] ss:$8 sps:$4 sm:$0xff]  }
  0xa3   : > { %2772 = vmatpush2.bf16.msra.mxu0 %v4073_v58  ;;  %v412_v55 = vpack.c.bf16 %v388_v52, %v388_v52  ;;  %v4146_v58 = vld [vmem:[%s4905_s30 + $0x3f4] ss:$8 sps:$4 sm:$0xff]  }
  0xa4   : > { %2813 = vmatpush2.bf16.msra.mxu1 %v4074_v59  ;;  %2773 = vmatprep.subr.bf16.mxu0 %v4075_v61  ;;  %v4141_v59 = vld [vmem:[%s4905_s30 + $0x2f0] ss:$8 sps:$4 sm:$0xff]   ;;  %v4149_v61 = vld [vmem:[%s4905_s30 + $0x2e4] ss:$8 sps:$4 sm:$0xff]  }
  0xa5   : > { %2814 = vmatprep.subr.bf16.mxu1 %v4077_v62  ;;  %v4152_v62 = vld [vmem:[%s4905_s30 + $0x3e4] ss:$8 sps:$4 sm:$0xff]  }
  0xa7   : > { %2774 = vmatpush2.bf16.msra.mxu0 %v4079_v63  ;;  %v4147_v63 = vld [vmem:[%s4905_s30 + $0x2e0] ss:$8 sps:$4 sm:$0xff]  }
  0xa8   : > { %2815 = vmatpush2.bf16.msra.mxu1 %v4080_v0  ;;  %2775 = vmatprep.subr.bf16.mxu0 %v4081_v1  ;;  %v4150_v0 = vld [vmem:[%s4905_s30 + $0x3e0] ss:$8 sps:$4 sm:$0xff]   ;;  %v4155_v1 = vld [vmem:[%s4905_s30 + $0x2d4] ss:$8 sps:$4 sm:$0xff]  }
  0xa9   : > { %2816 = vmatprep.subr.bf16.mxu1 %v4083_v2  ;;  %v4158_v2 = vld [vmem:[%s4905_s30 + $0x3d4] ss:$8 sps:$4 sm:$0xff]  }
  0xab   : > { %2776 = vmatpush2.bf16.msra.mxu0 %v4085_v5  ;;  %v4161_v5 = vld [vmem:[%s4905_s30 + $0x2c4] ss:$8 sps:$4 sm:$0xff]  }
  0xac   : > { %2817 = vmatpush2.bf16.msra.mxu1 %v4086_v6  ;;  %2777 = vmatprep.subr.bf16.mxu0 %v4087_v7  ;;  %v4164_v6 = vld [vmem:[%s4905_s30 + $0x3c4] ss:$8 sps:$4 sm:$0xff]   ;;  %v4159_v7 = vld [vmem:[%s4905_s30 + $0x2c0] ss:$8 sps:$4 sm:$0xff]  }
  0xad   : > { %2818 = vmatprep.subr.bf16.mxu1 %v4089_v10  ;;  %v4170_v10 = vld [vmem:[%s4905_s30 + $0x3b4] ss:$8 sps:$4 sm:$0xff]  }
  0xaf   : > { %2778 = vmatpush2.bf16.msra.mxu0 %v4091_v11  ;;  %v4165_v11 = vld [vmem:[%s4905_s30 + $0x2b0] ss:$8 sps:$4 sm:$0xff]  }
  0xb0   : > { %2819 = vmatpush2.bf16.msra.mxu1 %v4092_v12  ;;  %2829 = vmatprep.subr.bf16.mxu0 %v4095_v15  ;;  %v4168_v12 = vld [vmem:[%s4905_s30 + $0x3b0] ss:$8 sps:$4 sm:$0xff]   ;;  %v4171_v15 = vld [vmem:[%s4905_s30 + $0x2a0] ss:$8 sps:$4 sm:$0xff]  }
  0xb1   : > { %2870 = vmatprep.subr.bf16.mxu1 %v4098_v16  ;;  %v4174_v16 = vld [vmem:[%s4905_s30 + $0x3a0] ss:$8 sps:$4 sm:$0xff]  }
  0xb2   : > { %2780 = vmatmul.mubr.bf16.vlgmr.msra.gmra.mxu0 %v407_v17  ;;  %v4179_v17 = vld [vmem:[%s4905_s30 + $0x294] ss:$8 sps:$4 sm:$0xff]  }
  0xb3   : > { %2821 = vmatmul.mubr.bf16.vlgmr.msra.gmra.mxu1 %v409_v18  ;;  %2830 = vmatpush1.bf16.msra.mxu0 %v4093_v19  ;;  %v4182_v18 = vld [vmem:[%s4905_s30 + $0x394] ss:$8 sps:$4 sm:$0xff]  }
  0xb4   : > { %2871 = vmatpush1.bf16.msra.mxu1 %v4096_v20  ;;  %2831 = vmatprep.subr.bf16.mxu0 %v4101_v21  ;;  %v315_v19 = vld [vmem:[%s5461_s0 + $0x20] sm:$0x3f]  ;;  %v317_v20 = vld [vmem:[%s5461_s0 + $0x30] sm:$0x3f] }
  0xb5   : > { %2872 = vmatprep.subr.bf16.mxu1 %v4104_v22  ;;  %2861 = vmatprep.mubr.bf16.mxu0 %v412_v55  ;;  %v4177_v21 = vld [vmem:[%s4905_s30 + $0x290] ss:$8 sps:$4 sm:$0xff]   ;;  %vm339_vm7 = vcmp.ge.f32.partialorder %v315_v19, 0.0  ;;  %vm341_vm8 = vcmp.ge.f32.partialorder %v317_v20, 0.0  ;;  %v4207_v55 = vld [vmem:[%s4905_s30 + $0x440] ss:$8 sps:$4 sm:$0xff]  }
  0xb6   : > { %2902 = vmatprep.mubr.bf16.mxu1 %v414_v56  ;;  %v4180_v22 = vld [vmem:[%s4905_s30 + $0x390] ss:$8 sps:$4 sm:$0xff]   ;;  %v4210_v56 = vld [vmem:[%s4905_s30 + $0x540] ss:$8 sps:$4 sm:$0xff]  }
  0xb7   : > { %2832 = vmatpush1.bf16.msra.mxu0 %v4099_v23  ;;  %v4185_v23 = vld [vmem:[%s4905_s30 + $0x284] ss:$8 sps:$4 sm:$0xff]  }
  0xb8   : > { %2873 = vmatpush1.bf16.msra.mxu1 %v4102_v24  ;;  %2833 = vmatprep.subr.bf16.mxu0 %v4107_v25  ;;  %v363_v24 = vmul.f32 0.01, %v315_v19  ;;  %v365_v25 = vmul.f32 0.01, %v317_v20 }
  0xb9   : > { %2874 = vmatprep.subr.bf16.mxu1 %v4110_v26  ;;  %v4188_v26 = vld [vmem:[%s4905_s30 + $0x384] ss:$8 sps:$4 sm:$0xff]  }
  0xbb   : > { %2834 = vmatpush1.bf16.msra.mxu0 %v4105_v27  ;;  %v4183_v27 = vld [vmem:[%s4905_s30 + $0x280] ss:$8 sps:$4 sm:$0xff]  }
  0xbc   : > { %2875 = vmatpush1.bf16.msra.mxu1 %v4108_v28  ;;  %2835 = vmatprep.subr.bf16.mxu0 %v4113_v29  ;;  %v4186_v28 = vld [vmem:[%s4905_s30 + $0x380] ss:$8 sps:$4 sm:$0xff]   ;;  %v387_v29 = vsel %vm339_vm7, %v315_v19, %v363_v24  ;;  %v4249_v19 = vld [vmem:[%s4905_s30 + $0x4d0] ss:$8 sps:$4 sm:$0xff]  }
  0xbd   : > { %2876 = vmatprep.subr.bf16.mxu1 %v4116_v30  ;;  %v389_v30 = vsel %vm341_vm8, %v317_v20, %v365_v25  ;;  %v4252_v20 = vld [vmem:[%s4905_s30 + $0x5d0] ss:$8 sps:$4 sm:$0xff]   ;;  %v4258_v24 = vld [vmem:[%s4905_s30 + $0x5c0] ss:$8 sps:$4 sm:$0xff]   ;;  %v4263_v25 = vld [vmem:[%s4905_s30 + $0x4b4] ss:$8 sps:$4 sm:$0xff]  }
  0xbf   : > { %2836 = vmatpush1.bf16.msra.mxu0 %v4111_v31  ;;  %v4191_v31 = vld [vmem:[%s4905_s30 + $0x474] ss:$8 sps:$4 sm:$0xff]  }
  0xc0   : > { %2877 = vmatpush1.bf16.msra.mxu1 %v4114_v32  ;;  %2837 = vmatprep.subr.bf16.mxu0 %v4119_v33  ;;  %v4194_v32 = vld [vmem:[%s4905_s30 + $0x574] ss:$8 sps:$4 sm:$0xff]   ;;  %v411_v33 = vpack.c.bf16 %v387_v29, %v387_v29  ;;  %v4269_v29 = vld [vmem:[%s4905_s30 + $0x4a4] ss:$8 sps:$4 sm:$0xff]  }
  0xc1   : > { %2878 = vmatprep.subr.bf16.mxu1 %v4122_v34  ;;  %v413_v34 = vpack.c.bf16 %v389_v30, %v389_v30  ;;  %v4272_v30 = vld [vmem:[%s4905_s30 + $0x5a4] ss:$8 sps:$4 sm:$0xff]  }
  0xc3   : > { %2838 = vmatpush1.bf16.msra.mxu0 %v4117_v35  ;;  %v4189_v35 = vld [vmem:[%s4905_s30 + $0x470] ss:$8 sps:$4 sm:$0xff]  }
  0xc4   : > { %2879 = vmatpush1.bf16.msra.mxu1 %v4120_v36  ;;  %2839 = vmatprep.subr.bf16.mxu0 %v4125_v37  ;;  %v4192_v36 = vld [vmem:[%s4905_s30 + $0x570] ss:$8 sps:$4 sm:$0xff]   ;;  %v4197_v37 = vld [vmem:[%s4905_s30 + $0x464] ss:$8 sps:$4 sm:$0xff]  }
  0xc5   : > { %2880 = vmatprep.subr.bf16.mxu1 %v4128_v38  ;;  %v4200_v38 = vld [vmem:[%s4905_s30 + $0x564] ss:$8 sps:$4 sm:$0xff]  }
  0xc7   : > { %2840 = vmatpush1.bf16.msra.mxu0 %v4123_v39  ;;  %v4195_v39 = vld [vmem:[%s4905_s30 + $0x460] ss:$8 sps:$4 sm:$0xff]  }
  0xc8   : > { %2881 = vmatpush1.bf16.msra.mxu1 %v4126_v40  ;;  %2841 = vmatprep.subr.bf16.mxu0 %v4131_v41  ;;  %v4198_v40 = vld [vmem:[%s4905_s30 + $0x560] ss:$8 sps:$4 sm:$0xff]   ;;  %v4203_v41 = vld [vmem:[%s4905_s30 + $0x454] ss:$8 sps:$4 sm:$0xff]  }
  0xc9   : > { %2882 = vmatprep.subr.bf16.mxu1 %v4134_v42  ;;  %v4206_v42 = vld [vmem:[%s4905_s30 + $0x554] ss:$8 sps:$4 sm:$0xff]  }
  0xcb   : > { %2842 = vmatpush1.bf16.msra.mxu0 %v4129_v43  ;;  %v320_v43 = vld [vmem:[%s5461_s0 + $0x48] sm:$0x3f] }
  0xcc   : > { %2883 = vmatpush1.bf16.msra.mxu1 %v4132_v44  ;;  %2843 = vmatprep.subr.bf16.mxu0 %v4137_v45  ;;  %vm344_vm9 = vcmp.ge.f32.partialorder %v320_v43, 0.0  ;;  %v368_v44 = vmul.f32 0.01, %v320_v43  ;;  %v322_v45 = vld [vmem:[%s5461_s0 + $0x58] sm:$0x3f] }
  0xcd   : > { %2884 = vmatprep.subr.bf16.mxu1 %v4140_v46  ;;  %vm346_vm10 = vcmp.ge.f32.partialorder %v322_v45, 0.0  ;;  %v370_v46 = vmul.f32 0.01, %v322_v45 }
  0xce   : > { %v392_v49 = vsel %vm344_vm9, %v320_v43, %v368_v44  ;;  %v326_v43 = vld [vmem:[%s5461_s0 + $0x78] sm:$0x3f]  ;;  %v4284_v44 = vld [vmem:[%s4905_s30 + $0x584] ss:$8 sps:$4 sm:$0xff]  }
  0xcf   : > { %2844 = vmatpush1.bf16.msra.mxu0 %v4135_v51  ;;  %v4212_v51 = vld [vmem:[%s4905_s30 + $0x544] ss:$8 sps:$4 sm:$0xff]   ;;  %v416_v52 = vpack.c.bf16 %v392_v49, %v392_v49  ;;  %v394_v53 = vsel %vm346_vm10, %v322_v45, %v370_v46  ;;  %v4279_v45 = vld [vmem:[%s4905_s30 + $0x480] ss:$8 sps:$4 sm:$0xff]   ;;  %vm350_vm14 = vcmp.ge.f32.partialorder %v326_v43, 0.0 }
  0xd0   : > { %2885 = vmatpush1.bf16.msra.mxu1 %v4138_v54  ;;  %2845 = vmatprep.subr.bf16.mxu0 %v4143_v57  ;;  %v418_v54 = vpack.c.bf16 %v394_v53, %v394_v53  ;;  %v4215_v57 = vld [vmem:[%s4905_s30 + $0x434] ss:$8 sps:$4 sm:$0xff]   ;;  %v4282_v46 = vld [vmem:[%s4905_s30 + $0x580] ss:$8 sps:$4 sm:$0xff]  }
  0xd1   : > { %2886 = vmatprep.subr.bf16.mxu1 %v4146_v58  ;;  %v4218_v58 = vld [vmem:[%s4905_s30 + $0x534] ss:$8 sps:$4 sm:$0xff]  }
  0xd3   : > { %2846 = vmatpush2.bf16.msra.mxu0 %v4141_v59  ;;  %v4213_v59 = vld [vmem:[%s4905_s30 + $0x430] ss:$8 sps:$4 sm:$0xff]  }
  0xd4   : > { %2887 = vmatpush2.bf16.msra.mxu1 %v4144_v60  ;;  %2847 = vmatprep.subr.bf16.mxu0 %v4149_v61  ;;  %v4216_v60 = vld [vmem:[%s4905_s30 + $0x530] ss:$8 sps:$4 sm:$0xff]   ;;  %v4221_v61 = vld [vmem:[%s4905_s30 + $0x424] ss:$8 sps:$4 sm:$0xff]  }
  0xd5   : > { %2888 = vmatprep.subr.bf16.mxu1 %v4152_v62  ;;  %v4224_v62 = vld [vmem:[%s4905_s30 + $0x524] ss:$8 sps:$4 sm:$0xff]  }
  0xd7   : > { %2848 = vmatpush2.bf16.msra.mxu0 %v4147_v63  ;;  %v4219_v63 = vld [vmem:[%s4905_s30 + $0x420] ss:$8 sps:$4 sm:$0xff]  }
  0xd8   : > { %2889 = vmatpush2.bf16.msra.mxu1 %v4150_v0  ;;  %2849 = vmatprep.subr.bf16.mxu0 %v4155_v1  ;;  %v4222_v0 = vld [vmem:[%s4905_s30 + $0x520] ss:$8 sps:$4 sm:$0xff]   ;;  %v4227_v1 = vld [vmem:[%s4905_s30 + $0x414] ss:$8 sps:$4 sm:$0xff]  }
  0xd9   : > { %2890 = vmatprep.subr.bf16.mxu1 %v4158_v2  ;;  %v4230_v2 = vld [vmem:[%s4905_s30 + $0x514] ss:$8 sps:$4 sm:$0xff]  }
  0xdb   : > { %2850 = vmatpush2.bf16.msra.mxu0 %v4153_v3  ;;  %v4225_v3 = vld [vmem:[%s4905_s30 + $0x410] ss:$8 sps:$4 sm:$0xff]  }
  0xdc   : > { %2891 = vmatpush2.bf16.msra.mxu1 %v4156_v4  ;;  %2851 = vmatprep.subr.bf16.mxu0 %v4161_v5  ;;  %v4228_v4 = vld [vmem:[%s4905_s30 + $0x510] ss:$8 sps:$4 sm:$0xff]   ;;  %v4233_v5 = vld [vmem:[%s4905_s30 + $0x404] ss:$8 sps:$4 sm:$0xff]  }
  0xdd   : > { %2892 = vmatprep.subr.bf16.mxu1 %v4164_v6  ;;  %v4236_v6 = vld [vmem:[%s4905_s30 + $0x504] ss:$8 sps:$4 sm:$0xff]  }
  0xdf   : > { %2852 = vmatpush2.bf16.msra.mxu0 %v4159_v7  ;;  %v4231_v7 = vld [vmem:[%s4905_s30 + $0x400] ss:$8 sps:$4 sm:$0xff]  }
  0xe0   : > { %2893 = vmatpush2.bf16.msra.mxu1 %v4162_v8  ;;  %2853 = vmatprep.subr.bf16.mxu0 %v4167_v9  ;;  %v4234_v8 = vld [vmem:[%s4905_s30 + $0x500] ss:$8 sps:$4 sm:$0xff]   ;;  %v4239_v9 = vld [vmem:[%s4905_s30 + $0x4f4] ss:$8 sps:$4 sm:$0xff]  }
  0xe1   : > { %2894 = vmatprep.subr.bf16.mxu1 %v4170_v10  ;;  %v4242_v10 = vld [vmem:[%s4905_s30 + $0x5f4] ss:$8 sps:$4 sm:$0xff]  }
  0xe3   : > { %2854 = vmatpush2.bf16.msra.mxu0 %v4165_v11  ;;  %v4237_v11 = vld [vmem:[%s4905_s30 + $0x4f0] ss:$8 sps:$4 sm:$0xff]  }
  0xe4   : > { %2895 = vmatpush2.bf16.msra.mxu1 %v4168_v12  ;;  %2855 = vmatprep.subr.bf16.mxu0 %v4173_v13  ;;  %v4240_v12 = vld [vmem:[%s4905_s30 + $0x5f0] ss:$8 sps:$4 sm:$0xff]   ;;  %v4245_v13 = vld [vmem:[%s4905_s30 + $0x4e4] ss:$8 sps:$4 sm:$0xff]  }
  0xe5   : > { %2896 = vmatprep.subr.bf16.mxu1 %v4176_v14  ;;  %v4248_v14 = vld [vmem:[%s4905_s30 + $0x5e4] ss:$8 sps:$4 sm:$0xff]  }
  0xe7   : > { %2856 = vmatpush2.bf16.msra.mxu0 %v4171_v15  ;;  %v4243_v15 = vld [vmem:[%s4905_s30 + $0x4e0] ss:$8 sps:$4 sm:$0xff]  }
  0xe8   : > { %2897 = vmatpush2.bf16.msra.mxu1 %v4174_v16  ;;  %2857 = vmatprep.subr.bf16.mxu0 %v4179_v17  ;;  %v4246_v16 = vld [vmem:[%s4905_s30 + $0x5e0] ss:$8 sps:$4 sm:$0xff]   ;;  %v4251_v17 = vld [vmem:[%s4905_s30 + $0x4d4] ss:$8 sps:$4 sm:$0xff]  }
  0xe9   : > { %2898 = vmatprep.subr.bf16.mxu1 %v4182_v18  ;;  %v4254_v18 = vld [vmem:[%s4905_s30 + $0x5d4] ss:$8 sps:$4 sm:$0xff]  }
  0xeb   : > { %2858 = vmatpush2.bf16.msra.mxu0 %v4177_v21  ;;  %v4257_v21 = vld [vmem:[%s4905_s30 + $0x4c4] ss:$8 sps:$4 sm:$0xff]  }
  0xec   : > { %2899 = vmatpush2.bf16.msra.mxu1 %v4180_v22  ;;  %2859 = vmatprep.subr.bf16.mxu0 %v4185_v23  ;;  %v4260_v22 = vld [vmem:[%s4905_s30 + $0x5c4] ss:$8 sps:$4 sm:$0xff]   ;;  %v4255_v23 = vld [vmem:[%s4905_s30 + $0x4c0] ss:$8 sps:$4 sm:$0xff]  }
  0xed   : > { %2900 = vmatprep.subr.bf16.mxu1 %v4188_v26  ;;  %v4266_v26 = vld [vmem:[%s4905_s30 + $0x5b4] ss:$8 sps:$4 sm:$0xff]  }
  0xef   : > { %2860 = vmatpush2.bf16.msra.mxu0 %v4183_v27  ;;  %v4261_v27 = vld [vmem:[%s4905_s30 + $0x4b0] ss:$8 sps:$4 sm:$0xff]  }
  0xf0   : > { %2901 = vmatpush2.bf16.msra.mxu1 %v4186_v28  ;;  %2911 = vmatprep.subr.bf16.mxu0 %v4191_v31  ;;  %v4264_v28 = vld [vmem:[%s4905_s30 + $0x5b0] ss:$8 sps:$4 sm:$0xff]   ;;  %v4267_v31 = vld [vmem:[%s4905_s30 + $0x4a0] ss:$8 sps:$4 sm:$0xff]  }
  0xf1   : > { %2952 = vmatprep.subr.bf16.mxu1 %v4194_v32  ;;  %v4270_v32 = vld [vmem:[%s4905_s30 + $0x5a0] ss:$8 sps:$4 sm:$0xff]  }
  0xf2   : > { %2862 = vmatmul.mubr.bf16.vlgmr.msra.gmra.mxu0 %v411_v33  ;;  %v319_v33 = vld [vmem:[%s5461_s0 + $0x40] sm:$0x3f] }
  0xf3   : > { %2903 = vmatmul.mubr.bf16.vlgmr.msra.gmra.mxu1 %v413_v34  ;;  %2912 = vmatpush1.bf16.msra.mxu0 %v4189_v35  ;;  %v321_v34 = vld [vmem:[%s5461_s0 + $0x50] sm:$0x3f]  ;;  %v4275_v35 = vld [vmem:[%s4905_s30 + $0x494] ss:$8 sps:$4 sm:$0xff]   ;;  %vm343_vm11 = vcmp.ge.f32.partialorder %v319_v33, 0.0 }
  0xf4   : > { %2953 = vmatpush1.bf16.msra.mxu1 %v4192_v36  ;;  %2913 = vmatprep.subr.bf16.mxu0 %v4197_v37  ;;  %v4278_v36 = vld [vmem:[%s4905_s30 + $0x594] ss:$8 sps:$4 sm:$0xff]   ;;  %v4273_v37 = vld [vmem:[%s4905_s30 + $0x490] ss:$8 sps:$4 sm:$0xff]   ;;  %vm345_vm12 = vcmp.ge.f32.partialorder %v321_v34, 0.0 }
  0xf5   : > { %2954 = vmatprep.subr.bf16.mxu1 %v4200_v38  ;;  %2943 = vmatprep.mubr.bf16.mxu0 %v416_v52  ;;  %v4276_v38 = vld [vmem:[%s4905_s30 + $0x590] ss:$8 sps:$4 sm:$0xff]   ;;  %v4290_v52 = vld [vmem:[%s4905_s30 + $0x774] ss:$8 sps:$4 sm:$0xff]  }
  0xf6   : > { %2984 = vmatprep.mubr.bf16.mxu1 %v418_v54 }
  0xf7   : > { %2914 = vmatpush1.bf16.msra.mxu0 %v4195_v39  ;;  %v4281_v39 = vld [vmem:[%s4905_s30 + $0x484] ss:$8 sps:$4 sm:$0xff]  }
  0xf8   : > { %2955 = vmatpush1.bf16.msra.mxu1 %v4198_v40  ;;  %2915 = vmatprep.subr.bf16.mxu0 %v4203_v41  ;;  %v367_v40 = vmul.f32 0.01, %v319_v33  ;;  %v369_v41 = vmul.f32 0.01, %v321_v34 }
  0xf9   : > { %2956 = vmatprep.subr.bf16.mxu1 %v4206_v42  ;;  %v324_v42 = vld [vmem:[%s5461_s0 + $0x68] sm:$0x3f] }
  0xfa   : > { %v391_v49 = vsel %vm343_vm11, %v319_v33, %v367_v40  ;;  %vm348_vm13 = vcmp.ge.f32.partialorder %v324_v42, 0.0  ;;  %v4347_v33 = vld [vmem:[%s4905_s30 + $0x6d4] ss:$8 sps:$4 sm:$0xff]   ;;  %v4354_v40 = vld [vmem:[%s4905_s30 + $0x7c0] ss:$8 sps:$4 sm:$0xff]   ;;  %vm3349_vm11 = vcmask 78848  }
  0xfb   : > { %2916 = vmatpush1.bf16.msra.mxu0 %v4201_v47  ;;  %v372_v47 = vmul.f32 0.01, %v324_v42  ;;  %v415_v53 = vpack.c.bf16 %v391_v49, %v391_v49  ;;  %v4371_v49 = vld [vmem:[%s4905_s30 + $0x694] ss:$8 sps:$4 sm:$0xff]  }
  0xfc   : > { %2957 = vmatpush1.bf16.msra.mxu1 %v4204_v48  ;;  %2917 = vmatprep.subr.bf16.mxu0 %v4209_v50  ;;  %v374_v48 = vmul.f32 0.01, %v326_v43  ;;  %v393_v50 = vsel %vm345_vm12, %v321_v34, %v369_v41  ;;  %v4350_v34 = vld [vmem:[%s4905_s30 + $0x7d4] ss:$8 sps:$4 sm:$0xff]  }
  0xfd   : > { %2958 = vmatprep.subr.bf16.mxu1 %v4212_v51  ;;  %v4287_v51 = vld [vmem:[%s4905_s30 + $0x674] ss:$8 sps:$4 sm:$0xff]   ;;  %v417_v54 = vpack.c.bf16 %v393_v50, %v393_v50 }
  0xfe   : > { %v4359_v41 = vld [vmem:[%s4905_s30 + $0x6b4] ss:$8 sps:$4 sm:$0xff]  }
  0xff   : > { %2918 = vmatpush1.bf16.msra.mxu0 %v4207_v55  ;;  %v4285_v55 = vld [vmem:[%s4905_s30 + $0x670] ss:$8 sps:$4 sm:$0xff]   ;;  %v4374_v50 = vld [vmem:[%s4905_s30 + $0x794] ss:$8 sps:$4 sm:$0xff]  }
 0x100   : > { %2959 = vmatpush1.bf16.msra.mxu1 %v4210_v56  ;;  %2919 = vmatprep.subr.bf16.mxu0 %v4215_v57  ;;  %v396_v56 = vsel %vm348_vm13, %v324_v42, %v372_v47  ;;  %v398_v57 = vsel %vm350_vm14, %v326_v43, %v374_v48  ;;  %v4362_v42 = vld [vmem:[%s4905_s30 + $0x7b4] ss:$8 sps:$4 sm:$0xff]   ;;  %v4357_v43 = vld [vmem:[%s4905_s30 + $0x6b0] ss:$8 sps:$4 sm:$0xff]   ;;  %v4363_v47 = vld [vmem:[%s4905_s30 + $0x6a0] ss:$8 sps:$4 sm:$0xff]  }
 0x101   : > { %2960 = vmatprep.subr.bf16.mxu1 %v4218_v58  ;;  %v4288_v58 = vld [vmem:[%s4905_s30 + $0x770] ss:$8 sps:$4 sm:$0xff]   ;;  %v4366_v48 = vld [vmem:[%s4905_s30 + $0x7a0] ss:$8 sps:$4 sm:$0xff]  }
 0x103   : > { %2920 = vmatpush1.bf16.msra.mxu0 %v4213_v59  ;;  %v4293_v59 = vld [vmem:[%s4905_s30 + $0x664] ss:$8 sps:$4 sm:$0xff]  }
 0x104   : > { %2961 = vmatpush1.bf16.msra.mxu1 %v4216_v60  ;;  %2921 = vmatprep.subr.bf16.mxu0 %v4221_v61  ;;  %v4296_v60 = vld [vmem:[%s4905_s30 + $0x764] ss:$8 sps:$4 sm:$0xff]   ;;  %v420_v61 = vpack.c.bf16 %v396_v56, %v396_v56 }
 0x105   : > { %2962 = vmatprep.subr.bf16.mxu1 %v4224_v62  ;;  %v422_v62 = vpack.c.bf16 %v398_v57, %v398_v57  ;;  %v4377_v56 = vld [vmem:[%s4905_s30 + $0x684] ss:$8 sps:$4 sm:$0xff]  }
 0x107   : > { %2922 = vmatpush1.bf16.msra.mxu0 %v4219_v63  ;;  %v4291_v63 = vld [vmem:[%s4905_s30 + $0x660] ss:$8 sps:$4 sm:$0xff]  }
 0x108   : > { %2963 = vmatpush1.bf16.msra.mxu1 %v4222_v0  ;;  %2923 = vmatprep.subr.bf16.mxu0 %v4227_v1  ;;  %v4294_v0 = vld [vmem:[%s4905_s30 + $0x760] ss:$8 sps:$4 sm:$0xff]   ;;  %v4299_v1 = vld [vmem:[%s4905_s30 + $0x654] ss:$8 sps:$4 sm:$0xff]  }
 0x109   : > { %2964 = vmatprep.subr.bf16.mxu1 %v4230_v2  ;;  %v4302_v2 = vld [vmem:[%s4905_s30 + $0x754] ss:$8 sps:$4 sm:$0xff]  }
 0x10b   : > { %2924 = vmatpush1.bf16.msra.mxu0 %v4225_v3  ;;  %v4297_v3 = vld [vmem:[%s4905_s30 + $0x650] ss:$8 sps:$4 sm:$0xff]  }
 0x10c   : > { %2965 = vmatpush1.bf16.msra.mxu1 %v4228_v4  ;;  %2925 = vmatprep.subr.bf16.mxu0 %v4233_v5  ;;  %v4300_v4 = vld [vmem:[%s4905_s30 + $0x750] ss:$8 sps:$4 sm:$0xff]   ;;  %v4305_v5 = vld [vmem:[%s4905_s30 + $0x644] ss:$8 sps:$4 sm:$0xff]  }
 0x10d   : > { %2966 = vmatprep.subr.bf16.mxu1 %v4236_v6  ;;  %v4308_v6 = vld [vmem:[%s4905_s30 + $0x744] ss:$8 sps:$4 sm:$0xff]  }
 0x10f   : > { %2926 = vmatpush1.bf16.msra.mxu0 %v4231_v7  ;;  %v4303_v7 = vld [vmem:[%s4905_s30 + $0x640] ss:$8 sps:$4 sm:$0xff]  }
 0x110   : > { %2967 = vmatpush1.bf16.msra.mxu1 %v4234_v8  ;;  %2927 = vmatprep.subr.bf16.mxu0 %v4239_v9  ;;  %v4306_v8 = vld [vmem:[%s4905_s30 + $0x740] ss:$8 sps:$4 sm:$0xff]   ;;  %v4311_v9 = vld [vmem:[%s4905_s30 + $0x634] ss:$8 sps:$4 sm:$0xff]  }
 0x111   : > { %2968 = vmatprep.subr.bf16.mxu1 %v4242_v10  ;;  %v4314_v10 = vld [vmem:[%s4905_s30 + $0x734] ss:$8 sps:$4 sm:$0xff]  }
 0x113   : > { %2928 = vmatpush2.bf16.msra.mxu0 %v4237_v11  ;;  %v4309_v11 = vld [vmem:[%s4905_s30 + $0x630] ss:$8 sps:$4 sm:$0xff]  }
 0x114   : > { %2969 = vmatpush2.bf16.msra.mxu1 %v4240_v12  ;;  %2929 = vmatprep.subr.bf16.mxu0 %v4245_v13  ;;  %v4312_v12 = vld [vmem:[%s4905_s30 + $0x730] ss:$8 sps:$4 sm:$0xff]   ;;  %v4317_v13 = vld [vmem:[%s4905_s30 + $0x624] ss:$8 sps:$4 sm:$0xff]  }
 0x115   : > { %2970 = vmatprep.subr.bf16.mxu1 %v4248_v14  ;;  %v4320_v14 = vld [vmem:[%s4905_s30 + $0x724] ss:$8 sps:$4 sm:$0xff]  }
 0x117   : > { %2930 = vmatpush2.bf16.msra.mxu0 %v4243_v15  ;;  %v4315_v15 = vld [vmem:[%s4905_s30 + $0x620] ss:$8 sps:$4 sm:$0xff]  }
 0x118   : > { %2971 = vmatpush2.bf16.msra.mxu1 %v4246_v16  ;;  %2931 = vmatprep.subr.bf16.mxu0 %v4251_v17  ;;  %v4318_v16 = vld [vmem:[%s4905_s30 + $0x720] ss:$8 sps:$4 sm:$0xff]   ;;  %v4323_v17 = vld [vmem:[%s4905_s30 + $0x614] ss:$8 sps:$4 sm:$0xff]  }
 0x119   : > { %2972 = vmatprep.subr.bf16.mxu1 %v4254_v18  ;;  %v4326_v18 = vld [vmem:[%s4905_s30 + $0x714] ss:$8 sps:$4 sm:$0xff]  }
 0x11b   : > { %2932 = vmatpush2.bf16.msra.mxu0 %v4249_v19  ;;  %v4321_v19 = vld [vmem:[%s4905_s30 + $0x610] ss:$8 sps:$4 sm:$0xff]  }
 0x11c   : > { %2973 = vmatpush2.bf16.msra.mxu1 %v4252_v20  ;;  %2933 = vmatprep.subr.bf16.mxu0 %v4257_v21  ;;  %v4324_v20 = vld [vmem:[%s4905_s30 + $0x710] ss:$8 sps:$4 sm:$0xff]   ;;  %v4329_v21 = vld [vmem:[%s4905_s30 + $0x604] ss:$8 sps:$4 sm:$0xff]  }
 0x11d   : > { %2974 = vmatprep.subr.bf16.mxu1 %v4260_v22  ;;  %v4332_v22 = vld [vmem:[%s4905_s30 + $0x704] ss:$8 sps:$4 sm:$0xff]  }
 0x11f   : > { %2934 = vmatpush2.bf16.msra.mxu0 %v4255_v23  ;;  %v4327_v23 = vld [vmem:[%s4905_s30 + $0x600] ss:$8 sps:$4 sm:$0xff]  }
 0x120   : > { %2975 = vmatpush2.bf16.msra.mxu1 %v4258_v24  ;;  %2935 = vmatprep.subr.bf16.mxu0 %v4263_v25  ;;  %v4330_v24 = vld [vmem:[%s4905_s30 + $0x700] ss:$8 sps:$4 sm:$0xff]   ;;  %v4335_v25 = vld [vmem:[%s4905_s30 + $0x6f4] ss:$8 sps:$4 sm:$0xff]  }
 0x121   : > { %2976 = vmatprep.subr.bf16.mxu1 %v4266_v26  ;;  %v4338_v26 = vld [vmem:[%s4905_s30 + $0x7f4] ss:$8 sps:$4 sm:$0xff]  }
 0x123   : > { %2936 = vmatpush2.bf16.msra.mxu0 %v4261_v27  ;;  %v4333_v27 = vld [vmem:[%s4905_s30 + $0x6f0] ss:$8 sps:$4 sm:$0xff]  }
 0x124   : > { %2977 = vmatpush2.bf16.msra.mxu1 %v4264_v28  ;;  %2937 = vmatprep.subr.bf16.mxu0 %v4269_v29  ;;  %v4336_v28 = vld [vmem:[%s4905_s30 + $0x7f0] ss:$8 sps:$4 sm:$0xff]   ;;  %v4341_v29 = vld [vmem:[%s4905_s30 + $0x6e4] ss:$8 sps:$4 sm:$0xff]  }
 0x125   : > { %2978 = vmatprep.subr.bf16.mxu1 %v4272_v30  ;;  %v4344_v30 = vld [vmem:[%s4905_s30 + $0x7e4] ss:$8 sps:$4 sm:$0xff]  }
 0x127   : > { %2938 = vmatpush2.bf16.msra.mxu0 %v4267_v31  ;;  %v4339_v31 = vld [vmem:[%s4905_s30 + $0x6e0] ss:$8 sps:$4 sm:$0xff]  }
 0x128   : > { %2979 = vmatpush2.bf16.msra.mxu1 %v4270_v32  ;;  %2939 = vmatprep.subr.bf16.mxu0 %v4275_v35  ;;  %v4342_v32 = vld [vmem:[%s4905_s30 + $0x7e0] ss:$8 sps:$4 sm:$0xff]   ;;  %v4345_v35 = vld [vmem:[%s4905_s30 + $0x6d0] ss:$8 sps:$4 sm:$0xff]  }
 0x129   : > { %2980 = vmatprep.subr.bf16.mxu1 %v4278_v36  ;;  %v4348_v36 = vld [vmem:[%s4905_s30 + $0x7d0] ss:$8 sps:$4 sm:$0xff]  }
 0x12b   : > { %2940 = vmatpush2.bf16.msra.mxu0 %v4273_v37  ;;  %v4353_v37 = vld [vmem:[%s4905_s30 + $0x6c4] ss:$8 sps:$4 sm:$0xff]  }
 0x12c   : > { %2981 = vmatpush2.bf16.msra.mxu1 %v4276_v38  ;;  %2941 = vmatprep.subr.bf16.mxu0 %v4281_v39  ;;  %v4356_v38 = vld [vmem:[%s4905_s30 + $0x7c4] ss:$8 sps:$4 sm:$0xff]   ;;  %v4351_v39 = vld [vmem:[%s4905_s30 + $0x6c0] ss:$8 sps:$4 sm:$0xff]  }
 0x12d   : > { %2982 = vmatprep.subr.bf16.mxu1 %v4284_v44  ;;  %v4360_v44 = vld [vmem:[%s4905_s30 + $0x7b0] ss:$8 sps:$4 sm:$0xff]  }
 0x12f   : > { %2942 = vmatpush2.bf16.msra.mxu0 %v4279_v45  ;;  %v4365_v45 = vld [vmem:[%s4905_s30 + $0x6a4] ss:$8 sps:$4 sm:$0xff]  }
 0x130   : > { %2983 = vmatpush2.bf16.msra.mxu1 %v4282_v46  ;;  %2993 = vmatprep.subr.bf16.mxu0 %v4287_v51  ;;  %v4368_v46 = vld [vmem:[%s4905_s30 + $0x7a4] ss:$8 sps:$4 sm:$0xff]   ;;  %v817_v51 = vlaneseq }
 0x131   : > { %3034 = vmatprep.subr.bf16.mxu1 %v4290_v52  ;;  %v323_v52 = vld [vmem:[%s5461_s0 + $0x60] sm:$0x3f] }
 0x132   : > { %2944 = vmatmul.mubr.bf16.vlgmr.msra.gmra.mxu0 %v415_v53  ;;  %v325_v53 = vld [vmem:[%s5461_s0 + $0x70] sm:$0x3f]  ;;  %v818_v57 = vshrl.u32 %v817_v51, 7  ;;  %vm347_vm15 = vcmp.ge.f32.partialorder %v323_v52, 0.0 }
 0x133   : > { %2985 = vmatmul.mubr.bf16.vlgmr.msra.gmra.mxu1 %v417_v54  ;;  %2994 = vmatpush1.bf16.msra.mxu0 %v4285_v55  ;;  %v4369_v54 = vld [vmem:[%s4905_s30 + $0x690] ss:$8 sps:$4 sm:$0xff]   ;;  %vm349_vm0 = vcmp.ge.f32.partialorder %v325_v53, 0.0  ;;  %v4414_v51 = vld [vmem:[%s4905_s30 + $0x920] ss:$8 sps:$4 sm:$0xff]  }
 0x134   : > { %3035 = vmatpush1.bf16.msra.mxu1 %v4288_v58  ;;  %2995 = vmatprep.subr.bf16.mxu0 %v4293_v59  ;;  %v4372_v55 = vld [vmem:[%s4905_s30 + $0x790] ss:$8 sps:$4 sm:$0xff]   ;;  %v371_v58 = vmul.f32 0.01, %v323_v52  ;;  %v328_v59 = vld [vmem:[%s5461_s0 + $0x88] sm:$0x3f] }
 0x135   : > { %3036 = vmatprep.subr.bf16.mxu1 %v4296_v60  ;;  %3025 = vmatprep.mubr.bf16.mxu0 %v420_v61  ;;  %v373_v60 = vmul.f32 0.01, %v325_v53  ;;  %v330_v61 = vld [vmem:[%s5461_s0 + $0x98] sm:$0x3f]  ;;  %vm352_vm1 = vcmp.ge.f32.partialorder %v328_v59, 0.0 }
 0x136   : > { %3066 = vmatprep.mubr.bf16.mxu1 %v422_v62  ;;  %v4380_v62 = vld [vmem:[%s4905_s30 + $0x784] ss:$8 sps:$4 sm:$0xff]   ;;  %vm354_vm2 = vcmp.ge.f32.partialorder %v330_v61, 0.0 }
 0x137   : > { %2996 = vmatpush1.bf16.msra.mxu0 %v4291_v63  ;;  %v4375_v63 = vld [vmem:[%s4905_s30 + $0x680] ss:$8 sps:$4 sm:$0xff]  }
 0x138   : > { %3037 = vmatpush1.bf16.msra.mxu1 %v4294_v0  ;;  %2997 = vmatprep.subr.bf16.mxu0 %v4299_v1  ;;  %v4378_v0 = vld [vmem:[%s4905_s30 + $0x780] ss:$8 sps:$4 sm:$0xff]  }
 0x139   : > { %3038 = vmatprep.subr.bf16.mxu1 %v4302_v2  ;;  %v815_v1 = vld [vmem:[%s4912_s11] sm:$0x3]  ;;  %v819_v2 = vsub.s32 0, %v818_v57 }
 0x13b   : > { %2998 = vmatpush1.bf16.msra.mxu0 %v4297_v3  ;;  %v376_v3 = vmul.f32 0.01, %v328_v59 }
 0x13c   : > { %3039 = vmatpush1.bf16.msra.mxu1 %v4300_v4  ;;  %2999 = vmatprep.subr.bf16.mxu0 %v4305_v5  ;;  %v378_v4 = vmul.f32 0.01, %v330_v61  ;;  %v395_v5 = vsel %vm347_vm15, %v323_v52, %v371_v58  ;;  %v4419_v52 = vld [vmem:[%s4905_s30 + $0x814] ss:$8 sps:$4 sm:$0xff]   ;;  %v4423_v58 = vld [vmem:[%s4905_s30 + $0x800] ss:$8 sps:$4 sm:$0xff]  }
 0x13d   : > { %3040 = vmatprep.subr.bf16.mxu1 %v4308_v6  ;;  %v397_v6 = vsel %vm349_vm0, %v325_v53, %v373_v60  ;;  %v4422_v53 = vld [vmem:[%s4905_s30 + $0x914] ss:$8 sps:$4 sm:$0xff]  }
 0x13e   : > { %v4431_v60 = vld [vmem:[%s4905_s30 + $0x8f4] ss:$8 sps:$4 sm:$0xff]  }
 0x13f   : > { %3000 = vmatpush1.bf16.msra.mxu0 %v4303_v7  ;;  %v4383_v7 = vld [vmem:[%s4905_s30 + $0x874] ss:$8 sps:$4 sm:$0xff]  }
 0x140   : > { %3041 = vmatpush1.bf16.msra.mxu1 %v4306_v8  ;;  %3001 = vmatprep.subr.bf16.mxu0 %v4311_v9  ;;  %v4386_v8 = vld [vmem:[%s4905_s30 + $0x974] ss:$8 sps:$4 sm:$0xff]   ;;  %v823_v9 = vsub.s32 1, %v818_v57  ;;  %v4428_v57 = vld [vmem:[%s4905_s30 + $0x904] ss:$8 sps:$4 sm:$0xff]  }
 0x141   : > { %3042 = vmatprep.subr.bf16.mxu1 %v4314_v10  ;;  %v419_v10 = vpack.c.bf16 %v395_v5, %v395_v5  ;;  %v4446_v5 = vld [vmem:[%s4905_s30 + $0x9d4] ss:$8 sps:$4 sm:$0xff]  }
 0x143   : > { %3002 = vmatpush1.bf16.msra.mxu0 %v4309_v11  ;;  %v421_v11 = vpack.c.bf16 %v397_v6, %v397_v6  ;;  %v4441_v6 = vld [vmem:[%s4905_s30 + $0x8d0] ss:$8 sps:$4 sm:$0xff]  }
 0x144   : > { %3043 = vmatpush1.bf16.msra.mxu1 %v4312_v12  ;;  %3003 = vmatprep.subr.bf16.mxu0 %v4317_v13  ;;  %v4381_v12 = vld [vmem:[%s4905_s30 + $0x870] ss:$8 sps:$4 sm:$0xff]  }
 0x145   : > { %3044 = vmatprep.subr.bf16.mxu1 %v4320_v14  ;;  %v4384_v13 = vld [vmem:[%s4905_s30 + $0x970] ss:$8 sps:$4 sm:$0xff]   ;;  %v400_v14 = vsel %vm352_vm1, %v328_v59, %v376_v3  ;;  %v4426_v59 = vld [vmem:[%s4905_s30 + $0x900] ss:$8 sps:$4 sm:$0xff]  }
 0x146   : > { %v4438_v3 = vld [vmem:[%s4905_s30 + $0x9e0] ss:$8 sps:$4 sm:$0xff]  }
 0x147   : > { %3004 = vmatpush1.bf16.msra.mxu0 %v4315_v15  ;;  %v402_v15 = vsel %vm354_vm2, %v330_v61, %v378_v4  ;;  %v4434_v61 = vld [vmem:[%s4905_s30 + $0x9f4] ss:$8 sps:$4 sm:$0xff]  }
 0x148   : > { %3045 = vmatpush1.bf16.msra.mxu1 %v4318_v16  ;;  %3005 = vmatprep.subr.bf16.mxu0 %v4323_v17  ;;  %v820_v16 = vrot.slane %v815_v1, %v819_v2  ;;  %v4389_v17 = vld [vmem:[%s4905_s30 + $0x864] ss:$8 sps:$4 sm:$0xff]   ;;  %v4435_v2 = vld [vmem:[%s4905_s30 + $0x8e0] ss:$8 sps:$4 sm:$0xff]   ;;  %v4443_v4 = vld [vmem:[%s4905_s30 + $0x8d4] ss:$8 sps:$4 sm:$0xff]  }
 0x149   : > { %3046 = vmatprep.subr.bf16.mxu1 %v4326_v18  ;;  %v4392_v18 = vld [vmem:[%s4905_s30 + $0x964] ss:$8 sps:$4 sm:$0xff]  }
 0x14b   : > { %3006 = vmatpush1.bf16.msra.mxu0 %v4321_v19  ;;  %v824_v19 = vrot.slane %v815_v1, %v823_v9  ;;  %v4440_v1 = vld [vmem:[%s4905_s30 + $0x9e4] ss:$8 sps:$4 sm:$0xff]  }
 0x14c   : > { %3047 = vmatpush1.bf16.msra.mxu1 %v4324_v20  ;;  %3007 = vmatprep.subr.bf16.mxu0 %v4329_v21  ;;  %v424_v20 = vpack.c.bf16 %v400_v14, %v400_v14  ;;  %v426_v21 = vpack.c.bf16 %v402_v15, %v402_v15  ;;  %v4452_v9 = vld [vmem:[%s4905_s30 + $0x9c4] ss:$8 sps:$4 sm:$0xff]   ;;  %v4453_v14 = vld [vmem:[%s4905_s30 + $0x8b0] ss:$8 sps:$4 sm:$0xff]  }
 0x14d   : > { %3048 = vmatprep.subr.bf16.mxu1 %v4332_v22  ;;  %v4456_v15 = vld [vmem:[%s4905_s30 + $0x9b0] ss:$8 sps:$4 sm:$0xff]  }
 0x14f   : > { %3008 = vmatpush1.bf16.msra.mxu0 %v4327_v23 }
 0x150   : > { %3049 = vmatpush1.bf16.msra.mxu1 %v4330_v24  ;;  %3009 = vmatprep.subr.bf16.mxu0 %v4335_v25  ;;  %v4387_v24 = vld [vmem:[%s4905_s30 + $0x860] ss:$8 sps:$4 sm:$0xff]  }
 0x151   : > { %3050 = vmatprep.subr.bf16.mxu1 %v4338_v26  ;;  %v4390_v25 = vld [vmem:[%s4905_s30 + $0x960] ss:$8 sps:$4 sm:$0xff]  }
 0x153   : > { %3010 = vmatpush2.bf16.msra.mxu0 %v4333_v27  ;;  %v4395_v27 = vld [vmem:[%s4905_s30 + $0x854] ss:$8 sps:$4 sm:$0xff]  }
 0x154   : > { %3051 = vmatpush2.bf16.msra.mxu1 %v4336_v28  ;;  %3011 = vmatprep.subr.bf16.mxu0 %v4341_v29 }
 0x155   : > { %3052 = vmatprep.subr.bf16.mxu1 %v4344_v30  ;;  %v4398_v30 = vld [vmem:[%s4905_s30 + $0x954] ss:$8 sps:$4 sm:$0xff]  }
 0x157   : > { %3012 = vmatpush2.bf16.msra.mxu0 %v4339_v31 }
 0x158   : > { %3053 = vmatpush2.bf16.msra.mxu1 %v4342_v32  ;;  %3013 = vmatprep.subr.bf16.mxu0 %v4347_v33 }
 0x159   : > { %3054 = vmatprep.subr.bf16.mxu1 %v4350_v34 }
 0x15b   : > { %3014 = vmatpush2.bf16.msra.mxu0 %v4345_v35  ;;  %v4393_v35 = vld [vmem:[%s4905_s30 + $0x850] ss:$8 sps:$4 sm:$0xff]  }
 0x15c   : > { %3055 = vmatpush2.bf16.msra.mxu1 %v4348_v36  ;;  %3015 = vmatprep.subr.bf16.mxu0 %v4353_v37  ;;  %v4396_v36 = vld [vmem:[%s4905_s30 + $0x950] ss:$8 sps:$4 sm:$0xff]  }
 0x15d   : > { %3056 = vmatprep.subr.bf16.mxu1 %v4356_v38  ;;  %v4401_v38 = vld [vmem:[%s4905_s30 + $0x844] ss:$8 sps:$4 sm:$0xff]  }
 0x15f   : > { %3016 = vmatpush2.bf16.msra.mxu0 %v4351_v39 }
 0x160   : > { %3057 = vmatpush2.bf16.msra.mxu1 %v4354_v40  ;;  %3017 = vmatprep.subr.bf16.mxu0 %v4359_v41  ;;  %v4404_v41 = vld [vmem:[%s4905_s30 + $0x944] ss:$8 sps:$4 sm:$0xff]  }
 0x161   : > { %3058 = vmatprep.subr.bf16.mxu1 %v4362_v42  ;;  %v4399_v42 = vld [vmem:[%s4905_s30 + $0x840] ss:$8 sps:$4 sm:$0xff]  }
 0x163   : > { %3018 = vmatpush2.bf16.msra.mxu0 %v4357_v43  ;;  %v4402_v43 = vld [vmem:[%s4905_s30 + $0x940] ss:$8 sps:$4 sm:$0xff]  }
 0x164   : > { %3059 = vmatpush2.bf16.msra.mxu1 %v4360_v44  ;;  %3019 = vmatprep.subr.bf16.mxu0 %v4365_v45  ;;  %v4407_v44 = vld [vmem:[%s4905_s30 + $0x834] ss:$8 sps:$4 sm:$0xff]  }
 0x165   : > { %3060 = vmatprep.subr.bf16.mxu1 %v4368_v46  ;;  %v4410_v45 = vld [vmem:[%s4905_s30 + $0x934] ss:$8 sps:$4 sm:$0xff]   ;;  %v4405_v46 = vld [vmem:[%s4905_s30 + $0x830] ss:$8 sps:$4 sm:$0xff]  }
 0x167   : > { %3020 = vmatpush2.bf16.msra.mxu0 %v4363_v47  ;;  %v4408_v47 = vld [vmem:[%s4905_s30 + $0x930] ss:$8 sps:$4 sm:$0xff]  }
 0x168   : > { %3061 = vmatpush2.bf16.msra.mxu1 %v4366_v48  ;;  %3021 = vmatprep.subr.bf16.mxu0 %v4371_v49  ;;  %v4413_v48 = vld [vmem:[%s4905_s30 + $0x824] ss:$8 sps:$4 sm:$0xff]  }
 0x169   : > { %3062 = vmatprep.subr.bf16.mxu1 %v4374_v50  ;;  %v4416_v49 = vld [vmem:[%s4905_s30 + $0x924] ss:$8 sps:$4 sm:$0xff]   ;;  %v4411_v50 = vld [vmem:[%s4905_s30 + $0x820] ss:$8 sps:$4 sm:$0xff]  }
 0x16b   : > { %3022 = vmatpush2.bf16.msra.mxu0 %v4369_v54  ;;  %v4417_v54 = vld [vmem:[%s4905_s30 + $0x810] ss:$8 sps:$4 sm:$0xff]  }
 0x16c   : > { %3063 = vmatpush2.bf16.msra.mxu1 %v4372_v55  ;;  %3023 = vmatprep.subr.bf16.mxu0 %v4377_v56  ;;  %v4420_v55 = vld [vmem:[%s4905_s30 + $0x910] ss:$8 sps:$4 sm:$0xff]   ;;  %v4425_v56 = vld [vmem:[%s4905_s30 + $0x804] ss:$8 sps:$4 sm:$0xff]  }
 0x16d   : > { %3064 = vmatprep.subr.bf16.mxu1 %v4380_v62  ;;  %v4429_v62 = vld [vmem:[%s4905_s30 + $0x8f0] ss:$8 sps:$4 sm:$0xff]  }
 0x16f   : > { %3024 = vmatpush2.bf16.msra.mxu0 %v4375_v63  ;;  %v4432_v63 = vld [vmem:[%s4905_s30 + $0x9f0] ss:$8 sps:$4 sm:$0xff]  }
 0x170   : > { %3065 = vmatpush2.bf16.msra.mxu1 %v4378_v0  ;;  %3075 = vmatprep.subr.bf16.mxu0 %v4383_v7  ;;  %v4437_v0 = vld [vmem:[%s4905_s30 + $0x8e4] ss:$8 sps:$4 sm:$0xff]   ;;  %v4444_v7 = vld [vmem:[%s4905_s30 + $0x9d0] ss:$8 sps:$4 sm:$0xff]  }
 0x171   : > { %3116 = vmatprep.subr.bf16.mxu1 %v4386_v8  ;;  %v4449_v8 = vld [vmem:[%s4905_s30 + $0x8c4] ss:$8 sps:$4 sm:$0xff]  }
 0x172   : > { %v2781_v22 = vpop.f32.mrf.mxu0  ;;  %3026 = vmatmul.mubr.bf16.vlgmr.msra.gmra.mxu0 %v419_v10  ;;  %v4447_v10 = vld [vmem:[%s4905_s30 + $0x8c0] ss:$8 sps:$4 sm:$0xff]  }
 0x173   : > { %v2822_v23 = vpop.f32.mrf.mxu1  ;;  %3067 = vmatmul.mubr.bf16.vlgmr.msra.gmra.mxu1 %v421_v11  ;;  %v2782_v26 = vadd.f32 %v2781_v22, %v820_v16  ;;  %3076 = vmatpush1.bf16.msra.mxu0 %v4381_v12  ;;  %v4450_v11 = vld [vmem:[%s4905_s30 + $0x9c0] ss:$8 sps:$4 sm:$0xff]   ;;  %v4455_v12 = vld [vmem:[%s4905_s30 + $0x8b4] ss:$8 sps:$4 sm:$0xff]   ;;  %v4461_v16 = vld [vmem:[%s4905_s30 + $0x8a4] ss:$8 sps:$4 sm:$0xff]  }
 0x174   : > { %3117 = vmatpush1.bf16.msra.mxu1 %v4384_v13  ;;  %v2783_v28 = vpop.f32.mrf.mxu0  ;;  %3077 = vmatprep.subr.bf16.mxu0 %v4389_v17  ;;  %v4458_v13 = vld [vmem:[%s4905_s30 + $0x9b4] ss:$8 sps:$4 sm:$0xff]   ;;  %v4464_v17 = vld [vmem:[%s4905_s30 + $0x9a4] ss:$8 sps:$4 sm:$0xff]  }
 0x175   : > { %v2824_v29 = vpop.f32.mrf.mxu1  ;;  %3118 = vmatprep.subr.bf16.mxu1 %v4392_v18  ;;  %v5251_v31 = vadd.f32 %v2822_v23, %v2782_v26  ;;  %v2784_v32 = vadd.f32 %v2783_v28, %v824_v19  ;;  %3107 = vmatprep.mubr.bf16.mxu0 %v424_v20  ;;  %v4459_v18 = vld [vmem:[%s4905_s30 + $0x8a0] ss:$8 sps:$4 sm:$0xff]   ;;  %v327_v20 = vld [vmem:[%s5461_s0 + $0x80] sm:$0x3f] }
 0x176   : > { %3148 = vmatprep.mubr.bf16.mxu1 %v426_v21  ;;  %v2785_v33 = vpop.f32.mrf.mxu0  ;;  %v4462_v19 = vld [vmem:[%s4905_s30 + $0x9a0] ss:$8 sps:$4 sm:$0xff]   ;;  %v4467_v21 = vld [vmem:[%s4905_s30 + $0x894] ss:$8 sps:$4 sm:$0xff]   ;;  %v375_v26 = vmul.f32 0.01, %v327_v20 }
 0x177   : > { %v2826_v34 = vpop.f32.mrf.mxu1  ;;  %v5255_v37 = vadd.f32 %v2824_v29, %v2784_v32  ;;  %3078 = vmatpush1.bf16.msra.mxu0 %v4387_v24  ;;  %v4470_v22 = vld [vmem:[%s4905_s30 + $0x994] ss:$8 sps:$4 sm:$0xff]   ;;  %v329_v23 = vld [vmem:[%s5461_s0 + $0x90] sm:$0x3f]  ;;  %v4465_v24 = vld [vmem:[%s4905_s30 + $0x890] ss:$8 sps:$4 sm:$0xff]  }
 0x178   : > { %3119 = vmatpush1.bf16.msra.mxu1 %v4390_v25  ;;  %v2786_v39 = vpop.f32.mrf.mxu0  ;;  %3079 = vmatprep.subr.bf16.mxu0 %v4395_v27  ;;  %v4468_v25 = vld [vmem:[%s4905_s30 + $0x990] ss:$8 sps:$4 sm:$0xff]   ;;  %v377_v27 = vmul.f32 0.01, %v329_v23  ;;  %v332_v28 = vld [vmem:[%s5461_s0 + $0xa8] sm:$0x3f] }
 0x179   : > { %v2827_v40 = vpop.f32.mrf.mxu1  ;;  %3120 = vmatprep.subr.bf16.mxu1 %v4398_v30  ;;  %v334_v29 = vld [vmem:[%s5461_s0 + $0xb8] sm:$0x3f]  ;;  %v4473_v30 = vld [vmem:[%s4905_s30 + $0x884] ss:$8 sps:$4 sm:$0xff]   ;;  %vm351_vm3 = vcmp.ge.f32.partialorder %v327_v20, 0.0  ;;  %vm353_vm4 = vcmp.ge.f32.partialorder %v329_v23, 0.0 }
 0x17a   : > { %v4476_v32 = vld [vmem:[%s4905_s30 + $0x984] ss:$8 sps:$4 sm:$0xff]   ;;  %v380_v33 = vmul.f32 0.01, %v332_v28  ;;  %v382_v34 = vmul.f32 0.01, %v334_v29  ;;  %v401_v39 = vsel %vm353_vm4, %v329_v23, %v377_v27 }
 0x17b   : > { %3080 = vmatpush1.bf16.msra.mxu0 %v4393_v35  ;;  %v4471_v35 = vld [vmem:[%s4905_s30 + $0x880] ss:$8 sps:$4 sm:$0xff]   ;;  %vm356_vm5 = vcmp.ge.f32.partialorder %v332_v28, 0.0  ;;  %vm358_vm6 = vcmp.ge.f32.partialorder %v334_v29, 0.0  ;;  %v4479_v40 = vld [vmem:[%s4905_s30 + $0xa74] ss:$8 sps:$4 sm:$0xff]  }
 0x17c   : > { %3121 = vmatpush1.bf16.msra.mxu1 %v4396_v36  ;;  %3081 = vmatprep.subr.bf16.mxu0 %v4401_v38  ;;  %v4474_v36 = vld [vmem:[%s4905_s30 + $0x980] ss:$8 sps:$4 sm:$0xff]   ;;  %v399_v38 = vsel %vm351_vm3, %v327_v20, %v375_v26  ;;  %v4521_v20 = vld [vmem:[%s4905_s30 + $0xa04] ss:$8 sps:$4 sm:$0xff]   ;;  %v4525_v26 = vld [vmem:[%s4905_s30 + $0xaf0] ss:$8 sps:$4 sm:$0xff]  }
 0x17d   : > { %3122 = vmatprep.subr.bf16.mxu1 %v4404_v41  ;;  %v4482_v41 = vld [vmem:[%s4905_s30 + $0xb74] ss:$8 sps:$4 sm:$0xff]   ;;  %v4522_v23 = vld [vmem:[%s4905_s30 + $0xb00] ss:$8 sps:$4 sm:$0xff]   ;;  %v4528_v27 = vld [vmem:[%s4905_s30 + $0xbf0] ss:$8 sps:$4 sm:$0xff]  }
 0x17f   : > { %3082 = vmatpush1.bf16.msra.mxu0 %v4399_v42  ;;  %v423_v42 = vpack.c.bf16 %v399_v38, %v399_v38  ;;  %v4545_v38 = vld [vmem:[%s4905_s30 + $0xac4] ss:$8 sps:$4 sm:$0xff]  }
 0x180   : > { %3123 = vmatpush1.bf16.msra.mxu1 %v4402_v43  ;;  %3083 = vmatprep.subr.bf16.mxu0 %v4407_v44  ;;  %v425_v43 = vpack.c.bf16 %v401_v39, %v401_v39  ;;  %v404_v44 = vsel %vm356_vm5, %v332_v28, %v380_v33  ;;  %v4533_v28 = vld [vmem:[%s4905_s30 + $0xae4] ss:$8 sps:$4 sm:$0xff]   ;;  %v4539_v33 = vld [vmem:[%s4905_s30 + $0xad4] ss:$8 sps:$4 sm:$0xff]  }
 0x181   : > { %3124 = vmatprep.subr.bf16.mxu1 %v4410_v45  ;;  %v406_v45 = vsel %vm358_vm6, %v334_v29, %v382_v34  ;;  %v4536_v29 = vld [vmem:[%s4905_s30 + $0xbe4] ss:$8 sps:$4 sm:$0xff]   ;;  %v4542_v34 = vld [vmem:[%s4905_s30 + $0xbd4] ss:$8 sps:$4 sm:$0xff]  }
 0x182   : > { %v4548_v39 = vld [vmem:[%s4905_s30 + $0xbc4] ss:$8 sps:$4 sm:$0xff]  }
 0x183   : > { %3084 = vmatpush1.bf16.msra.mxu0 %v4405_v46  ;;  %v4477_v46 = vld [vmem:[%s4905_s30 + $0xa70] ss:$8 sps:$4 sm:$0xff]  }
 0x184   : > { %3125 = vmatpush1.bf16.msra.mxu1 %v4408_v47  ;;  %3085 = vmatprep.subr.bf16.mxu0 %v4413_v48  ;;  %v4480_v47 = vld [vmem:[%s4905_s30 + $0xb70] ss:$8 sps:$4 sm:$0xff]   ;;  %v4485_v48 = vld [vmem:[%s4905_s30 + $0xa64] ss:$8 sps:$4 sm:$0xff]  }
 0x185   : > { %3126 = vmatprep.subr.bf16.mxu1 %v4416_v49  ;;  %v4488_v49 = vld [vmem:[%s4905_s30 + $0xb64] ss:$8 sps:$4 sm:$0xff]  }
 0x187   : > { %3086 = vmatpush1.bf16.msra.mxu0 %v4411_v50  ;;  %v428_v50 = vpack.c.bf16 %v404_v44, %v404_v44  ;;  %v4549_v44 = vld [vmem:[%s4905_s30 + $0xab0] ss:$8 sps:$4 sm:$0xff]  }
 0x188   : > { %3127 = vmatpush1.bf16.msra.mxu1 %v4414_v51  ;;  %3087 = vmatprep.subr.bf16.mxu0 %v4419_v52  ;;  %v430_v51 = vpack.c.bf16 %v406_v45, %v406_v45  ;;  %v4552_v45 = vld [vmem:[%s4905_s30 + $0xbb0] ss:$8 sps:$4 sm:$0xff]  }
 0x189   : > { %3128 = vmatprep.subr.bf16.mxu1 %v4422_v53 }
 0x18b   : > { %3088 = vmatpush1.bf16.msra.mxu0 %v4417_v54 }
 0x18c   : > { %3129 = vmatpush1.bf16.msra.mxu1 %v4420_v55  ;;  %3089 = vmatprep.subr.bf16.mxu0 %v4425_v56  ;;  %v4483_v55 = vld [vmem:[%s4905_s30 + $0xa60] ss:$8 sps:$4 sm:$0xff]  }
 0x18d   : > { %3130 = vmatprep.subr.bf16.mxu1 %v4428_v57  ;;  %v4486_v56 = vld [vmem:[%s4905_s30 + $0xb60] ss:$8 sps:$4 sm:$0xff]  }
 0x18f   : > { %3090 = vmatpush1.bf16.msra.mxu0 %v4423_v58 }
 0x190   : > { %3131 = vmatpush1.bf16.msra.mxu1 %v4426_v59  ;;  %3091 = vmatprep.subr.bf16.mxu0 %v4431_v60  ;;  %v4491_v59 = vld [vmem:[%s4905_s30 + $0xa54] ss:$8 sps:$4 sm:$0xff]  }
 0x191   : > { %3132 = vmatprep.subr.bf16.mxu1 %v4434_v61  ;;  %v4494_v60 = vld [vmem:[%s4905_s30 + $0xb54] ss:$8 sps:$4 sm:$0xff]  }
 0x193   : > { %3092 = vmatpush2.bf16.msra.mxu0 %v4429_v62 }
 0x194   : > { %3133 = vmatpush2.bf16.msra.mxu1 %v4432_v63  ;;  %3093 = vmatprep.subr.bf16.mxu0 %v4437_v0 }
 0x195   : > { %3134 = vmatprep.subr.bf16.mxu1 %v4440_v1  ;;  %v4489_v1 = vld [vmem:[%s4905_s30 + $0xa50] ss:$8 sps:$4 sm:$0xff]  }
 0x197   : > { %3094 = vmatpush2.bf16.msra.mxu0 %v4435_v2  ;;  %v4492_v2 = vld [vmem:[%s4905_s30 + $0xb50] ss:$8 sps:$4 sm:$0xff]  }
 0x198   : > { %3135 = vmatpush2.bf16.msra.mxu1 %v4438_v3  ;;  %3095 = vmatprep.subr.bf16.mxu0 %v4443_v4 }
 0x199   : > { %3136 = vmatprep.subr.bf16.mxu1 %v4446_v5  ;;  %v4500_v5 = vld [vmem:[%s4905_s30 + $0xb44] ss:$8 sps:$4 sm:$0xff]  }
 0x19b   : > { %3096 = vmatpush2.bf16.msra.mxu0 %v4441_v6  ;;  %v4495_v6 = vld [vmem:[%s4905_s30 + $0xa40] ss:$8 sps:$4 sm:$0xff]  }
 0x19c   : > { %3137 = vmatpush2.bf16.msra.mxu1 %v4444_v7  ;;  %3097 = vmatprep.subr.bf16.mxu0 %v4449_v8  ;;  %v4498_v7 = vld [vmem:[%s4905_s30 + $0xb40] ss:$8 sps:$4 sm:$0xff]   ;;  %v4503_v8 = vld [vmem:[%s4905_s30 + $0xa34] ss:$8 sps:$4 sm:$0xff]  }
 0x19d   : > { %3138 = vmatprep.subr.bf16.mxu1 %v4452_v9  ;;  %v4506_v9 = vld [vmem:[%s4905_s30 + $0xb34] ss:$8 sps:$4 sm:$0xff]  }
 0x19f   : > { %3098 = vmatpush2.bf16.msra.mxu0 %v4447_v10  ;;  %v4501_v10 = vld [vmem:[%s4905_s30 + $0xa30] ss:$8 sps:$4 sm:$0xff]  }
 0x1a0   : > { %3139 = vmatpush2.bf16.msra.mxu1 %v4450_v11  ;;  %3099 = vmatprep.subr.bf16.mxu0 %v4455_v12  ;;  %v4504_v11 = vld [vmem:[%s4905_s30 + $0xb30] ss:$8 sps:$4 sm:$0xff]   ;;  %v4509_v12 = vld [vmem:[%s4905_s30 + $0xa24] ss:$8 sps:$4 sm:$0xff]  }
 0x1a1   : > { %3140 = vmatprep.subr.bf16.mxu1 %v4458_v13  ;;  %v4512_v13 = vld [vmem:[%s4905_s30 + $0xb24] ss:$8 sps:$4 sm:$0xff]  }
 0x1a3   : > { %3100 = vmatpush2.bf16.msra.mxu0 %v4453_v14  ;;  %v4507_v14 = vld [vmem:[%s4905_s30 + $0xa20] ss:$8 sps:$4 sm:$0xff]  }
 0x1a4   : > { %3141 = vmatpush2.bf16.msra.mxu1 %v4456_v15  ;;  %3101 = vmatprep.subr.bf16.mxu0 %v4461_v16  ;;  %v4510_v15 = vld [vmem:[%s4905_s30 + $0xb20] ss:$8 sps:$4 sm:$0xff]   ;;  %v4515_v16 = vld [vmem:[%s4905_s30 + $0xa14] ss:$8 sps:$4 sm:$0xff]  }
 0x1a5   : > { %3142 = vmatprep.subr.bf16.mxu1 %v4464_v17  ;;  %v4518_v17 = vld [vmem:[%s4905_s30 + $0xb14] ss:$8 sps:$4 sm:$0xff]  }
 0x1a7   : > { %3102 = vmatpush2.bf16.msra.mxu0 %v4459_v18  ;;  %v4513_v18 = vld [vmem:[%s4905_s30 + $0xa10] ss:$8 sps:$4 sm:$0xff]  }
 0x1a8   : > { %3143 = vmatpush2.bf16.msra.mxu1 %v4462_v19  ;;  %3103 = vmatprep.subr.bf16.mxu0 %v4467_v21  ;;  %v4516_v19 = vld [vmem:[%s4905_s30 + $0xb10] ss:$8 sps:$4 sm:$0xff]   ;;  %v4524_v21 = vld [vmem:[%s4905_s30 + $0xb04] ss:$8 sps:$4 sm:$0xff]  }
 0x1a9   : > { %3144 = vmatprep.subr.bf16.mxu1 %v4470_v22  ;;  %v4519_v22 = vld [vmem:[%s4905_s30 + $0xa00] ss:$8 sps:$4 sm:$0xff]  }
 0x1ab   : > { %3104 = vmatpush2.bf16.msra.mxu0 %v4465_v24  ;;  %v4527_v24 = vld [vmem:[%s4905_s30 + $0xaf4] ss:$8 sps:$4 sm:$0xff]  }
 0x1ac   : > { %3145 = vmatpush2.bf16.msra.mxu1 %v4468_v25  ;;  %3105 = vmatprep.subr.bf16.mxu0 %v4473_v30  ;;  %v4530_v25 = vld [vmem:[%s4905_s30 + $0xbf4] ss:$8 sps:$4 sm:$0xff]   ;;  %v4531_v30 = vld [vmem:[%s4905_s30 + $0xae0] ss:$8 sps:$4 sm:$0xff]  }
 0x1ad   : > { %3146 = vmatprep.subr.bf16.mxu1 %v4476_v32  ;;  %v4534_v32 = vld [vmem:[%s4905_s30 + $0xbe0] ss:$8 sps:$4 sm:$0xff]  }
 0x1af   : > { %3106 = vmatpush2.bf16.msra.mxu0 %v4471_v35  ;;  %v4537_v35 = vld [vmem:[%s4905_s30 + $0xad0] ss:$8 sps:$4 sm:$0xff]  }
 0x1b0   : > { %3147 = vmatpush2.bf16.msra.mxu1 %v4474_v36  ;;  %3157 = vmatprep.subr.bf16.mxu0 %v4479_v40  ;;  %v4540_v36 = vld [vmem:[%s4905_s30 + $0xbd0] ss:$8 sps:$4 sm:$0xff]   ;;  %v4543_v40 = vld [vmem:[%s4905_s30 + $0xac0] ss:$8 sps:$4 sm:$0xff]  }
 0x1b1   : > { %3198 = vmatprep.subr.bf16.mxu1 %v4482_v41  ;;  %v4546_v41 = vld [vmem:[%s4905_s30 + $0xbc0] ss:$8 sps:$4 sm:$0xff]  }
 0x1b2   : > { %v2863_v52 = vpop.f32.mrf.mxu0  ;;  %3108 = vmatmul.mubr.bf16.vlgmr.msra.gmra.mxu0 %v423_v42  ;;  %v4551_v42 = vld [vmem:[%s4905_s30 + $0xab4] ss:$8 sps:$4 sm:$0xff]  }
 0x1b3   : > { %v2904_v53 = vpop.f32.mrf.mxu1  ;;  %3149 = vmatmul.mubr.bf16.vlgmr.msra.gmra.mxu1 %v425_v43  ;;  %v2864_v54 = vadd.f32 %v2863_v52, %v5251_v31  ;;  %3158 = vmatpush1.bf16.msra.mxu0 %v4477_v46  ;;  %v4554_v43 = vld [vmem:[%s4905_s30 + $0xbb4] ss:$8 sps:$4 sm:$0xff]   ;;  %v4557_v46 = vld [vmem:[%s4905_s30 + $0xaa4] ss:$8 sps:$4 sm:$0xff]  }
 0x1b4   : > { %3199 = vmatpush1.bf16.msra.mxu1 %v4480_v47  ;;  %v2865_v57 = vpop.f32.mrf.mxu0  ;;  %3159 = vmatprep.subr.bf16.mxu0 %v4485_v48  ;;  %v4560_v47 = vld [vmem:[%s4905_s30 + $0xba4] ss:$8 sps:$4 sm:$0xff]   ;;  %v4555_v48 = vld [vmem:[%s4905_s30 + $0xaa0] ss:$8 sps:$4 sm:$0xff]   ;;  %v331_v52 = vld [vmem:[%s5461_s0 + $0xa0] sm:$0x3f] }
 0x1b5   : > { %v2906_v58 = vpop.f32.mrf.mxu1  ;;  %3200 = vmatprep.subr.bf16.mxu1 %v4488_v49  ;;  %v5332_v61 = vadd.f32 %v2904_v53, %v2864_v54  ;;  %v2866_v62 = vadd.f32 %v2865_v57, %v5255_v37  ;;  %3189 = vmatprep.mubr.bf16.mxu0 %v428_v50  ;;  %v4497_v37 = vld [vmem:[%s4905_s30 + $0xa44] ss:$8 sps:$4 sm:$0xff]   ;;  %v4558_v49 = vld [vmem:[%s4905_s30 + $0xba0] ss:$8 sps:$4 sm:$0xff]   ;;  %v4563_v50 = vld [vmem:[%s4905_s30 + $0xa94] ss:$8 sps:$4 sm:$0xff]  }
 0x1b6   : > { %3230 = vmatprep.mubr.bf16.mxu1 %v430_v51  ;;  %v2867_v31 = vpop.f32.mrf.mxu0  ;;  %v4566_v51 = vld [vmem:[%s4905_s30 + $0xb94] ss:$8 sps:$4 sm:$0xff]   ;;  %v333_v53 = vld [vmem:[%s5461_s0 + $0xb0] sm:$0x3f]  ;;  %v4561_v54 = vld [vmem:[%s4905_s30 + $0xa90] ss:$8 sps:$4 sm:$0xff]  }
 0x1b7   : > { %v2908_v63 = vpop.f32.mrf.mxu1  ;;  %v5335_v0 = vadd.f32 %v2906_v58, %v2866_v62  ;;  %3160 = vmatpush1.bf16.msra.mxu0 %v4483_v55  ;;  %v4564_v55 = vld [vmem:[%s4905_s30 + $0xb90] ss:$8 sps:$4 sm:$0xff]   ;;  %v381_v57 = vmul.f32 0.01, %v333_v53  ;;  %v4569_v58 = vld [vmem:[%s4905_s30 + $0xa84] ss:$8 sps:$4 sm:$0xff]  }
 0x1b8   : > { %3201 = vmatpush1.bf16.msra.mxu1 %v4486_v56  ;;  %v2868_v3 = vpop.f32.mrf.mxu0  ;;  %3161 = vmatprep.subr.bf16.mxu0 %v4491_v59  ;;  %v379_v56 = vmul.f32 0.01, %v331_v52  ;;  %v4572_v59 = vld [vmem:[%s4905_s30 + $0xb84] ss:$8 sps:$4 sm:$0xff]   ;;  %vm355_vm7 = vcmp.ge.f32.partialorder %v331_v52, 0.0  ;;  %vm357_vm8 = vcmp.ge.f32.partialorder %v333_v53, 0.0 }
 0x1b9   : > { %v2909_v4 = vpop.f32.mrf.mxu1  ;;  %3202 = vmatprep.subr.bf16.mxu1 %v4494_v60  ;;  %v4567_v60 = vld [vmem:[%s4905_s30 + $0xa80] ss:$8 sps:$4 sm:$0xff]   ;;  %v405_v63 = vsel %vm357_vm8, %v333_v53, %v381_v57  ;;  %v3246_v57 = vld [vmem:[%s4926_s14] sm:$0xff] }
 0x1ba   : > { %v4570_v62 = vld [vmem:[%s4905_s30 + $0xb80] ss:$8 sps:$4 sm:$0xff]   ;;  %v403_v31 = vsel %vm355_vm7, %v331_v52, %v379_v56  ;;  %v3262_v56 = vld [vmem:[%s4926_s14 + $0x80] sm:$0xff] }
 0x1bb   : > { %3162 = vmatpush1.bf16.msra.mxu0 %v4489_v1  ;;  %v427_v1 = vpack.c.bf16 %v403_v31, %v403_v31 }
 0x1bc   : > { %3203 = vmatpush1.bf16.msra.mxu1 %v4492_v2  ;;  %3163 = vmatprep.subr.bf16.mxu0 %v4497_v37  ;;  %v429_v2 = vpack.c.bf16 %v405_v63, %v405_v63 }
 0x1bd   : > { %3204 = vmatprep.subr.bf16.mxu1 %v4500_v5 }
 0x1bf   : > { %3164 = vmatpush1.bf16.msra.mxu0 %v4495_v6 }
 0x1c0   : > { %3205 = vmatpush1.bf16.msra.mxu1 %v4498_v7  ;;  %3165 = vmatprep.subr.bf16.mxu0 %v4503_v8 }
 0x1c1   : > { %3206 = vmatprep.subr.bf16.mxu1 %v4506_v9 }
 0x1c3   : > { %3166 = vmatpush1.bf16.msra.mxu0 %v4501_v10 }
 0x1c4   : > { %3207 = vmatpush1.bf16.msra.mxu1 %v4504_v11  ;;  %3167 = vmatprep.subr.bf16.mxu0 %v4509_v12 }
 0x1c5   : > { %3208 = vmatprep.subr.bf16.mxu1 %v4512_v13 }
 0x1c7   : > { %3168 = vmatpush1.bf16.msra.mxu0 %v4507_v14  ;;  %v3277_v14 = vld [vmem:[%s4926_s14 + $0xf8] sm:$0xff] }
 0x1c8   : > { %3209 = vmatpush1.bf16.msra.mxu1 %v4510_v15  ;;  %3169 = vmatprep.subr.bf16.mxu0 %v4515_v16  ;;  %v3261_v15 = vld [vmem:[%s4926_s14 + $0x78] sm:$0xff]  ;;  %v3276_v16 = vld [vmem:[%s4926_s14 + $0xf0] sm:$0xff] }
 0x1c9   : > { %3210 = vmatprep.subr.bf16.mxu1 %v4518_v17  ;;  %v3275_v17 = vld [vmem:[%s4926_s14 + $0xe8] sm:$0xff] }
 0x1cb   : > { %3170 = vmatpush1.bf16.msra.mxu0 %v4513_v18  ;;  %v3274_v18 = vld [vmem:[%s4926_s14 + $0xe0] sm:$0xff] }
 0x1cc   : > { %3211 = vmatpush1.bf16.msra.mxu1 %v4516_v19  ;;  %3171 = vmatprep.subr.bf16.mxu0 %v4521_v20  ;;  %v3258_v19 = vld [vmem:[%s4926_s14 + $0x60] sm:$0xff]  ;;  %v3273_v20 = vld [vmem:[%s4926_s14 + $0xd8] sm:$0xff] }
 0x1cd   : > { %3212 = vmatprep.subr.bf16.mxu1 %v4524_v21  ;;  %v3257_v21 = vld [vmem:[%s4926_s14 + $0x58] sm:$0xff] }
 0x1cf   : > { %3172 = vmatpush1.bf16.msra.mxu0 %v4519_v22  ;;  %v3272_v22 = vld [vmem:[%s4926_s14 + $0xd0] sm:$0xff] }
 0x1d0   : > { %3213 = vmatpush1.bf16.msra.mxu1 %v4522_v23  ;;  %3173 = vmatprep.subr.bf16.mxu0 %v4527_v24  ;;  %v3256_v23 = vld [vmem:[%s4926_s14 + $0x50] sm:$0xff]  ;;  %v3271_v24 = vld [vmem:[%s4926_s14 + $0xc8] sm:$0xff] }
 0x1d1   : > { %3214 = vmatprep.subr.bf16.mxu1 %v4530_v25  ;;  %v3255_v25 = vld [vmem:[%s4926_s14 + $0x48] sm:$0xff] }
 0x1d3   : > { %3174 = vmatpush2.bf16.msra.mxu0 %v4525_v26  ;;  %v3270_v26 = vld [vmem:[%s4926_s14 + $0xc0] sm:$0xff] }
 0x1d4   : > { %3215 = vmatpush2.bf16.msra.mxu1 %v4528_v27  ;;  %3175 = vmatprep.subr.bf16.mxu0 %v4533_v28  ;;  %v3254_v27 = vld [vmem:[%s4926_s14 + $0x40] sm:$0xff]  ;;  %v3269_v28 = vld [vmem:[%s4926_s14 + $0xb8] sm:$0xff] }
 0x1d5   : > { %3216 = vmatprep.subr.bf16.mxu1 %v4536_v29  ;;  %v3253_v29 = vld [vmem:[%s4926_s14 + $0x38] sm:$0xff] }
 0x1d7   : > { %3176 = vmatpush2.bf16.msra.mxu0 %v4531_v30  ;;  %v3268_v30 = vld [vmem:[%s4926_s14 + $0xb0] sm:$0xff] }
 0x1d8   : > { %3217 = vmatpush2.bf16.msra.mxu1 %v4534_v32  ;;  %3177 = vmatprep.subr.bf16.mxu0 %v4539_v33  ;;  %v3252_v32 = vld [vmem:[%s4926_s14 + $0x30] sm:$0xff]  ;;  %v3267_v33 = vld [vmem:[%s4926_s14 + $0xa8] sm:$0xff] }
 0x1d9   : > { %3218 = vmatprep.subr.bf16.mxu1 %v4542_v34  ;;  %v3251_v34 = vld [vmem:[%s4926_s14 + $0x28] sm:$0xff] }
 0x1db   : > { %3178 = vmatpush2.bf16.msra.mxu0 %v4537_v35 }
 0x1dc   : > { %3219 = vmatpush2.bf16.msra.mxu1 %v4540_v36  ;;  %3179 = vmatprep.subr.bf16.mxu0 %v4545_v38  ;;  %v3266_v38 = vld [vmem:[%s4926_s14 + $0xa0] sm:$0xff] }
 0x1dd   : > { %3220 = vmatprep.subr.bf16.mxu1 %v4548_v39 }
 0x1df   : > { %3180 = vmatpush2.bf16.msra.mxu0 %v4543_v40  ;;  %v3250_v40 = vld [vmem:[%s4926_s14 + $0x20] sm:$0xff] }
 0x1e0   : > { %3221 = vmatpush2.bf16.msra.mxu1 %v4546_v41  ;;  %3181 = vmatprep.subr.bf16.mxu0 %v4551_v42 }
 0x1e1   : > { %3222 = vmatprep.subr.bf16.mxu1 %v4554_v43  ;;  %v3265_v43 = vld [vmem:[%s4926_s14 + $0x98] sm:$0xff] }
 0x1e3   : > { %3182 = vmatpush2.bf16.msra.mxu0 %v4549_v44 }
 0x1e4   : > { %3223 = vmatpush2.bf16.msra.mxu1 %v4552_v45  ;;  %3183 = vmatprep.subr.bf16.mxu0 %v4557_v46  ;;  %v3249_v46 = vld [vmem:[%s4926_s14 + $0x18] sm:$0xff] }
 0x1e5   : > { %3224 = vmatprep.subr.bf16.mxu1 %v4560_v47 }
 0x1e7   : > { %3184 = vmatpush2.bf16.msra.mxu0 %v4555_v48 }
 0x1e8   : > { %3225 = vmatpush2.bf16.msra.mxu1 %v4558_v49  ;;  %3185 = vmatprep.subr.bf16.mxu0 %v4563_v50  ;;  %v3264_v49 = vld [vmem:[%s4926_s14 + $0x90] sm:$0xff] }
 0x1e9   : > { %3226 = vmatprep.subr.bf16.mxu1 %v4566_v51  ;;  %v3248_v51 = vld [vmem:[%s4926_s14 + $0x10] sm:$0xff] }
 0x1eb   : > { %3186 = vmatpush2.bf16.msra.mxu0 %v4561_v54  ;;  %v3263_v54 = vld [vmem:[%s4926_s14 + $0x88] sm:$0xff] }
 0x1ec   : > { %3227 = vmatpush2.bf16.msra.mxu1 %v4564_v55  ;;  %3187 = vmatprep.subr.bf16.mxu0 %v4569_v58  ;;  %v3247_v55 = vld [vmem:[%s4926_s14 + $0x8] sm:$0xff] }
 0x1ed   : > { %3228 = vmatprep.subr.bf16.mxu1 %v4572_v59 }
 0x1ef   : > { %3188 = vmatpush2.bf16.msra.mxu0 %v4567_v60 }
 0x1f0   : > { %3229 = vmatpush2.bf16.msra.mxu1 %v4570_v62  ;;  %3894 = vmatprep.subr.mxu0 %v3277_v14 }
 0x1f2   : > { %v2945_v3 = vpop.f32.mrf.mxu0  ;;  %3190 = vmatmul.mubr.bf16.vlgmr.msra.gmra.mxu0 %v427_v1 }
 0x1f3   : > { %v2986_v4 = vpop.f32.mrf.mxu1  ;;  %3231 = vmatmul.mubr.bf16.vlgmr.msra.gmra.mxu1 %v429_v2  ;;  %v2946_v37 = vadd.f32 %v2945_v3, %v5332_v61  ;;  %v3260_v61 = vld [vmem:[%s4926_s14 + $0x70] sm:$0xff]  ;;  %3895 = vmatpush3.msra.mxu0 %v3261_v15 }
 0x1f4   : > { %v2947_v5 = vpop.f32.mrf.mxu0  ;;  %3896 = vmatprep.subr.mxu0 %v3276_v16 }
 0x1f5   : > { %v2988_v6 = vpop.f32.mrf.mxu1  ;;  %v2987_v7 = vadd.f32 %v2986_v4, %v2946_v37  ;;  %v2948_v8 = vadd.f32 %v2947_v5, %v5335_v0  ;;  %v3259_v0 = vld [vmem:[%s4926_s14 + $0x68] sm:$0xff]  ;;  %3897 = vmatpush3.msra.mxu0 %v3260_v61 }
 0x1f6   : > { %v2949_v9 = vpop.f32.mrf.mxu0  ;;  %3898 = vmatprep.subr.mxu0 %v3275_v17 }
 0x1f7   : > { %v2990_v10 = vpop.f32.mrf.mxu1  ;;  %v2989_v11 = vadd.f32 %v2988_v6, %v2948_v8  ;;  %3899 = vmatpush3.msra.mxu0 %v3259_v0 }
 0x1f8   : > { %v2950_v12 = vpop.f32.mrf.mxu0  ;;  %3900 = vmatprep.subr.mxu0 %v3274_v18 }
 0x1f9   : > { %v2991_v13 = vpop.f32.mrf.mxu1  ;;  %3901 = vmatpush3.msra.mxu0 %v3258_v19 }
 0x1fa   : > { %3902 = vmatprep.subr.mxu0 %v3273_v20 }
 0x1fb   : > { %3903 = vmatpush3.msra.mxu0 %v3257_v21  ;;  %v3245_v21 = vld [vmem:[#allocation2] sm:$0x3f] }
 0x1fc   : > { %3904 = vmatprep.subr.mxu0 %v3272_v22 }
 0x1fd   : > { %3905 = vmatpush3.msra.mxu0 %v3256_v23 }
 0x1fe   : > { %3906 = vmatprep.subr.mxu0 %v3271_v24 }
 0x1ff   : > { %3907 = vmatpush3.msra.mxu0 %v3255_v25 }
 0x200   : > { %3908 = vmatprep.subr.mxu0 %v3270_v26 }
 0x201   : > { %3909 = vmatpush3.msra.mxu0 %v3254_v27 }
 0x202   : > { %3910 = vmatprep.subr.mxu0 %v3269_v28 }
 0x203   : > { %3911 = vmatpush3.msra.mxu0 %v3253_v29 }
 0x204   : > { %3912 = vmatprep.subr.mxu0 %v3268_v30 }
 0x205   : > { %3913 = vmatpush3.msra.mxu0 %v3252_v32 }
 0x206   : > { %3914 = vmatprep.subr.mxu0 %v3267_v33 }
 0x207   : > { %3915 = vmatpush3.msra.mxu0 %v3251_v34 }
 0x208   : > { %3916 = vmatprep.subr.mxu0 %v3266_v38 }
 0x209   : > { %3917 = vmatpush3.msra.mxu0 %v3250_v40 }
 0x20a   : > { %3918 = vmatprep.subr.mxu0 %v3265_v43 }
 0x20b   : > { %3919 = vmatpush3.msra.mxu0 %v3249_v46 }
 0x20c   : > { %3920 = vmatprep.subr.mxu0 %v3264_v49 }
 0x20d   : > { %3921 = vmatpush3.msra.mxu0 %v3248_v51 }
 0x20e   : > { %3922 = vmatprep.subr.mxu0 %v3263_v54 }
 0x20f   : > { %3923 = vmatpush3.msra.mxu0 %v3247_v55 }
 0x210   : > { %3924 = vmatprep.subr.mxu0 %v3262_v56 }
 0x211   : > { %3925 = vmatpush3.msra.mxu0 %v3246_v57 }
 0x232   : > { %v3027_v35 = vpop.f32.mrf.mxu0 }
 0x233   : > { %v3068_v36 = vpop.f32.mrf.mxu1  ;;  %v3028_v39 = vadd.f32 %v3027_v35, %v2987_v7 }
 0x234   : > { %v3029_v41 = vpop.f32.mrf.mxu0 }
 0x235   : > { %v3070_v42 = vpop.f32.mrf.mxu1  ;;  %v3069_v44 = vadd.f32 %v3068_v36, %v3028_v39  ;;  %v3030_v45 = vadd.f32 %v3029_v41, %v2989_v11 }
 0x236   : > { %v3031_v47 = vpop.f32.mrf.mxu0 }
 0x237   : > { %v3072_v48 = vpop.f32.mrf.mxu1  ;;  %v3071_v50 = vadd.f32 %v3070_v42, %v3030_v45 }
 0x238   : > { %v3032_v52 = vpop.f32.mrf.mxu0 }
 0x239   : > { %v3073_v53 = vpop.f32.mrf.mxu1 }
 0x272   : > { %v3109_v58 = vpop.f32.mrf.mxu0 }
 0x273   : > { %v3150_v59 = vpop.f32.mrf.mxu1  ;;  %v3110_v60 = vadd.f32 %v3109_v58, %v3069_v44 }
 0x274   : > { %v3111_v62 = vpop.f32.mrf.mxu0 }
 0x275   : > { %v3152_v31 = vpop.f32.mrf.mxu1  ;;  %v3151_v63 = vadd.f32 %v3150_v59, %v3110_v60  ;;  %v3112_v37 = vadd.f32 %v3111_v62, %v3071_v50 }
 0x276   : > { %v3113_v1 = vpop.f32.mrf.mxu0 }
 0x277   : > { %v3154_v2 = vpop.f32.mrf.mxu1  ;;  %v3153_v7 = vadd.f32 %v3152_v31, %v3112_v37 }
 0x278   : > { %v3114_v3 = vpop.f32.mrf.mxu0 }
 0x279   : > { %v3155_v4 = vpop.f32.mrf.mxu1 }
 0x2b2   : > { %v3191_v5 = vpop.f32.mrf.mxu0 }
 0x2b3   : > { %v3232_v6 = vpop.f32.mrf.mxu1  ;;  %v3192_v8 = vadd.f32 %v3191_v5, %v3151_v63 }
 0x2b4   : > { %v3193_v9 = vpop.f32.mrf.mxu0 }
 0x2b5   : > { %v3234_v10 = vpop.f32.mrf.mxu1  ;;  %v3233_v11 = vadd.f32 %v3232_v6, %v3192_v8  ;;  %v3194_v12 = vadd.f32 %v3193_v9, %v3153_v7 }
 0x2b6   : > { %v3195_v13 = vpop.f32.mrf.mxu0 }
 0x2b7   : > { %v3236_v14 = vpop.f32.mrf.mxu1  ;;  %v3235_v15 = vadd.f32 %v3234_v10, %v3194_v12  ;;  %v3241_v16 = vmul.f32 0.01, %v3233_v11  ;;  %vm3239_vm9 = vcmp.ge.f32.partialorder %v3233_v11, 0.0 }
 0x2b8   : > { %v3196_v61 = vpop.f32.mrf.mxu0 }
 0x2b9   : > { %v3237_v17 = vpop.f32.mrf.mxu1  ;;  %v3242_v0 = vmul.f32 0.01, %v3235_v15  ;;  %vm3240_vm10 = vcmp.ge.f32.partialorder %v3235_v15, 0.0  ;;  %v3243_v19 = vsel %vm3239_vm9, %v3233_v11, %v3241_v16 }
 0x2bb   : > { %v3244_v18 = vsel %vm3240_vm10, %v3235_v15, %v3242_v0 }
 0x2bc   : > { %3342 = vmatprep.mubr.f32.mxu0 %v3244_v18 }
 0x2bd   : > { %3343 = vmatmul.mubr.f32.vlgmr.msra.gmra.mxu0 %v3243_v19 }
 0x37d   : > { %v3926_v20 = vpop.f32.mrf.mxu0 }
 0x37f   : > { %v3927_v22 = vpop.f32.mrf.mxu0 }
 0x380   : > { %v3928_v23 = vadd.f32 %v3927_v22, %v3926_v20  ;;  %3354 = sbr.rel (%p3886_p6) target bundleno = 975 (0x3cf), region = 60 }
 0x382   : > { %v3348_v24 = vadd.f32 %v3928_v23, %v3245_v21 }
 0x384   : > { %3350 = vst.msk [vmem:[#allocation2] sm:$0x3f] %vm3349_vm11, %v3348_v24 }
 0x385   : > { %v3887_v26 = vld [vmem:[#allocation8] ss:$0 sm:$0xff] }
 0x38b   : > { %v3355_v25 = vld [vmem:[#allocation2] sm:$0x3f] }
 0x38c   : > { %v3363_v27 = vadd.f32 %v3887_v26, %v3355_v25 }
 0x38e   : > { %v3364_v28 = vsel %vm3349_vm11, %v3363_v27, -inf }
 0x38f   : > { %v3365_v29 = vrot.slane %v3364_v28, 4 }
 0x391   : > { %v3366_v30 = vmax.f32 %v3364_v28, %v3365_v29 }
 0x393   : > { %v3367_v32 = vrot.slane %v3366_v30, 2 }
 0x395   : > { %v3368_v33 = vmax.f32 %v3366_v30, %v3367_v32 }
 0x397   : > { %v3369_v34 = vrot.slane %v3368_v33, 1 }
 0x399   : > { %v3370_v35 = vmax.f32 %v3368_v33, %v3369_v34 }
 0x39b   : > { %v3371_v36 = vsub.f32 %v3363_v27, %v3370_v35 }
 0x39d   : > { %v3372_v38 = vmul.f32 1.442695, %v3371_v36 }
 0x39f   : > { %4573 = vpow2.f32 %v3372_v38 }
 0x3ac   : > { %v4574_v39 = vpop.eup %4573 }
 0x3ad   : > { %v3374_v40 = vsel %vm3349_vm11, %v4574_v39, 0.0 }
 0x3ae   : > { %v3375_v41 = vrot.slane %v3374_v40, 4 }
 0x3b0   : > { %v3376_v42 = vadd.f32 %v3375_v41, %v3374_v40 }
 0x3b2   : > { %v3377_v43 = vrot.slane %v3376_v42, 2 }
 0x3b4   : > { %v3378_v44 = vadd.f32 %v3377_v43, %v3376_v42 }
 0x3b6   : > { %v3379_v45 = vrot.slane %v3378_v44, 1 }
 0x3b8   : > { %v3380_v46 = vadd.f32 %v3379_v45, %v3378_v44 }
 0x3ba   : > { %4575 = vlog2.f32 %v3380_v46 }
 0x3c7   : > { %v4576_v47 = vpop.eup %4575 }
 0x3c8   : > { %v3382_v48 = vmul.f32 0.6931472, %v4576_v47 }
 0x3ca   : > { %v3383_v49 = vadd.f32 %v3382_v48, %v3370_v35 }
 0x3cc   : > { %v3384_v50 = vsub.f32 %v3363_v27, %v3383_v49 }
 0x3ce   : > { %3385 = vst.msk [vmem:[#allocation9] sm:$0x3f] %vm3349_vm11, %v3384_v50 }
 0x3cf PF: > { %p3957_p7 = scmp.eq.s32.totalorder %s4788_s22, 3  ;;  %s4738_s30 = smov [#allocation9]  }
 0x3d0   : > { %s3393_s14 = sshll.u32 %s4738_s30, 4  ;;  %s3394_s14 = int_to_ptr.vmem [resolvable:$true] %s3393_s14 }
 0x3d1   : > { %s4659_s27 = scalar_lea.vmem %s3394_s14, 128  ;;  %p4666_p13 = scmp.lt.s32.totalorder %s3394_s14, %s3394_s14 }
 0x3d2   : > { %p4660_p11 = scmp.ne.s32.totalorder %s3394_s14, %s4659_s27  ;;  %p4667_p8 = scmp.lt.s32.totalorder %s4659_s27, %s4659_s27 }
 0x3d4   : > { %p4661_p4 = pnand %p4660_p11, %p3957_p7  ;;  %p4668_p12 = por %p4667_p8, %p4666_p13 }
 0x3d6   : > { %p4662_p9 = pneg %p4661_p4 }
 0x3d8   : > { %p4669_p1 = pnand %p4668_p12, %p4662_p9 }
 0x3da   : > { %4672 = shalt.err (!%p4669_p1)
}
 0x3db   : > { %3940 = dma.vmem_to_hbm [thread:$0]  (%p3957_p7), %s3394_s14, 128, %s5466_s5, [#allocation5]  }
 0x3dc   : > { %4712 = dma.done.wait (%p3957_p7), [#allocation5], 128  }
 0x3dd   : > { %4714 = vsyncadd (%p3957_p7), [#allocation5], 4294967168 }
 0x3de PF: > { %s5485_s1 = sld [smem:[#allocation14_spill]]  ;;  %p19_p5 = scmp.ge.s32.totalorder %s4791_s23, 6  }
 0x3df   : > { %s5486_s18 = smov %s4721_s19  ;;  %s5487_s19 = smov %s4725_s20 }
 0x3e0   : > { %s5489_s21 = smov %s4791_s23  ;;  %21 = sbr.rel (!%p19_p5) target bundleno = 9 (0x9), region = 105 }
 0x3e4   : > { %s5488_s20 = smov %s5485_s1 }
 0x3e5   :  { %3406 = vsyncpa [#allocation4], 1 }
 0x3e6   :  { %3408 = vsyncpa [#allocation4 + $0x1], 1 }
 0x3e7   :  { %3409 = vsyncpa [#allocation7], 1 }
 0x3e8   :  { %3411 = vsyncpa [#allocation7 + $0x1], 1 }
 0x3e9   :  { %3412 = vsyncpa [#allocation5], 1 }
 0x3ea   :  { %3414 = vsyncpa [#allocation5 + $0x1], 1 }

</bundles_post_ra>
